<compile_context>
chip_gen: v6e
topology: v6e:2x2x1
jax: 0.10.0
libtpu: 0.0.40
codegen_flags: <defaults>
</compile_context>

<pallas_src>
import functools

import jax
import jax.numpy as jnp
import numpy as np
from jax import lax
from jax.experimental import pallas as pl
from jax.experimental.pallas import tpu as pltpu

EPS = 1e-5


# ------------------------------ fused kernel ------------------------------- #

def _fused_decoder_kernel(x_ref, w1_ref, b1_ref, w2_ref, b2_ref, pavg_ref,
                          lng_ref, lnb_ref, w3_ref, b3_ref,
                          e_ref, mseli_ref, g_ref, msel5_ref, m1_ref, d1b_ref,
                          sind_ref, rind_ref, bng_ref, bnb_ref,
                          wt_ref, bto_ref,
                          o_ref, pad_ref, lhs_ref, *, B, C, OW, OH, K, P):
    """Whole DecoderCNNMedium forward for the full batch in one grid step."""
    f32 = jnp.float32
    YP = OW + K - 1            # y-padded rows per image
    ROW = OH * C               # one image row, (x, channel) flattened (no x-pad)

    # ---- slot MLP: fc1 -> relu -> fc2 -> LayerNorm -> relu -> fc3 ------------
    # Rows are batch elements; the slot dim is packed into columns, so the
    # per-slot Linears are block-diagonal matmuls and the per-slot LayerNorm
    # mean/var broadcasts are a single precomputed averaging matrix P_avg.
    x = x_ref[...]                                                        # (B, S*D)
    h = jnp.dot(x, w1_ref[...], preferred_element_type=f32) + b1_ref[...]
    h = jnp.maximum(h, 0.0)                                               # act1
    h = jnp.dot(h, w2_ref[...], preferred_element_type=f32) + b2_ref[...]
    mu = jnp.dot(h, pavg_ref[...], preferred_element_type=f32)            # per-slot mean, bcast
    cent = h - mu
    var = jnp.dot(cent * cent, pavg_ref[...], preferred_element_type=f32)
    h = cent * lax.rsqrt(var + EPS) * lng_ref[...] + lnb_ref[...]
    h = jnp.maximum(h, 0.0)                                               # act2
    hflat = jnp.dot(h, w3_ref[...], preferred_element_type=f32) + b3_ref[...]  # (B, S*w*h)

    # ---- deconv1 (k=5, s=5), produced directly in (B*OW, ROW) row layout -----
    # row r = (b, y): expand batch rows to output rows, mask to the latent row
    # i(y), fold the latent-row axis, mask to the kernel row ki(y), then one
    # matmul with the small (5*S*h_lat, ROW) deconv1 weight.  No reshapes, no
    # per-row scatter; all constants are tiny.
    r = jnp.dot(e_ref[...], hflat, preferred_element_type=f32)            # (B*OW, S*w*h)
    r = r * mseli_ref[...]                                                # keep latent row i(y)
    r = jnp.dot(r, g_ref[...], preferred_element_type=f32)                # (B*OW, 5*S*h_lat)
    r = r * msel5_ref[...]                                                # keep kernel row ki(y)
    d1 = jnp.dot(r, m1_ref[...], preferred_element_type=f32) + d1b_ref[...]  # (B*OW, ROW)

    # ---- BatchNorm2d (training batch stats, E[x^2]-mean^2) + relu ------------
    inv_n = 1.0 / float(B * OW * OH)
    ch_sum = jnp.sum(jnp.dot(d1, sind_ref[...], preferred_element_type=f32),
                     axis=0, keepdims=True)                               # (1, C)
    ch_sq = jnp.sum(jnp.dot(d1 * d1, sind_ref[...], preferred_element_type=f32),
                    axis=0, keepdims=True)                                # (1, C)
    mean = ch_sum * inv_n
    var_c = ch_sq * inv_n - mean * mean
    scale = bng_ref[...] * lax.rsqrt(var_c + EPS)                         # (1, C)
    shift = bnb_ref[...] - mean * scale
    scale_row = jnp.dot(scale, rind_ref[...], preferred_element_type=f32)  # (1, ROW)
    shift_row = jnp.dot(shift, rind_ref[...], preferred_element_type=f32)
    padn = jnp.maximum(d1 * scale_row + shift_row, 0.0)                   # act3, (B*OW, ROW)

    # ---- y-padded layout: zero only the 2*P pad rows, bulk interior stores ----
    zpad = jnp.zeros((P, ROW), f32)                                       # hoisted
    for b in range(B):
        base = b * YP
        pad_ref[base:base + P, :] = zpad
        pad_ref[base + P:base + P + OW, :] = padn[b * OW:(b + 1) * OW, :]  # one bulk store/image
        pad_ref[base + P + OW:base + YP, :] = zpad

    # ---- deconv2 (k=9, pad=4): single deep-contraction dot -------------------
    # LHS (B*OW, K*ROW) is built from 9 lane-aligned shifted-window stores per
    # image; one (B*OW, K*ROW) @ (K*ROW, CO*OH) matmul replaces B*K tiny dots.
    for b in range(B):
        for dy in range(K):
            lhs_ref[b * OW:(b + 1) * OW, dy * ROW:(dy + 1) * ROW] = \
                pad_ref[b * YP + dy: b * YP + dy + OW, :]
    out = jnp.dot(lhs_ref[...], wt_ref[...], preferred_element_type=f32) + bto_ref[...]
    o_ref[...] = out                                                      # (B*OW, CO*OH), one store


# --------------------------- one-time param prep ---------------------------- #

def precompute_decoder_params(params, *, batch, num_slots, input_dim, hidden, output_size):
    """Hoisted, one-time preprocessing of weights into kernel-friendly matrices."""
    del input_dim  # implied by params
    CO, W_img, H_img = output_size
    w_lat, h_lat = W_img // 5, H_img // 5
    OW, OH = W_img, H_img
    K, P = 9, 4
    S, C, B = num_slots, hidden, batch
    out_dim = w_lat * h_lat
    ROW = OH * C
    SH = S * h_lat
    f32 = np.float32

    w1 = np.asarray(params["w1"], f32); b1 = np.asarray(params["b1"], f32).reshape(-1)
    w2 = np.asarray(params["w2"], f32); b2 = np.asarray(params["b2"], f32).reshape(-1)
    ln_g = np.asarray(params["ln_g"], f32).reshape(-1)
    ln_b = np.asarray(params["ln_b"], f32).reshape(-1)
    w3 = np.asarray(params["w3"], f32); b3 = np.asarray(params["b3"], f32).reshape(-1)
    d1w = np.asarray(params["deconv1_w"], f32)          # (S, C, 5, 5)
    d1b = np.asarray(params["deconv1_b"], f32)          # (C,)
    bng = np.asarray(params["bn_g"], f32); bnb = np.asarray(params["bn_b"], f32)
    d2w = np.asarray(params["deconv2_w"], f32)          # (C, CO, 9, 9)
    d2b = np.asarray(params["deconv2_b"], f32)          # (CO,)

    def block_diag(w, n):
        a, b_ = w.shape
        out = np.zeros((n * a, n * b_), f32)
        for s in range(n):
            out[s * a:(s + 1) * a, s * b_:(s + 1) * b_] = w
        return out

    prep = {}
    # block-diagonal per-slot MLP + LayerNorm averaging matrix
    prep["w1bd"] = jnp.asarray(block_diag(w1, S))
    prep["b1t"] = jnp.asarray(np.tile(b1, S)[None, :])
    prep["w2bd"] = jnp.asarray(block_diag(w2, S))
    prep["b2t"] = jnp.asarray(np.tile(b2, S)[None, :])
    prep["pavg"] = jnp.asarray(np.kron(np.eye(S, dtype=f32), np.full((C, C), 1.0 / C, f32)))
    prep["ln_gt"] = jnp.asarray(np.tile(ln_g, S)[None, :])
    prep["ln_bt"] = jnp.asarray(np.tile(ln_b, S)[None, :])
    prep["w3bd"] = jnp.asarray(block_diag(w3, S))        # cols ordered (s, i, j)
    prep["b3t"] = jnp.asarray(np.tile(b3, S)[None, :])

    # deconv1 structured operands (row-expansion / masks / small weight)
    nrow = B * OW
    e_exp = np.zeros((nrow, B), f32)
    mseli = np.zeros((nrow, S * out_dim), f32)
    msel5 = np.zeros((nrow, 5 * SH), f32)
    for r in range(nrow):
        b, y = divmod(r, OW)
        i0, ki0 = divmod(y, 5)
        e_exp[r, b] = 1.0
        for s in range(S):
            c0 = s * out_dim + i0 * h_lat
            mseli[r, c0:c0 + h_lat] = 1.0
        msel5[r, ki0 * SH:(ki0 + 1) * SH] = 1.0
    g_mat = np.zeros((S * out_dim, 5 * SH), f32)
    for s in range(S):
        for i in range(w_lat):
            for j in range(h_lat):
                for ki in range(5):
                    g_mat[s * out_dim + i * h_lat + j, ki * SH + s * h_lat + j] = 1.0
    m1p = np.zeros((5 * SH, ROW), f32)
    for ki in range(5):
        for s in range(S):
            for j in range(h_lat):
                for kj in range(5):
                    xo = 5 * j + kj
                    m1p[ki * SH + s * h_lat + j, xo * C:(xo + 1) * C] = d1w[s, :, ki, kj]
    prep["e_exp"] = jnp.asarray(e_exp)
    prep["mseli"] = jnp.asarray(mseli)
    prep["g_mat"] = jnp.asarray(g_mat)
    prep["msel5"] = jnp.asarray(msel5)
    prep["m1p"] = jnp.asarray(m1p)
    prep["d1bias"] = jnp.asarray(np.tile(d1b, OH)[None, :])      # (1, ROW), cols (x, c)

    # BatchNorm channel reduce / broadcast indicators (no x-padding columns)
    s_ind = np.tile(np.eye(C, dtype=f32), (OH, 1))               # (ROW, C)
    prep["s_ind"] = jnp.asarray(s_ind)
    prep["r_ind"] = jnp.asarray(np.ascontiguousarray(s_ind.T))   # (C, ROW)
    prep["bn_g"] = jnp.asarray(bng[None, :])
    prep["bn_b"] = jnp.asarray(bnb[None, :])

    # deconv2 (k=9, pad=4) fused row-Toeplitz weight: (K*ROW, CO*OH)
    wt = np.zeros((K, OH, C, CO, OH), f32)
    for dy in range(K):
        ky = K - 1 - dy
        for xo in range(OH):                 # output x
            for kx in range(K):
                xin = xo + P - kx
                if 0 <= xin < OH:
                    wt[dy, xin, :, :, xo] = d2w[:, :, ky, kx]
    prep["wt"] = jnp.asarray(wt.reshape(K * ROW, CO * OH))
    prep["btoe"] = jnp.asarray(np.repeat(d2b, OH)[None, :])      # (1, CO*OH), cols (co, x)
    return prep


# ------------------------------ forward wrapper ----------------------------- #

def decoder_cnn_medium_forward(ins, prep, *, num_slots, input_dim, hidden, output_size):
    CO, W_img, H_img = output_size
    B = ins.shape[0]
    OW, OH = W_img, H_img
    K, P = 9, 4
    YP = OW + K - 1
    ROW = OH * hidden

    vmem = pl.BlockSpec(memory_space=pltpu.MemorySpace.VMEM)
    kern = functools.partial(_fused_decoder_kernel, B=B, C=hidden,
                             OW=OW, OH=OH, K=K, P=P)
    x_flat = ins.reshape(B, num_slots * input_dim).astype(jnp.float32)

    out = pl.pallas_call(
        kern,
        out_shape=jax.ShapeDtypeStruct((B * OW, CO * OH), jnp.float32),
        in_specs=[vmem] * 22,
        out_specs=vmem,
        scratch_shapes=[pltpu.VMEM((B * YP, ROW), jnp.float32),      # y-padded image rows
                        pltpu.VMEM((B * OW, K * ROW), jnp.float32)],  # fused deconv2 LHS
        compiler_params=pltpu.CompilerParams(vmem_limit_bytes=16 * 1024 * 1024),
    )(x_flat, prep["w1bd"], prep["b1t"], prep["w2bd"], prep["b2t"], prep["pavg"],
      prep["ln_gt"], prep["ln_bt"], prep["w3bd"], prep["b3t"],
      prep["e_exp"], prep["mseli"], prep["g_mat"], prep["msel5"], prep["m1p"],
      prep["d1bias"], prep["s_ind"], prep["r_ind"], prep["bn_g"], prep["bn_b"],
      prep["wt"], prep["btoe"])
    # kernel output is lane-dense (B*OW, CO*OH); cheap NCHW relayout in XLA
    return out.reshape(B, OW, CO, OH).transpose(0, 2, 1, 3)


# --------------------------- params & pure-JAX ref -------------------------- #

def init_params(key, input_dim, hidden_dim, num_slots, output_size):
    C_out, W_img, H_img = output_size
    w_lat, h_lat = W_img // 5, H_img // 5
    out_dim = w_lat * h_lat
    ks = jax.random.split(key, 9)

    def rnd(k, shape, scale=0.1):
        return (scale * jax.random.normal(k, shape)).astype(jnp.float32)

    return dict(
        w1=rnd(ks[0], (input_dim, hidden_dim)),
        b1=0.01 * jnp.ones((1, hidden_dim), jnp.float32),
        w2=rnd(ks[1], (hidden_dim, hidden_dim)),
        b2=0.01 * jnp.ones((1, hidden_dim), jnp.float32),
        ln_g=jnp.ones((1, hidden_dim), jnp.float32),
        ln_b=jnp.zeros((1, hidden_dim), jnp.float32),
        w3=rnd(ks[2], (hidden_dim, out_dim)),
        b3=0.01 * jnp.ones((1, out_dim), jnp.float32),
        # torch ConvTranspose2d weight layout: (in_channels, out_channels, kH, kW)
        deconv1_w=rnd(ks[3], (num_slots, hidden_dim, 5, 5)),
        deconv1_b=rnd(ks[4], (hidden_dim,)),
        bn_g=(1.0 + rnd(ks[5], (hidden_dim,))),
        bn_b=rnd(ks[6], (hidden_dim,)),
        deconv2_w=rnd(ks[7], (hidden_dim, C_out, 9, 9)),
        deconv2_b=rnd(ks[8], (C_out,)),
    )


def reference_forward(ins, params, *, num_slots, map_size):
    """Pure-JAX reference mirroring PyTorch semantics (training-mode BN)."""
    C_out, w_lat, h_lat = map_size
    B, S, D_in = ins.shape
    hidden = params["w1"].shape[1]
    OW, OH = w_lat * 5, h_lat * 5

    x = ins.reshape(B * S, D_in)
    h = jax.nn.relu(x @ params["w1"] + params["b1"])
    h2 = h @ params["w2"] + params["b2"]
    mu = h2.mean(-1, keepdims=True)
    var = ((h2 - mu) ** 2).mean(-1, keepdims=True)
    h2 = jax.nn.relu((h2 - mu) / jnp.sqrt(var + EPS) * params["ln_g"] + params["ln_b"])
    h3 = h2 @ params["w3"] + params["b3"]
    hc = h3.reshape(B, S, w_lat, h_lat)

    # deconv1 (k=5, s=5)
    d1 = jnp.einsum("bcij,cokl->boikjl", hc, params["deconv1_w"]).reshape(B, hidden, OW, OH)
    d1 = d1 + params["deconv1_b"][None, :, None, None]

    # BatchNorm2d (training-mode batch stats) + relu
    mean = d1.mean(axis=(0, 2, 3))
    var = d1.var(axis=(0, 2, 3))
    d1n = ((d1 - mean[None, :, None, None]) / jnp.sqrt(var + EPS)[None, :, None, None]
           * params["bn_g"][None, :, None, None] + params["bn_b"][None, :, None, None])
    d1n = jax.nn.relu(d1n)

    # deconv2 (k=9, pad=4, stride=1) == correlation with flipped weights, pad 4
    wflip = jnp.flip(params["deconv2_w"], axis=(2, 3))         # (in, out, 9, 9)
    kern = jnp.transpose(wflip, (1, 0, 2, 3))                  # OIHW
    out = lax.conv_general_dilated(
        d1n, kern, window_strides=(1, 1), padding=((4, 4), (4, 4)),
        dimension_numbers=("NCHW", "OIHW", "NCHW"))
    return out + params["deconv2_b"][None, :, None, None]


# ----------------------------------- main ----------------------------------- #

if __name__ == "__main__":
    input_dim, hidden_dim, num_slots = 8, 32, 4
    output_size = (3, 20, 20)                 # (C, H, W); spatial multiple of 5
    batch = 2
    map_size = (output_size[0], output_size[1] // 5, output_size[2] // 5)

    key = jax.random.PRNGKey(0)
    kp, kx = jax.random.split(key)
    params = init_params(kp, input_dim, hidden_dim, num_slots, output_size)
    ins = jax.random.normal(kx, (batch, num_slots, input_dim), dtype=jnp.float32)

    prep = precompute_decoder_params(params, batch=batch, num_slots=num_slots,
                                     input_dim=input_dim, hidden=hidden_dim,
                                     output_size=output_size)

    out = decoder_cnn_medium_forward(ins, prep, num_slots=num_slots, input_dim=input_dim,
                                     hidden=hidden_dim, output_size=output_size)
    out = jax.block_until_ready(out)

    ref = jax.block_until_ready(
        reference_forward(ins, params, num_slots=num_slots, map_size=map_size))

    assert out.shape == (batch, output_size[0], output_size[1], output_size[2]), out.shape
    np.testing.assert_allclose(np.asarray(out), np.asarray(ref), rtol=1e-3, atol=1e-3)
    print("KERNEL_OK")
</pallas_src>

<mosaic_0001>
module attributes {stable_mosaic.version = 11 : i64} {
  func.func @_fused_decoder_kernel(%arg0: memref<2x32xf32, #tpu.memory_space<vmem>>, %arg1: memref<32x128xf32, #tpu.memory_space<vmem>>, %arg2: memref<1x128xf32, #tpu.memory_space<vmem>>, %arg3: memref<128x128xf32, #tpu.memory_space<vmem>>, %arg4: memref<1x128xf32, #tpu.memory_space<vmem>>, %arg5: memref<128x128xf32, #tpu.memory_space<vmem>>, %arg6: memref<1x128xf32, #tpu.memory_space<vmem>>, %arg7: memref<1x128xf32, #tpu.memory_space<vmem>>, %arg8: memref<128x64xf32, #tpu.memory_space<vmem>>, %arg9: memref<1x64xf32, #tpu.memory_space<vmem>>, %arg10: memref<40x2xf32, #tpu.memory_space<vmem>>, %arg11: memref<40x64xf32, #tpu.memory_space<vmem>>, %arg12: memref<64x80xf32, #tpu.memory_space<vmem>>, %arg13: memref<40x80xf32, #tpu.memory_space<vmem>>, %arg14: memref<80x640xf32, #tpu.memory_space<vmem>>, %arg15: memref<1x640xf32, #tpu.memory_space<vmem>>, %arg16: memref<640x32xf32, #tpu.memory_space<vmem>>, %arg17: memref<32x640xf32, #tpu.memory_space<vmem>>, %arg18: memref<1x32xf32, #tpu.memory_space<vmem>>, %arg19: memref<1x32xf32, #tpu.memory_space<vmem>>, %arg20: memref<5760x60xf32, #tpu.memory_space<vmem>>, %arg21: memref<1x60xf32, #tpu.memory_space<vmem>>, %arg22: memref<40x60xf32, #tpu.memory_space<vmem>>, %arg23: memref<56x640xf32, #tpu.memory_space<vmem>>, %arg24: memref<40x5760xf32, #tpu.memory_space<vmem>>) attributes {dimension_semantics = [], scalar_prefetch = 0 : i64, scratch_operands = 2 : i64, tpu.core_type = #tpu.core_type<tc>} {
    %c0 = arith.constant 0 : index
    %c0_0 = arith.constant 0 : index
    %0 = vector.load %arg0[%c0, %c0_0] : memref<2x32xf32, #tpu.memory_space<vmem>>, vector<2x32xf32>
    %c0_1 = arith.constant 0 : index
    %c0_2 = arith.constant 0 : index
    %1 = vector.load %arg1[%c0_1, %c0_2] : memref<32x128xf32, #tpu.memory_space<vmem>>, vector<32x128xf32>
    %cst = arith.constant dense<0.000000e+00> : vector<2x128xf32>
    %2 = tpu.matmul %0, %1, %cst {dimension_numbers = #tpu.dot_dimension_numbers<[1], [0], [0], [1], [0, 0, 1, 1], [], []>} : vector<2x32xf32>, vector<32x128xf32>, vector<2x128xf32> -> vector<2x128xf32>
    %c0_3 = arith.constant 0 : index
    %c0_4 = arith.constant 0 : index
    %3 = vector.load %arg2[%c0_3, %c0_4] : memref<1x128xf32, #tpu.memory_space<vmem>>, vector<1x128xf32>
    %4 = vector.broadcast %3 : vector<1x128xf32> to vector<2x128xf32>
    %5 = arith.addf %2, %4 : vector<2x128xf32>
    %cst_5 = arith.constant 0.000000e+00 : f32
    %6 = vector.broadcast %cst_5 : f32 to vector<2x128xf32>
    %7 = arith.maximumf %5, %6 : vector<2x128xf32>
    %c0_6 = arith.constant 0 : index
    %c0_7 = arith.constant 0 : index
    %8 = vector.load %arg3[%c0_6, %c0_7] : memref<128x128xf32, #tpu.memory_space<vmem>>, vector<128x128xf32>
    %cst_8 = arith.constant dense<0.000000e+00> : vector<2x128xf32>
    %9 = tpu.matmul %7, %8, %cst_8 {dimension_numbers = #tpu.dot_dimension_numbers<[1], [0], [0], [1], [0, 0, 1, 1], [], []>} : vector<2x128xf32>, vector<128x128xf32>, vector<2x128xf32> -> vector<2x128xf32>
    %c0_9 = arith.constant 0 : index
    %c0_10 = arith.constant 0 : index
    %10 = vector.load %arg4[%c0_9, %c0_10] : memref<1x128xf32, #tpu.memory_space<vmem>>, vector<1x128xf32>
    %11 = vector.broadcast %10 : vector<1x128xf32> to vector<2x128xf32>
    %12 = arith.addf %9, %11 : vector<2x128xf32>
    %c0_11 = arith.constant 0 : index
    %c0_12 = arith.constant 0 : index
    %13 = vector.load %arg5[%c0_11, %c0_12] : memref<128x128xf32, #tpu.memory_space<vmem>>, vector<128x128xf32>
    %cst_13 = arith.constant dense<0.000000e+00> : vector<2x128xf32>
    %14 = tpu.matmul %12, %13, %cst_13 {dimension_numbers = #tpu.dot_dimension_numbers<[1], [0], [0], [1], [0, 0, 1, 1], [], []>} : vector<2x128xf32>, vector<128x128xf32>, vector<2x128xf32> -> vector<2x128xf32>
    %15 = arith.subf %12, %14 : vector<2x128xf32>
    %16 = arith.mulf %15, %15 : vector<2x128xf32>
    %c0_14 = arith.constant 0 : index
    %c0_15 = arith.constant 0 : index
    %17 = vector.load %arg5[%c0_14, %c0_15] : memref<128x128xf32, #tpu.memory_space<vmem>>, vector<128x128xf32>
    %cst_16 = arith.constant dense<0.000000e+00> : vector<2x128xf32>
    %18 = tpu.matmul %16, %17, %cst_16 {dimension_numbers = #tpu.dot_dimension_numbers<[1], [0], [0], [1], [0, 0, 1, 1], [], []>} : vector<2x128xf32>, vector<128x128xf32>, vector<2x128xf32> -> vector<2x128xf32>
    %cst_17 = arith.constant 9.99999974E-6 : f32
    %19 = vector.broadcast %cst_17 : f32 to vector<2x128xf32>
    %20 = arith.addf %18, %19 : vector<2x128xf32>
    %21 = math.rsqrt %20 : vector<2x128xf32>
    %22 = arith.mulf %15, %21 : vector<2x128xf32>
    %c0_18 = arith.constant 0 : index
    %c0_19 = arith.constant 0 : index
    %23 = vector.load %arg6[%c0_18, %c0_19] : memref<1x128xf32, #tpu.memory_space<vmem>>, vector<1x128xf32>
    %24 = vector.broadcast %23 : vector<1x128xf32> to vector<2x128xf32>
    %25 = arith.mulf %22, %24 : vector<2x128xf32>
    %c0_20 = arith.constant 0 : index
    %c0_21 = arith.constant 0 : index
    %26 = vector.load %arg7[%c0_20, %c0_21] : memref<1x128xf32, #tpu.memory_space<vmem>>, vector<1x128xf32>
    %27 = vector.broadcast %26 : vector<1x128xf32> to vector<2x128xf32>
    %28 = arith.addf %25, %27 : vector<2x128xf32>
    %cst_22 = arith.constant 0.000000e+00 : f32
    %29 = vector.broadcast %cst_22 : f32 to vector<2x128xf32>
    %30 = arith.maximumf %28, %29 : vector<2x128xf32>
    %c0_23 = arith.constant 0 : index
    %c0_24 = arith.constant 0 : index
    %31 = vector.load %arg8[%c0_23, %c0_24] : memref<128x64xf32, #tpu.memory_space<vmem>>, vector<128x64xf32>
    %cst_25 = arith.constant dense<0.000000e+00> : vector<2x64xf32>
    %32 = tpu.matmul %30, %31, %cst_25 {dimension_numbers = #tpu.dot_dimension_numbers<[1], [0], [0], [1], [0, 0, 1, 1], [], []>} : vector<2x128xf32>, vector<128x64xf32>, vector<2x64xf32> -> vector<2x64xf32>
    %c0_26 = arith.constant 0 : index
    %c0_27 = arith.constant 0 : index
    %33 = vector.load %arg9[%c0_26, %c0_27] : memref<1x64xf32, #tpu.memory_space<vmem>>, vector<1x64xf32>
    %34 = vector.broadcast %33 : vector<1x64xf32> to vector<2x64xf32>
    %35 = arith.addf %32, %34 : vector<2x64xf32>
    %c0_28 = arith.constant 0 : index
    %c0_29 = arith.constant 0 : index
    %36 = vector.load %arg10[%c0_28, %c0_29] : memref<40x2xf32, #tpu.memory_space<vmem>>, vector<40x2xf32>
    %cst_30 = arith.constant dense<0.000000e+00> : vector<40x64xf32>
    %37 = tpu.matmul %36, %35, %cst_30 {dimension_numbers = #tpu.dot_dimension_numbers<[1], [0], [0], [1], [0, 0, 1, 1], [], []>} : vector<40x2xf32>, vector<2x64xf32>, vector<40x64xf32> -> vector<40x64xf32>
    %c0_31 = arith.constant 0 : index
    %c0_32 = arith.constant 0 : index
    %38 = vector.load %arg11[%c0_31, %c0_32] : memref<40x64xf32, #tpu.memory_space<vmem>>, vector<40x64xf32>
    %39 = arith.mulf %37, %38 : vector<40x64xf32>
    %c0_33 = arith.constant 0 : index
    %c0_34 = arith.constant 0 : index
    %40 = vector.load %arg12[%c0_33, %c0_34] : memref<64x80xf32, #tpu.memory_space<vmem>>, vector<64x80xf32>
    %cst_35 = arith.constant dense<0.000000e+00> : vector<40x80xf32>
    %41 = tpu.matmul %39, %40, %cst_35 {dimension_numbers = #tpu.dot_dimension_numbers<[1], [0], [0], [1], [0, 0, 1, 1], [], []>} : vector<40x64xf32>, vector<64x80xf32>, vector<40x80xf32> -> vector<40x80xf32>
    %c0_36 = arith.constant 0 : index
    %c0_37 = arith.constant 0 : index
    %42 = vector.load %arg13[%c0_36, %c0_37] : memref<40x80xf32, #tpu.memory_space<vmem>>, vector<40x80xf32>
    %43 = arith.mulf %41, %42 : vector<40x80xf32>
    %c0_38 = arith.constant 0 : index
    %c0_39 = arith.constant 0 : index
    %44 = vector.load %arg14[%c0_38, %c0_39] : memref<80x640xf32, #tpu.memory_space<vmem>>, vector<80x640xf32>
    %cst_40 = arith.constant dense<0.000000e+00> : vector<40x640xf32>
    %45 = tpu.matmul %43, %44, %cst_40 {dimension_numbers = #tpu.dot_dimension_numbers<[1], [0], [0], [1], [0, 0, 1, 1], [], []>} : vector<40x80xf32>, vector<80x640xf32>, vector<40x640xf32> -> vector<40x640xf32>
    %c0_41 = arith.constant 0 : index
    %c0_42 = arith.constant 0 : index
    %46 = vector.load %arg15[%c0_41, %c0_42] : memref<1x640xf32, #tpu.memory_space<vmem>>, vector<1x640xf32>
    %47 = vector.broadcast %46 : vector<1x640xf32> to vector<40x640xf32>
    %48 = arith.addf %45, %47 : vector<40x640xf32>
    %c0_43 = arith.constant 0 : index
    %c0_44 = arith.constant 0 : index
    %49 = vector.load %arg16[%c0_43, %c0_44] : memref<640x32xf32, #tpu.memory_space<vmem>>, vector<640x32xf32>
    %cst_45 = arith.constant dense<0.000000e+00> : vector<40x32xf32>
    %50 = tpu.matmul %48, %49, %cst_45 {dimension_numbers = #tpu.dot_dimension_numbers<[1], [0], [0], [1], [0, 0, 1, 1], [], []>} : vector<40x640xf32>, vector<640x32xf32>, vector<40x32xf32> -> vector<40x32xf32>
    %cst_46 = arith.constant dense<0.000000e+00> : vector<32xf32>
    %51 = vector.multi_reduction <add>, %50, %cst_46 [0] : vector<40x32xf32> to vector<32xf32>
    %52 = vector.shape_cast %51 : vector<32xf32> to vector<1x32xf32>
    %53 = arith.mulf %48, %48 : vector<40x640xf32>
    %c0_47 = arith.constant 0 : index
    %c0_48 = arith.constant 0 : index
    %54 = vector.load %arg16[%c0_47, %c0_48] : memref<640x32xf32, #tpu.memory_space<vmem>>, vector<640x32xf32>
    %cst_49 = arith.constant dense<0.000000e+00> : vector<40x32xf32>
    %55 = tpu.matmul %53, %54, %cst_49 {dimension_numbers = #tpu.dot_dimension_numbers<[1], [0], [0], [1], [0, 0, 1, 1], [], []>} : vector<40x640xf32>, vector<640x32xf32>, vector<40x32xf32> -> vector<40x32xf32>
    %cst_50 = arith.constant dense<0.000000e+00> : vector<32xf32>
    %56 = vector.multi_reduction <add>, %55, %cst_50 [0] : vector<40x32xf32> to vector<32xf32>
    %57 = vector.shape_cast %56 : vector<32xf32> to vector<1x32xf32>
    %cst_51 = arith.constant 1.250000e-03 : f32
    %58 = vector.broadcast %cst_51 : f32 to vector<1x32xf32>
    %59 = arith.mulf %52, %58 : vector<1x32xf32>
    %cst_52 = arith.constant 1.250000e-03 : f32
    %60 = vector.broadcast %cst_52 : f32 to vector<1x32xf32>
    %61 = arith.mulf %57, %60 : vector<1x32xf32>
    %62 = arith.mulf %59, %59 : vector<1x32xf32>
    %63 = arith.subf %61, %62 : vector<1x32xf32>
    %c0_53 = arith.constant 0 : index
    %c0_54 = arith.constant 0 : index
    %64 = vector.load %arg18[%c0_53, %c0_54] : memref<1x32xf32, #tpu.memory_space<vmem>>, vector<1x32xf32>
    %cst_55 = arith.constant 9.99999974E-6 : f32
    %65 = vector.broadcast %cst_55 : f32 to vector<1x32xf32>
    %66 = arith.addf %63, %65 : vector<1x32xf32>
    %67 = math.rsqrt %66 : vector<1x32xf32>
    %68 = arith.mulf %64, %67 : vector<1x32xf32>
    %c0_56 = arith.constant 0 : index
    %c0_57 = arith.constant 0 : index
    %69 = vector.load %arg19[%c0_56, %c0_57] : memref<1x32xf32, #tpu.memory_space<vmem>>, vector<1x32xf32>
    %70 = arith.mulf %59, %68 : vector<1x32xf32>
    %71 = arith.subf %69, %70 : vector<1x32xf32>
    %c0_58 = arith.constant 0 : index
    %c0_59 = arith.constant 0 : index
    %72 = vector.load %arg17[%c0_58, %c0_59] : memref<32x640xf32, #tpu.memory_space<vmem>>, vector<32x640xf32>
    %cst_60 = arith.constant dense<0.000000e+00> : vector<1x640xf32>
    %73 = tpu.matmul %68, %72, %cst_60 {dimension_numbers = #tpu.dot_dimension_numbers<[1], [0], [0], [1], [0, 0, 1, 1], [], []>} : vector<1x32xf32>, vector<32x640xf32>, vector<1x640xf32> -> vector<1x640xf32>
    %c0_61 = arith.constant 0 : index
    %c0_62 = arith.constant 0 : index
    %74 = vector.load %arg17[%c0_61, %c0_62] : memref<32x640xf32, #tpu.memory_space<vmem>>, vector<32x640xf32>
    %cst_63 = arith.constant dense<0.000000e+00> : vector<1x640xf32>
    %75 = tpu.matmul %71, %74, %cst_63 {dimension_numbers = #tpu.dot_dimension_numbers<[1], [0], [0], [1], [0, 0, 1, 1], [], []>} : vector<1x32xf32>, vector<32x640xf32>, vector<1x640xf32> -> vector<1x640xf32>
    %76 = vector.broadcast %73 : vector<1x640xf32> to vector<40x640xf32>
    %77 = arith.mulf %48, %76 : vector<40x640xf32>
    %78 = vector.broadcast %75 : vector<1x640xf32> to vector<40x640xf32>
    %79 = arith.addf %77, %78 : vector<40x640xf32>
    %cst_64 = arith.constant 0.000000e+00 : f32
    %80 = vector.broadcast %cst_64 : f32 to vector<40x640xf32>
    %81 = arith.maximumf %79, %80 : vector<40x640xf32>
    %cst_65 = arith.constant 0.000000e+00 : f32
    %82 = vector.broadcast %cst_65 : f32 to vector<4x640xf32>
    %c0_66 = arith.constant 0 : index
    %c0_67 = arith.constant 0 : index
    %83 = vector.load %arg23[%c0_66, %c0_67] : memref<56x640xf32, #tpu.memory_space<vmem>>, vector<4x640xf32>
    tpu.vector_store %arg23[%c0_66, %c0_67], %82 {strides = array<i32>} : memref<56x640xf32, #tpu.memory_space<vmem>>, vector<4x640xf32>,
    %84 = vector.extract_strided_slice %81 {offsets = [0, 0], sizes = [20, 640], strides = [1, 1]} : vector<40x640xf32> to vector<20x640xf32>
    %c4 = arith.constant 4 : index
    %c0_68 = arith.constant 0 : index
    %85 = vector.load %arg23[%c4, %c0_68] : memref<56x640xf32, #tpu.memory_space<vmem>>, vector<20x640xf32>
    tpu.vector_store %arg23[%c4, %c0_68], %84 {strides = array<i32>} : memref<56x640xf32, #tpu.memory_space<vmem>>, vector<20x640xf32>,
    %c24 = arith.constant 24 : index
    %c0_69 = arith.constant 0 : index
    %86 = vector.load %arg23[%c24, %c0_69] : memref<56x640xf32, #tpu.memory_space<vmem>>, vector<4x640xf32>
    tpu.vector_store %arg23[%c24, %c0_69], %82 {strides = array<i32>} : memref<56x640xf32, #tpu.memory_space<vmem>>, vector<4x640xf32>,
    %c28 = arith.constant 28 : index
    %c0_70 = arith.constant 0 : index
    %87 = vector.load %arg23[%c28, %c0_70] : memref<56x640xf32, #tpu.memory_space<vmem>>, vector<4x640xf32>
    tpu.vector_store %arg23[%c28, %c0_70], %82 {strides = array<i32>} : memref<56x640xf32, #tpu.memory_space<vmem>>, vector<4x640xf32>,
    %88 = vector.extract_strided_slice %81 {offsets = [20, 0], sizes = [20, 640], strides = [1, 1]} : vector<40x640xf32> to vector<20x640xf32>
    %c32 = arith.constant 32 : index
    %c0_71 = arith.constant 0 : index
    %89 = vector.load %arg23[%c32, %c0_71] : memref<56x640xf32, #tpu.memory_space<vmem>>, vector<20x640xf32>
    tpu.vector_store %arg23[%c32, %c0_71], %88 {strides = array<i32>} : memref<56x640xf32, #tpu.memory_space<vmem>>, vector<20x640xf32>,
    %c52 = arith.constant 52 : index
    %c0_72 = arith.constant 0 : index
    %90 = vector.load %arg23[%c52, %c0_72] : memref<56x640xf32, #tpu.memory_space<vmem>>, vector<4x640xf32>
    tpu.vector_store %arg23[%c52, %c0_72], %82 {strides = array<i32>} : memref<56x640xf32, #tpu.memory_space<vmem>>, vector<4x640xf32>,
    %c0_73 = arith.constant 0 : index
    %c0_74 = arith.constant 0 : index
    %91 = vector.load %arg23[%c0_73, %c0_74] : memref<56x640xf32, #tpu.memory_space<vmem>>, vector<20x640xf32>
    %c0_75 = arith.constant 0 : index
    %c0_76 = arith.constant 0 : index
    %92 = vector.load %arg24[%c0_75, %c0_76] : memref<40x5760xf32, #tpu.memory_space<vmem>>, vector<20x640xf32>
    tpu.vector_store %arg24[%c0_75, %c0_76], %91 {strides = array<i32>} : memref<40x5760xf32, #tpu.memory_space<vmem>>, vector<20x640xf32>,
    %c1 = arith.constant 1 : index
    %c0_77 = arith.constant 0 : index
    %93 = vector.load %arg23[%c1, %c0_77] : memref<56x640xf32, #tpu.memory_space<vmem>>, vector<20x640xf32>
    %c0_78 = arith.constant 0 : index
    %c640 = arith.constant 640 : index
    %94 = vector.load %arg24[%c0_78, %c640] : memref<40x5760xf32, #tpu.memory_space<vmem>>, vector<20x640xf32>
    tpu.vector_store %arg24[%c0_78, %c640], %93 {strides = array<i32>} : memref<40x5760xf32, #tpu.memory_space<vmem>>, vector<20x640xf32>,
    %c2 = arith.constant 2 : index
    %c0_79 = arith.constant 0 : index
    %95 = vector.load %arg23[%c2, %c0_79] : memref<56x640xf32, #tpu.memory_space<vmem>>, vector<20x640xf32>
    %c0_80 = arith.constant 0 : index
    %c1280 = arith.constant 1280 : index
    %96 = vector.load %arg24[%c0_80, %c1280] : memref<40x5760xf32, #tpu.memory_space<vmem>>, vector<20x640xf32>
    tpu.vector_store %arg24[%c0_80, %c1280], %95 {strides = array<i32>} : memref<40x5760xf32, #tpu.memory_space<vmem>>, vector<20x640xf32>,
    %c3 = arith.constant 3 : index
    %c0_81 = arith.constant 0 : index
    %97 = vector.load %arg23[%c3, %c0_81] : memref<56x640xf32, #tpu.memory_space<vmem>>, vector<20x640xf32>
    %c0_82 = arith.constant 0 : index
    %c1920 = arith.constant 1920 : index
    %98 = vector.load %arg24[%c0_82, %c1920] : memref<40x5760xf32, #tpu.memory_space<vmem>>, vector<20x640xf32>
    tpu.vector_store %arg24[%c0_82, %c1920], %97 {strides = array<i32>} : memref<40x5760xf32, #tpu.memory_space<vmem>>, vector<20x640xf32>,
    %c4_83 = arith.constant 4 : index
    %c0_84 = arith.constant 0 : index
    %99 = vector.load %arg23[%c4_83, %c0_84] : memref<56x640xf32, #tpu.memory_space<vmem>>, vector<20x640xf32>
    %c0_85 = arith.constant 0 : index
    %c2560 = arith.constant 2560 : index
    %100 = vector.load %arg24[%c0_85, %c2560] : memref<40x5760xf32, #tpu.memory_space<vmem>>, vector<20x640xf32>
    tpu.vector_store %arg24[%c0_85, %c2560], %99 {strides = array<i32>} : memref<40x5760xf32, #tpu.memory_space<vmem>>, vector<20x640xf32>,
    %c5 = arith.constant 5 : index
    %c0_86 = arith.constant 0 : index
    %101 = vector.load %arg23[%c5, %c0_86] : memref<56x640xf32, #tpu.memory_space<vmem>>, vector<20x640xf32>
    %c0_87 = arith.constant 0 : index
    %c3200 = arith.constant 3200 : index
    %102 = vector.load %arg24[%c0_87, %c3200] : memref<40x5760xf32, #tpu.memory_space<vmem>>, vector<20x640xf32>
    tpu.vector_store %arg24[%c0_87, %c3200], %101 {strides = array<i32>} : memref<40x5760xf32, #tpu.memory_space<vmem>>, vector<20x640xf32>,
    %c6 = arith.constant 6 : index
    %c0_88 = arith.constant 0 : index
    %103 = vector.load %arg23[%c6, %c0_88] : memref<56x640xf32, #tpu.memory_space<vmem>>, vector<20x640xf32>
    %c0_89 = arith.constant 0 : index
    %c3840 = arith.constant 3840 : index
    %104 = vector.load %arg24[%c0_89, %c3840] : memref<40x5760xf32, #tpu.memory_space<vmem>>, vector<20x640xf32>
    tpu.vector_store %arg24[%c0_89, %c3840], %103 {strides = array<i32>} : memref<40x5760xf32, #tpu.memory_space<vmem>>, vector<20x640xf32>,
    %c7 = arith.constant 7 : index
    %c0_90 = arith.constant 0 : index
    %105 = vector.load %arg23[%c7, %c0_90] : memref<56x640xf32, #tpu.memory_space<vmem>>, vector<20x640xf32>
    %c0_91 = arith.constant 0 : index
    %c4480 = arith.constant 4480 : index
    %106 = vector.load %arg24[%c0_91, %c4480] : memref<40x5760xf32, #tpu.memory_space<vmem>>, vector<20x640xf32>
    tpu.vector_store %arg24[%c0_91, %c4480], %105 {strides = array<i32>} : memref<40x5760xf32, #tpu.memory_space<vmem>>, vector<20x640xf32>,
    %c8 = arith.constant 8 : index
    %c0_92 = arith.constant 0 : index
    %107 = vector.load %arg23[%c8, %c0_92] : memref<56x640xf32, #tpu.memory_space<vmem>>, vector<20x640xf32>
    %c0_93 = arith.constant 0 : index
    %c5120 = arith.constant 5120 : index
    %108 = vector.load %arg24[%c0_93, %c5120] : memref<40x5760xf32, #tpu.memory_space<vmem>>, vector<20x640xf32>
    tpu.vector_store %arg24[%c0_93, %c5120], %107 {strides = array<i32>} : memref<40x5760xf32, #tpu.memory_space<vmem>>, vector<20x640xf32>,
    %c28_94 = arith.constant 28 : index
    %c0_95 = arith.constant 0 : index
    %109 = vector.load %arg23[%c28_94, %c0_95] : memref<56x640xf32, #tpu.memory_space<vmem>>, vector<20x640xf32>
    %c20 = arith.constant 20 : index
    %c0_96 = arith.constant 0 : index
    %110 = vector.load %arg24[%c20, %c0_96] : memref<40x5760xf32, #tpu.memory_space<vmem>>, vector<20x640xf32>
    tpu.vector_store %arg24[%c20, %c0_96], %109 {strides = array<i32>} : memref<40x5760xf32, #tpu.memory_space<vmem>>, vector<20x640xf32>,
    %c29 = arith.constant 29 : index
    %c0_97 = arith.constant 0 : index
    %111 = vector.load %arg23[%c29, %c0_97] : memref<56x640xf32, #tpu.memory_space<vmem>>, vector<20x640xf32>
    %c20_98 = arith.constant 20 : index
    %c640_99 = arith.constant 640 : index
    %112 = vector.load %arg24[%c20_98, %c640_99] : memref<40x5760xf32, #tpu.memory_space<vmem>>, vector<20x640xf32>
    tpu.vector_store %arg24[%c20_98, %c640_99], %111 {strides = array<i32>} : memref<40x5760xf32, #tpu.memory_space<vmem>>, vector<20x640xf32>,
    %c30 = arith.constant 30 : index
    %c0_100 = arith.constant 0 : index
    %113 = vector.load %arg23[%c30, %c0_100] : memref<56x640xf32, #tpu.memory_space<vmem>>, vector<20x640xf32>
    %c20_101 = arith.constant 20 : index
    %c1280_102 = arith.constant 1280 : index
    %114 = vector.load %arg24[%c20_101, %c1280_102] : memref<40x5760xf32, #tpu.memory_space<vmem>>, vector<20x640xf32>
    tpu.vector_store %arg24[%c20_101, %c1280_102], %113 {strides = array<i32>} : memref<40x5760xf32, #tpu.memory_space<vmem>>, vector<20x640xf32>,
    %c31 = arith.constant 31 : index
    %c0_103 = arith.constant 0 : index
    %115 = vector.load %arg23[%c31, %c0_103] : memref<56x640xf32, #tpu.memory_space<vmem>>, vector<20x640xf32>
    %c20_104 = arith.constant 20 : index
    %c1920_105 = arith.constant 1920 : index
    %116 = vector.load %arg24[%c20_104, %c1920_105] : memref<40x5760xf32, #tpu.memory_space<vmem>>, vector<20x640xf32>
    tpu.vector_store %arg24[%c20_104, %c1920_105], %115 {strides = array<i32>} : memref<40x5760xf32, #tpu.memory_space<vmem>>, vector<20x640xf32>,
    %c32_106 = arith.constant 32 : index
    %c0_107 = arith.constant 0 : index
    %117 = vector.load %arg23[%c32_106, %c0_107] : memref<56x640xf32, #tpu.memory_space<vmem>>, vector<20x640xf32>
    %c20_108 = arith.constant 20 : index
    %c2560_109 = arith.constant 2560 : index
    %118 = vector.load %arg24[%c20_108, %c2560_109] : memref<40x5760xf32, #tpu.memory_space<vmem>>, vector<20x640xf32>
    tpu.vector_store %arg24[%c20_108, %c2560_109], %117 {strides = array<i32>} : memref<40x5760xf32, #tpu.memory_space<vmem>>, vector<20x640xf32>,
    %c33 = arith.constant 33 : index
    %c0_110 = arith.constant 0 : index
    %119 = vector.load %arg23[%c33, %c0_110] : memref<56x640xf32, #tpu.memory_space<vmem>>, vector<20x640xf32>
    %c20_111 = arith.constant 20 : index
    %c3200_112 = arith.constant 3200 : index
    %120 = vector.load %arg24[%c20_111, %c3200_112] : memref<40x5760xf32, #tpu.memory_space<vmem>>, vector<20x640xf32>
    tpu.vector_store %arg24[%c20_111, %c3200_112], %119 {strides = array<i32>} : memref<40x5760xf32, #tpu.memory_space<vmem>>, vector<20x640xf32>,
    %c34 = arith.constant 34 : index
    %c0_113 = arith.constant 0 : index
    %121 = vector.load %arg23[%c34, %c0_113] : memref<56x640xf32, #tpu.memory_space<vmem>>, vector<20x640xf32>
    %c20_114 = arith.constant 20 : index
    %c3840_115 = arith.constant 3840 : index
    %122 = vector.load %arg24[%c20_114, %c3840_115] : memref<40x5760xf32, #tpu.memory_space<vmem>>, vector<20x640xf32>
    tpu.vector_store %arg24[%c20_114, %c3840_115], %121 {strides = array<i32>} : memref<40x5760xf32, #tpu.memory_space<vmem>>, vector<20x640xf32>,
    %c35 = arith.constant 35 : index
    %c0_116 = arith.constant 0 : index
    %123 = vector.load %arg23[%c35, %c0_116] : memref<56x640xf32, #tpu.memory_space<vmem>>, vector<20x640xf32>
    %c20_117 = arith.constant 20 : index
    %c4480_118 = arith.constant 4480 : index
    %124 = vector.load %arg24[%c20_117, %c4480_118] : memref<40x5760xf32, #tpu.memory_space<vmem>>, vector<20x640xf32>
    tpu.vector_store %arg24[%c20_117, %c4480_118], %123 {strides = array<i32>} : memref<40x5760xf32, #tpu.memory_space<vmem>>, vector<20x640xf32>,
    %c36 = arith.constant 36 : index
    %c0_119 = arith.constant 0 : index
    %125 = vector.load %arg23[%c36, %c0_119] : memref<56x640xf32, #tpu.memory_space<vmem>>, vector<20x640xf32>
    %c20_120 = arith.constant 20 : index
    %c5120_121 = arith.constant 5120 : index
    %126 = vector.load %arg24[%c20_120, %c5120_121] : memref<40x5760xf32, #tpu.memory_space<vmem>>, vector<20x640xf32>
    tpu.vector_store %arg24[%c20_120, %c5120_121], %125 {strides = array<i32>} : memref<40x5760xf32, #tpu.memory_space<vmem>>, vector<20x640xf32>,
    %c0_122 = arith.constant 0 : index
    %c0_123 = arith.constant 0 : index
    %127 = vector.load %arg24[%c0_122, %c0_123] : memref<40x5760xf32, #tpu.memory_space<vmem>>, vector<40x5760xf32>
    %c0_124 = arith.constant 0 : index
    %c0_125 = arith.constant 0 : index
    %128 = vector.load %arg20[%c0_124, %c0_125] : memref<5760x60xf32, #tpu.memory_space<vmem>>, vector<5760x60xf32>
    %cst_126 = arith.constant dense<0.000000e+00> : vector<40x60xf32>
    %129 = tpu.matmul %127, %128, %cst_126 {dimension_numbers = #tpu.dot_dimension_numbers<[1], [0], [0], [1], [0, 0, 1, 1], [], []>} : vector<40x5760xf32>, vector<5760x60xf32>, vector<40x60xf32> -> vector<40x60xf32>
    %c0_127 = arith.constant 0 : index
    %c0_128 = arith.constant 0 : index
    %130 = vector.load %arg21[%c0_127, %c0_128] : memref<1x60xf32, #tpu.memory_space<vmem>>, vector<1x60xf32>
    %131 = vector.broadcast %130 : vector<1x60xf32> to vector<40x60xf32>
    %132 = arith.addf %129, %131 : vector<40x60xf32>
    %c0_129 = arith.constant 0 : index
    %c0_130 = arith.constant 0 : index
    %133 = vector.load %arg22[%c0_129, %c0_130] : memref<40x60xf32, #tpu.memory_space<vmem>>, vector<40x60xf32>
    tpu.vector_store %arg22[%c0_129, %c0_130], %132 {strides = array<i32>} : memref<40x60xf32, #tpu.memory_space<vmem>>, vector<40x60xf32>,
    return
  }
}

</mosaic_0001>

<bundles_post_ra>
// kernel: tpu_custom_call.1
= control target key start
LH: loop header
LB: loop body
LE: loop exit
PB: predicated region body
PF: predicated region fallthrough
CT: control target
= control target key end

     0   :  { %s14021_s0 = inlined_call_operand.vmem [shape: f32[2,32], index: 0, kind: input, shape index: {}]   ;;  %s14022_s1 = inlined_call_operand.vmem [shape: f32[32,128], index: 1, kind: input, shape index: {}]   ;;  %s14023_s2 = inlined_call_operand.vmem [shape: f32[1,128], index: 2, kind: input, shape index: {}]   ;;  %s14024_s3 = inlined_call_operand.vmem [shape: f32[128,128], index: 3, kind: input, shape index: {}]   ;;  %s14025_s4 = inlined_call_operand.vmem [shape: f32[1,128], index: 4, kind: input, shape index: {}]   ;;  %s14026_s5 = inlined_call_operand.vmem [shape: f32[128,128], index: 5, kind: input, shape index: {}]   ;;  %s14027_s6 = inlined_call_operand.vmem [shape: f32[1,128], index: 6, kind: input, shape index: {}]   ;;  %s14028_s7 = inlined_call_operand.vmem [shape: f32[1,128], index: 7, kind: input, shape index: {}]   ;;  %s14029_s8 = inlined_call_operand.vmem [shape: f32[128,64], index: 8, kind: input, shape index: {}]   ;;  %s14030_s9 = inlined_call_operand.vmem [shape: f32[1,64], index: 9, kind: input, shape index: {}]   ;;  %s14031_s10 = inlined_call_operand.vmem [shape: f32[40,2], index: 10, kind: input, shape index: {}]   ;;  %s14032_s11 = inlined_call_operand.vmem [shape: f32[40,64], index: 11, kind: input, shape index: {}]   ;;  %s14033_s12 = inlined_call_operand.vmem [shape: f32[64,80], index: 12, kind: input, shape index: {}]   ;;  %s14034_s13 = inlined_call_operand.vmem [shape: f32[40,80], index: 13, kind: input, shape index: {}]   ;;  %s14035_s14 = inlined_call_operand.vmem [shape: f32[80,640], index: 14, kind: input, shape index: {}]   ;;  %s14036_s15 = inlined_call_operand.vmem [shape: f32[1,640], index: 15, kind: input, shape index: {}]   ;;  %s14037_s16 = inlined_call_operand.vmem [shape: f32[640,32], index: 16, kind: input, shape index: {}]   ;;  %s14038_s17 = inlined_call_operand.vmem [shape: f32[32,640], index: 17, kind: input, shape index: {}]   ;;  %s14039_s18 = inlined_call_operand.vmem [shape: f32[1,32], index: 18, kind: input, shape index: {}]   ;;  %s14040_s19 = inlined_call_operand.vmem [shape: f32[1,32], index: 19, kind: input, shape index: {}]   ;;  %s14041_s20 = inlined_call_operand.vmem [shape: f32[5760,60], index: 20, kind: input, shape index: {}]   ;;  %s14042_s21 = inlined_call_operand.vmem [shape: f32[1,60], index: 21, kind: input, shape index: {}]   ;;  %s14043_s22 = inlined_call_operand.hbm [shape: f32[40,60], index: 22, kind: output, shape index: {}]  }
   0x1   :  { %14096 = sst [smem:[#allocation45_spill]] %s14021_s0 }
   0x2   :  { %14097 = sst [smem:[#allocation46_spill]] %s14022_s1 }
   0x3   :  { %14098 = sst [smem:[#allocation47_spill]] %s14023_s2 }
   0x4   :  { %14099 = sst [smem:[#allocation48_spill]] %s14024_s3 }
   0x5   :  { %14100 = sst [smem:[#allocation49_spill]] %s14025_s4 }
   0x6   :  { %14101 = sst [smem:[#allocation50_spill]] %s14026_s5 }
   0x7   :  { %14102 = sst [smem:[#allocation51_spill]] %s14027_s6 }
   0x8   :  { %s14103_s29 = sld [smem:[#allocation46_spill]]  ;;  %v14047_v1 = vmov 0.0   ;;  %vm9042_vm0 = vmmov 0   ;;  %vm84_vm1 = vcmask 261120  }
   0x9   :  { %8466 = vmatprep.subr.mxu0 %v14047_v1  ;;  %2395 = vst [vmem:[#allocation2 + $0xb0] sm:$0xf] %v14047_v1  ;;  %2396 = vst [vmem:[#allocation2 + $0xd0] sm:$0xf] %v14047_v1  ;;  %8474 = vmatprep.mubr.msk.f32.mxu0 %vm9042_vm0, %v14047_v1  ;;  %s14104_s1 = sld [smem:[#allocation48_spill]] }
   0xa   :  { %2397 = vst [vmem:[#allocation2 + $0x10] sm:$0xf] %v14047_v1  ;;  %2398 = vst [vmem:[#allocation2 + $0x48] sm:$0xf] %v14047_v1  ;;  %8477 = vmatprep.subr.mxu1 %v14047_v1  ;;  %s14105_s4 = sld [smem:[#allocation45_spill]] }
   0xb   :  { %2399 = vst [vmem:[#allocation2 + $0x108] sm:$0xf] %v14047_v1  ;;  %2471 = vst [vmem:[#allocation2 + $0x100] sm:$0xf] %v14047_v1 }
   0xc   :  { %2472 = vst [vmem:[#allocation2 + $0xc0] sm:$0xf] %v14047_v1  ;;  %2473 = vst [vmem:[#allocation2 + $0x88] sm:$0xf] %v14047_v1 }
   0xd   :  { %2474 = vst [vmem:[#allocation2 + $0x98] sm:$0xf] %v14047_v1  ;;  %2475 = vst [vmem:[#allocation2 + $0x28] sm:$0xf] %v14047_v1 }
   0xe   :  { %v76_v0 = vld [vmem:[%s14103_s29 + $0x18] sm:$0xff]  ;;  %2476 = vst [vmem:[#allocation2 + $0x100] sm:$0xf0] %v14047_v1  ;;  %2477 = vst [vmem:[#allocation2 + $0xc0] sm:$0xf0] %v14047_v1  ;;  %v75_v2 = vld [vmem:[%s14103_s29 + $0x10] sm:$0xff] }
   0xf   :  { %2478 = vst [vmem:[#allocation2 + $0x88] sm:$0xf0] %v14047_v1  ;;  %2479 = vst [vmem:[#allocation2 + $0x98] sm:$0xf0] %v14047_v1  ;;  %v174_v3 = vld [vmem:[%s14104_s1 + $0x78] sm:$0xff]  ;;  %8467 = vmatpush3.msra.mxu0 %v76_v0  ;;  %v173_v4 = vld [vmem:[%s14104_s1 + $0x70] sm:$0xff] }
  0x10   :  { %2480 = vst [vmem:[#allocation2 + $0x28] sm:$0xf0] %v14047_v1  ;;  %2541 = vst [vmem:[#allocation2 + $0x60] sm:$0xf0] %v14047_v1  ;;  %8468 = vmatprep.subr.mxu0 %v14047_v1  ;;  %v74_v5 = vld [vmem:[%s14103_s29 + $0x8] sm:$0xff]  ;;  %8478 = vmatpush3.msra.mxu1 %v174_v3  ;;  %v73_v7 = vld [vmem:[%s14103_s29] sm:$0xff] }
  0x11   :  { %2542 = vst [vmem:[#allocation2 + $0xf8] sm:$0xf0] %v14047_v1  ;;  %2543 = vst [vmem:[#allocation2 + $0xa8] sm:$0xf0] %v14047_v1  ;;  %8469 = vmatpush3.msra.mxu0 %v75_v2  ;;  %8479 = vmatprep.subr.mxu1 %v14047_v1  ;;  %v172_v6 = vld [vmem:[%s14104_s1 + $0x68] sm:$0xff]  ;;  %v171_v9 = vld [vmem:[%s14104_s1 + $0x60] sm:$0xff] }
  0x12   :  { %2544 = vst [vmem:[#allocation2 + $0x78] sm:$0xf0] %v14047_v1  ;;  %2545 = vst [vmem:[#allocation2 + $0xe0] sm:$0xf0] %v14047_v1  ;;  %8470 = vmatprep.subr.mxu0 %v14047_v1  ;;  %8480 = vmatpush3.msra.mxu1 %v173_v4  ;;  %v72_v8 = vld [vmem:[%s14105_s4] sm:$0x3] }
  0x13   :  { %8471 = vmatpush3.msra.mxu0 %v74_v5  ;;  %8481 = vmatprep.subr.mxu1 %v14047_v1 }
  0x14   :  { %27 = vsyncpa [#allocation5], 0  ;;  %8472 = vmatprep.subr.mxu0 %v14047_v1  ;;  %8482 = vmatpush3.msra.mxu1 %v172_v6  ;;  %v170_v10 = vld [vmem:[%s14104_s1 + $0x58] sm:$0xff]  ;;  %v169_v11 = vld [vmem:[%s14104_s1 + $0x50] sm:$0xff]  ;;  %s14106_s0 = sld [smem:[#allocation50_spill]]  ;;  %vm543_vm2 = vcmask 1041408  }
  0x15   :  { %8473 = vmatpush3.msra.mxu0 %v73_v7  ;;  %8483 = vmatprep.subr.mxu1 %v14047_v1  ;;  %v168_v12 = vld [vmem:[%s14104_s1 + $0x48] sm:$0xff]  ;;  %v167_v13 = vld [vmem:[%s14104_s1 + $0x40] sm:$0xff]  ;;  %v166_v14 = vld [vmem:[%s14104_s1 + $0x38] sm:$0xff]  ;;  %s14107_s23 = sld [smem:[#allocation47_spill]]  ;;  %vm527_vm3 = vcmask 15360   ;;  %vm655_vm4 = vcmask 523264  }
  0x16   :  { %8475 = vmatmul.mubr.msk.f32.vlgmr.msra.gmra.mxu0 %vm84_vm1, %v72_v8  ;;  %8484 = vmatpush3.msra.mxu1 %v171_v9  ;;  %v165_v15 = vld [vmem:[%s14104_s1 + $0x30] sm:$0xff]  ;;  %v164_v16 = vld [vmem:[%s14104_s1 + $0x28] sm:$0xff]  ;;  %v163_v17 = vld [vmem:[%s14104_s1 + $0x20] sm:$0xff]  ;;  %s14108_s26 = sld [smem:[#allocation49_spill]]  ;;  %vm848_vm5 = vcmask 654336   ;;  %vm2415_vm6 = vcmask 1043456  }
  0x17   :  { %8485 = vmatprep.subr.mxu1 %v14047_v1  ;;  %8509 = vmatprep.mubr.msk.f32.mxu1 %vm9042_vm0, %v14047_v1  ;;  %v162_v18 = vld [vmem:[%s14104_s1 + $0x18] sm:$0xff]  ;;  %v161_v19 = vld [vmem:[%s14104_s1 + $0x10] sm:$0xff]  ;;  %v160_v20 = vld [vmem:[%s14104_s1 + $0x8] sm:$0xff]  ;;  %s14109_s28 = sld [smem:[#allocation51_spill]]  ;;  %vm2606_vm7 = vcmask 1046528   ;;  %vm2692_vm8 = vcmask 1045504  }
  0x18   :  { %8486 = vmatpush3.msra.mxu1 %v170_v10  ;;  %8512 = vmatprep.subr.mxu0 %v14047_v1  ;;  %v159_v21 = vld [vmem:[%s14104_s1] sm:$0xff]  ;;  %v444_v47 = vld [vmem:[%s14029_s8 + $0x78] sm:$0xff]  ;;  %v443_v48 = vld [vmem:[%s14029_s8 + $0x70] sm:$0xff]  ;;  %vm2778_vm9 = vcmask 1044480   ;;  %vm2959_vm10 = vcmask 1042432   ;;  %vm3170_vm11 = vcmask 1040384  }
  0x19   :  { %8487 = vmatprep.subr.mxu1 %v14047_v1  ;;  %8544 = vmatprep.mubr.msk.f32.mxu0 %vm9042_vm0, %v14047_v1  ;;  %v442_v49 = vld [vmem:[%s14029_s8 + $0x68] sm:$0xff]  ;;  %v441_v54 = vld [vmem:[%s14029_s8 + $0x60] sm:$0xff]  ;;  %v440_v55 = vld [vmem:[%s14029_s8 + $0x58] sm:$0xff]  ;;  %vm7003_vm12 = vcmask 490496  }
  0x1a   :  { %8488 = vmatpush3.msra.mxu1 %v169_v11  ;;  %v267_v22 = vld [vmem:[%s14106_s0 + $0x78] sm:$0xff]  ;;  %v266_v23 = vld [vmem:[%s14106_s0 + $0x70] sm:$0xff]  ;;  %v265_v24 = vld [vmem:[%s14106_s0 + $0x68] sm:$0xff] }
  0x1b   :  { %8489 = vmatprep.subr.mxu1 %v14047_v1  ;;  %8513 = vmatpush3.msra.mxu0 %v267_v22  ;;  %v264_v25 = vld [vmem:[%s14106_s0 + $0x60] sm:$0xff]  ;;  %v263_v26 = vld [vmem:[%s14106_s0 + $0x58] sm:$0xff]  ;;  %v262_v27 = vld [vmem:[%s14106_s0 + $0x50] sm:$0xff] }
  0x1c   :  { %8490 = vmatpush3.msra.mxu1 %v168_v12  ;;  %8514 = vmatprep.subr.mxu0 %v14047_v1  ;;  %v261_v28 = vld [vmem:[%s14106_s0 + $0x48] sm:$0xff]  ;;  %v260_v29 = vld [vmem:[%s14106_s0 + $0x40] sm:$0xff]  ;;  %v259_v30 = vld [vmem:[%s14106_s0 + $0x38] sm:$0xff] }
  0x1d   :  { %8491 = vmatprep.subr.mxu1 %v14047_v1  ;;  %8515 = vmatpush3.msra.mxu0 %v266_v23  ;;  %v258_v31 = vld [vmem:[%s14106_s0 + $0x30] sm:$0xff]  ;;  %v257_v32 = vld [vmem:[%s14106_s0 + $0x28] sm:$0xff]  ;;  %v256_v33 = vld [vmem:[%s14106_s0 + $0x20] sm:$0xff] }
  0x1e   :  { %8492 = vmatpush3.msra.mxu1 %v167_v13  ;;  %8516 = vmatprep.subr.mxu0 %v14047_v1  ;;  %v255_v34 = vld [vmem:[%s14106_s0 + $0x18] sm:$0xff]  ;;  %v254_v35 = vld [vmem:[%s14106_s0 + $0x10] sm:$0xff]  ;;  %v7025_v36 = vld [vmem:[%s14107_s23] ss:$0 sm:$0xff] }
  0x1f   :  { %8493 = vmatprep.subr.mxu1 %v14047_v1  ;;  %8517 = vmatpush3.msra.mxu0 %v265_v24  ;;  %v253_v41 = vld [vmem:[%s14106_s0 + $0x8] sm:$0xff]  ;;  %v252_v42 = vld [vmem:[%s14106_s0] sm:$0xff]  ;;  %v439_v56 = vld [vmem:[%s14029_s8 + $0x50] sm:$0xff] }
  0x20   :  { %8494 = vmatpush3.msra.mxu1 %v166_v14  ;;  %8518 = vmatprep.subr.mxu0 %v14047_v1  ;;  %v7027_v43 = vld [vmem:[%s14108_s26] ss:$0 sm:$0xff]  ;;  %v438_v57 = vld [vmem:[%s14029_s8 + $0x48] sm:$0xff]  ;;  %v436_v59 = vld [vmem:[%s14029_s8 + $0x38] sm:$0xff] }
  0x21   :  { %8495 = vmatprep.subr.mxu1 %v14047_v1  ;;  %8519 = vmatpush3.msra.mxu0 %v264_v25  ;;  %v437_v58 = vld [vmem:[%s14029_s8 + $0x40] sm:$0xff]  ;;  %v435_v60 = vld [vmem:[%s14029_s8 + $0x30] sm:$0xff]  ;;  %v434_v61 = vld [vmem:[%s14029_s8 + $0x28] sm:$0xff] }
  0x22   :  { %8496 = vmatpush3.msra.mxu1 %v165_v15  ;;  %8520 = vmatprep.subr.mxu0 %v14047_v1  ;;  %v433_v62 = vld [vmem:[%s14029_s8 + $0x20] sm:$0xff]  ;;  %v432_v63 = vld [vmem:[%s14029_s8 + $0x18] sm:$0xff]  ;;  %v431_v0 = vld [vmem:[%s14029_s8 + $0x10] sm:$0xff] }
  0x23   :  { %8497 = vmatprep.subr.mxu1 %v14047_v1  ;;  %8521 = vmatpush3.msra.mxu0 %v263_v26  ;;  %v430_v2 = vld [vmem:[%s14029_s8 + $0x8] sm:$0xff]  ;;  %v429_v3 = vld [vmem:[%s14029_s8] sm:$0xff] }
  0x24   :  { %8498 = vmatpush3.msra.mxu1 %v164_v16  ;;  %8522 = vmatprep.subr.mxu0 %v14047_v1  ;;  %v7028_v8 = vld [vmem:[%s14109_s28] ss:$0 sm:$0xff] }
  0x25   :  { %8499 = vmatprep.subr.mxu1 %v14047_v1  ;;  %8523 = vmatpush3.msra.mxu0 %v262_v27  ;;  %v7029_v10 = vld [vmem:[%s14028_s7] ss:$0 sm:$0xff] }
  0x26   :  { %8500 = vmatpush3.msra.mxu1 %v163_v17  ;;  %8524 = vmatprep.subr.mxu0 %v14047_v1  ;;  %v7030_v14 = vld [vmem:[%s14030_s9] ss:$0 sm:$0xff] }
  0x27   :  { %8501 = vmatprep.subr.mxu1 %v14047_v1  ;;  %8525 = vmatpush3.msra.mxu0 %v261_v28  ;;  %v522_v17 = vld [vmem:[%s14031_s10] sm:$0xff] }
  0x28   :  { %8502 = vmatpush3.msra.mxu1 %v162_v18  ;;  %8526 = vmatprep.subr.mxu0 %v14047_v1 }
  0x29   :  { %8503 = vmatprep.subr.mxu1 %v14047_v1  ;;  %8527 = vmatpush3.msra.mxu0 %v260_v29 }
  0x2a   :  { %8504 = vmatpush3.msra.mxu1 %v161_v19  ;;  %8528 = vmatprep.subr.mxu0 %v14047_v1  ;;  %v654_v19 = vld [vmem:[%s14033_s12 + $0x38] sm:$0xff] }
  0x2b   :  { %8505 = vmatprep.subr.mxu1 %v14047_v1  ;;  %8529 = vmatpush3.msra.mxu0 %v259_v30 }
  0x2c   :  { %8506 = vmatpush3.msra.mxu1 %v160_v20  ;;  %8530 = vmatprep.subr.mxu0 %v14047_v1  ;;  %v653_v20 = vld [vmem:[%s14033_s12 + $0x30] sm:$0xff] }
  0x2d   :  { %8507 = vmatprep.subr.mxu1 %v14047_v1  ;;  %8531 = vmatpush3.msra.mxu0 %v258_v31 }
  0x2e   :  { %8508 = vmatpush3.msra.mxu1 %v159_v21  ;;  %8532 = vmatprep.subr.mxu0 %v14047_v1  ;;  %v523_v21 = vld [vmem:[%s14031_s10 + $0x8] sm:$0xff] }
  0x2f   :  { %8547 = vmatprep.subr.mxu1 %v14047_v1  ;;  %8533 = vmatpush3.msra.mxu0 %v257_v32 }
  0x30   :  { %8534 = vmatprep.subr.mxu0 %v14047_v1 }
  0x31   :  { %8535 = vmatpush3.msra.mxu0 %v256_v33 }
  0x32   :  { %8536 = vmatprep.subr.mxu0 %v14047_v1 }
  0x33   :  { %8537 = vmatpush3.msra.mxu0 %v255_v34 }
  0x34   :  { %8538 = vmatprep.subr.mxu0 %v14047_v1 }
  0x35   :  { %8539 = vmatpush3.msra.mxu0 %v254_v35 }
  0x36   :  { %8540 = vmatprep.subr.mxu0 %v14047_v1 }
  0x37   :  { %8541 = vmatpush3.msra.mxu0 %v253_v41 }
  0x38   :  { %8542 = vmatprep.subr.mxu0 %v14047_v1 }
  0x39   :  { %8543 = vmatpush3.msra.mxu0 %v252_v42 }
  0x3a   :  { %8582 = vmatprep.subr.mxu0 %v14047_v1 }
  0xd6   :  { %v154_v37 = vpop.f32.mrf.mxu0 }
  0xd7   :  { %v155_v38 = vadd.f32 %v7025_v36, %v154_v37  ;;  %v809_v36 = vld [vmem:[%s14035_s14 + $0x130] sm:$0xff]  ;;  %v808_v37 = vld [vmem:[%s14035_s14 + $0x128] sm:$0xff] }
  0xd8   :  { %v8476_v39 = vpop.f32.mrf.mxu0 }
  0xd9   :  { %v158_v40 = vmax.f32 %v155_v38, 0.0  ;;  %v804_v38 = vld [vmem:[%s14035_s14 + $0x108] sm:$0xff]  ;;  %v803_v39 = vld [vmem:[%s14035_s14 + $0x100] sm:$0xff] }
  0xdb   :  { %8510 = vmatmul.mubr.f32.vlgmr.msra.gmra.mxu1 %v158_v40  ;;  %v799_v40 = vld [vmem:[%s14035_s14 + $0xe0] sm:$0xff] }
  0xdc   :  { %8548 = vmatpush3.msra.mxu1 %v267_v22  ;;  %8579 = vmatprep.mubr.msk.f32.mxu1 %vm9042_vm0, %v14047_v1  ;;  %v652_v22 = vld [vmem:[%s14033_s12 + $0x28] sm:$0xff] }
  0xdd   :  { %8549 = vmatprep.subr.mxu1 %v14047_v1 }
  0xde   :  { %8550 = vmatpush3.msra.mxu1 %v266_v23  ;;  %v651_v23 = vld [vmem:[%s14033_s12 + $0x20] sm:$0xff] }
  0xdf   :  { %8551 = vmatprep.subr.mxu1 %v14047_v1 }
  0xe0   :  { %8552 = vmatpush3.msra.mxu1 %v265_v24  ;;  %v524_v24 = vld [vmem:[%s14031_s10 + $0x10] sm:$0xff] }
  0xe1   :  { %8553 = vmatprep.subr.mxu1 %v14047_v1 }
  0xe2   :  { %8554 = vmatpush3.msra.mxu1 %v264_v25  ;;  %v650_v25 = vld [vmem:[%s14033_s12 + $0x18] sm:$0xff] }
  0xe3   :  { %8555 = vmatprep.subr.mxu1 %v14047_v1 }
  0xe4   :  { %8556 = vmatpush3.msra.mxu1 %v263_v26  ;;  %v649_v26 = vld [vmem:[%s14033_s12 + $0x10] sm:$0xff] }
  0xe5   :  { %8557 = vmatprep.subr.mxu1 %v14047_v1 }
  0xe6   :  { %8558 = vmatpush3.msra.mxu1 %v262_v27  ;;  %v525_v27 = vld [vmem:[%s14031_s10 + $0x18] sm:$0xff] }
  0xe7   :  { %8559 = vmatprep.subr.mxu1 %v14047_v1 }
  0xe8   :  { %8560 = vmatpush3.msra.mxu1 %v261_v28  ;;  %v526_v28 = vld [vmem:[%s14031_s10 + $0x20] sm:$0xff] }
  0xe9   :  { %8561 = vmatprep.subr.mxu1 %v14047_v1 }
  0xea   :  { %8562 = vmatpush3.msra.mxu1 %v260_v29  ;;  %v648_v29 = vld [vmem:[%s14033_s12 + $0x8] sm:$0xff] }
  0xeb   :  { %8563 = vmatprep.subr.mxu1 %v14047_v1 }
  0xec   :  { %8564 = vmatpush3.msra.mxu1 %v259_v30  ;;  %v647_v30 = vld [vmem:[%s14033_s12] sm:$0xff] }
  0xed   :  { %8565 = vmatprep.subr.mxu1 %v14047_v1 }
  0xee   :  { %8566 = vmatpush3.msra.mxu1 %v258_v31  ;;  %v817_v31 = vld [vmem:[%s14035_s14 + $0x170] sm:$0xff] }
  0xef   :  { %8567 = vmatprep.subr.mxu1 %v14047_v1 }
  0xf0   :  { %8568 = vmatpush3.msra.mxu1 %v257_v32  ;;  %v819_v32 = vld [vmem:[%s14035_s14 + $0x180] sm:$0xff] }
  0xf1   :  { %8569 = vmatprep.subr.mxu1 %v14047_v1 }
  0xf2   :  { %8570 = vmatpush3.msra.mxu1 %v256_v33  ;;  %v818_v33 = vld [vmem:[%s14035_s14 + $0x178] sm:$0xff] }
  0xf3   :  { %8571 = vmatprep.subr.mxu1 %v14047_v1 }
  0xf4   :  { %8572 = vmatpush3.msra.mxu1 %v255_v34  ;;  %v814_v34 = vld [vmem:[%s14035_s14 + $0x158] sm:$0xff] }
  0xf5   :  { %8573 = vmatprep.subr.mxu1 %v14047_v1 }
  0xf6   :  { %8574 = vmatpush3.msra.mxu1 %v254_v35  ;;  %v813_v35 = vld [vmem:[%s14035_s14 + $0x150] sm:$0xff] }
  0xf7   :  { %8575 = vmatprep.subr.mxu1 %v14047_v1 }
  0xf8   :  { %8576 = vmatpush3.msra.mxu1 %v253_v41  ;;  %v798_v41 = vld [vmem:[%s14035_s14 + $0xd8] sm:$0xff] }
  0xf9   :  { %8577 = vmatprep.subr.mxu1 %v14047_v1 }
  0xfa   :  { %8578 = vmatpush3.msra.mxu1 %v252_v42  ;;  %v794_v42 = vld [vmem:[%s14035_s14 + $0xb8] sm:$0xff] }
  0xfb   :  { %8617 = vmatprep.subr.mxu1 %v14047_v1 }
 0x19b   :  { %v248_v44 = vpop.f32.mrf.mxu1 }
 0x19c   :  { %v249_v45 = vadd.f32 %v7027_v43, %v248_v44  ;;  %v793_v43 = vld [vmem:[%s14035_s14 + $0xb0] sm:$0xff] }
 0x19d   :  { %v8511_v46 = vpop.f32.mrf.mxu1  ;;  %v789_v44 = vld [vmem:[%s14035_s14 + $0x90] sm:$0xff] }
 0x19e   :  { %8545 = vmatmul.mubr.f32.vlgmr.msra.gmra.mxu0 %v249_v45  ;;  %v784_v46 = vld [vmem:[%s14035_s14 + $0x68] sm:$0xff] }
 0x19f   :  { %8614 = vmatprep.mubr.msk.f32.mxu0 %vm9042_vm0, %v14047_v1  ;;  %8583 = vmatpush3.msra.mxu0 %v444_v47  ;;  %v783_v47 = vld [vmem:[%s14035_s14 + $0x60] sm:$0xff] }
 0x1a0   :  { %8584 = vmatprep.subr.mxu0 %v14047_v1 }
 0x1a1   :  { %8585 = vmatpush3.msra.mxu0 %v443_v48  ;;  %v779_v48 = vld [vmem:[%s14035_s14 + $0x40] sm:$0xff] }
 0x1a2   :  { %8586 = vmatprep.subr.mxu0 %v14047_v1 }
 0x1a3   :  { %8587 = vmatpush3.msra.mxu0 %v442_v49  ;;  %v637_v49 = vld [vmem:[%s14032_s11] sm:$0xff] }
 0x1a4   :  { %8588 = vmatprep.subr.mxu0 %v14047_v1 }
 0x1a5   :  { %8589 = vmatpush3.msra.mxu0 %v441_v54  ;;  %v638_v54 = vld [vmem:[%s14032_s11 + $0x8] sm:$0xff] }
 0x1a6   :  { %8590 = vmatprep.subr.mxu0 %v14047_v1 }
 0x1a7   :  { %8591 = vmatpush3.msra.mxu0 %v440_v55  ;;  %v812_v55 = vld [vmem:[%s14035_s14 + $0x148] sm:$0xff] }
 0x1a8   :  { %8592 = vmatprep.subr.mxu0 %v14047_v1 }
 0x1a9   :  { %8593 = vmatpush3.msra.mxu0 %v439_v56  ;;  %v811_v56 = vld [vmem:[%s14035_s14 + $0x140] sm:$0xff] }
 0x1aa   :  { %8594 = vmatprep.subr.mxu0 %v14047_v1 }
 0x1ab   :  { %8595 = vmatpush3.msra.mxu0 %v438_v57 }
 0x1ac   :  { %8596 = vmatprep.subr.mxu0 %v14047_v1 }
 0x1ad   :  { %8597 = vmatpush3.msra.mxu0 %v437_v58  ;;  %v807_v58 = vld [vmem:[%s14035_s14 + $0x120] sm:$0xff] }
 0x1ae   :  { %8598 = vmatprep.subr.mxu0 %v14047_v1 }
 0x1af   :  { %8599 = vmatpush3.msra.mxu0 %v436_v59 }
 0x1b0   :  { %8600 = vmatprep.subr.mxu0 %v14047_v1 }
 0x1b1   :  { %8601 = vmatpush3.msra.mxu0 %v435_v60  ;;  %v806_v60 = vld [vmem:[%s14035_s14 + $0x118] sm:$0xff] }
 0x1b2   :  { %8602 = vmatprep.subr.mxu0 %v14047_v1 }
 0x1b3   :  { %8603 = vmatpush3.msra.mxu0 %v434_v61 }
 0x1b4   :  { %8604 = vmatprep.subr.mxu0 %v14047_v1 }
 0x1b5   :  { %8605 = vmatpush3.msra.mxu0 %v433_v62  ;;  %v639_v62 = vld [vmem:[%s14032_s11 + $0x10] sm:$0xff] }
 0x1b6   :  { %8606 = vmatprep.subr.mxu0 %v14047_v1 }
 0x1b7   :  { %8607 = vmatpush3.msra.mxu0 %v432_v63  ;;  %v802_v63 = vld [vmem:[%s14035_s14 + $0xf8] sm:$0xff] }
 0x1b8   :  { %8608 = vmatprep.subr.mxu0 %v14047_v1 }
 0x1b9   :  { %8609 = vmatpush3.msra.mxu0 %v431_v0  ;;  %v801_v0 = vld [vmem:[%s14035_s14 + $0xf0] sm:$0xff] }
 0x1ba   :  { %8610 = vmatprep.subr.mxu0 %v14047_v1 }
 0x1bb   :  { %8611 = vmatpush3.msra.mxu0 %v430_v2 }
 0x1bc   :  { %8612 = vmatprep.subr.mxu0 %v14047_v1 }
 0x1bd   :  { %8613 = vmatpush3.msra.mxu0 %v429_v3  ;;  %v797_v3 = vld [vmem:[%s14035_s14 + $0xd0] sm:$0xff] }
 0x1be   :  { %971 = vmatprep.subr.mxu0 %v819_v32  ;;  %v820_v32 = vld [vmem:[%s14035_s14 + $0x188] sm:$0xff] }
 0x25e   :  { %v334_v50 = vpop.f32.mrf.mxu0 }
 0x25f   :  { %v338_v51 = vsub.f32 %v249_v45, %v334_v50  ;;  %v788_v45 = vld [vmem:[%s14035_s14 + $0x88] sm:$0xff] }
 0x260   :  { %v8546_v52 = vpop.f32.mrf.mxu0 }
 0x261   :  { %v339_v53 = vmul.f32 %v338_v51, %v338_v51  ;;  %v816_v52 = vld [vmem:[%s14035_s14 + $0x168] sm:$0xff] }
 0x263   :  { %8580 = vmatmul.mubr.f32.vlgmr.msra.gmra.mxu1 %v339_v53 }
 0x264   :  { %8619 = vmatprep.mubr.msk.f32.mxu1 %vm9042_vm0, %v14047_v1 }
 0x323   :  { %v406_v4 = vpop.f32.mrf.mxu1 }
 0x324   :  { %v407_v5 = vadd.f32 1e-05, %v406_v4 }
 0x325   :  { %v8581_v6 = vpop.f32.mrf.mxu1 }
 0x326   :  { %8868 = vrsqrt.f32 %v407_v5  ;;  %v796_v5 = vld [vmem:[%s14035_s14 + $0xc8] sm:$0xff] }
 0x333   :  { %v8869_v7 = vpop.eup %8868 }
 0x334   :  { %v411_v9 = vmul.f32 %v8869_v7, %v338_v51  ;;  %v640_v7 = vld [vmem:[%s14032_s11 + $0x18] sm:$0xff] }
 0x336   :  { %v419_v11 = vmul.f32 %v7028_v8, %v411_v9  ;;  %v792_v8 = vld [vmem:[%s14035_s14 + $0xa8] sm:$0xff]  ;;  %v791_v9 = vld [vmem:[%s14035_s14 + $0xa0] sm:$0xff] }
 0x338   :  { %v427_v12 = vadd.f32 %v7029_v10, %v419_v11  ;;  %v787_v11 = vld [vmem:[%s14035_s14 + $0x80] sm:$0xff] }
 0x33a   :  { %v428_v13 = vmax.f32 %v427_v12, 0.0 }
 0x33c   :  { %8615 = vmatmul.mubr.f32.vlgmr.msra.gmra.mxu0 %v428_v13  ;;  %v786_v13 = vld [vmem:[%s14035_s14 + $0x78] sm:$0xff] }
 0x33d   :  { %1023 = vmatprep.mubr.f32.mxu0 %v14047_v1  ;;  %972 = vmatpush1.msra.mxu0 %v818_v33 }
 0x33e   :  { %973 = vmatprep.subr.mxu0 %v814_v34  ;;  %v762_v34 = vld [vmem:[%s14034_s13 + $0x8] sm:$0xff] }
 0x33f   :  { %974 = vmatpush1.msra.mxu0 %v813_v35  ;;  %v815_v35 = vld [vmem:[%s14035_s14 + $0x160] sm:$0xff] }
 0x340   :  { %975 = vmatprep.subr.mxu0 %v809_v36  ;;  %v9678_v36 = vld [vmem:[%s14037_s16 + $0x78] sm:$0xff] }
 0x341   :  { %976 = vmatpush1.msra.mxu0 %v808_v37 }
 0x342   :  { %977 = vmatprep.subr.mxu0 %v804_v38 }
 0x343   :  { %978 = vmatpush1.msra.mxu0 %v803_v39 }
 0x344   :  { %979 = vmatprep.subr.mxu0 %v799_v40  ;;  %v763_v40 = vld [vmem:[%s14034_s13 + $0x10] sm:$0xff] }
 0x345   :  { %980 = vmatpush1.msra.mxu0 %v798_v41  ;;  %v810_v41 = vld [vmem:[%s14035_s14 + $0x138] sm:$0xff] }
 0x346   :  { %981 = vmatprep.subr.mxu0 %v794_v42  ;;  %v9699_v42 = vld [vmem:[%s14037_s16 + $0xf0] sm:$0xff] }
 0x347   :  { %982 = vmatpush1.msra.mxu0 %v793_v43 }
 0x348   :  { %983 = vmatprep.subr.mxu0 %v789_v44  ;;  %v805_v44 = vld [vmem:[%s14035_s14 + $0x110] sm:$0xff] }
 0x349   :  { %984 = vmatpush1.msra.mxu0 %v788_v45 }
 0x34a   :  { %985 = vmatprep.subr.mxu0 %v784_v46 }
 0x34b   :  { %986 = vmatpush1.msra.mxu0 %v783_v47  ;;  %v764_v47 = vld [vmem:[%s14034_s13 + $0x18] sm:$0xff] }
 0x34c   :  { %987 = vmatprep.subr.mxu0 %v779_v48  ;;  %v800_v48 = vld [vmem:[%s14035_s14 + $0xe8] sm:$0xff] }
 0x3fc   :  { %v518_v15 = vpop.f32.mrf.mxu0 }
 0x3fd   :  { %v519_v16 = vadd.f32 %v7030_v14, %v518_v15  ;;  %v641_v15 = vld [vmem:[%s14032_s11 + $0x20] sm:$0xff] }
 0x3fe   :  { %v8616_v18 = vpop.f32.mrf.mxu0 }
 0x3ff   :  { %8618 = vmatpush3.msk.msra.mxu1 %vm543_vm2, %v519_v16  ;;  %v782_v16 = vld [vmem:[%s14035_s14 + $0x58] sm:$0xff] }
 0x400   :  { %8620 = vmatmul.mubr.msk.f32.vlgmr.msra.gmra.mxu1 %vm527_vm3, %v522_v17  ;;  %8634 = vmatprep.subr.mxu1 %v14047_v1  ;;  %v781_v17 = vld [vmem:[%s14035_s14 + $0x50] sm:$0xff] }
 0x401   :  { %8622 = vmatprep.mubr.msk.f32.mxu1 %vm9042_vm0, %v14047_v1  ;;  %8635 = vmatpush3.msra.mxu1 %v654_v19  ;;  %v777_v19 = vld [vmem:[%s14035_s14 + $0x30] sm:$0xff] }
 0x402   :  { %8636 = vmatprep.subr.mxu1 %v14047_v1 }
 0x403   :  { %8637 = vmatpush3.msra.mxu1 %v653_v20 }
 0x404   :  { %8623 = vmatmul.mubr.msk.f32.gmra.mxu1 %vm527_vm3, %v523_v21  ;;  %8638 = vmatprep.subr.mxu1 %v14047_v1 }
 0x405   :  { %8625 = vmatprep.mubr.msk.f32.mxu1 %vm9042_vm0, %v14047_v1  ;;  %8639 = vmatpush3.msra.mxu1 %v652_v22  ;;  %v776_v22 = vld [vmem:[%s14035_s14 + $0x28] sm:$0xff] }
 0x406   :  { %8640 = vmatprep.subr.mxu1 %v14047_v1 }
 0x407   :  { %8641 = vmatpush3.msra.mxu1 %v651_v23  ;;  %v778_v23 = vld [vmem:[%s14035_s14 + $0x38] sm:$0xff] }
 0x408   :  { %8626 = vmatmul.mubr.msk.f32.gmra.mxu1 %vm527_vm3, %v524_v24  ;;  %8642 = vmatprep.subr.mxu1 %v14047_v1  ;;  %v772_v24 = vld [vmem:[%s14035_s14 + $0x8] sm:$0xff] }
 0x409   :  { %8628 = vmatprep.mubr.msk.f32.mxu1 %vm9042_vm0, %v14047_v1  ;;  %8643 = vmatpush3.msra.mxu1 %v650_v25  ;;  %v774_v25 = vld [vmem:[%s14035_s14 + $0x18] sm:$0xff] }
 0x40a   :  { %8644 = vmatprep.subr.mxu1 %v14047_v1  ;;  %988 = vmatpush1.msra.mxu0 %v778_v23  ;;  %v9926_v23 = vld [vmem:[%s14037_s16 + $0xc0] sm:$0xff] }
 0x40b   :  { %8645 = vmatpush3.msra.mxu1 %v649_v26  ;;  %989 = vmatprep.subr.mxu0 %v774_v25  ;;  %v771_v26 = vld [vmem:[%s14035_s14] sm:$0xff] }
 0x40c   :  { %8629 = vmatmul.mubr.msk.f32.gmra.mxu1 %vm527_vm3, %v525_v27  ;;  %8646 = vmatprep.subr.mxu1 %v14047_v1  ;;  %v773_v27 = vld [vmem:[%s14035_s14 + $0x10] sm:$0xff]  ;;  %v9941_v25 = vld [vmem:[%s14037_s16 + $0x40] sm:$0xff] }
 0x40d   :  { %8631 = vmatprep.mubr.msk.f32.mxu1 %vm9042_vm0, %v14047_v1  ;;  %8647 = vmatpush3.msra.mxu1 %v648_v29  ;;  %v761_v29 = vld [vmem:[%s14034_s13] sm:$0xff] }
 0x40e   :  { %8648 = vmatprep.subr.mxu1 %v14047_v1  ;;  %990 = vmatpush1.msra.mxu0 %v773_v27  ;;  %v9953_v27 = vld [vmem:[%s14037_s16 + $0xb8] sm:$0xff] }
 0x40f   :  { %8649 = vmatpush3.msra.mxu1 %v647_v30 }
 0x410   :  { %8632 = vmatmul.mubr.msk.f32.gmra.mxu1 %vm527_vm3, %v526_v28  ;;  %876 = vmatprep.subr.mxu1 %v817_v31  ;;  %v9654_v28 = vld [vmem:[%s14037_s16 + $0xf8] sm:$0xff] }
 0x411   :  { %8650 = vmatprep.mubr.msk.f32.mxu1 %vm9042_vm0, %v14047_v1  ;;  %7171 = vmatprep.subr.mxu0 %v9654_v28 }
 0x4c0   :  { %v613_v50 = vpop.f32.mrf.mxu1 }
 0x4c1   :  { %v642_v51 = vmul.f32 %v637_v49, %v613_v50  ;;  %v795_v50 = vld [vmem:[%s14035_s14 + $0xc0] sm:$0xff] }
 0x4c2   :  { %v8621_v53 = vpop.f32.mrf.mxu1 }
 0x4c3   :  { %8651 = vmatmul.mubr.msk.f32.vlgmr.msra.gmra.mxu1 %vm655_vm4, %v642_v51  ;;  %v765_v53 = vld [vmem:[%s14034_s13 + $0x20] sm:$0xff] }
 0x4c4   :  { %v618_v57 = vpop.f32.mrf.mxu1  ;;  %8653 = vmatprep.mubr.msk.f32.mxu1 %vm9042_vm0, %v14047_v1  ;;  %877 = vmatpush1.msra.mxu1 %v816_v52 }
 0x4c5   :  { %v643_v59 = vmul.f32 %v638_v54, %v618_v57  ;;  %878 = vmatprep.subr.mxu1 %v812_v55  ;;  %v790_v54 = vld [vmem:[%s14035_s14 + $0x98] sm:$0xff] }
 0x4c6   :  { %v8624_v61 = vpop.f32.mrf.mxu1  ;;  %879 = vmatpush1.msra.mxu1 %v811_v56  ;;  %v785_v56 = vld [vmem:[%s14035_s14 + $0x70] sm:$0xff] }
 0x4c7   :  { %8654 = vmatmul.mubr.msk.f32.gmra.mxu1 %vm655_vm4, %v643_v59  ;;  %880 = vmatprep.subr.mxu1 %v807_v58  ;;  %v780_v58 = vld [vmem:[%s14035_s14 + $0x48] sm:$0xff]  ;;  %v775_v61 = vld [vmem:[%s14035_s14 + $0x20] sm:$0xff] }
 0x4c8   :  { %v623_v2 = vpop.f32.mrf.mxu1  ;;  %8656 = vmatprep.mubr.msk.f32.mxu1 %vm9042_vm0, %v14047_v1  ;;  %881 = vmatpush1.msra.mxu1 %v806_v60  ;;  %v9757_v60 = vld [vmem:[%s14037_s16 + $0x70] sm:$0xff] }
 0x4c9   :  { %v644_v4 = vmul.f32 %v639_v62, %v623_v2  ;;  %882 = vmatprep.subr.mxu1 %v802_v63  ;;  %v9768_v62 = vld [vmem:[%s14037_s16 + $0xe8] sm:$0xff]  ;;  %v9775_v63 = vld [vmem:[%s14037_s16 + $0x1f8] sm:$0xff]  ;;  %v9787_v2 = vld [vmem:[%s14037_s16 + $0x1f0] sm:$0xff] }
 0x4ca   :  { %v8627_v6 = vpop.f32.mrf.mxu1  ;;  %883 = vmatpush1.msra.mxu1 %v801_v0  ;;  %v9781_v0 = vld [vmem:[%s14037_s16 + $0x178] sm:$0xff] }
 0x4cb   :  { %8657 = vmatmul.mubr.msk.f32.gmra.mxu1 %vm655_vm4, %v644_v4  ;;  %884 = vmatprep.subr.mxu1 %v797_v3  ;;  %v9793_v3 = vld [vmem:[%s14037_s16 + $0x68] sm:$0xff]  ;;  %v9801_v4 = vld [vmem:[%s14037_s16 + $0x170] sm:$0xff] }
 0x4cc   :  { %v628_v10 = vpop.f32.mrf.mxu1  ;;  %8659 = vmatprep.mubr.msk.f32.mxu1 %vm9042_vm0, %v14047_v1  ;;  %885 = vmatpush1.msra.mxu1 %v796_v5  ;;  %v9806_v5 = vld [vmem:[%s14037_s16 + $0xe0] sm:$0xff]  ;;  %v9814_v6 = vld [vmem:[%s14037_s16 + $0x1e8] sm:$0xff] }
 0x4cd   :  { %v645_v12 = vmul.f32 %v640_v7, %v628_v10  ;;  %886 = vmatprep.subr.mxu1 %v792_v8  ;;  %v9821_v7 = vld [vmem:[%s14037_s16 + $0x168] sm:$0xff]  ;;  %v9828_v8 = vld [vmem:[%s14037_s16 + $0x1e0] sm:$0xff] }
 0x4ce   :  { %v8630_v14 = vpop.f32.mrf.mxu1  ;;  %887 = vmatpush1.msra.mxu1 %v791_v9  ;;  %v9833_v9 = vld [vmem:[%s14037_s16 + $0x60] sm:$0xff] }
 0x4cf   :  { %8660 = vmatmul.mubr.msk.f32.gmra.mxu1 %vm655_vm4, %v645_v12  ;;  %888 = vmatprep.subr.mxu1 %v787_v11  ;;  %v9841_v10 = vld [vmem:[%s14037_s16 + $0x160] sm:$0xff]  ;;  %v9846_v11 = vld [vmem:[%s14037_s16 + $0xd8] sm:$0xff] }
 0x4d0   :  { %v633_v18 = vpop.f32.mrf.mxu1  ;;  %8662 = vmatprep.mubr.msk.f32.mxu1 %vm9042_vm0, %v14047_v1  ;;  %889 = vmatpush1.msra.mxu1 %v786_v13  ;;  %v9854_v12 = vld [vmem:[%s14037_s16 + $0x1d8] sm:$0xff] }
 0x4d1   :  { %v646_v20 = vmul.f32 %v641_v15, %v633_v18  ;;  %890 = vmatprep.subr.mxu1 %v782_v16  ;;  %v9861_v13 = vld [vmem:[%s14037_s16 + $0x58] sm:$0xff]  ;;  %v9873_v15 = vld [vmem:[%s14037_s16 + $0xd0] sm:$0xff]  ;;  %v9894_v18 = vld [vmem:[%s14037_s16 + $0xc8] sm:$0xff] }
 0x4d2   :  { %v8633_v21 = vpop.f32.mrf.mxu1  ;;  %891 = vmatpush1.msra.mxu1 %v781_v17  ;;  %v9868_v14 = vld [vmem:[%s14037_s16 + $0x158] sm:$0xff]  ;;  %v9881_v16 = vld [vmem:[%s14037_s16 + $0x1d0] sm:$0xff] }
 0x4d3   :  { %8663 = vmatmul.mubr.msk.f32.gmra.mxu1 %vm655_vm4, %v646_v20  ;;  %892 = vmatprep.subr.mxu1 %v777_v19  ;;  %v9886_v17 = vld [vmem:[%s14037_s16 + $0x50] sm:$0xff]  ;;  %v9908_v20 = vld [vmem:[%s14037_s16 + $0x1c8] sm:$0xff] }
 0x4d4   :  { %928 = vmatprep.mubr.f32.mxu1 %v14047_v1  ;;  %893 = vmatpush1.msra.mxu1 %v776_v22  ;;  %v9901_v19 = vld [vmem:[%s14037_s16 + $0x150] sm:$0xff]  ;;  %14110 = vst [vmem:[#allocation7_spill] sm:$0xff] %v9908_v20  ;;  %v9913_v21 = vld [vmem:[%s14037_s16 + $0x48] sm:$0xff] }
 0x4d5   :  { %894 = vmatprep.subr.mxu1 %v772_v24  ;;  %v9921_v22 = vld [vmem:[%s14037_s16 + $0x148] sm:$0xff]  ;;  %v9934_v24 = vld [vmem:[%s14037_s16 + $0x1c0] sm:$0xff] }
 0x4d6   :  { %895 = vmatpush1.msra.mxu1 %v771_v26  ;;  %14111 = vst [vmem:[#allocation8_spill] sm:$0xff] %v9921_v22  ;;  %14112 = vst [vmem:[#allocation9_spill] sm:$0xff] %v9934_v24  ;;  %v9946_v26 = vld [vmem:[%s14037_s16 + $0x140] sm:$0xff] }
 0x4d7   :  { %8665 = vmatprep.subr.mxu1 %v14047_v1  ;;  %14113 = vst [vmem:[#allocation10_spill] sm:$0xff] %v9946_v26 }
 0x583   :  { %v737_v30 = vpop.f32.mrf.mxu1 }
 0x584   :  { %v9660_v31 = vmul.f32 %v761_v29, %v737_v30  ;;  %v9958_v29 = vld [vmem:[%s14037_s16 + $0x1b8] sm:$0xff] }
 0x585   :  { %v8652_v33 = vpop.f32.mrf.mxu1  ;;  %14114 = vst [vmem:[#allocation11_spill] sm:$0xff] %v9958_v29  ;;  %v9966_v30 = vld [vmem:[%s14037_s16 + $0x38] sm:$0xff] }
 0x586   :  { %7042 = vmatmul.mubr.msk.f32.vlgmr.msra.gmra.mxu1 %vm848_vm5, %v9660_v31  ;;  %7047 = vmatmul.mubr.msk.f32.vlgmr.msra.gmra.mxu0 %vm848_vm5, %v9660_v31  ;;  %v9983_v33 = vld [vmem:[%s14037_s16 + $0x1b0] sm:$0xff] }
 0x587   :  { %v742_v37 = vpop.f32.mrf.mxu1  ;;  %8666 = vmatpush3.msra.mxu1 %v820_v32  ;;  %934 = vmatprep.mubr.f32.mxu1 %v14047_v1  ;;  %v9978_v32 = vld [vmem:[%s14037_s16 + $0xb0] sm:$0xff]  ;;  %14116 = vst [vmem:[#allocation13_spill] sm:$0xff] %v9983_v33 }
 0x588   :  { %v9681_v38 = vmul.f32 %v762_v34, %v742_v37  ;;  %8667 = vmatprep.subr.mxu1 %v14047_v1  ;;  %1029 = vmatprep.mubr.f32.mxu0 %v14047_v1  ;;  %v9990_v34 = vld [vmem:[%s14037_s16 + $0x30] sm:$0xff]  ;;  %v10002_v37 = vld [vmem:[%s14037_s16 + $0xa8] sm:$0xff] }
 0x589   :  { %v8655_v39 = vpop.f32.mrf.mxu1  ;;  %8668 = vmatpush3.msra.mxu1 %v815_v35  ;;  %7172 = vmatpush3.msra.mxu0 %v9678_v36  ;;  %v9995_v35 = vld [vmem:[%s14037_s16 + $0x130] sm:$0xff] }
 0x58a   :  { %7043 = vmatmul.mubr.msk.f32.gmra.mxu1 %vm848_vm5, %v9681_v38  ;;  %7048 = vmatmul.mubr.msk.f32.gmra.mxu0 %vm848_vm5, %v9681_v38  ;;  %14117 = vst [vmem:[#allocation14_spill] sm:$0xff] %v9995_v35  ;;  %v10014_v39 = vld [vmem:[%s14037_s16 + $0x28] sm:$0xff] }
 0x58b   :  { %8669 = vmatprep.subr.mxu1 %v14047_v1  ;;  %v747_v43 = vpop.f32.mrf.mxu1  ;;  %940 = vmatprep.mubr.f32.mxu1 %v14047_v1 }
 0x58c   :  { %v9706_v45 = vmul.f32 %v763_v40, %v747_v43  ;;  %8670 = vmatpush3.msra.mxu1 %v810_v41  ;;  %1035 = vmatprep.mubr.f32.mxu0 %v14047_v1  ;;  %v10019_v40 = vld [vmem:[%s14037_s16 + $0x128] sm:$0xff]  ;;  %v10026_v41 = vld [vmem:[%s14037_s16 + $0xa0] sm:$0xff] }
 0x58d   :  { %8671 = vmatprep.subr.mxu1 %v14047_v1  ;;  %v8658_v46 = vpop.f32.mrf.mxu1  ;;  %7173 = vmatprep.subr.mxu0 %v9699_v42  ;;  %14119 = vst [vmem:[#allocation16_spill] sm:$0xff] %v10019_v40  ;;  %v10031_v43 = vld [vmem:[%s14037_s16 + $0x1a0] sm:$0xff] }
 0x58e   :  { %8672 = vmatpush3.msra.mxu1 %v805_v44  ;;  %7049 = vmatmul.mubr.msk.f32.gmra.mxu0 %vm848_vm5, %v9706_v45  ;;  %14120 = vst [vmem:[#allocation17_spill] sm:$0xff] %v10031_v43  ;;  %v10038_v44 = vld [vmem:[%s14037_s16 + $0x20] sm:$0xff]  ;;  %v10050_v46 = vld [vmem:[%s14037_s16 + $0x98] sm:$0xff] }
 0x58f   :  { %7044 = vmatmul.mubr.msk.f32.gmra.mxu1 %vm848_vm5, %v9706_v45  ;;  %8673 = vmatprep.subr.mxu1 %v14047_v1  ;;  %v752_v49 = vpop.f32.mrf.mxu1 }
 0x590   :  { %v9725_v51 = vmul.f32 %v764_v47, %v752_v49  ;;  %8674 = vmatpush3.msra.mxu1 %v800_v48  ;;  %946 = vmatprep.mubr.f32.mxu1 %v14047_v1  ;;  %v10055_v47 = vld [vmem:[%s14037_s16 + $0x198] sm:$0xff] }
 0x591   :  { %8675 = vmatprep.subr.mxu1 %v14047_v1  ;;  %v8661_v52 = vpop.f32.mrf.mxu1  ;;  %1041 = vmatprep.mubr.f32.mxu0 %v14047_v1  ;;  %14122 = vst [vmem:[#allocation19_spill] sm:$0xff] %v10055_v47  ;;  %v10062_v48 = vld [vmem:[%s14037_s16 + $0x18] sm:$0xff] }
 0x592   :  { %8676 = vmatpush3.msra.mxu1 %v795_v50  ;;  %7050 = vmatmul.mubr.msk.f32.gmra.mxu0 %vm848_vm5, %v9725_v51  ;;  %v10067_v49 = vld [vmem:[%s14037_s16 + $0x118] sm:$0xff]  ;;  %v10074_v50 = vld [vmem:[%s14037_s16 + $0x90] sm:$0xff] }
 0x593   :  { %7045 = vmatmul.mubr.msk.f32.gmra.mxu1 %vm848_vm5, %v9725_v51  ;;  %8677 = vmatprep.subr.mxu1 %v14047_v1  ;;  %v757_v55 = vpop.f32.mrf.mxu1  ;;  %14123 = vst [vmem:[#allocation20_spill] sm:$0xff] %v10067_v49  ;;  %v10090_v52 = vld [vmem:[%s14037_s16 + $0x10] sm:$0xff] }
 0x594   :  { %v9744_v57 = vmul.f32 %v765_v53, %v757_v55  ;;  %8678 = vmatpush3.msra.mxu1 %v790_v54  ;;  %952 = vmatprep.mubr.f32.mxu1 %v14047_v1  ;;  %v10095_v53 = vld [vmem:[%s14037_s16 + $0x110] sm:$0xff]  ;;  %v10102_v54 = vld [vmem:[%s14037_s16 + $0x88] sm:$0xff] }
 0x595   :  { %8679 = vmatprep.subr.mxu1 %v14047_v1  ;;  %1047 = vmatprep.mubr.f32.mxu0 %v14047_v1  ;;  %v8664_v59 = vpop.f32.mrf.mxu1  ;;  %14125 = vst [vmem:[#allocation22_spill] sm:$0xff] %v10095_v53  ;;  %v10107_v55 = vld [vmem:[%s14037_s16 + $0x188] sm:$0xff] }
 0x596   :  { %8680 = vmatpush3.msra.mxu1 %v785_v56  ;;  %7051 = vmatmul.mubr.msk.f32.gmra.mxu0 %vm848_vm5, %v9744_v57  ;;  %14126 = vst [vmem:[#allocation23_spill] sm:$0xff] %v10107_v55  ;;  %v10114_v56 = vld [vmem:[%s14037_s16 + $0x8] sm:$0xff]  ;;  %v10131_v59 = vld [vmem:[%s14037_s16 + $0x180] sm:$0xff] }
 0x597   :  { %7046 = vmatmul.mubr.msk.f32.gmra.mxu1 %vm848_vm5, %v9744_v57  ;;  %8681 = vmatprep.subr.mxu1 %v14047_v1  ;;  %14128 = vst [vmem:[#allocation25_spill] sm:$0xff] %v10131_v59 }
 0x598   :  { %8682 = vmatpush3.msra.mxu1 %v780_v58  ;;  %8685 = vmatprep.mubr.msk.f32.mxu1 %vm9042_vm0, %v14047_v1  ;;  %v10126_v58 = vld [vmem:[%s14037_s16 + $0x80] sm:$0xff] }
 0x599   :  { %8683 = vmatprep.subr.mxu1 %v14047_v1  ;;  %7174 = vmatpush3.msra.mxu0 %v9757_v60 }
 0x59a   :  { %8684 = vmatpush3.msra.mxu1 %v775_v61  ;;  %7175 = vmatprep.subr.mxu0 %v9768_v62  ;;  %v10138_v61 = vld [vmem:[%s14037_s16] sm:$0xff] }
 0x59b   :  { %8686 = vmatmul.mubr.msk.f32.vlgmr.msra.gmra.mxu1 %vm848_vm5, %v9660_v31  ;;  %7218 = vmatprep.subr.mxu1 %v9775_v63  ;;  %v9971_v31 = vld [vmem:[%s14037_s16 + $0x138] sm:$0xff] }
 0x59c   :  { %8688 = vmatprep.mubr.msk.f32.mxu1 %vm9042_vm0, %v14047_v1  ;;  %7219 = vmatpush3.msra.mxu1 %v9781_v0  ;;  %14115 = vst [vmem:[#allocation12_spill] sm:$0xff] %v9971_v31 }
 0x59d   :  { %7220 = vmatprep.subr.mxu1 %v9787_v2  ;;  %7176 = vmatpush3.msra.mxu0 %v9793_v3 }
 0x59e   :  { %7221 = vmatpush3.msra.mxu1 %v9801_v4  ;;  %7177 = vmatprep.subr.mxu0 %v9806_v5 }
 0x59f   :  { %8689 = vmatmul.mubr.msk.f32.gmra.mxu1 %vm848_vm5, %v9681_v38  ;;  %7222 = vmatprep.subr.mxu1 %v9814_v6  ;;  %v10007_v38 = vld [vmem:[%s14037_s16 + $0x1a8] sm:$0xff] }
 0x5a0   :  { %8691 = vmatprep.mubr.msk.f32.mxu1 %vm9042_vm0, %v14047_v1  ;;  %7223 = vmatpush3.msra.mxu1 %v9821_v7  ;;  %14118 = vst [vmem:[#allocation15_spill] sm:$0xff] %v10007_v38 }
 0x5a1   :  { %7224 = vmatprep.subr.mxu1 %v9828_v8  ;;  %7178 = vmatpush3.msra.mxu0 %v9833_v9 }
 0x5a2   :  { %7225 = vmatpush3.msra.mxu1 %v9841_v10  ;;  %7179 = vmatprep.subr.mxu0 %v9846_v11 }
 0x5a3   :  { %8692 = vmatmul.mubr.msk.f32.gmra.mxu1 %vm848_vm5, %v9706_v45  ;;  %7226 = vmatprep.subr.mxu1 %v9854_v12  ;;  %v10043_v45 = vld [vmem:[%s14037_s16 + $0x120] sm:$0xff] }
 0x5a4   :  { %8694 = vmatprep.mubr.msk.f32.mxu1 %vm9042_vm0, %v14047_v1  ;;  %7180 = vmatpush3.msra.mxu0 %v9861_v13  ;;  %14121 = vst [vmem:[#allocation18_spill] sm:$0xff] %v10043_v45 }
 0x5a5   :  { %7227 = vmatpush3.msra.mxu1 %v9868_v14  ;;  %7181 = vmatprep.subr.mxu0 %v9873_v15 }
 0x5a6   :  { %7228 = vmatprep.subr.mxu1 %v9881_v16  ;;  %7182 = vmatpush3.msra.mxu0 %v9886_v17 }
 0x5a7   :  { %8695 = vmatmul.mubr.msk.f32.gmra.mxu1 %vm848_vm5, %v9725_v51  ;;  %7183 = vmatprep.subr.mxu0 %v9894_v18  ;;  %v10079_v51 = vld [vmem:[%s14037_s16 + $0x190] sm:$0xff] }
 0x5a8   :  { %8697 = vmatprep.mubr.msk.f32.mxu1 %vm9042_vm0, %v14047_v1  ;;  %7229 = vmatpush3.msra.mxu1 %v9901_v19  ;;  %14124 = vst [vmem:[#allocation21_spill] sm:$0xff] %v10079_v51  ;;  %v10143_v1 = vld [vmem:[%s14037_s16 + $0x100] sm:$0xff] }
 0x5a9   :  { %7230 = vmatprep.subr.mxu1 %v9908_v20  ;;  %7184 = vmatpush3.msra.mxu0 %v9913_v21  ;;  %14129 = vst [vmem:[#allocation26_spill] sm:$0xff] %v10143_v1 }
 0x5aa   :  { %7231 = vmatpush3.msra.mxu1 %v9921_v22  ;;  %7185 = vmatprep.subr.mxu0 %v9926_v23 }
 0x5ab   :  { %8698 = vmatmul.mubr.msk.f32.gmra.mxu1 %vm848_vm5, %v9744_v57  ;;  %7232 = vmatprep.subr.mxu1 %v9934_v24  ;;  %v10119_v57 = vld [vmem:[%s14037_s16 + $0x108] sm:$0xff] }
 0x5ac   :  { %7186 = vmatpush3.msra.mxu0 %v9941_v25  ;;  %7233 = vmatpush3.msra.mxu1 %v9946_v26  ;;  %14127 = vst [vmem:[#allocation24_spill] sm:$0xff] %v10119_v57 }
 0x5ad   :  { %7187 = vmatprep.subr.mxu0 %v9953_v27  ;;  %7234 = vmatprep.subr.mxu1 %v9958_v29 }
 0x5ae   :  { %7188 = vmatpush3.msra.mxu0 %v9966_v30  ;;  %7235 = vmatpush3.msra.mxu1 %v9971_v31 }
 0x5af   :  { %7189 = vmatprep.subr.mxu0 %v9978_v32  ;;  %7236 = vmatprep.subr.mxu1 %v9983_v33 }
 0x5b0   :  { %7190 = vmatpush3.msra.mxu0 %v9990_v34  ;;  %7237 = vmatpush3.msra.mxu1 %v9995_v35 }
 0x5b1   :  { %7191 = vmatprep.subr.mxu0 %v10002_v37  ;;  %7238 = vmatprep.subr.mxu1 %v10007_v38 }
 0x5b2   :  { %7192 = vmatpush3.msra.mxu0 %v10014_v39  ;;  %7239 = vmatpush3.msra.mxu1 %v10019_v40 }
 0x5b3   :  { %7193 = vmatprep.subr.mxu0 %v10026_v41  ;;  %7240 = vmatprep.subr.mxu1 %v10031_v43 }
 0x5b4   :  { %7194 = vmatpush3.msra.mxu0 %v10038_v44  ;;  %7241 = vmatpush3.msra.mxu1 %v10043_v45 }
 0x5b5   :  { %7195 = vmatprep.subr.mxu0 %v10050_v46  ;;  %7242 = vmatprep.subr.mxu1 %v10055_v47 }
 0x5b6   :  { %7196 = vmatpush3.msra.mxu0 %v10062_v48  ;;  %7243 = vmatpush3.msra.mxu1 %v10067_v49 }
 0x5b7   :  { %7197 = vmatprep.subr.mxu0 %v10074_v50  ;;  %7244 = vmatprep.subr.mxu1 %v10079_v51 }
 0x5b8   :  { %7198 = vmatpush3.msra.mxu0 %v10090_v52  ;;  %7245 = vmatpush3.msra.mxu1 %v10095_v53 }
 0x5b9   :  { %7199 = vmatprep.subr.mxu0 %v10102_v54  ;;  %7246 = vmatprep.subr.mxu1 %v10107_v55  ;;  %v823_v55 = vlaneseq }
 0x5ba   :  { %7200 = vmatpush3.msra.mxu0 %v10114_v56  ;;  %7247 = vmatpush3.msra.mxu1 %v10119_v57  ;;  %v14130_v57 = vmov 0.0  }
 0x5bb   :  { %7201 = vmatprep.subr.mxu0 %v10126_v58  ;;  %7248 = vmatprep.subr.mxu1 %v10131_v59  ;;  %v10149_v59 = vshrl.u32 %v823_v55, 7 }
 0x5bc   :  { %7202 = vmatpush3.msra.mxu0 %v10138_v61  ;;  %7249 = vmatpush3.msra.mxu1 %v10143_v1  ;;  %v10160_v1 = vld [vmem:[%s14036_s15] sm:$0x1f] }
 0x5bd   :  { %8700 = vmatprep.subr.mxu0 %v14130_v57  ;;  %7286 = vmatprep.subr.mxu1 %v9654_v28  ;;  %v829_v53 = vsub.s32 1, %v10149_v59  ;;  %v837_v51 = vsub.s32 3, %v10149_v59  ;;  %v10154_v49 = vsub.s32 0, %v10149_v59  ;;  %v833_v47 = vsub.s32 2, %v10149_v59 }
 0x5bf   :  { %14131 = vst [vmem:[#allocation27_spill] sm:$0xff] %v10154_v49  ;;  %v10163_v45 = vrot.slane %v10160_v1, %v829_v53  ;;  %v10166_v28 = vrot.slane %v10160_v1, %v837_v51  ;;  %v10170_v55 = vrot.slane %v10160_v1, %v10154_v49  ;;  %v10173_v40 = vrot.slane %v10160_v1, %v833_v47  ;;  %v10190_v47 = vld [vmem:[%s14037_s16 + $0x278] sm:$0xff] }
 0x646   :  { %v930_v43 = vpop.f32.mrf.mxu1  ;;  %v1025_v38 = vpop.f32.mrf.mxu0 }
 0x647   :  { %v10182_v51 = vadd.f32 %v930_v43, %v10170_v55  ;;  %v10185_v29 = vadd.f32 %v1025_v38, %v10173_v40  ;;  %v10199_v38 = vld [vmem:[%s14037_s16 + $0x270] sm:$0xff] }
 0x648   :  { %v932_v35 = vpop.f32.mrf.mxu1  ;;  %v1027_v33 = vpop.f32.mrf.mxu0 }
 0x649   :  { %v10176_v31 = vadd.f32 %v932_v35, %v10163_v45  ;;  %v10179_v53 = vadd.f32 %v1027_v33, %v10166_v28  ;;  %14134 = vst [vmem:[#allocation30_spill] sm:$0xff] %v10185_v29 }
 0x64a   :  { %v936_v49 = vpop.f32.mrf.mxu1  ;;  %v1031_v26 = vpop.f32.mrf.mxu0 }
 0x64b   :  { %14132 = vst [vmem:[#allocation28_spill] sm:$0xff] %v10176_v31  ;;  %14133 = vst [vmem:[#allocation29_spill] sm:$0xff] %v10179_v53  ;;  %1288 = vmatprep.mubr.f32.mxu0 %v10176_v31  ;;  %1378 = vmatprep.mubr.f32.mxu1 %v10179_v53  ;;  %v10202_v43 = vadd.f32 %v1031_v26, %v10173_v40  ;;  %v10218_v26 = vld [vmem:[%s14037_s16 + $0x268] sm:$0xff] }
 0x64c   :  { %v938_v35 = vpop.f32.mrf.mxu1  ;;  %v1033_v33 = vpop.f32.mrf.mxu0  ;;  %1289 = vmatmul.mubr.f32.vlgmr.msra.gmra.mxu0 %v10182_v51  ;;  %1379 = vmatmul.mubr.f32.vlgmr.msra.gmra.mxu1 %v10185_v29 }
 0x64d   :  { %14135 = vst [vmem:[#allocation31_spill] sm:$0xff] %v10202_v43  ;;  %v10205_v24 = vadd.f32 %v1033_v33, %v10166_v28  ;;  %8701 = vmatpush3.msra.mxu0 %v10190_v47  ;;  %7287 = vmatpush3.msra.mxu1 %v9678_v36 }
 0x64e   :  { %8702 = vmatprep.subr.mxu0 %v14130_v57  ;;  %7288 = vmatprep.subr.mxu1 %v9699_v42  ;;  %v1037_v29 = vpop.f32.mrf.mxu0 }
 0x64f   :  { %14136 = vst [vmem:[#allocation32_spill] sm:$0xff] %v10205_v24  ;;  %v10211_v53 = vpop.f32.mrf.mxu1  ;;  %8703 = vmatpush3.msra.mxu0 %v10199_v38  ;;  %7289 = vmatpush3.msra.mxu1 %v9757_v60  ;;  %v10230_v60 = vld [vmem:[%s14037_s16 + $0x260] sm:$0xff]  ;;  %v10233_v22 = vadd.f32 %v1037_v29, %v10173_v40  ;;  %v10246_v29 = vld [vmem:[%s14037_s16 + $0x258] sm:$0xff] }
 0x650   :  { %1383 = vmatprep.mubr.f32.mxu1 %v10205_v24  ;;  %8704 = vmatprep.subr.mxu0 %v14130_v57  ;;  %v1039_v36 = vpop.f32.mrf.mxu0 }
 0x651   :  { %7290 = vmatprep.subr.mxu1 %v9768_v62  ;;  %v944_v42 = vpop.f32.mrf.mxu1  ;;  %v10224_v33 = vadd.f32 %v1039_v36, %v10166_v28  ;;  %1384 = vmatmul.mubr.f32.gmra.mxu1 %v10202_v43  ;;  %14138 = vst [vmem:[#allocation34_spill] sm:$0xff] %v10233_v22 }
 0x652   :  { %8705 = vmatpush3.msra.mxu0 %v10218_v26  ;;  %7291 = vmatpush3.msra.mxu1 %v9793_v3  ;;  %v1043_v24 = vpop.f32.mrf.mxu0 }
 0x653   :  { %14137 = vst [vmem:[#allocation33_spill] sm:$0xff] %v10224_v33  ;;  %8706 = vmatprep.subr.mxu0 %v14130_v57  ;;  %7292 = vmatprep.subr.mxu1 %v9806_v5  ;;  %v10239_v62 = vpop.f32.mrf.mxu1  ;;  %v10261_v20 = vadd.f32 %v1043_v24, %v10173_v40 }
 0x654   :  { %8707 = vmatpush3.msra.mxu0 %v10230_v60  ;;  %7293 = vmatpush3.msra.mxu1 %v9833_v9  ;;  %v1045_v36 = vpop.f32.mrf.mxu0  ;;  %v10258_v9 = vld [vmem:[%s14037_s16 + $0x250] sm:$0xff] }
 0x655   :  { %1388 = vmatprep.mubr.f32.mxu1 %v10224_v33  ;;  %8708 = vmatprep.subr.mxu0 %v14130_v57  ;;  %v950_v3 = vpop.f32.mrf.mxu1  ;;  %v10252_v5 = vadd.f32 %v1045_v36, %v10166_v28 }
 0x656   :  { %7294 = vmatprep.subr.mxu1 %v9846_v11  ;;  %1389 = vmatmul.mubr.f32.gmra.mxu1 %v10233_v22  ;;  %v1049_v43 = vpop.f32.mrf.mxu0  ;;  %v10270_v11 = vadd.f32 %v938_v35, %v10163_v45  ;;  %v10277_v22 = vld [vmem:[%s14037_s16 + $0x248] sm:$0xff] }
 0x657   :  { %14139 = vst [vmem:[#allocation35_spill] sm:$0xff] %v10252_v5  ;;  %8709 = vmatpush3.msra.mxu0 %v10246_v29  ;;  %7295 = vmatpush3.msra.mxu1 %v9861_v13  ;;  %v10265_v33 = vpop.f32.mrf.mxu1  ;;  %v10280_v13 = vadd.f32 %v936_v49, %v10170_v55  ;;  %v10296_v49 = vld [vmem:[%s14037_s16 + $0x240] sm:$0xff]  ;;  %v10299_v35 = vadd.f32 %v1049_v43, %v10173_v40 }
 0x658   :  { %8710 = vmatprep.subr.mxu0 %v14130_v57  ;;  %7296 = vmatprep.subr.mxu1 %v9873_v15  ;;  %14140 = vst [vmem:[#allocation36_spill] sm:$0xff] %v10270_v11  ;;  %v1051_v24 = vpop.f32.mrf.mxu0  ;;  %v1510_v43 = vmul.f32 %v10176_v31, %v10176_v31 }
 0x659   :  { %8711 = vmatpush3.msra.mxu0 %v10258_v9  ;;  %7297 = vmatpush3.msra.mxu1 %v9886_v17  ;;  %v956_v36 = vpop.f32.mrf.mxu1  ;;  %v10289_v17 = vadd.f32 %v1051_v24, %v10166_v28  ;;  %v10306_v28 = vadd.f32 %v944_v42, %v10163_v45  ;;  %v10339_v42 = vadd.f32 %v950_v3, %v10163_v45 }
 0x65a   :  { %1393 = vmatprep.mubr.f32.mxu1 %v10252_v5  ;;  %8712 = vmatprep.subr.mxu0 %v14130_v57  ;;  %v10380_v3 = vadd.f32 %v10265_v33, %v10170_v55  ;;  %v14158_v33 = vld [vmem:[#allocation14_spill] sm:$0xff] }
 0x65b   :  { %7298 = vmatprep.subr.mxu1 %v9894_v18  ;;  %1394 = vmatmul.mubr.f32.gmra.mxu1 %v10261_v20  ;;  %v10286_v15 = vpop.f32.mrf.mxu1  ;;  %14141 = vst [vmem:[#allocation37_spill] sm:$0xff] %v10289_v17  ;;  %14142 = vst [vmem:[#allocation38_spill] sm:$0xff] %v10306_v28 }
 0x65c   :  { %8713 = vmatpush3.msra.mxu0 %v10277_v22  ;;  %7299 = vmatpush3.msra.mxu1 %v9913_v21  ;;  %v10313_v21 = vld [vmem:[%s14037_s16 + $0x238] sm:$0xff]  ;;  %14143 = vst [vmem:[#allocation39_spill] sm:$0xff] %v10339_v42 }
 0x65d   :  { %1293 = vmatprep.mubr.f32.mxu0 %v10270_v11  ;;  %8714 = vmatprep.subr.mxu0 %v14130_v57  ;;  %v8687_v18 = vpop.f32.mrf.mxu1 }
 0x65e   :  { %7300 = vmatprep.subr.mxu1 %v9926_v23  ;;  %1294 = vmatmul.mubr.f32.gmra.mxu0 %v10280_v13  ;;  %v10321_v23 = vadd.f32 %v10211_v53, %v10170_v55  ;;  %v10334_v53 = vld [vmem:[%s14037_s16 + $0x230] sm:$0xff]  ;;  %v10351_v18 = vadd.f32 %v10239_v62, %v10170_v55  ;;  %v10367_v62 = vadd.f32 %v956_v36, %v10163_v45  ;;  %v841_v45 = vsub.s32 4, %v10149_v59  ;;  %v14162_v36 = vld [vmem:[#allocation18_spill] sm:$0xff] }
 0x65f   :  { %8715 = vmatpush3.msra.mxu0 %v10296_v49  ;;  %7301 = vmatpush3.msra.mxu1 %v9941_v25  ;;  %v10315_v40 = vpop.f32.mrf.mxu1 }
 0x660   :  { %1398 = vmatprep.mubr.f32.mxu1 %v10289_v17  ;;  %8716 = vmatprep.subr.mxu0 %v14130_v57  ;;  %14144 = vst [vmem:[#allocation40_spill] sm:$0xff] %v10367_v62 }
 0x661   :  { %7302 = vmatprep.subr.mxu1 %v9953_v27  ;;  %1399 = vmatmul.mubr.f32.gmra.mxu1 %v10299_v35  ;;  %v8690_v25 = vpop.f32.mrf.mxu1 }
 0x662   :  { %8717 = vmatpush3.msra.mxu0 %v10313_v21  ;;  %7303 = vmatpush3.msra.mxu1 %v9966_v30  ;;  %v10347_v30 = vld [vmem:[%s14037_s16 + $0x228] sm:$0xff] }
 0x663   :  { %1298 = vmatprep.mubr.f32.mxu0 %v10306_v28  ;;  %8718 = vmatprep.subr.mxu0 %v14130_v57  ;;  %v10336_v27 = vpop.f32.mrf.mxu1  ;;  %v14167_v25 = vld [vmem:[#allocation23_spill] sm:$0xff] }
 0x664   :  { %7304 = vmatprep.subr.mxu1 %v9978_v32  ;;  %1598 = vmatprep.mubr.f32.mxu1 %v1510_v43  ;;  %v14168_v43 = vld [vmem:[#allocation24_spill] sm:$0xff] }
 0x665   :  { %1299 = vmatmul.mubr.f32.gmra.mxu0 %v10321_v23  ;;  %7305 = vmatpush3.msra.mxu1 %v9990_v34  ;;  %v8693_v24 = vpop.f32.mrf.mxu1  ;;  %v10364_v34 = vld [vmem:[%s14037_s16 + $0x220] sm:$0xff] }
 0x666   :  { %8719 = vmatpush3.msra.mxu0 %v10334_v53  ;;  %7306 = vmatprep.subr.mxu1 %v10002_v37 }
 0x667   :  { %8720 = vmatprep.subr.mxu0 %v14130_v57  ;;  %7307 = vmatpush3.msra.mxu1 %v10014_v39  ;;  %v10357_v32 = vpop.f32.mrf.mxu1  ;;  %v10376_v39 = vld [vmem:[%s14037_s16 + $0x218] sm:$0xff] }
 0x668   :  { %8721 = vmatpush3.msra.mxu0 %v10347_v30  ;;  %1303 = vmatprep.mubr.f32.mxu0 %v10339_v42 }
 0x669   :  { %8722 = vmatprep.subr.mxu0 %v14130_v57  ;;  %7308 = vmatprep.subr.mxu1 %v10026_v41  ;;  %v8696_v37 = vpop.f32.mrf.mxu1 }
 0x66a   :  { %1304 = vmatmul.mubr.f32.gmra.mxu0 %v10351_v18  ;;  %7309 = vmatpush3.msra.mxu1 %v10038_v44  ;;  %v10394_v44 = vld [vmem:[%s14037_s16 + $0x210] sm:$0xff] }
 0x66b   :  { %8723 = vmatpush3.msra.mxu0 %v10364_v34  ;;  %7310 = vmatprep.subr.mxu1 %v10050_v46  ;;  %v10385_v41 = vpop.f32.mrf.mxu1  ;;  %v10399_v46 = vrot.slane %v10160_v1, %v841_v45  ;;  %v10415_v1 = vld [vmem:[%s14037_s16 + $0x200] sm:$0xff] }
 0x66c   :  { %8724 = vmatprep.subr.mxu0 %v14130_v57  ;;  %7311 = vmatpush3.msra.mxu1 %v10062_v48  ;;  %v10406_v48 = vld [vmem:[%s14037_s16 + $0x208] sm:$0xff] }
 0x66d   :  { %8725 = vmatpush3.msra.mxu0 %v10376_v39  ;;  %1308 = vmatprep.mubr.f32.mxu0 %v10367_v62  ;;  %v8699_v59 = vpop.f32.mrf.mxu1 }
 0x66e   :  { %8726 = vmatprep.subr.mxu0 %v14130_v57  ;;  %7312 = vmatprep.subr.mxu1 %v10074_v50  ;;  %v1509_v50 = vmul.f32 %v10182_v51, %v10182_v51 }
 0x66f   :  { %1309 = vmatmul.mubr.f32.gmra.mxu0 %v10380_v3  ;;  %7313 = vmatpush3.msra.mxu1 %v10090_v52  ;;  %v10423_v52 = vadd.f32 %v10286_v15, %v10399_v46  ;;  %v14163_v15 = vld [vmem:[#allocation19_spill] sm:$0xff] }
 0x670   :  { %8727 = vmatpush3.msra.mxu0 %v10394_v44  ;;  %7314 = vmatprep.subr.mxu1 %v10102_v54  ;;  %v1515_v54 = vmul.f32 %v10270_v11, %v10270_v11 }
 0x671   :  { %8728 = vmatprep.subr.mxu0 %v14130_v57  ;;  %7315 = vmatpush3.msra.mxu1 %v10114_v56  ;;  %14145 = vst [vmem:[#allocation41_spill] sm:$0xff] %v10423_v52  ;;  %v10440_v56 = vadd.f32 %v10315_v40, %v10399_v46  ;;  %v14166_v40 = vld [vmem:[#allocation22_spill] sm:$0xff]  ;;  %v1513_v24 = vmul.f32 %v10423_v52, %v10423_v52 }
 0x672   :  { %8729 = vmatpush3.msra.mxu0 %v10406_v48  ;;  %7316 = vmatprep.subr.mxu1 %v10126_v58  ;;  %v1529_v58 = vmul.f32 %v10380_v3, %v10380_v3 }
 0x673   :  { %8730 = vmatprep.subr.mxu0 %v14130_v57  ;;  %8732 = vmatprep.mubr.msk.f32.mxu0 %vm9042_vm0, %v14130_v57  ;;  %14146 = vst [vmem:[#allocation42_spill] sm:$0xff] %v10440_v56 }
 0x674   :  { %8731 = vmatpush3.msra.mxu0 %v10415_v1  ;;  %7317 = vmatpush3.msra.mxu1 %v10138_v61  ;;  %v14153_v61 = vld [vmem:[#allocation10_spill] sm:$0xff] }
 0x675   :  { %8733 = vmatmul.mubr.f32.vlgmr.msra.gmra.mxu0 %v10423_v52  ;;  %1599 = vmatmul.mubr.f32.vlgmr.msra.gmra.mxu1 %v1509_v50  ;;  %v1527_v50 = vmul.f32 %v10252_v5, %v10252_v5 }
 0x676   :  { %7333 = vmatprep.subr.mxu0 %v9775_v63  ;;  %8747 = vmatprep.subr.mxu1 %v14130_v57  ;;  %v1514_v63 = vmul.f32 %v10280_v13, %v10280_v13 }
 0x677   :  { %1603 = vmatprep.mubr.f32.mxu1 %v1515_v54  ;;  %7334 = vmatpush3.msra.mxu0 %v9781_v0  ;;  %v1520_v0 = vmul.f32 %v10306_v28, %v10306_v28  ;;  %v1526_v54 = vmul.f32 %v10261_v20, %v10261_v20 }
 0x678   :  { %8748 = vmatpush3.msra.mxu1 %v10190_v47  ;;  %7335 = vmatprep.subr.mxu0 %v9787_v2  ;;  %v10459_v2 = vadd.f32 %v10336_v27, %v10399_v46  ;;  %v14155_v47 = vld [vmem:[#allocation11_spill] sm:$0xff]  ;;  %v14170_v27 = vld [vmem:[#allocation30_spill] sm:$0xff] }
 0x679   :  { %8749 = vmatprep.subr.mxu1 %v14130_v57  ;;  %8735 = vmatprep.mubr.msk.f32.mxu0 %vm9042_vm0, %v14130_v57 }
 0x67a   :  { %7336 = vmatpush3.msra.mxu0 %v9801_v4  ;;  %8750 = vmatpush3.msra.mxu1 %v10199_v38  ;;  %14147 = vst [vmem:[#allocation43_spill] sm:$0xff] %v10459_v2  ;;  %v1519_v4 = vmul.f32 %v10321_v23, %v10321_v23  ;;  %v14156_v38 = vld [vmem:[#allocation12_spill] sm:$0xff] }
 0x67b   :  { %8736 = vmatmul.mubr.f32.gmra.mxu0 %v10440_v56  ;;  %1604 = vmatmul.mubr.f32.gmra.mxu1 %v1514_v63 }
 0x67c   :  { %7337 = vmatprep.subr.mxu0 %v9814_v6  ;;  %8751 = vmatprep.subr.mxu1 %v14130_v57  ;;  %v1525_v6 = vmul.f32 %v10339_v42, %v10339_v42 }
 0x67d   :  { %1608 = vmatprep.mubr.f32.mxu1 %v1520_v0  ;;  %7338 = vmatpush3.msra.mxu0 %v9821_v7  ;;  %v10478_v7 = vadd.f32 %v10357_v32, %v10399_v46  ;;  %v14171_v32 = vld [vmem:[#allocation26_spill] sm:$0xff]  ;;  %v1532_v0 = vmul.f32 %v10289_v17, %v10289_v17 }
 0x67e   :  { %8752 = vmatpush3.msra.mxu1 %v10218_v26  ;;  %7339 = vmatprep.subr.mxu0 %v9828_v8  ;;  %v1524_v8 = vmul.f32 %v10351_v18, %v10351_v18  ;;  %v14157_v26 = vld [vmem:[#allocation13_spill] sm:$0xff] }
 0x67f   :  { %8753 = vmatprep.subr.mxu1 %v14130_v57  ;;  %8738 = vmatprep.mubr.msk.f32.mxu0 %vm9042_vm0, %v14130_v57  ;;  %14148 = vst [vmem:[#allocation44_spill] sm:$0xff] %v10478_v7  ;;  %v1528_v63 = vmul.f32 %v10478_v7, %v10478_v7 }
 0x680   :  { %7340 = vmatpush3.msra.mxu0 %v9841_v10  ;;  %8754 = vmatpush3.msra.mxu1 %v10230_v60  ;;  %v1530_v10 = vmul.f32 %v10367_v62, %v10367_v62  ;;  %v14159_v60 = vld [vmem:[#allocation15_spill] sm:$0xff] }
 0x681   :  { %8739 = vmatmul.mubr.f32.gmra.mxu0 %v10459_v2  ;;  %1609 = vmatmul.mubr.f32.gmra.mxu1 %v1519_v4  ;;  %v1531_v4 = vmul.f32 %v10299_v35, %v10299_v35 }
 0x682   :  { %7341 = vmatprep.subr.mxu0 %v9854_v12  ;;  %8755 = vmatprep.subr.mxu1 %v14130_v57  ;;  %v14149_v12 = vld [vmem:[#allocation7_spill] sm:$0xff] }
 0x683   :  { %1613 = vmatprep.mubr.f32.mxu1 %v1525_v6  ;;  %7342 = vmatpush3.msra.mxu0 %v9868_v14  ;;  %v14150_v14 = vld [vmem:[#allocation8_spill] sm:$0xff] }
 0x684   :  { %8756 = vmatpush3.msra.mxu1 %v10246_v29  ;;  %7343 = vmatprep.subr.mxu0 %v9881_v16  ;;  %v14151_v16 = vld [vmem:[#allocation9_spill] sm:$0xff]  ;;  %v14160_v29 = vld [vmem:[#allocation16_spill] sm:$0xff] }
 0x685   :  { %8757 = vmatprep.subr.mxu1 %v14130_v57  ;;  %8741 = vmatprep.mubr.msk.f32.mxu0 %vm9042_vm0, %v14130_v57 }
 0x686   :  { %7344 = vmatpush3.msra.mxu0 %v9901_v19  ;;  %8758 = vmatpush3.msra.mxu1 %v10258_v9  ;;  %v10497_v19 = vadd.f32 %v10385_v41, %v10399_v46  ;;  %v14161_v9 = vld [vmem:[#allocation17_spill] sm:$0xff]  ;;  %v1518_v41 = vmul.f32 %v10440_v56, %v10440_v56  ;;  %v14175_v46 = vld [vmem:[#allocation34_spill] sm:$0xff] }
 0x687   :  { %8742 = vmatmul.mubr.f32.gmra.mxu0 %v10478_v7  ;;  %1614 = vmatmul.mubr.f32.gmra.mxu1 %v1524_v8  ;;  %v10584_v8 = vld [vmem:[%s14038_s17 + $0x90] sm:$0xff] }
 0x688   :  { %7345 = vmatprep.subr.mxu0 %v14149_v12  ;;  %8759 = vmatprep.subr.mxu1 %v14130_v57  ;;  %14152 = vst [vmem:[#allocation7_spill] sm:$0xff] %v10497_v19  ;;  %v1533_v6 = vmul.f32 %v10497_v19, %v10497_v19  ;;  %v1846_v12 = vld [vmem:[%s14038_s17 + $0x80] sm:$0xff] }
 0x689   :  { %1618 = vmatprep.mubr.f32.mxu1 %v1530_v10  ;;  %7346 = vmatpush3.msra.mxu0 %v14150_v14  ;;  %v10589_v10 = vld [vmem:[%s14038_s17 + $0x88] sm:$0xff] }
 0x68a   :  { %8760 = vmatpush3.msra.mxu1 %v10277_v22  ;;  %7347 = vmatprep.subr.mxu0 %v14151_v16  ;;  %v14154_v22 = vld [vmem:[#allocation29_spill] sm:$0xff]  ;;  %v10598_v14 = vld [vmem:[%s14038_s17 + $0x68] sm:$0xff] }
 0x68b   :  { %8761 = vmatprep.subr.mxu1 %v14130_v57  ;;  %8744 = vmatprep.mubr.msk.f32.mxu0 %vm9042_vm0, %v14130_v57  ;;  %v1512_v55 = vmul.f32 %v14154_v22, %v14154_v22  ;;  %v10603_v16 = vld [vmem:[%s14038_s17 + $0x78] sm:$0xff] }
 0x68c   :  { %7348 = vmatpush3.msra.mxu0 %v14153_v61  ;;  %8762 = vmatpush3.msra.mxu1 %v10296_v49  ;;  %v14164_v49 = vld [vmem:[#allocation20_spill] sm:$0xff]  ;;  %v10615_v61 = vld [vmem:[%s14038_s17 + $0x58] sm:$0xff] }
 0x68d   :  { %8745 = vmatmul.mubr.f32.gmra.mxu0 %v10497_v19  ;;  %1619 = vmatmul.mubr.f32.gmra.mxu1 %v1529_v58  ;;  %v10608_v58 = vld [vmem:[%s14038_s17 + $0x60] sm:$0xff] }
 0x68e   :  { %7349 = vmatprep.subr.mxu0 %v14155_v47  ;;  %8763 = vmatprep.subr.mxu1 %v14130_v57  ;;  %v10625_v47 = vld [vmem:[%s14038_s17 + $0x50] sm:$0xff] }
 0x68f   :  { %7350 = vmatpush3.msra.mxu0 %v14156_v38  ;;  %1688 = vmatprep.mubr.f32.mxu0 %v1512_v55  ;;  %v10620_v55 = vld [vmem:[%s14038_s17 + $0x40] sm:$0xff]  ;;  %v10632_v38 = vld [vmem:[%s14038_s17 + $0x38] sm:$0xff] }
 0x690   :  { %8764 = vmatpush3.msra.mxu1 %v10313_v21  ;;  %7351 = vmatprep.subr.mxu0 %v14157_v26  ;;  %v14165_v21 = vld [vmem:[#allocation21_spill] sm:$0xff]  ;;  %v10637_v26 = vld [vmem:[%s14038_s17 + $0x30] sm:$0xff] }
 0x691   :  { %8765 = vmatprep.subr.mxu1 %v14130_v57  ;;  %7352 = vmatpush3.msra.mxu0 %v14158_v33  ;;  %v10642_v33 = vld [vmem:[%s14038_s17 + $0x28] sm:$0xff] }
 0x692   :  { %8766 = vmatpush3.msra.mxu1 %v10334_v53  ;;  %7353 = vmatprep.subr.mxu0 %v14159_v60  ;;  %v14169_v53 = vld [vmem:[#allocation25_spill] sm:$0xff]  ;;  %v10649_v60 = vld [vmem:[%s14038_s17 + $0x8] sm:$0xff] }
 0x693   :  { %8767 = vmatprep.subr.mxu1 %v14130_v57  ;;  %7354 = vmatpush3.msra.mxu0 %v14160_v29  ;;  %v10654_v29 = vld [vmem:[%s14038_s17 + $0x18] sm:$0xff] }
 0x694   :  { %8768 = vmatpush3.msra.mxu1 %v10347_v30  ;;  %7355 = vmatprep.subr.mxu0 %v14161_v9  ;;  %v1511_v30 = vmul.f32 %v14170_v27, %v14170_v27  ;;  %v10661_v9 = vld [vmem:[%s14038_s17] sm:$0xff] }
 0x695   :  { %8769 = vmatprep.subr.mxu1 %v14130_v57  ;;  %7356 = vmatpush3.msra.mxu0 %v14162_v36  ;;  %v10666_v36 = vld [vmem:[%s14038_s17 + $0x10] sm:$0xff] }
 0x696   :  { %8770 = vmatpush3.msra.mxu1 %v10364_v34  ;;  %7357 = vmatprep.subr.mxu0 %v14163_v15  ;;  %v14172_v34 = vld [vmem:[#allocation32_spill] sm:$0xff] }
 0x697   :  { %8771 = vmatprep.subr.mxu1 %v14130_v57  ;;  %7358 = vmatpush3.msra.mxu0 %v14164_v49  ;;  %v1517_v37 = vmul.f32 %v14172_v34, %v14172_v34 }
 0x698   :  { %8772 = vmatpush3.msra.mxu1 %v10376_v39  ;;  %7359 = vmatprep.subr.mxu0 %v14165_v21  ;;  %v14173_v39 = vld [vmem:[#allocation31_spill] sm:$0xff] }
 0x699   :  { %8773 = vmatprep.subr.mxu1 %v14130_v57  ;;  %7360 = vmatpush3.msra.mxu0 %v14166_v40  ;;  %v1516_v45 = vmul.f32 %v14173_v39, %v14173_v39 }
 0x69a   :  { %8774 = vmatpush3.msra.mxu1 %v10394_v44  ;;  %7361 = vmatprep.subr.mxu0 %v14167_v25  ;;  %v14174_v44 = vld [vmem:[#allocation33_spill] sm:$0xff] }
 0x69b   :  { %8775 = vmatprep.subr.mxu1 %v14130_v57  ;;  %7362 = vmatpush3.msra.mxu0 %v14168_v43  ;;  %v1522_v59 = vmul.f32 %v14174_v44, %v14174_v44 }
 0x69c   :  { %8776 = vmatpush3.msra.mxu1 %v10406_v48  ;;  %7363 = vmatprep.subr.mxu0 %v14169_v53  ;;  %v1521_v48 = vmul.f32 %v14175_v46, %v14175_v46 }
 0x69d   :  { %8777 = vmatprep.subr.mxu1 %v14130_v57  ;;  %7364 = vmatpush3.msra.mxu0 %v14171_v32 }
 0x69e   :  { %8778 = vmatpush3.msra.mxu1 %v10415_v1  ;;  %8779 = vmatprep.mubr.msk.f32.mxu1 %vm9042_vm0, %v14130_v57  ;;  %v1523_v1 = vmul.f32 %v10459_v2, %v10459_v2 }
 0x69f   :  { %1689 = vmatmul.mubr.f32.vlgmr.msra.gmra.mxu0 %v1511_v30  ;;  %8780 = vmatmul.mubr.f32.vlgmr.msra.gmra.mxu1 %v1513_v24 }
 0x6a0   :  { %1693 = vmatprep.mubr.f32.mxu0 %v1517_v37  ;;  %8782 = vmatprep.mubr.msk.f32.mxu1 %vm9042_vm0, %v14130_v57 }
 0x6a1   :  { %1948 = vmatprep.subr.mxu1 %v10584_v8  ;;  %1877 = vmatprep.subr.mxu0 %v1846_v12 }
 0x6a2   :  { %1949 = vmatpush1.msra.mxu1 %v10589_v10  ;;  %1878 = vmatpush1.msra.mxu0 %v10603_v16 }
 0x6a3   :  { %1694 = vmatmul.mubr.f32.gmra.mxu0 %v1516_v45  ;;  %8783 = vmatmul.mubr.f32.gmra.mxu1 %v1518_v41 }
 0x6a4   :  { %1698 = vmatprep.mubr.f32.mxu0 %v1522_v59  ;;  %8785 = vmatprep.mubr.msk.f32.mxu1 %vm9042_vm0, %v14130_v57 }
 0x6a5   :  { %1950 = vmatprep.subr.mxu1 %v10598_v14  ;;  %1879 = vmatprep.subr.mxu0 %v10615_v61 }
 0x6a6   :  { %1951 = vmatpush1.msra.mxu1 %v10608_v58  ;;  %1880 = vmatpush1.msra.mxu0 %v10625_v47 }
 0x6a7   :  { %1699 = vmatmul.mubr.f32.gmra.mxu0 %v1521_v48  ;;  %8786 = vmatmul.mubr.f32.gmra.mxu1 %v1523_v1 }
 0x6a8   :  { %1703 = vmatprep.mubr.f32.mxu0 %v1527_v50  ;;  %8788 = vmatprep.mubr.msk.f32.mxu1 %vm9042_vm0, %v14130_v57 }
 0x6a9   :  { %1952 = vmatprep.subr.mxu1 %v10620_v55  ;;  %1881 = vmatprep.subr.mxu0 %v10637_v26 }
 0x6aa   :  { %1953 = vmatpush1.msra.mxu1 %v10632_v38  ;;  %1882 = vmatpush1.msra.mxu0 %v10642_v33 }
 0x6ab   :  { %1704 = vmatmul.mubr.f32.gmra.mxu0 %v1526_v54  ;;  %8789 = vmatmul.mubr.f32.gmra.mxu1 %v1528_v63 }
 0x6ac   :  { %1708 = vmatprep.mubr.f32.mxu0 %v1532_v0  ;;  %8791 = vmatprep.mubr.msk.f32.mxu1 %vm9042_vm0, %v14130_v57 }
 0x6ad   :  { %1883 = vmatprep.subr.mxu0 %v10649_v60  ;;  %1954 = vmatprep.subr.mxu1 %v10654_v29 }
 0x6ae   :  { %1884 = vmatpush1.msra.mxu0 %v10661_v9  ;;  %1955 = vmatpush1.msra.mxu1 %v10666_v36 }
 0x6af   :  { %1709 = vmatmul.mubr.f32.gmra.mxu0 %v1531_v4  ;;  %8792 = vmatmul.mubr.f32.gmra.mxu1 %v1533_v6 }
 0x6b0   :  { %1917 = vmatprep.mubr.f32.mxu0 %v14130_v57  ;;  %1988 = vmatprep.mubr.f32.mxu1 %v14130_v57 }
 0x6b1   :  { %8794 = vmatprep.subr.mxu0 %v14130_v57  ;;  %2092 = vmatprep.subr.mxu1 %v1846_v12 }
 0x70c   :  { %v7250_v15 = vpop.f32.mrf.mxu1  ;;  %v7203_v49 = vpop.f32.mrf.mxu0 }
 0x70e   :  { %v7251_v21 = vpop.f32.mrf.mxu1  ;;  %v7204_v25 = vpop.f32.mrf.mxu0 }
 0x70f   :  { %v7205_v0 = vadd.f32 %v7204_v25, %v7203_v49  ;;  %v7252_v4 = vadd.f32 %v7251_v21, %v7250_v15 }
 0x711   :  { %v7253_v40 = vpop.f32.mrf.mxu1  ;;  %v1381_v56 = vadd.f32 %v7252_v4, %v7205_v0 }
 0x713   :  { %v7254_v53 = vpop.f32.mrf.mxu1 }
 0x714   :  { %v7255_v19 = vadd.f32 %v7254_v53, %v7253_v40 }
 0x716   :  { %v7256_v24 = vpop.f32.mrf.mxu1 }
 0x718   :  { %v7257_v45 = vpop.f32.mrf.mxu1 }
 0x719   :  { %v7258_v22 = vadd.f32 %v7257_v45, %v7256_v24 }
 0x71b   :  { %v7259_v59 = vpop.f32.mrf.mxu1 }
 0x71d   :  { %v7260_v1 = vpop.f32.mrf.mxu1 }
 0x71e   :  { %v7206_v43 = vpop.f32.mrf.mxu0 }
 0x720   :  { %v7207_v30 = vpop.f32.mrf.mxu0 }
 0x721   :  { %v7262_v54 = vpop.f32.mrf.mxu1  ;;  %v7208_v12 = vadd.f32 %v7207_v30, %v7206_v43 }
 0x723   :  { %v7263_v7 = vpop.f32.mrf.mxu1  ;;  %v1386_v5 = vadd.f32 %v7255_v19, %v7208_v12 }
 0x725   :  { %v7209_v32 = vpop.f32.mrf.mxu0 }
 0x727   :  { %v7210_v37 = vpop.f32.mrf.mxu0 }
 0x728   :  { %v7211_v34 = vadd.f32 %v7210_v37, %v7209_v32 }
 0x72a   :  { %v7212_v41 = vpop.f32.mrf.mxu0  ;;  %v1391_v21 = vadd.f32 %v7258_v22, %v7211_v34 }
 0x72c   :  { %v7213_v48 = vpop.f32.mrf.mxu0 }
 0x72d   :  { %v7214_v43 = vadd.f32 %v7213_v48, %v7212_v41 }
 0x72f   :  { %v7215_v50 = vpop.f32.mrf.mxu0 }
 0x731   :  { %v7216_v63 = vpop.f32.mrf.mxu0 }
 0x732   :  { %v7217_v48 = vadd.f32 %v7216_v63, %v7215_v50 }
 0x735   :  { %v1470_v6 = vpop.f32.mrf.mxu0  ;;  %v7318_v52 = vpop.f32.mrf.mxu1 }
 0x736   :  { %v1471_v17 = vadd.f32 %v1470_v6, %v1381_v56 }
 0x737   :  { %v8734_v2 = vpop.f32.mrf.mxu0  ;;  %v7319_v42 = vpop.f32.mrf.mxu1 }
 0x738   :  { %v1494_v11 = vsel %vm84_vm1, %v1471_v17, 0.0  ;;  %v7261_v2 = vadd.f32 %v7260_v1, %v7259_v59  ;;  %v7264_v1 = vadd.f32 %v7263_v7, %v7262_v54  ;;  %v7320_v7 = vadd.f32 %v7319_v42, %v7318_v52 }
 0x73a   :  { %v1396_v24 = vadd.f32 %v7261_v2, %v7214_v43  ;;  %v1401_v4 = vadd.f32 %v7264_v1, %v7217_v48 }
 0x73b   :  { %v1475_v44 = vpop.f32.mrf.mxu0  ;;  %v7321_v25 = vpop.f32.mrf.mxu1 }
 0x73c   :  { %v1476_v62 = vadd.f32 %v1475_v44, %v1386_v5 }
 0x73d   :  { %v8737_v28 = vpop.f32.mrf.mxu0  ;;  %v7322_v19 = vpop.f32.mrf.mxu1 }
 0x73e   :  { %v1495_v49 = vsel %vm84_vm1, %v1476_v62, 0.0 }
 0x73f   :  { %v1496_v15 = vadd.f32 %v1495_v49, %v1494_v11 }
 0x741   :  { %v1480_v40 = vpop.f32.mrf.mxu0  ;;  %v7324_v28 = vpop.f32.mrf.mxu1 }
 0x742   :  { %v1481_v53 = vadd.f32 %v1480_v40, %v1391_v21 }
 0x743   :  { %v8740_v30 = vpop.f32.mrf.mxu0  ;;  %v7325_v11 = vpop.f32.mrf.mxu1 }
 0x744   :  { %v1497_v56 = vsel %vm84_vm1, %v1481_v53, 0.0 }
 0x745   :  { %v1498_v32 = vadd.f32 %v1497_v56, %v1496_v15  ;;  %v7323_v56 = vadd.f32 %v7322_v19, %v7321_v25 }
 0x747   :  { %v1485_v5 = vpop.f32.mrf.mxu0  ;;  %v7327_v45 = vpop.f32.mrf.mxu1 }
 0x748   :  { %v1486_v44 = vadd.f32 %v1485_v5, %v1396_v24 }
 0x749   :  { %v8743_v37 = vpop.f32.mrf.mxu0  ;;  %v7328_v41 = vpop.f32.mrf.mxu1 }
 0x74a   :  { %v1499_v17 = vsel %vm84_vm1, %v1486_v44, 0.0  ;;  %v7329_v25 = vadd.f32 %v7328_v41, %v7327_v45 }
 0x74b   :  { %v1500_v62 = vadd.f32 %v1499_v17, %v1498_v32  ;;  %v7326_v17 = vadd.f32 %v7325_v11, %v7324_v28 }
 0x74d   :  { %v1490_v22 = vpop.f32.mrf.mxu0  ;;  %v7330_v59 = vpop.f32.mrf.mxu1 }
 0x74e   :  { %v1491_v49 = vadd.f32 %v1490_v22, %v1401_v4 }
 0x74f   :  { %v8746_v34 = vpop.f32.mrf.mxu0  ;;  %v7331_v0 = vpop.f32.mrf.mxu1 }
 0x750   :  { %v1501_v2 = vsel %vm84_vm1, %v1491_v49, 0.0  ;;  %v7332_v28 = vadd.f32 %v7331_v0, %v7330_v59 }
 0x751   :  { %v1502_v5 = vadd.f32 %v1501_v2, %v1500_v62 }
 0x753   :  { %v1503_v48 = vrot.slane %v1502_v5, 4 }
 0x75f   :  { %v7365_v6 = vpop.f32.mrf.mxu0  ;;  %v1780_v12 = vpop.f32.mrf.mxu1 }
 0x761   :  { %v7366_v15 = vpop.f32.mrf.mxu0  ;;  %v8781_v21 = vpop.f32.mrf.mxu1 }
 0x762   :  { %v7367_v32 = vadd.f32 %v7366_v15, %v7365_v6  ;;  %v1504_v15 = vadd.f32 %v1503_v48, %v1502_v5 }
 0x763   :  { %v7368_v40 = vpop.f32.mrf.mxu0  ;;  %v1785_v43 = vpop.f32.mrf.mxu1 }
 0x764   :  { %v1691_v22 = vadd.f32 %v7367_v32, %v7320_v7 }
 0x765   :  { %v7369_v53 = vpop.f32.mrf.mxu0  ;;  %v8784_v30 = vpop.f32.mrf.mxu1 }
 0x766   :  { %v7370_v24 = vadd.f32 %v7369_v53, %v7368_v40  ;;  %v1781_v19 = vadd.f32 %v1780_v12, %v1691_v22 }
 0x767   :  { %v7371_v44 = vpop.f32.mrf.mxu0  ;;  %v1790_v50 = vpop.f32.mrf.mxu1 }
 0x768   :  { %v1696_v54 = vadd.f32 %v7370_v24, %v7323_v56  ;;  %v1804_v56 = vsel %vm84_vm1, %v1781_v19, 0.0  ;;  %v1823_v19 = vld [vmem:[%s14039_s18] sm:$0x1] }
 0x769   :  { %v7372_v63 = vpop.f32.mrf.mxu0  ;;  %v8787_v37 = vpop.f32.mrf.mxu1 }
 0x76a   :  { %v7373_v34 = vadd.f32 %v7372_v63, %v7371_v44  ;;  %v1786_v21 = vadd.f32 %v1785_v43, %v1696_v54  ;;  %v1505_v44 = vrot.slane %v1504_v15, 2 }
 0x76b   :  { %v7374_v1 = vpop.f32.mrf.mxu0  ;;  %v1795_v4 = vpop.f32.mrf.mxu1 }
 0x76c   :  { %v1701_v49 = vadd.f32 %v7373_v34, %v7326_v17  ;;  %v1805_v52 = vsel %vm84_vm1, %v1786_v21, 0.0 }
 0x76d   :  { %v7375_v31 = vpop.f32.mrf.mxu0  ;;  %v8790_v30 = vpop.f32.mrf.mxu1  ;;  %v1806_v45 = vadd.f32 %v1805_v52, %v1804_v56  ;;  %v4231_v56 = vld [vmem:[%s14041_s20 + $0xc8] sm:$0xff] }
 0x76e   :  { %v1791_v6 = vadd.f32 %v1790_v50, %v1701_v49  ;;  %v7376_v62 = vadd.f32 %v7375_v31, %v7374_v1  ;;  %v1506_v50 = vadd.f32 %v1505_v44, %v1504_v15  ;;  %v1849_v15 = vld [vmem:[%s14038_s17 + $0x98] sm:$0xff]  ;;  %v4230_v44 = vld [vmem:[%s14041_s20 + $0xc0] sm:$0xff] }
 0x76f   :  { %v7377_v40 = vpop.f32.mrf.mxu0  ;;  %v1800_v42 = vpop.f32.mrf.mxu1 }
 0x770   :  { %v1706_v2 = vadd.f32 %v7376_v62, %v7329_v25  ;;  %v1807_v43 = vsel %vm84_vm1, %v1791_v6, 0.0  ;;  %v1507_v0 = vrot.slane %v1506_v50, 1 }
 0x771   :  { %v7378_v11 = vpop.f32.mrf.mxu0  ;;  %v8793_v53 = vpop.f32.mrf.mxu1  ;;  %v1808_v12 = vadd.f32 %v1807_v43, %v1806_v45  ;;  %v4267_v43 = vld [vmem:[%s14041_s20 + $0x1e8] sm:$0xff]  ;;  %v4266_v45 = vld [vmem:[%s14041_s20 + $0x1e0] sm:$0xff] }
 0x772   :  { %v1796_v32 = vadd.f32 %v1795_v4, %v1706_v2  ;;  %v7379_v24 = vadd.f32 %v7378_v11, %v7377_v40  ;;  %v1508_v17 = vadd.f32 %v1507_v0, %v1506_v50  ;;  %v1844_v40 = vld [vmem:[%s14038_s17 + $0x70] sm:$0xff]  ;;  %v4213_v50 = vld [vmem:[%s14041_s20 + $0x38] sm:$0xff] }
 0x773   :  { %v4232_v2 = vld [vmem:[%s14041_s20 + $0xd0] sm:$0xff] }
 0x774   :  { %v1809_v41 = vsel %vm84_vm1, %v1796_v32, 0.0  ;;  %v1711_v31 = vadd.f32 %v7379_v24, %v7332_v28  ;;  %v1819_v48 = vmul.f32 0.00125, %v1508_v17  ;;  %v4268_v28 = vld [vmem:[%s14041_s20 + $0x1f0] sm:$0xff]  ;;  %v4215_v32 = vld [vmem:[%s14041_s20 + $0x48] sm:$0xff] }
 0x775   :  { %v1810_v7 = vadd.f32 %v1809_v41, %v1808_v12  ;;  %v4216_v11 = vld [vmem:[%s14041_s20 + $0x50] sm:$0xff]  ;;  %v4251_v24 = vld [vmem:[%s14041_s20 + $0x168] sm:$0xff]  ;;  %v4214_v41 = vld [vmem:[%s14041_s20 + $0x40] sm:$0xff] }
 0x776   :  { %v1801_v5 = vadd.f32 %v1800_v42, %v1711_v31  ;;  %v1821_v21 = vmul.f32 %v1819_v48, %v1819_v48  ;;  %v1839_v42 = vld [vmem:[%s14038_s17 + $0x48] sm:$0xff]  ;;  %v4252_v53 = vld [vmem:[%s14041_s20 + $0x170] sm:$0xff]  ;;  %v4250_v31 = vld [vmem:[%s14041_s20 + $0x160] sm:$0xff] }
 0x777   :  { %v4229_v12 = vld [vmem:[%s14041_s20 + $0xb8] sm:$0xff]  ;;  %v4212_v0 = vld [vmem:[%s14041_s20 + $0x30] sm:$0xff]  ;;  %v4263_v17 = vld [vmem:[%s14041_s20 + $0x1c8] sm:$0xff] }
 0x778   :  { %v1811_v54 = vsel %vm84_vm1, %v1801_v5, 0.0  ;;  %v4265_v5 = vld [vmem:[%s14041_s20 + $0x1d8] sm:$0xff] }
 0x779   :  { %v1812_v59 = vadd.f32 %v1811_v54, %v1810_v7  ;;  %v4249_v7 = vld [vmem:[%s14041_s20 + $0x158] sm:$0xff]  ;;  %v4228_v54 = vld [vmem:[%s14041_s20 + $0xb0] sm:$0xff] }
 0x77b   :  { %v1813_v63 = vrot.slane %v1812_v59, 4 }
 0x77d   :  { %v1814_v37 = vadd.f32 %v1813_v63, %v1812_v59  ;;  %v4264_v59 = vld [vmem:[%s14041_s20 + $0x1d0] sm:$0xff] }
 0x77e   :  { %v4248_v63 = vld [vmem:[%s14041_s20 + $0x150] sm:$0xff] }
 0x77f   :  { %v1815_v22 = vrot.slane %v1814_v37, 2 }
 0x781   :  { %v1816_v34 = vadd.f32 %v1815_v22, %v1814_v37  ;;  %v4227_v37 = vld [vmem:[%s14041_s20 + $0xa8] sm:$0xff] }
 0x782   :  { %v4211_v22 = vld [vmem:[%s14041_s20 + $0x28] sm:$0xff] }
 0x783   :  { %v1817_v1 = vrot.slane %v1816_v34, 1 }
 0x785   :  { %v1818_v4 = vadd.f32 %v1817_v1, %v1816_v34  ;;  %v4247_v34 = vld [vmem:[%s14041_s20 + $0x148] sm:$0xff]  ;;  %v4262_v1 = vld [vmem:[%s14041_s20 + $0x1c0] sm:$0xff] }
 0x787   :  { %v1820_v49 = vmul.f32 0.00125, %v1818_v4  ;;  %v4210_v4 = vld [vmem:[%s14041_s20 + $0x20] sm:$0xff] }
 0x789   :  { %v1822_v30 = vsub.f32 %v1820_v49, %v1821_v21  ;;  %v4246_v21 = vld [vmem:[%s14041_s20 + $0x140] sm:$0xff]  ;;  %v4225_v49 = vld [vmem:[%s14041_s20 + $0x98] sm:$0xff] }
 0x78b   :  { %v1824_v25 = vadd.f32 1e-05, %v1822_v30  ;;  %v4261_v30 = vld [vmem:[%s14041_s20 + $0x1b8] sm:$0xff] }
 0x78d   :  { %8870 = vrsqrt.f32 %v1824_v25  ;;  %v4209_v25 = vld [vmem:[%s14041_s20 + $0x18] sm:$0xff] }
 0x79a   :  { %v8871_v6 = vpop.eup %8870 }
 0x79b   :  { %v1826_v62 = vmul.f32 %v8871_v6, %v1823_v19  ;;  %v4245_v19 = vld [vmem:[%s14041_s20 + $0x138] sm:$0xff]  ;;  %v4224_v6 = vld [vmem:[%s14041_s20 + $0x90] sm:$0xff] }
 0x79d   :  { %7057 = vmatmul.mubr.msk.f32.vlgmr.msra.gmra.mxu0 %vm84_vm1, %v1826_v62  ;;  %7058 = vmatmul.mubr.msk.f32.vlgmr.msra.gmra.mxu1 %vm84_vm1, %v1826_v62  ;;  %v1828_v52 = vmul.f32 %v1826_v62, %v1819_v48  ;;  %v4226_v48 = vld [vmem:[%s14041_s20 + $0xa0] sm:$0xff] }
 0x79e   :  { %8795 = vmatpush3.msra.mxu0 %v1849_v15  ;;  %2093 = vmatpush1.msra.mxu1 %v10603_v16  ;;  %v1834_v16 = vld [vmem:[%s14038_s17 + $0x20] sm:$0xff] }
 0x79f   :  { %8796 = vmatprep.subr.mxu0 %v14130_v57  ;;  %2094 = vmatprep.subr.mxu1 %v10615_v61  ;;  %v1827_v61 = vld [vmem:[%s14040_s19] sm:$0x1] }
 0x7a0   :  { %8797 = vmatpush3.msra.mxu0 %v1844_v40  ;;  %2095 = vmatpush1.msra.mxu1 %v10625_v47  ;;  %v1829_v47 = vsub.f32 %v1827_v61, %v1828_v52  ;;  %v4259_v52 = vld [vmem:[%s14041_s20 + $0x1a8] sm:$0xff] }
 0x7a1   :  { %8798 = vmatprep.subr.mxu0 %v14130_v57  ;;  %2096 = vmatprep.subr.mxu1 %v10637_v26  ;;  %v4234_v26 = vld [vmem:[%s14041_s20 + $0xe0] sm:$0xff]  ;;  %v4243_v61 = vld [vmem:[%s14041_s20 + $0x128] sm:$0xff] }
 0x7a2   :  { %8799 = vmatpush3.msra.mxu0 %v1839_v42  ;;  %2097 = vmatpush1.msra.mxu1 %v10642_v33  ;;  %v4218_v33 = vld [vmem:[%s14041_s20 + $0x60] sm:$0xff] }
 0x7a3   :  { %8800 = vmatprep.subr.mxu0 %v14130_v57  ;;  %2098 = vmatprep.subr.mxu1 %v10649_v60  ;;  %v4233_v60 = vld [vmem:[%s14041_s20 + $0xd8] sm:$0xff] }
 0x7a4   :  { %8801 = vmatpush3.msra.mxu0 %v1834_v16  ;;  %8802 = vmatprep.mubr.msk.f32.mxu0 %vm9042_vm0, %v14130_v57 }
 0x7a5   :  { %2099 = vmatpush1.msra.mxu1 %v10661_v9  ;;  %2132 = vmatprep.mubr.f32.mxu1 %v14130_v57  ;;  %v4217_v9 = vld [vmem:[%s14041_s20 + $0x58] sm:$0xff] }
 0x7a6   :  { %8803 = vmatmul.mubr.msk.f32.vlgmr.msra.gmra.mxu0 %vm84_vm1, %v1826_v62  ;;  %7060 = vmatmul.mubr.msk.f32.vlgmr.msra.gmra.mxu1 %vm84_vm1, %v1829_v47  ;;  %v4260_v62 = vld [vmem:[%s14041_s20 + $0x1b0] sm:$0xff] }
 0x7a7   :  { %2163 = vmatprep.subr.mxu0 %v10584_v8  ;;  %8805 = vmatprep.subr.mxu1 %v14130_v57  ;;  %v4237_v8 = vld [vmem:[%s14041_s20 + $0xf8] sm:$0xff] }
 0x7a8   :  { %2164 = vmatpush1.msra.mxu0 %v10589_v10  ;;  %8806 = vmatpush3.msra.mxu1 %v1849_v15  ;;  %v4221_v10 = vld [vmem:[%s14041_s20 + $0x78] sm:$0xff]  ;;  %v4208_v15 = vld [vmem:[%s14041_s20 + $0x10] sm:$0xff] }
 0x7a9   :  { %2165 = vmatprep.subr.mxu0 %v10598_v14  ;;  %8807 = vmatprep.subr.mxu1 %v14130_v57  ;;  %v4236_v14 = vld [vmem:[%s14041_s20 + $0xf0] sm:$0xff] }
 0x7aa   :  { %2166 = vmatpush1.msra.mxu0 %v10608_v58  ;;  %8808 = vmatpush3.msra.mxu1 %v1844_v40  ;;  %v4220_v58 = vld [vmem:[%s14041_s20 + $0x70] sm:$0xff] }
 0x7ab   :  { %2167 = vmatprep.subr.mxu0 %v10620_v55  ;;  %8809 = vmatprep.subr.mxu1 %v14130_v57  ;;  %v4235_v55 = vld [vmem:[%s14041_s20 + $0xe8] sm:$0xff]  ;;  %v4244_v40 = vld [vmem:[%s14041_s20 + $0x130] sm:$0xff] }
 0x7ac   :  { %2168 = vmatpush1.msra.mxu0 %v10632_v38  ;;  %8810 = vmatpush3.msra.mxu1 %v1839_v42  ;;  %v4219_v38 = vld [vmem:[%s14041_s20 + $0x68] sm:$0xff] }
 0x7ad   :  { %2169 = vmatprep.subr.mxu0 %v10654_v29  ;;  %8811 = vmatprep.subr.mxu1 %v14130_v57  ;;  %v4269_v29 = vld [vmem:[%s14041_s20 + $0x1f8] sm:$0xff]  ;;  %v4223_v42 = vld [vmem:[%s14041_s20 + $0x88] sm:$0xff] }
 0x7ae   :  { %2170 = vmatpush1.msra.mxu0 %v10666_v36  ;;  %2203 = vmatprep.mubr.f32.mxu0 %v14130_v57  ;;  %v4253_v36 = vld [vmem:[%s14041_s20 + $0x178] sm:$0xff] }
 0x7af   :  { %8812 = vmatpush3.msra.mxu1 %v1834_v16  ;;  %8813 = vmatprep.mubr.msk.f32.mxu1 %vm9042_vm0, %v14130_v57  ;;  %v4207_v16 = vld [vmem:[%s14041_s20 + $0x8] sm:$0xff] }
 0x7b0   :  { %7061 = vmatmul.mubr.msk.f32.vlgmr.msra.gmra.mxu0 %vm84_vm1, %v1829_v47  ;;  %8814 = vmatmul.mubr.msk.f32.vlgmr.msra.gmra.mxu1 %vm84_vm1, %v1829_v47  ;;  %v4222_v47 = vld [vmem:[%s14041_s20 + $0x80] sm:$0xff] }
 0x7b1   :  { %7411 = vmatprep.subr.mxu0 %v4237_v8  ;;  %7458 = vmatprep.subr.mxu1 %v4269_v29  ;;  %v4258_v8 = vld [vmem:[%s14041_s20 + $0x1a0] sm:$0xff]  ;;  %v4240_v29 = vld [vmem:[%s14041_s20 + $0x110] sm:$0xff] }
 0x7b2   :  { %7412 = vmatpush3.msra.mxu0 %v4221_v10  ;;  %7459 = vmatpush3.msra.mxu1 %v4253_v36  ;;  %v4206_v10 = vld [vmem:[%s14041_s20] sm:$0xff]  ;;  %v4239_v36 = vld [vmem:[%s14041_s20 + $0x108] sm:$0xff] }
 0x7b3   :  { %7413 = vmatprep.subr.mxu0 %v4236_v14  ;;  %7460 = vmatprep.subr.mxu1 %v4268_v28  ;;  %v4242_v14 = vld [vmem:[%s14041_s20 + $0x120] sm:$0xff] }
 0x7b4   :  { %7414 = vmatpush3.msra.mxu0 %v4220_v58  ;;  %7461 = vmatpush3.msra.mxu1 %v4252_v53  ;;  %v3266_v58 = vld [vmem:[#allocation2 + $0x100] sm:$0xf0]  ;;  %v3268_v53 = vld [vmem:[#allocation2 + $0x88] sm:$0xf0] }
 0x7b5   :  { %7415 = vmatprep.subr.mxu0 %v4235_v55  ;;  %7462 = vmatprep.subr.mxu1 %v4267_v43  ;;  %v4257_v55 = vld [vmem:[%s14041_s20 + $0x198] sm:$0xff]  ;;  %3281 = vst [vmem:[#allocation3 + $0x2a8] sm:$0xf0] %v3266_v58  ;;  %v4238_v28 = vld [vmem:[%s14041_s20 + $0x100] sm:$0xff]  ;;  %3283 = vst [vmem:[#allocation3 + $0x1b8] sm:$0xf0] %v3268_v53 }
 0x7b6   :  { %7416 = vmatpush3.msra.mxu0 %v4219_v38  ;;  %7463 = vmatpush3.msra.mxu1 %v4251_v24  ;;  %v4301_v38 = vld [vmem:[%s14041_s20 + $0x2f8] sm:$0xff]  ;;  %v3270_v43 = vld [vmem:[#allocation2 + $0x28] sm:$0xf0] }
 0x7b7   :  { %7417 = vmatprep.subr.mxu0 %v4234_v26  ;;  %7464 = vmatprep.subr.mxu1 %v4266_v45  ;;  %v4241_v26 = vld [vmem:[%s14041_s20 + $0x118] sm:$0xff]  ;;  %3285 = vst [vmem:[#allocation3 + $0x108] sm:$0xf0] %v3270_v43  ;;  %v10937_v24 = vld [vmem:[#allocation2 + $0x88] sm:$0xe0] }
 0x7b8   :  { %7418 = vmatpush3.msra.mxu0 %v4218_v33  ;;  %7465 = vmatpush3.msra.mxu1 %v4250_v31  ;;  %v3267_v33 = vld [vmem:[#allocation2 + $0xc0] sm:$0xf0]  ;;  %v3342_v31 = vrot.slane %v10937_v24, 1 }
 0x7b9   :  { %7419 = vmatprep.subr.mxu0 %v4233_v60  ;;  %7466 = vmatprep.subr.mxu1 %v4265_v5  ;;  %v4256_v60 = vld [vmem:[%s14041_s20 + $0x190] sm:$0xff]  ;;  %3282 = vst [vmem:[#allocation3 + $0x5f8] sm:$0xf0] %v3267_v33  ;;  %v10943_v5 = vld [vmem:[#allocation2 + $0xc0] sm:$0xc0] }
 0x7ba   :  { %7420 = vmatpush3.msra.mxu0 %v4217_v9  ;;  %7467 = vmatpush3.msra.mxu1 %v4249_v7  ;;  %v4255_v9 = vld [vmem:[%s14041_s20 + $0x188] sm:$0xff] }
 0x7bb   :  { %7421 = vmatprep.subr.mxu0 %v4232_v2  ;;  %7468 = vmatprep.subr.mxu1 %v4264_v59  ;;  %v4254_v2 = vld [vmem:[%s14041_s20 + $0x180] sm:$0xff]  ;;  %v14176_v7 = vld [vmem:[#allocation27_spill] sm:$0xff] }
 0x7bc   :  { %7422 = vmatpush3.msra.mxu0 %v4216_v11  ;;  %7469 = vmatpush3.msra.mxu1 %v4248_v63  ;;  %v4333_v11 = vld [vmem:[%s14041_s20 + $0x3f8] sm:$0xff] }
 0x7bd   :  { %7423 = vmatprep.subr.mxu0 %v4231_v56  ;;  %7470 = vmatprep.subr.mxu1 %v4263_v17  ;;  %v3269_v56 = vld [vmem:[#allocation2 + $0x98] sm:$0xf0] }
 0x7be   :  { %7424 = vmatpush3.msra.mxu0 %v4215_v32  ;;  %7471 = vmatpush3.msra.mxu1 %v4247_v34  ;;  %3284 = vst [vmem:[#allocation3 + $0x210] sm:$0xf0] %v3269_v56  ;;  %v10935_v32 = vld [vmem:[#allocation2 + $0x100] sm:$0xe0]  ;;  %v10950_v63 = vld [vmem:[#allocation2 + $0x98] sm:$0xe0] }
 0x7bf   :  { %7425 = vmatprep.subr.mxu0 %v4230_v44  ;;  %7472 = vmatprep.subr.mxu1 %v4262_v1  ;;  %v10954_v17 = vld [vmem:[#allocation2 + $0x98] sm:$0xc0]  ;;  %v10958_v34 = vld [vmem:[#allocation2 + $0x28] sm:$0xc0] }
 0x7c0   :  { %7426 = vmatpush3.msra.mxu0 %v4214_v41  ;;  %7473 = vmatpush3.msra.mxu1 %v4246_v21  ;;  %v3336_v41 = vrot.slane %v10935_v32, 1 }
 0x7c1   :  { %7427 = vmatprep.subr.mxu0 %v4229_v12  ;;  %7474 = vmatprep.subr.mxu1 %v4261_v30  ;;  %v10941_v12 = vld [vmem:[#allocation2 + $0xc0] sm:$0xe0] }
 0x7c2   :  { %7428 = vmatpush3.msra.mxu0 %v4213_v50  ;;  %7475 = vmatpush3.msra.mxu1 %v4245_v19  ;;  %v10945_v50 = vld [vmem:[#allocation2 + $0x100] sm:$0xc0] }
 0x7c3   :  { %7429 = vmatprep.subr.mxu0 %v4228_v54  ;;  %7476 = vmatprep.subr.mxu1 %v4260_v62 }
 0x7c4   :  { %7430 = vmatpush3.msra.mxu0 %v4212_v0  ;;  %7477 = vmatpush3.msra.mxu1 %v4244_v40  ;;  %v10948_v0 = vld [vmem:[#allocation2 + $0x28] sm:$0xe0] }
 0x7c5   :  { %7431 = vmatprep.subr.mxu0 %v4227_v37  ;;  %7478 = vmatprep.subr.mxu1 %v4259_v52  ;;  %v10952_v37 = vld [vmem:[#allocation2 + $0x100] sm:$0x80] }
 0x7c6   :  { %7432 = vmatpush3.msra.mxu0 %v4211_v22  ;;  %7479 = vmatpush3.msra.mxu1 %v4243_v61  ;;  %v10956_v22 = vld [vmem:[#allocation2 + $0x88] sm:$0xc0] }
 0x7c7   :  { %7433 = vmatprep.subr.mxu0 %v4226_v48  ;;  %7480 = vmatprep.subr.mxu1 %v4258_v8 }
 0x7c8   :  { %7434 = vmatpush3.msra.mxu0 %v4210_v4  ;;  %7481 = vmatpush3.msra.mxu1 %v4242_v14  ;;  %v3339_v4 = vrot.slane %v10941_v12, 1 }
 0x7c9   :  { %7435 = vmatprep.subr.mxu0 %v4225_v49  ;;  %7482 = vmatprep.subr.mxu1 %v4257_v55  ;;  %v14178_v55 = vld [vmem:[#allocation36_spill] sm:$0xff] }
 0x7ca   :  { %7436 = vmatpush3.msra.mxu0 %v4209_v25  ;;  %7483 = vmatpush3.msra.mxu1 %v4241_v26  ;;  %v14179_v26 = vld [vmem:[#allocation38_spill] sm:$0xff] }
 0x7cb   :  { %7437 = vmatprep.subr.mxu0 %v4224_v6  ;;  %7484 = vmatprep.subr.mxu1 %v4256_v60 }
 0x7cc   :  { %7438 = vmatpush3.msra.mxu0 %v4208_v15  ;;  %7485 = vmatpush3.msra.mxu1 %v4240_v29 }
 0x7cd   :  { %7439 = vmatprep.subr.mxu0 %v4223_v42  ;;  %7486 = vmatprep.subr.mxu1 %v4255_v9  ;;  %v14181_v9 = vld [vmem:[#allocation40_spill] sm:$0xff] }
 0x7ce   :  { %7440 = vmatpush3.msra.mxu0 %v4207_v16  ;;  %7487 = vmatpush3.msra.mxu1 %v4239_v36  ;;  %v14182_v36 = vld [vmem:[#allocation29_spill] sm:$0xff] }
 0x7cf   :  { %7441 = vmatprep.subr.mxu0 %v4222_v47  ;;  %7488 = vmatprep.subr.mxu1 %v4254_v2 }
 0x7d0   :  { %7442 = vmatpush3.msra.mxu0 %v4206_v10  ;;  %7489 = vmatpush3.msra.mxu1 %v4238_v28 }
 0x7d1   :  { %7505 = vmatprep.subr.mxu0 %v4301_v38  ;;  %7552 = vmatprep.subr.mxu1 %v4333_v11  ;;  %v14184_v11 = vld [vmem:[#allocation33_spill] sm:$0xff] }
 0x85d   :  { %v1919_v44 = vpop.f32.mrf.mxu0  ;;  %v1990_v45 = vpop.f32.mrf.mxu1 }
 0x85e   :  { %v2283_v54 = vrot.slane %v1919_v44, %v14176_v7  ;;  %v2291_v48 = vrot.slane %v1990_v45, %v14176_v7  ;;  %v14185_v44 = vld [vmem:[#allocation35_spill] sm:$0xff] }
 0x85f   :  { %v1921_v59 = vpop.f32.mrf.mxu0  ;;  %v1992_v1 = vpop.f32.mrf.mxu1 }
 0x860   :  { %v2287_v30 = vrot.slane %v1921_v59, %v14176_v7  ;;  %v2300_v62 = vmul.f32 %v2283_v54, %v10182_v51  ;;  %v2305_v52 = vmul.f32 %v2283_v54, %v10280_v13  ;;  %v2310_v16 = vmul.f32 %v2283_v54, %v10321_v23 }
 0x861   :  { %v2315_v61 = vmul.f32 %v2283_v54, %v10351_v18  ;;  %v2295_v47 = vrot.slane %v1992_v1, %v14176_v7  ;;  %v2320_v8 = vmul.f32 %v2283_v54, %v10380_v3  ;;  %v10978_v10 = vmul.f32 %v2291_v48, %v14170_v27  ;;  %v14177_v18 = vld [vmem:[#allocation28_spill] sm:$0xff]  ;;  %v14186_v54 = vld [vmem:[#allocation37_spill] sm:$0xff] }
 0x862   :  { %v10981_v51 = vmul.f32 %v2291_v48, %v14173_v39  ;;  %v10984_v14 = vmul.f32 %v2291_v48, %v14175_v46  ;;  %v10987_v13 = vmul.f32 %v2291_v48, %v10261_v20  ;;  %v10990_v23 = vmul.f32 %v2291_v48, %v10299_v35  ;;  %v14180_v39 = vld [vmem:[#allocation39_spill] sm:$0xff]  ;;  %v14183_v35 = vld [vmem:[#allocation32_spill] sm:$0xff]  ;;  %v14187_v48 = vld [vmem:[#allocation41_spill] sm:$0xff] }
 0x863   :  { %v2301_v58 = vmul.f32 %v2287_v30, %v14177_v18  ;;  %v2306_v3 = vmul.f32 %v2287_v30, %v14178_v55  ;;  %v2311_v33 = vmul.f32 %v2287_v30, %v14179_v26  ;;  %v2316_v60 = vmul.f32 %v2287_v30, %v14180_v39  ;;  %v14189_v55 = vld [vmem:[#allocation43_spill] sm:$0xff] }
 0x864   :  { %v2321_v20 = vmul.f32 %v2287_v30, %v14181_v9  ;;  %v11000_v2 = vmul.f32 %v2295_v47, %v14182_v36  ;;  %v11003_v28 = vmul.f32 %v2295_v47, %v14183_v35  ;;  %v11006_v53 = vmul.f32 %v2295_v47, %v14184_v11  ;;  %v14188_v30 = vld [vmem:[#allocation42_spill] sm:$0xff]  ;;  %v14190_v9 = vld [vmem:[#allocation44_spill] sm:$0xff] }
 0x865   :  { %v11009_v45 = vmul.f32 %v2295_v47, %v14185_v44  ;;  %v11012_v59 = vmul.f32 %v2295_v47, %v14186_v54 }
 0x866   :  { %v2061_v38 = vpop.f32.mrf.mxu0  ;;  %v2134_v27 = vpop.f32.mrf.mxu1 }
 0x867   :  { %v2299_v46 = vrot.slane %v2061_v38, %v14176_v7  ;;  %v2328_v29 = vrot.slane %v2134_v27, %v14176_v7 }
 0x868   :  { %v8804_v56 = vpop.f32.mrf.mxu0  ;;  %v2136_v43 = vpop.f32.mrf.mxu1 }
 0x869   :  { %v11015_v1 = vmul.f32 %v2299_v46, %v14187_v48  ;;  %v11018_v18 = vmul.f32 %v2299_v46, %v14188_v30  ;;  %v11021_v38 = vmul.f32 %v2299_v46, %v14189_v55  ;;  %v2345_v27 = vadd.f32 %v2328_v29, %v2300_v62  ;;  %v14191_v56 = vld [vmem:[#allocation7_spill] sm:$0xff] }
 0x86a   :  { %v2350_v26 = vadd.f32 %v2328_v29, %v2305_v52  ;;  %v2355_v39 = vadd.f32 %v2328_v29, %v2310_v16  ;;  %v11024_v36 = vmul.f32 %v2299_v46, %v14190_v9  ;;  %v2360_v35 = vadd.f32 %v2328_v29, %v2315_v61 }
 0x86b   :  { %v2365_v11 = vadd.f32 %v2328_v29, %v2320_v8  ;;  %v2332_v47 = vrot.slane %v2136_v43, %v14176_v7  ;;  %v11028_v44 = vmul.f32 %v2299_v46, %v14191_v56  ;;  %v2370_v54 = vmax.f32 %v2345_v27, 0.0 }
 0x86c   :  { %v2375_v48 = vmax.f32 %v2350_v26, 0.0  ;;  %v2380_v30 = vmax.f32 %v2355_v39, 0.0  ;;  %v2385_v42 = vmax.f32 %v2360_v35, 0.0 }
 0x86d   :  { %v2390_v6 = vmax.f32 %v2365_v11, 0.0  ;;  %v2346_v55 = vadd.f32 %v2332_v47, %v2301_v58  ;;  %v2351_v40 = vadd.f32 %v2332_v47, %v2306_v3  ;;  %v2416_v62 = vrot.slane %v2370_v54, 4 }
 0x86e   :  { %v2421_v52 = vrot.slane %v2375_v48, 4  ;;  %v2431_v16 = vrot.slane %v2380_v30, 4  ;;  %v2356_v15 = vadd.f32 %v2332_v47, %v2311_v33  ;;  %v2491_v9 = vrot.slane %v2385_v42, 4 }
 0x86f   :  { %v2501_v49 = vrot.slane %v2390_v6, 4  ;;  %v2361_v61 = vadd.f32 %v2332_v47, %v2316_v60  ;;  %v2366_v8 = vadd.f32 %v2332_v47, %v2321_v20  ;;  %2456 = vst [vmem:[#allocation2 + $0xb0] sm:$0xf0] %v2416_v62  ;;  %v2371_v43 = vmax.f32 %v2346_v55, 0.0 }
 0x870   :  { %v11031_v29 = vsel %vm2415_vm6, %v2416_v62, %v2421_v52  ;;  %v2432_v46 = vsel %vm2415_vm6, %v2421_v52, %v2431_v16  ;;  %v2376_v27 = vmax.f32 %v2351_v40, 0.0  ;;  %v2205_v26 = vpop.f32.mrf.mxu0  ;;  %v2276_v39 = vpop.f32.mrf.mxu1  ;;  %v11036_v58 = vsel %vm2415_vm6, %v2431_v16, %v2491_v9 }
 0x871   :  { %2461 = vst [vmem:[#allocation2 + $0x68] sm:$0xff] %v11031_v29  ;;  %2466 = vst [vmem:[#allocation2 + $0x90] sm:$0xff] %v2432_v46  ;;  %v11039_v6 = vsel %vm2415_vm6, %v2491_v9, %v2501_v49  ;;  %v2381_v42 = vmax.f32 %v2356_v15, 0.0  ;;  %v2386_v3 = vmax.f32 %v2361_v61, 0.0  ;;  %v2391_v33 = vmax.f32 %v2366_v8, 0.0 }
 0x872   :  { %2536 = vst [vmem:[#allocation2 + $0x60] sm:$0xf] %v2501_v49  ;;  %2526 = vst [vmem:[#allocation2 + $0x50] sm:$0xff] %v11036_v58  ;;  %v2417_v40 = vrot.slane %v2371_v43, 4  ;;  %v2423_v60 = vrot.slane %v2376_v27, 4  ;;  %v2336_v20 = vrot.slane %v2205_v26, %v14176_v7  ;;  %v2207_v35 = vpop.f32.mrf.mxu0  ;;  %v8815_v11 = vpop.f32.mrf.mxu1  ;;  %v2344_v54 = vrot.slane %v2276_v39, %v14176_v7 }
 0x873   :  { %2531 = vst [vmem:[#allocation2 + $0x8] sm:$0xff] %v11039_v6  ;;  %v2433_v47 = vrot.slane %v2381_v42, 4  ;;  %v2493_v56 = vrot.slane %v2386_v3, 4  ;;  %v11046_v48 = vrot.slane %v2207_v35, %v14176_v7  ;;  %v2503_v15 = vrot.slane %v2391_v33, 4 }
 0x874   :  { %v11049_v49 = vsel %vm2415_vm6, %v2417_v40, %v2423_v60  ;;  %2457 = vst [vmem:[#allocation2 + $0xd0] sm:$0xf0] %v2417_v40  ;;  %v2347_v30 = vadd.f32 %v2336_v20, %v10978_v10  ;;  %v2352_v55 = vadd.f32 %v2336_v20, %v10981_v51  ;;  %v2357_v16 = vadd.f32 %v2336_v20, %v10984_v14 }
 0x875   :  { %v2434_v62 = vsel %vm2415_vm6, %v2423_v60, %v2433_v47  ;;  %2462 = vst [vmem:[#allocation2 + $0x30] sm:$0xff] %v11049_v49  ;;  %v11056_v52 = vsel %vm2415_vm6, %v2433_v47, %v2493_v56  ;;  %v2362_v7 = vadd.f32 %v2336_v20, %v10987_v13  ;;  %v11061_v9 = vsel %vm2415_vm6, %v2493_v56, %v2503_v15 }
 0x876   :  { %2467 = vst [vmem:[#allocation2 + $0xf0] sm:$0xff] %v2434_v62  ;;  %2527 = vst [vmem:[#allocation2 + $0xd8] sm:$0xff] %v11056_v52  ;;  %v2367_v10 = vadd.f32 %v2336_v20, %v10990_v23  ;;  %v2372_v51 = vmax.f32 %v2347_v30, 0.0  ;;  %v2377_v61 = vmax.f32 %v2352_v55, 0.0  ;;  %v2382_v8 = vmax.f32 %v2357_v16, 0.0  ;;  %v2546_v13 = vld [vmem:[#allocation2 + $0xb0] sm:$0xff] }
 0x877   :  { %2537 = vst [vmem:[#allocation2 + $0xf8] sm:$0xf] %v2503_v15  ;;  %2532 = vst [vmem:[#allocation2 + $0xb8] sm:$0xff] %v11061_v9  ;;  %v2387_v46 = vmax.f32 %v2362_v7, 0.0  ;;  %v2349_v43 = vadd.f32 %v2344_v54, %v11015_v1  ;;  %v2354_v14 = vadd.f32 %v2344_v54, %v11018_v18  ;;  %v2359_v42 = vadd.f32 %v2344_v54, %v11021_v38  ;;  %v4300_v62 = vld [vmem:[%s14041_s20 + $0x2f0] sm:$0xff] }
 0x878   :  { %v2392_v27 = vmax.f32 %v2367_v10, 0.0  ;;  %v2418_v26 = vrot.slane %v2372_v51, 4  ;;  %v2425_v39 = vrot.slane %v2377_v61, 4  ;;  %v2556_v3 = vld [vmem:[#allocation2 + $0x90] sm:$0xf]  ;;  %v2435_v33 = vrot.slane %v2382_v8, 4 }
 0x879   :  { %v2495_v40 = vrot.slane %v2387_v46, 4  ;;  %v2364_v23 = vadd.f32 %v2344_v54, %v11024_v36  ;;  %v2369_v60 = vadd.f32 %v2344_v54, %v11028_v44  ;;  %2571 = vst [vmem:[#allocation3 + $0x2a8] sm:$0xf] %v2556_v3  ;;  %v2374_v18 = vmax.f32 %v2349_v43, 0.0  ;;  %v4285_v44 = vld [vmem:[%s14041_s20 + $0x278] sm:$0xff]  ;;  %v4284_v61 = vld [vmem:[%s14041_s20 + $0x270] sm:$0xff] }
 0x87a   :  { %v11072_v20 = vsel %vm2415_vm6, %v2418_v26, %v2425_v39  ;;  %2458 = vst [vmem:[#allocation2 + $0x10] sm:$0xf0] %v2418_v26  ;;  %v2505_v1 = vrot.slane %v2392_v27, 4  ;;  %v2379_v35 = vmax.f32 %v2354_v14, 0.0  ;;  %v2436_v11 = vsel %vm2415_vm6, %v2425_v39, %v2435_v33  ;;  %v2576_v27 = vld [vmem:[#allocation2 + $0xb0] sm:$0xfe] }
 0x87b   :  { %2463 = vst [vmem:[#allocation2 + $0x18] sm:$0xff] %v11072_v20  ;;  %v11077_v38 = vsel %vm2415_vm6, %v2435_v33, %v2495_v40  ;;  %v2384_v47 = vmax.f32 %v2359_v42, 0.0  ;;  %v2389_v36 = vmax.f32 %v2364_v23, 0.0  ;;  %v2547_v56 = vld [vmem:[#allocation2 + $0xd0] sm:$0xff]  ;;  %2468 = vst [vmem:[#allocation2 + $0x20] sm:$0xff] %v2436_v11  ;;  %v2394_v15 = vmax.f32 %v2369_v60, 0.0 }
 0x87c   :  { %v11083_v54 = vsel %vm2415_vm6, %v2495_v40, %v2505_v1  ;;  %2528 = vst [vmem:[#allocation2 + $0x58] sm:$0xff] %v11077_v38  ;;  %2538 = vst [vmem:[#allocation2 + $0xa8] sm:$0xf] %v2505_v1  ;;  %v2420_v30 = vrot.slane %v2374_v18, 4  ;;  %v2429_v55 = vrot.slane %v2379_v35, 4  ;;  %4997 = vmatprep.mubr.f32.mxu0 %v2547_v56  ;;  %v2348_v10 = vadd.f32 %v11046_v48, %v11000_v2  ;;  %v4298_v42 = vld [vmem:[%s14041_s20 + $0x2e0] sm:$0xff] }
 0x87d   :  { %2533 = vst [vmem:[#allocation2 + $0x38] sm:$0xff] %v11083_v54  ;;  %v2439_v16 = vrot.slane %v2384_v47, 4  ;;  %v2499_v7 = vrot.slane %v2389_v36, 4  ;;  %v2353_v51 = vadd.f32 %v11046_v48, %v11003_v28  ;;  %4998 = vmatmul.mubr.f32.vlgmr.msra.gmra.mxu0 %v2546_v13  ;;  %v2557_v8 = vld [vmem:[#allocation2 + $0xf0] sm:$0xf]  ;;  %v2509_v43 = vrot.slane %v2394_v15, 4 }
 0x87e   :  { %v11098_v46 = vsel %vm2415_vm6, %v2420_v30, %v2429_v55  ;;  %2460 = vst [vmem:[#allocation2 + $0x108] sm:$0xf0] %v2420_v30  ;;  %v2358_v14 = vadd.f32 %v11046_v48, %v11006_v53  ;;  %v2363_v2 = vadd.f32 %v11046_v48, %v11009_v45  ;;  %7506 = vmatpush3.msra.mxu0 %v4285_v44  ;;  %v4299_v28 = vld [vmem:[%s14041_s20 + $0x2e8] sm:$0xff]  ;;  %2572 = vst [vmem:[#allocation3 + $0x5f8] sm:$0xf] %v2557_v8  ;;  %v4282_v3 = vld [vmem:[%s14041_s20 + $0x260] sm:$0xff] }
 0x87f   :  { %5002 = vmatprep.mubr.f32.mxu0 %v11049_v49  ;;  %v4283_v13 = vld [vmem:[%s14041_s20 + $0x268] sm:$0xff]  ;;  %v2440_v26 = vsel %vm2415_vm6, %v2429_v55, %v2439_v16  ;;  %2465 = vst [vmem:[#allocation2 + $0x110] sm:$0xff] %v11098_v46  ;;  %v11114_v53 = vsel %vm2415_vm6, %v2439_v16, %v2499_v7  ;;  %v2368_v45 = vadd.f32 %v11046_v48, %v11012_v59  ;;  %v2373_v39 = vmax.f32 %v2348_v10, 0.0  ;;  %v2586_v33 = vld [vmem:[#allocation2 + $0x90] sm:$0x1f]  ;;  %v4297_v48 = vld [vmem:[%s14041_s20 + $0x2d8] sm:$0xff] }
 0x880   :  { %7507 = vmatprep.subr.mxu0 %v4300_v62  ;;  %2470 = vst [vmem:[#allocation2 + $0x70] sm:$0xff] %v2440_v26  ;;  %v2510_v40 = vsel %vm2415_vm6, %v2499_v7, %v2509_v43  ;;  %2530 = vst [vmem:[#allocation2 + $0x40] sm:$0xff] %v11114_v53  ;;  %v2378_v23 = vmax.f32 %v2353_v51, 0.0  ;;  %v2383_v60 = vmax.f32 %v2358_v14, 0.0  ;;  %v2388_v59 = vmax.f32 %v2363_v2, 0.0  ;;  %v4281_v47 = vld [vmem:[%s14041_s20 + $0x258] sm:$0xff] }
 0x881   :  { %2540 = vst [vmem:[#allocation2 + $0xe0] sm:$0xf] %v2509_v43  ;;  %7508 = vmatpush3.msra.mxu0 %v4284_v61  ;;  %v11129_v1 = vld [vmem:[#allocation2 + $0xd0] sm:$0xfe]  ;;  %2535 = vst [vmem:[#allocation2] sm:$0xff] %v2510_v40  ;;  %v2393_v18 = vmax.f32 %v2368_v45, 0.0 }
 0x882   :  { %v2419_v35 = vrot.slane %v2373_v39, 4  ;;  %7509 = vmatprep.subr.mxu0 %v4299_v28  ;;  %5003 = vmatmul.mubr.f32.gmra.mxu0 %v11031_v29  ;;  %v11132_v11 = vld [vmem:[#allocation2 + $0x10] sm:$0xff]  ;;  %v2607_v36 = vrot.slane %v2576_v27, 1  ;;  %v2608_v56 = vrot.slane %v11031_v29, 1  ;;  %v2427_v44 = vrot.slane %v2378_v23, 4  ;;  %v11150_v14 = vld [vmem:[#allocation2 + $0x8] sm:$0xff] }
 0x883   :  { %v2437_v15 = vrot.slane %v2383_v60, 4  ;;  %v2497_v30 = vrot.slane %v2388_v59, 4  ;;  %7510 = vmatpush3.msra.mxu0 %v4283_v13  ;;  %v4296_v55 = vld [vmem:[%s14041_s20 + $0x2d0] sm:$0xff]  ;;  %v2614_v16 = vrot.slane %v11072_v20, 1  ;;  %v11142_v7 = vld [vmem:[#allocation2 + $0x60] sm:$0x1] }
 0x884   :  { %v2578_v62 = vld [vmem:[#allocation2 + $0x10] sm:$0xfe]  ;;  %2459 = vst [vmem:[#allocation2 + $0x48] sm:$0xf0] %v2419_v35  ;;  %v2507_v10 = vrot.slane %v2393_v18, 4  ;;  %7511 = vmatprep.subr.mxu0 %v4298_v42  ;;  %v11148_v61 = vsel %vm2606_vm7, %v2607_v36, %v2608_v56  ;;  %v2622_v43 = vrot.slane %v2586_v33, 1  ;;  %v11153_v2 = vsel %vm2415_vm6, %v2419_v35, %v2427_v44 }
 0x885   :  { %v4280_v29 = vld [vmem:[%s14041_s20 + $0x250] sm:$0xff]  ;;  %v2558_v51 = vld [vmem:[#allocation2 + $0x20] sm:$0xf]  ;;  %v2613_v8 = vrot.slane %v2578_v62, 1  ;;  %v2438_v28 = vsel %vm2415_vm6, %v2427_v44, %v2437_v15  ;;  %v11157_v13 = vsel %vm2415_vm6, %v2437_v15, %v2497_v30  ;;  %7512 = vmatpush3.msra.mxu0 %v4282_v3  ;;  %v4295_v27 = vld [vmem:[%s14041_s20 + $0x2c8] sm:$0xff]  ;;  %v3337_v26 = vrot.slane %v11036_v58, 1 }
 0x886   :  { %2573 = vst [vmem:[#allocation3 + $0x1b8] sm:$0xf] %v2558_v51  ;;  %v2588_v45 = vld [vmem:[#allocation2 + $0x20] sm:$0x1f]  ;;  %v2587_v39 = vld [vmem:[#allocation2 + $0xf0] sm:$0x1f]  ;;  %v11167_v33 = vsel %vm2415_vm6, %v2497_v30, %v2507_v10  ;;  %7513 = vmatprep.subr.mxu0 %v4297_v48  ;;  %v11179_v59 = vsel %vm2606_vm7, %v2608_v56, %v2622_v43 }
 0x887   :  { %v11163_v42 = vld [vmem:[#allocation2 + $0xd8] sm:$0xff]  ;;  %2464 = vst [vmem:[#allocation2 + $0x80] sm:$0xff] %v11153_v2  ;;  %2469 = vst [vmem:[#allocation2 + $0xc8] sm:$0xff] %v2438_v28  ;;  %v4072_v3 = vld [vmem:[#allocation3 + $0x5f8] sm:$0xff]  ;;  %v11174_v23 = vsel %vm2606_vm7, %v2613_v8, %v2614_v16  ;;  %v2610_v18 = vrot.slane %v11129_v1, 1  ;;  %7514 = vmatpush3.msra.mxu0 %v4281_v47  ;;  %v3338_v44 = vsel %vm2606_vm7, %v3336_v41, %v3337_v26  ;;  %v2611_v15 = vrot.slane %v11049_v49, 1 }
 0x888   :  { %2529 = vst [vmem:[#allocation2 + $0xa0] sm:$0xff] %v11157_v13  ;;  %2539 = vst [vmem:[#allocation2 + $0x78] sm:$0xf] %v2507_v10  ;;  %v4279_v40 = vld [vmem:[%s14041_s20 + $0x248] sm:$0xff]  ;;  %v11182_v35 = vld [vmem:[#allocation2 + $0x38] sm:$0xff]  ;;  %5007 = vmatprep.mubr.f32.mxu0 %v4072_v3  ;;  %v3351_v56 = vrot.slane %v11150_v14, 1  ;;  %7515 = vmatprep.subr.mxu0 %v4296_v55 }
 0x889   :  { %v11176_v60 = vld [vmem:[#allocation2 + $0x108] sm:$0xff]  ;;  %2657 = vst [vmem:[#allocation3 + $0x2c0] sm:$0xf] %v2622_v43  ;;  %v11184_v36 = vld [vmem:[#allocation2 + $0xb8] sm:$0xff]  ;;  %2534 = vst [vmem:[#allocation2 + $0xe8] sm:$0xff] %v11167_v33  ;;  %v2626_v30 = vrot.slane %v2588_v45, 1  ;;  %7516 = vmatpush3.msra.mxu0 %v4280_v29  ;;  %v11202_v49 = vsel %vm2606_vm7, %v2610_v18, %v2611_v15 }
 0x88a   :  { %v4071_v48 = vld [vmem:[#allocation3 + $0x2a8] sm:$0xff]  ;;  %v2580_v62 = vld [vmem:[#allocation2 + $0x108] sm:$0xfe]  ;;  %v11192_v1 = vld [vmem:[#allocation2 + $0xd0] sm:$0xfc]  ;;  %v2624_v51 = vrot.slane %v2587_v39, 1  ;;  %v11205_v55 = vsel %vm2606_vm7, %v3337_v26, %v3351_v56  ;;  %7517 = vmatprep.subr.mxu0 %v4295_v27 }
 0x88b   :  { %5008 = vmatmul.mubr.f32.gmra.mxu0 %v4071_v48  ;;  %3386 = vst [vmem:[#allocation3 + $0x2c0] sm:$0xf0] %v3338_v44  ;;  %v2560_v10 = vld [vmem:[#allocation2 + $0x70] sm:$0xf]  ;;  %v3361_v8 = vrot.slane %v11142_v7, 1  ;;  %v3343_v47 = vrot.slane %v11077_v38, 1  ;;  %v11208_v7 = vsel %vm2606_vm7, %v2614_v16, %v2626_v30 }
 0x88c   :  { %v3340_v32 = vrot.slane %v11163_v42, 1  ;;  %v4317_v41 = vld [vmem:[%s14041_s20 + $0x378] sm:$0xff]  ;;  %5012 = vmatprep.mubr.f32.mxu0 %v11056_v52  ;;  %2575 = vst [vmem:[#allocation3 + $0x108] sm:$0xf] %v2560_v10  ;;  %2659 = vst [vmem:[#allocation3 + $0x6a8] sm:$0xf] %v2626_v30  ;;  %v11220_v26 = vsel %vm2606_vm7, %v2611_v15, %v2624_v51  ;;  %7518 = vmatpush3.msra.mxu0 %v4279_v40 }
 0x88d   :  { %v3355_v43 = vrot.slane %v11182_v35, 1  ;;  %v3313_v28 = vld [vmem:[#allocation2 + $0xa8] sm:$0x1]  ;;  %v3312_v45 = vld [vmem:[#allocation2 + $0xf8] sm:$0x1]  ;;  %v11211_v39 = vld [vmem:[#allocation2 + $0x30] sm:$0xff]  ;;  %v11223_v16 = vsel %vm2606_vm7, %v3351_v56, %v3361_v8  ;;  %v3344_v3 = vsel %vm2606_vm7, %v3342_v31, %v3343_v47 }
 0x88e   :  { %v4332_v52 = vld [vmem:[%s14041_s20 + $0x3f0] sm:$0xff]  ;;  %v4294_v29 = vld [vmem:[%s14041_s20 + $0x2c0] sm:$0xff]  ;;  %2658 = vst [vmem:[#allocation3 + $0x38] sm:$0xf] %v2624_v51  ;;  %v3341_v18 = vsel %vm2606_vm7, %v3339_v4, %v3340_v32  ;;  %v2549_v48 = vld [vmem:[#allocation2 + $0x48] sm:$0xff]  ;;  %v2619_v31 = vrot.slane %v2580_v62, 1 }
 0x88f   :  { %v2590_v27 = vld [vmem:[#allocation2 + $0x70] sm:$0x1f]  ;;  %v4278_v15 = vld [vmem:[%s14041_s20 + $0x240] sm:$0xff]  ;;  %3388 = vst [vmem:[#allocation3 + $0x6a8] sm:$0xf0] %v3344_v3  ;;  %v11238_v24 = vsel %vm2606_vm7, %v3343_v47, %v3355_v43  ;;  %v2620_v12 = vrot.slane %v11098_v46, 1  ;;  %5087 = vmatprep.mubr.f32.mxu1 %v2549_v48  ;;  %5013 = vmatmul.mubr.f32.gmra.mxu0 %v11036_v58 }
 0x890   :  { %v4316_v44 = vld [vmem:[%s14041_s20 + $0x370] sm:$0xff]  ;;  %3387 = vst [vmem:[#allocation3 + $0x38] sm:$0xf0] %v3341_v18  ;;  %v3353_v4 = vrot.slane %v11184_v36, 1  ;;  %v2579_v56 = vld [vmem:[#allocation2 + $0x48] sm:$0xfe]  ;;  %5088 = vmatmul.mubr.f32.vlgmr.msra.gmra.mxu1 %v11132_v11  ;;  %5017 = vmatprep.mubr.f32.mxu0 %v11061_v9 }
 0x891   :  { %v11242_v30 = vld [vmem:[#allocation2 + $0xb0] sm:$0xfc]  ;;  %v11244_v10 = vld [vmem:[#allocation2 + $0x68] sm:$0xff]  ;;  %v3365_v51 = vrot.slane %v3313_v28, 1  ;;  %v3363_v8 = vrot.slane %v3312_v45, 1  ;;  %v2696_v62 = vrot.slane %v11192_v1, 2  ;;  %v11264_v28 = vsel %vm2606_vm7, %v2619_v31, %v2620_v12  ;;  %7553 = vmatpush3.msra.mxu1 %v4317_v41  ;;  %5092 = vmatprep.mubr.f32.mxu1 %v11153_v2 }
 0x892   :  { %v4331_v40 = vld [vmem:[%s14041_s20 + $0x3e8] sm:$0xff]  ;;  %v11252_v3 = vld [vmem:[#allocation2 + $0x40] sm:$0xff]  ;;  %v11256_v21 = vld [vmem:[#allocation2 + $0xf0] sm:$0x3f]  ;;  %v11267_v1 = vsel %vm2606_vm7, %v3340_v32, %v3353_v4  ;;  %v2616_v19 = vrot.slane %v2579_v56, 1  ;;  %v2630_v25 = vrot.slane %v2590_v27, 1  ;;  %7554 = vmatprep.subr.mxu1 %v4332_v52  ;;  %7519 = vmatprep.subr.mxu0 %v4294_v29 }
 0x893   :  { %v11254_v18 = vld [vmem:[#allocation2] sm:$0xff]  ;;  %v4315_v48 = vld [vmem:[%s14041_s20 + $0x368] sm:$0xff]  ;;  %v4293_v11 = vld [vmem:[%s14041_s20 + $0x2b8] sm:$0xff]  ;;  %v11281_v32 = vsel %vm2606_vm7, %v3355_v43, %v3365_v51  ;;  %v11284_v31 = vsel %vm2606_vm7, %v3353_v4, %v3363_v8  ;;  %v14193_v27 = vrot.slane %v11211_v39, 2  ;;  %v3349_v51 = vrot.slane %v11252_v3, 1  ;;  %7555 = vmatpush3.msra.mxu1 %v4316_v44  ;;  %7520 = vmatpush3.msra.mxu0 %v4278_v15 }
 0x894   :  { %v2559_v58 = vld [vmem:[#allocation2 + $0xc8] sm:$0xf]  ;;  %v11269_v45 = vld [vmem:[#allocation2 + $0x80] sm:$0xff]  ;;  %14192 = vst [vmem:[#allocation8_spill] sm:$0xff] %v11284_v31  ;;  %v2631_v57 = vsel %vm2606_vm7, %v2620_v12, %v2630_v25  ;;  %2661 = vst [vmem:[#allocation3 + $0x430] sm:$0xf] %v2630_v25  ;;  %7556 = vmatprep.subr.mxu1 %v4331_v40  ;;  %5093 = vmatmul.mubr.f32.gmra.mxu1 %v11072_v20 }
 0x895   :  { %v11271_v47 = vld [vmem:[#allocation2 + $0xa0] sm:$0xff]  ;;  %2574 = vst [vmem:[#allocation3 + $0x210] sm:$0xf] %v2559_v58  ;;  %v11289_v41 = vsel %vm2692_vm8, %v2696_v62, %v14193_v27  ;;  %v2617_v2 = vrot.slane %v11269_v45, 1  ;;  %v2589_v56 = vld [vmem:[#allocation2 + $0xc8] sm:$0x1f]  ;;  %7557 = vmatpush3.msra.mxu1 %v4315_v48  ;;  %7521 = vmatprep.subr.mxu0 %v4293_v11 }
 0x896   :  { %v4330_v9 = vld [vmem:[%s14041_s20 + $0x3e0] sm:$0xff]  ;;  %14194 = vst [vmem:[#allocation9_spill] sm:$0xff] %v11289_v41  ;;  %v2672_v58 = vld [vmem:[#allocation2 + $0x90] sm:$0x3f]  ;;  %v2628_v43 = vrot.slane %v2589_v56, 1  ;;  %v3346_v4 = vrot.slane %v11271_v47, 1  ;;  %5018 = vmatmul.mubr.f32.gmra.mxu0 %v11039_v6 }
 0x897   :  { %v11295_v8 = vld [vmem:[#allocation2 + $0xe8] sm:$0xff]  ;;  %v11297_v31 = vld [vmem:[#allocation2 + $0xe0] sm:$0x1]  ;;  %v2618_v52 = vsel %vm2606_vm7, %v2616_v19, %v2617_v2  ;;  %2656 = vst [vmem:[#allocation3 + $0xc8] sm:$0xff] %v2631_v57  ;;  %v2693_v25 = vrot.slane %v11242_v30, 2  ;;  %v2694_v29 = vrot.slane %v11244_v10, 2  ;;  %7558 = vmatprep.subr.mxu1 %v4330_v9  ;;  %5177 = vmatprep.mubr.f32.mxu0 %v11148_v61 }
 0x898   :  { %v4314_v62 = vld [vmem:[%s14041_s20 + $0x360] sm:$0xff]  ;;  %v3359_v12 = vrot.slane %v11254_v18, 1  ;;  %v3314_v27 = vld [vmem:[#allocation2 + $0x78] sm:$0x1]  ;;  %2650 = vst [vmem:[#allocation3 + $0xd8] sm:$0xff] %v2618_v52  ;;  %v2629_v57 = vsel %vm2606_vm7, %v2617_v2, %v2628_v43  ;;  %v14195_v19 = vrot.slane %v10948_v0, 1 }
 0x899   :  { %v4329_v44 = vld [vmem:[%s14041_s20 + $0x3d8] sm:$0xff]  ;;  %2660 = vst [vmem:[#allocation3 + $0x4d0] sm:$0xf] %v2628_v43  ;;  %v14196_v40 = vrot.slane %v10950_v63, 1  ;;  %v2710_v56 = vrot.slane %v11256_v21, 2  ;;  %v11321_v41 = vld [vmem:[#allocation2 + $0x50] sm:$0xff]  ;;  %v2695_v63 = vsel %vm2692_vm8, %v2693_v25, %v2694_v29  ;;  %7559 = vmatpush3.msra.mxu1 %v4314_v62 }
 0x89a   :  { %v4277_v15 = vld [vmem:[%s14041_s20 + $0x238] sm:$0xff]  ;;  %v3350_v30 = vsel %vm2606_vm7, %v14195_v19, %v3349_v51  ;;  %v4292_v0 = vld [vmem:[%s14041_s20 + $0x2b0] sm:$0xff]  ;;  %2655 = vst [vmem:[#allocation3 + $0x160] sm:$0xff] %v2629_v57  ;;  %v3360_v2 = vsel %vm2606_vm7, %v3349_v51, %v3359_v12  ;;  %v3357_v21 = vrot.slane %v11295_v8, 1  ;;  %v2708_v43 = vrot.slane %v2672_v58, 2  ;;  %2733 = vst [vmem:[#allocation3 + $0x490] sm:$0xff] %v2695_v63  ;;  %7560 = vmatprep.subr.mxu1 %v4329_v44 }
 0x89b   :  { %v3347_v20 = vsel %vm2606_vm7, %v14196_v40, %v3346_v4  ;;  %v4313_v52 = vld [vmem:[%s14041_s20 + $0x358] sm:$0xff]  ;;  %3390 = vst [vmem:[#allocation3 + $0x430] sm:$0xf0] %v3350_v30  ;;  %v2665_v48 = vld [vmem:[#allocation2 + $0x48] sm:$0xfc]  ;;  %v4328_v11 = vld [vmem:[%s14041_s20 + $0x3d0] sm:$0xff]  ;;  %7522 = vmatpush3.msra.mxu0 %v4277_v15 }
 0x89c   :  { %3389 = vst [vmem:[#allocation3 + $0x4d0] sm:$0xf0] %v3347_v20  ;;  %3395 = vst [vmem:[#allocation3 + $0x28] sm:$0xff] %v3360_v2  ;;  %v14197_v57 = vrot.slane %v11211_v39, 2  ;;  %v3369_v51 = vrot.slane %v11297_v31, 1  ;;  %v3445_v25 = vrot.slane %v11163_v42, 2  ;;  %v3358_v9 = vsel %vm2606_vm7, %v3346_v4, %v3357_v21  ;;  %7523 = vmatprep.subr.mxu0 %v4292_v0  ;;  %7561 = vmatpush3.msra.mxu1 %v4313_v52 }
 0x89d   :  { %2744 = vst [vmem:[#allocation3 + $0x648] sm:$0xf] %v2710_v56  ;;  %v3367_v58 = vrot.slane %v3314_v27, 1  ;;  %v11341_v30 = vld [vmem:[#allocation2 + $0xf8] sm:$0x3]  ;;  %v4276_v6 = vld [vmem:[%s14041_s20 + $0x230] sm:$0xff]  ;;  %v2709_v31 = vsel %vm2692_vm8, %v2694_v29, %v2708_v43  ;;  %7562 = vmatprep.subr.mxu1 %v4328_v11 }
 0x89e   :  { %v2711_v19 = vsel %vm2692_vm8, %v14197_v57, %v2710_v56  ;;  %v4312_v39 = vld [vmem:[%s14041_s20 + $0x350] sm:$0xff]  ;;  %2743 = vst [vmem:[#allocation3 + $0x6d0] sm:$0xf] %v2708_v43  ;;  %v3442_v42 = vrot.slane %v11321_v41, 2  ;;  %v3458_v27 = vrot.slane %v11184_v36, 2  ;;  %v4074_v40 = vld [vmem:[#allocation3 + $0x210] sm:$0xff]  ;;  %v3370_v29 = vsel %vm2606_vm7, %v3359_v12, %v3369_v51  ;;  %7524 = vmatpush3.msra.mxu0 %v4276_v6 }
 0x89f   :  { %2739 = vst [vmem:[#allocation3 + $0x180] sm:$0xff] %v2711_v19  ;;  %v3416_v62 = vld [vmem:[#allocation2 + $0x60] sm:$0x3]  ;;  %v2748_v15 = vld [vmem:[#allocation2 + $0xb0] sm:$0xf8]  ;;  %v4291_v20 = vld [vmem:[%s14041_s20 + $0x2a8] sm:$0xff]  ;;  %v3368_v63 = vsel %vm2606_vm7, %v3357_v21, %v3367_v58  ;;  %5097 = vmatprep.mubr.f32.mxu1 %v4074_v40  ;;  %7563 = vmatpush3.msra.mxu1 %v4312_v39 }
 0x8a0   :  { %v4327_v4 = vld [vmem:[%s14041_s20 + $0x3c8] sm:$0xff]  ;;  %3394 = vst [vmem:[#allocation3 + $0x98] sm:$0xff] %v3358_v9  ;;  %2738 = vst [vmem:[#allocation3 + $0x530] sm:$0xff] %v2709_v31  ;;  %v14198_v56 = vrot.slane %v10943_v5, 2  ;;  %v2702_v44 = vrot.slane %v2665_v48, 2  ;;  %v11364_v2 = vld [vmem:[#allocation2 + $0x18] sm:$0xff]  ;;  %v3459_v21 = vsel %vm2692_vm8, %v3445_v25, %v3458_v27  ;;  %7525 = vmatprep.subr.mxu0 %v4291_v20 }
 0x8a1   :  { %v2664_v0 = vld [vmem:[#allocation2 + $0x10] sm:$0xfc]  ;;  %v4275_v57 = vld [vmem:[%s14041_s20 + $0x228] sm:$0xff]  ;;  %3400 = vst [vmem:[#allocation3 + $0x360] sm:$0xff] %v3370_v29  ;;  %3399 = vst [vmem:[#allocation3 + $0x130] sm:$0xff] %v3368_v63  ;;  %v14199_v5 = vrot.slane %v10945_v50, 2  ;;  %7564 = vmatprep.subr.mxu1 %v4327_v4 }
 0x8a2   :  { %v3446_v36 = vsel %vm2692_vm8, %v14198_v56, %v3445_v25  ;;  %v4073_v43 = vld [vmem:[#allocation3 + $0x1b8] sm:$0xff]  ;;  %v2703_v48 = vrot.slane %v11269_v45, 2  ;;  %v3456_v19 = vrot.slane %v11150_v14, 2  ;;  %v2675_v51 = vld [vmem:[#allocation2 + $0xc8] sm:$0x3f]  ;;  %3497 = vst [vmem:[#allocation3 + $0x88] sm:$0xff] %v3459_v21  ;;  %7526 = vmatpush3.msra.mxu0 %v4275_v57 }
 0x8a3   :  { %3492 = vst [vmem:[#allocation3 + $0x648] sm:$0xf0] %v3446_v36  ;;  %v3443_v12 = vsel %vm2692_vm8, %v14199_v5, %v3442_v42  ;;  %5098 = vmatmul.mubr.f32.gmra.mxu1 %v4073_v43  ;;  %v3468_v52 = vrot.slane %v11341_v30, 2  ;;  %v3466_v58 = vrot.slane %v3416_v62, 2  ;;  %v2779_v9 = vrot.slane %v2748_v15, 3  ;;  %v11382_v61 = vld [vmem:[#allocation2 + $0x58] sm:$0xff] }
 0x8a4   :  { %3491 = vst [vmem:[#allocation3 + $0x6d0] sm:$0xf0] %v3443_v12  ;;  %v2780_v50 = vrot.slane %v11244_v10, 3  ;;  %v2674_v31 = vld [vmem:[#allocation2 + $0x20] sm:$0x3f]  ;;  %5102 = vmatprep.mubr.f32.mxu1 %v11157_v13  ;;  %v2704_v45 = vsel %vm2692_vm8, %v2702_v44, %v2703_v48  ;;  %v3457_v14 = vsel %vm2692_vm8, %v3442_v42, %v3456_v19  ;;  %v2699_v25 = vrot.slane %v2664_v0, 2 }
 0x8a5   :  { %v2700_v40 = vrot.slane %v11364_v2, 2  ;;  %v2666_v29 = vld [vmem:[#allocation2 + $0x108] sm:$0xfc]  ;;  %v11384_v56 = vld [vmem:[#allocation2 + $0x110] sm:$0xff]  ;;  %v4290_v13 = vld [vmem:[%s14041_s20 + $0x2a0] sm:$0xff]  ;;  %2736 = vst [vmem:[#allocation3 + $0x658] sm:$0xff] %v2704_v45  ;;  %v3469_v11 = vsel %vm2692_vm8, %v3458_v27, %v3468_v52  ;;  %v3467_v42 = vsel %vm2692_vm8, %v3456_v19, %v3466_v58 }
 0x8a6   :  { %v4311_v30 = vld [vmem:[%s14041_s20 + $0x348] sm:$0xff]  ;;  %3496 = vst [vmem:[#allocation3 + $0x218] sm:$0xff] %v3457_v14  ;;  %v2781_v62 = vsel %vm2778_vm9, %v2779_v9, %v2780_v50  ;;  %v2714_v6 = vrot.slane %v2675_v51, 2  ;;  %v4326_v39 = vld [vmem:[%s14041_s20 + $0x3c0] sm:$0xff]  ;;  %3502 = vst [vmem:[#allocation3 + $0x560] sm:$0xff] %v3469_v11  ;;  %v2712_v36 = vrot.slane %v2674_v31, 2  ;;  %7527 = vmatprep.subr.mxu0 %v4290_v13 }
 0x8a7   :  { %3501 = vst [vmem:[#allocation3 + $0x158] sm:$0xff] %v3467_v42  ;;  %2819 = vst [vmem:[#allocation3 + $0x300] sm:$0xff] %v2781_v62  ;;  %v2701_v15 = vsel %vm2692_vm8, %v2699_v25, %v2700_v40  ;;  %v3451_v27 = vrot.slane %v11271_v47, 2  ;;  %v3448_v63 = vrot.slane %v11382_v61, 2  ;;  %v2758_v44 = vld [vmem:[#allocation2 + $0x90] sm:$0x7f]  ;;  %5103 = vmatmul.mubr.f32.gmra.mxu1 %v11077_v38 }
 0x8a8   :  { %v4274_v20 = vld [vmem:[%s14041_s20 + $0x220] sm:$0xff]  ;;  %2735 = vst [vmem:[#allocation3 + $0x388] sm:$0xff] %v2701_v15  ;;  %v2715_v0 = vsel %vm2692_vm8, %v2703_v48, %v2714_v6  ;;  %2746 = vst [vmem:[#allocation3 + $0x110] sm:$0xf] %v2714_v6  ;;  %v2705_v43 = vrot.slane %v2666_v29, 2  ;;  %v2706_v47 = vrot.slane %v11384_v56, 2  ;;  %7565 = vmatpush3.msra.mxu1 %v4311_v30  ;;  %5107 = vmatprep.mubr.f32.mxu1 %v11167_v33 }
 0x8a9   :  { %v4310_v4 = vld [vmem:[%s14041_s20 + $0x340] sm:$0xff]  ;;  %v3462_v5 = vrot.slane %v11295_v8, 2  ;;  %v4289_v38 = vld [vmem:[%s14041_s20 + $0x298] sm:$0xff]  ;;  %2741 = vst [vmem:[#allocation3 + $0x6f8] sm:$0xff] %v2715_v0  ;;  %v2713_v12 = vsel %vm2692_vm8, %v2700_v40, %v2712_v36  ;;  %2745 = vst [vmem:[#allocation3 + $0x40] sm:$0xf] %v2712_v36  ;;  %7566 = vmatprep.subr.mxu1 %v4326_v39  ;;  %7528 = vmatpush3.msra.mxu0 %v4274_v20 }
 0x8aa   :  { %v4325_v57 = vld [vmem:[%s14041_s20 + $0x3b8] sm:$0xff]  ;;  %v14200_v21 = vrot.slane %v10954_v17, 2  ;;  %v14201_v8 = vrot.slane %v10956_v22, 2  ;;  %v2794_v19 = vrot.slane %v2758_v44, 3  ;;  %v11427_v51 = vld [vmem:[#allocation2 + $0x88] sm:$0x80]  ;;  %v2707_v17 = vsel %vm2692_vm8, %v2705_v43, %v2706_v47  ;;  %7567 = vmatpush3.msra.mxu1 %v4310_v4  ;;  %7529 = vmatprep.subr.mxu0 %v4289_v38 }
 0x8ab   :  { %v4273_v52 = vld [vmem:[%s14041_s20 + $0x218] sm:$0xff]  ;;  %2740 = vst [vmem:[#allocation3 + $0x678] sm:$0xff] %v2713_v12  ;;  %v3463_v58 = vsel %vm2692_vm8, %v3451_v27, %v3462_v5  ;;  %v3460_v22 = vrot.slane %v11182_v35, 2  ;;  %v2676_v9 = vld [vmem:[#allocation2 + $0x70] sm:$0x3f]  ;;  %v3547_v31 = vrot.slane %v11321_v41, 3  ;;  %7568 = vmatprep.subr.mxu1 %v4325_v57  ;;  %5108 = vmatmul.mubr.f32.gmra.mxu1 %v11083_v54 }
 0x8ac   :  { %v3452_v48 = vsel %vm2692_vm8, %v14200_v21, %v3451_v27  ;;  %v3449_v33 = vsel %vm2692_vm8, %v14201_v8, %v3448_v63  ;;  %v4309_v45 = vld [vmem:[%s14041_s20 + $0x338] sm:$0xff]  ;;  %v4288_v14 = vld [vmem:[%s14041_s20 + $0x290] sm:$0xff]  ;;  %2737 = vst [vmem:[#allocation3 + $0x350] sm:$0xff] %v2707_v17  ;;  %3499 = vst [vmem:[#allocation3 + $0x2f8] sm:$0xff] %v3463_v58  ;;  %v2795_v25 = vsel %vm2778_vm9, %v2780_v50, %v2794_v19  ;;  %v2716_v40 = vrot.slane %v2676_v9, 2 }
 0x8ad   :  { %3494 = vst [vmem:[#allocation3 + $0x110] sm:$0xf0] %v3452_v48  ;;  %3493 = vst [vmem:[#allocation3 + $0x40] sm:$0xf0] %v3449_v33  ;;  %v3419_v29 = vld [vmem:[#allocation2 + $0x78] sm:$0x3]  ;;  %v3461_v11 = vsel %vm2692_vm8, %v3448_v63, %v3460_v22  ;;  %7530 = vmatpush3.msra.mxu0 %v4273_v52  ;;  %7569 = vmatpush3.msra.mxu1 %v4309_v45 }
 0x8ae   :  { %2829 = vst [vmem:[#allocation3 + $0x120] sm:$0xf] %v2794_v19  ;;  %v3454_v30 = vrot.slane %v11252_v3, 2  ;;  %v4324_v13 = vld [vmem:[%s14041_s20 + $0x3b0] sm:$0xff]  ;;  %2824 = vst [vmem:[#allocation3 + $0xa8] sm:$0xff] %v2795_v25  ;;  %v3472_v42 = vrot.slane %v3419_v29, 2  ;;  %7531 = vmatprep.subr.mxu0 %v4288_v14  ;;  %5267 = vmatprep.mubr.f32.mxu1 %v11174_v23 }
 0x8af   :  { %v14202_v10 = vrot.slane %v10952_v37, 3  ;;  %v3552_v3 = vrot.slane %v11427_v51, 3  ;;  %v4272_v62 = vld [vmem:[%s14041_s20 + $0x210] sm:$0xff]  ;;  %v4287_v39 = vld [vmem:[%s14041_s20 + $0x288] sm:$0xff]  ;;  %3498 = vst [vmem:[#allocation3 + $0x100] sm:$0xff] %v3461_v11  ;;  %v2717_v37 = vsel %vm2692_vm8, %v2706_v47, %v2716_v40  ;;  %v14203_v54 = vrot.slane %v10958_v34, 2  ;;  %7570 = vmatprep.subr.mxu1 %v4324_v13 }
 0x8b0   :  { %v4308_v6 = vld [vmem:[%s14041_s20 + $0x330] sm:$0xff]  ;;  %2747 = vst [vmem:[#allocation3 + $0x590] sm:$0xf] %v2716_v40  ;;  %v3464_v36 = vrot.slane %v11254_v18, 2  ;;  %v4323_v27 = vld [vmem:[%s14041_s20 + $0x3a8] sm:$0xff]  ;;  %2742 = vst [vmem:[#allocation3 + $0x5a8] sm:$0xff] %v2717_v37  ;;  %v3473_v44 = vsel %vm2692_vm8, %v3462_v5, %v3472_v42  ;;  %7532 = vmatpush3.msra.mxu0 %v4272_v62 }
 0x8b1   :  { %v3548_v50 = vsel %vm2778_vm9, %v14202_v10, %v3547_v31  ;;  %v3455_v15 = vsel %vm2692_vm8, %v14203_v54, %v3454_v30  ;;  %v4271_v63 = vld [vmem:[%s14041_s20 + $0x208] sm:$0xff]  ;;  %v2786_v34 = vrot.slane %v11364_v2, 3  ;;  %v3553_v4 = vrot.slane %v11382_v61, 3  ;;  %3504 = vst [vmem:[#allocation3 + $0xf8] sm:$0xff] %v3473_v44  ;;  %v2750_v38 = vld [vmem:[#allocation2 + $0x10] sm:$0xf8]  ;;  %7571 = vmatpush3.msra.mxu1 %v4308_v6  ;;  %7533 = vmatprep.subr.mxu0 %v4287_v39 }
 0x8b2   :  { %3596 = vst [vmem:[#allocation3 + $0x120] sm:$0xf0] %v3548_v50  ;;  %v3418_v20 = vld [vmem:[#allocation2 + $0xa8] sm:$0x3]  ;;  %3495 = vst [vmem:[#allocation3 + $0x590] sm:$0xf0] %v3455_v15  ;;  %v3465_v5 = vsel %vm2692_vm8, %v3454_v30, %v3464_v36  ;;  %7572 = vmatprep.subr.mxu1 %v4323_v27  ;;  %7534 = vmatpush3.msra.mxu0 %v4271_v63 }
 0x8b3   :  { %v4307_v0 = vld [vmem:[%s14041_s20 + $0x328] sm:$0xff]  ;;  %v3470_v43 = vrot.slane %v3418_v20, 2  ;;  %v4286_v57 = vld [vmem:[%s14041_s20 + $0x280] sm:$0xff]  ;;  %v2785_v21 = vrot.slane %v2750_v38, 3  ;;  %3500 = vst [vmem:[#allocation3 + $0x5e8] sm:$0xff] %v3465_v5  ;;  %v3554_v48 = vsel %vm2778_vm9, %v3552_v3, %v3553_v4  ;;  %v4321_v51 = vld [vmem:[%s14041_s20 + $0x398] sm:$0xff] }
 0x8b4   :  { %v11486_v47 = vld [vmem:[#allocation2 + $0x8] sm:$0xff]  ;;  %v4322_v23 = vld [vmem:[%s14041_s20 + $0x3a0] sm:$0xff]  ;;  %3598 = vst [vmem:[#allocation3 + $0xe8] sm:$0xf0] %v3554_v48  ;;  %7573 = vmatpush3.msra.mxu1 %v4307_v0  ;;  %7535 = vmatprep.subr.mxu0 %v4286_v57  ;;  %v4365_v35 = vld [vmem:[%s14041_s20 + $0x4f8] sm:$0xff]  ;;  %v2792_v29 = vrot.slane %v11384_v56, 3 }
 0x8b5   :  { %v3561_v12 = vrot.slane %v11486_v47, 3  ;;  %v4270_v8 = vld [vmem:[%s14041_s20 + $0x200] sm:$0xff]  ;;  %v3471_v19 = vsel %vm2692_vm8, %v3460_v22, %v3470_v43  ;;  %v2787_v17 = vsel %vm2778_vm9, %v2785_v21, %v2786_v34  ;;  %7574 = vmatprep.subr.mxu1 %v4322_v23  ;;  %v4305_v41 = vld [vmem:[%s14041_s20 + $0x318] sm:$0xff]  ;;  %v4364_v45 = vld [vmem:[%s14041_s20 + $0x4f0] sm:$0xff] }
 0x8b6   :  { %v4306_v33 = vld [vmem:[%s14041_s20 + $0x320] sm:$0xff]  ;;  %3503 = vst [vmem:[#allocation3 + $0x308] sm:$0xff] %v3471_v19  ;;  %2821 = vst [vmem:[#allocation3 + $0x178] sm:$0xff] %v2787_v17  ;;  %7536 = vmatpush3.msra.mxu0 %v4270_v8  ;;  %v4349_v22 = vld [vmem:[%s14041_s20 + $0x478] sm:$0xff] }
 0x8b7   :  { %v3562_v52 = vsel %vm2778_vm9, %v3547_v31, %v3561_v12  ;;  %v3521_v58 = vld [vmem:[#allocation2 + $0x60] sm:$0x7]  ;;  %7575 = vmatpush3.msra.mxu1 %v4306_v33  ;;  %5178 = vmatmul.mubr.f32.vlgmr.msra.gmra.mxu0 %v11176_v60  ;;  %v4320_v31 = vld [vmem:[%s14041_s20 + $0x390] sm:$0xff]  ;;  %v4319_v30 = vld [vmem:[%s14041_s20 + $0x388] sm:$0xff] }
 0x8b8   :  { %3601 = vst [vmem:[#allocation3 + $0x4f8] sm:$0xff] %v3562_v52  ;;  %v3571_v9 = vrot.slane %v3521_v58, 3  ;;  %7576 = vmatprep.subr.mxu1 %v4321_v51  ;;  %7599 = vmatprep.subr.mxu0 %v4365_v35  ;;  %v4304_v14 = vld [vmem:[%s14041_s20 + $0x310] sm:$0xff]  ;;  %v3420_v40 = vld [vmem:[#allocation2 + $0xe0] sm:$0x3]  ;;  %v4363_v11 = vld [vmem:[%s14041_s20 + $0x4e8] sm:$0xff] }
 0x8b9   :  { %5182 = vmatprep.mubr.f32.mxu0 %v11179_v59  ;;  %v4348_v60 = vld [vmem:[%s14041_s20 + $0x470] sm:$0xff]  ;;  %7577 = vmatpush3.msra.mxu1 %v4305_v41  ;;  %v3474_v59 = vrot.slane %v3420_v40, 2  ;;  %v2752_v13 = vld [vmem:[#allocation2 + $0x108] sm:$0xf8]  ;;  %v4076_v62 = vld [vmem:[#allocation3 + $0x2c0] sm:$0xff] }
 0x8ba   :  { %v3572_v25 = vsel %vm2778_vm9, %v3561_v12, %v3571_v9  ;;  %7600 = vmatpush3.msra.mxu0 %v4349_v22  ;;  %7578 = vmatprep.subr.mxu1 %v4320_v31  ;;  %v2791_v42 = vrot.slane %v2752_v13, 3  ;;  %v4303_v10 = vld [vmem:[%s14041_s20 + $0x308] sm:$0xff]  ;;  %v4318_v6 = vld [vmem:[%s14041_s20 + $0x380] sm:$0xff]  ;;  %v2749_v54 = vld [vmem:[#allocation2 + $0xd0] sm:$0xf8] }
 0x8bb   :  { %3606 = vst [vmem:[#allocation3 + $0x358] sm:$0xff] %v3572_v25  ;;  %7601 = vmatprep.subr.mxu0 %v4364_v45  ;;  %7579 = vmatpush3.msra.mxu1 %v4304_v14  ;;  %v4347_v50 = vld [vmem:[%s14041_s20 + $0x468] sm:$0xff]  ;;  %v3475_v3 = vsel %vm2692_vm8, %v3464_v36, %v3474_v59  ;;  %v4362_v39 = vld [vmem:[%s14041_s20 + $0x4e0] sm:$0xff]  ;;  %v11575_v15 = vld [vmem:[#allocation2 + $0x30] sm:$0xff]  ;;  %v2782_v63 = vrot.slane %v2749_v54, 3 }
 0x8bc   :  { %7602 = vmatpush3.msra.mxu0 %v4348_v60  ;;  %7580 = vmatprep.subr.mxu1 %v4319_v30  ;;  %3505 = vst [vmem:[#allocation3 + $0x510] sm:$0xff] %v3475_v3  ;;  %v2793_v37 = vsel %vm2778_vm9, %v2791_v42, %v2792_v29  ;;  %v4346_v18 = vld [vmem:[%s14041_s20 + $0x460] sm:$0xff]  ;;  %v4361_v36 = vld [vmem:[%s14041_s20 + $0x4d8] sm:$0xff]  ;;  %v2783_v44 = vrot.slane %v11575_v15, 3  ;;  %v2759_v12 = vld [vmem:[#allocation2 + $0xf0] sm:$0x7f] }
 0x8bd   :  { %5183 = vmatmul.mubr.f32.gmra.mxu0 %v11098_v46  ;;  %7603 = vmatprep.subr.mxu0 %v4363_v11  ;;  %v4302_v46 = vld [vmem:[%s14041_s20 + $0x300] sm:$0xff]  ;;  %2823 = vst [vmem:[#allocation3 + $0x58] sm:$0xff] %v2793_v37  ;;  %v4397_v27 = vld [vmem:[%s14041_s20 + $0x5f8] sm:$0xff]  ;;  %v4360_v21 = vld [vmem:[%s14041_s20 + $0x4d0] sm:$0xff]  ;;  %v2796_v8 = vrot.slane %v2759_v12, 3  ;;  %v2868_v12 = vrot.slane %v11575_v15, 4 }
 0x8be   :  { %5187 = vmatprep.mubr.f32.mxu0 %v4076_v62  ;;  %7581 = vmatpush3.msra.mxu1 %v4303_v10  ;;  %v2760_v20 = vld [vmem:[#allocation2 + $0x20] sm:$0x7f]  ;;  %v3507_v38 = vld [vmem:[#allocation2 + $0xc0] sm:$0x80]  ;;  %v4345_v5 = vld [vmem:[%s14041_s20 + $0x458] sm:$0xff]  ;;  %v2784_v23 = vsel %vm2778_vm9, %v2782_v63, %v2783_v44 }
 0x8bf   :  { %7604 = vmatpush3.msra.mxu0 %v4347_v50  ;;  %7582 = vmatprep.subr.mxu1 %v4318_v6  ;;  %v4075_v0 = vld [vmem:[#allocation3 + $0x108] sm:$0xff]  ;;  %v2798_v43 = vrot.slane %v2760_v20, 3  ;;  %v4381_v57 = vld [vmem:[%s14041_s20 + $0x578] sm:$0xff]  ;;  %2820 = vst [vmem:[#allocation3 + $0x240] sm:$0xff] %v2784_v23  ;;  %v4344_v33 = vld [vmem:[%s14041_s20 + $0x450] sm:$0xff]  ;;  %v3549_v51 = vrot.slane %v3507_v38, 3 }
 0x8c0   :  { %7605 = vmatprep.subr.mxu0 %v4362_v39  ;;  %7583 = vmatpush3.msra.mxu1 %v4302_v46  ;;  %v4380_v19 = vld [vmem:[%s14041_s20 + $0x570] sm:$0xff]  ;;  %v4359_v2 = vld [vmem:[%s14041_s20 + $0x4c8] sm:$0xff]  ;;  %2830 = vst [vmem:[#allocation3 + $0x1e8] sm:$0xf] %v2796_v8  ;;  %v11622_v58 = vld [vmem:[#allocation2 + $0x80] sm:$0xff] }
 0x8c1   :  { %7606 = vmatpush3.msra.mxu0 %v4346_v18  ;;  %5268 = vmatmul.mubr.f32.vlgmr.msra.gmra.mxu1 %v11202_v49  ;;  %v4396_v49 = vld [vmem:[%s14041_s20 + $0x5f0] sm:$0xff]  ;;  %v2799_v48 = vsel %vm2778_vm9, %v2786_v34, %v2798_v43  ;;  %2831 = vst [vmem:[#allocation3 + $0xe8] sm:$0xf] %v2798_v43  ;;  %v11616_v34 = vld [vmem:[#allocation2 + $0xd8] sm:$0xff]  ;;  %v4343_v52 = vld [vmem:[%s14041_s20 + $0x448] sm:$0xff]  ;;  %v2789_v31 = vrot.slane %v11622_v58, 3 }
 0x8c2   :  { %5188 = vmatmul.mubr.f32.gmra.mxu0 %v4075_v0  ;;  %7607 = vmatprep.subr.mxu0 %v4361_v36  ;;  %2826 = vst [vmem:[#allocation3 + $0x330] sm:$0xff] %v2799_v48  ;;  %v3550_v17 = vrot.slane %v11616_v34, 3  ;;  %v2751_v35 = vld [vmem:[#allocation2 + $0x48] sm:$0xf8]  ;;  %v3642_v41 = vrot.slane %v11616_v34, 4  ;;  %v11629_v45 = vld [vmem:[#allocation2 + $0x38] sm:$0xff] }
 0x8c3   :  { %7646 = vmatprep.subr.mxu1 %v4397_v27  ;;  %5192 = vmatprep.mubr.f32.mxu0 %v11205_v55  ;;  %v4395_v55 = vld [vmem:[%s14041_s20 + $0x5e8] sm:$0xff]  ;;  %v2788_v9 = vrot.slane %v2751_v35, 3  ;;  %v2762_v14 = vld [vmem:[#allocation2 + $0x70] sm:$0x7f]  ;;  %v4358_v60 = vld [vmem:[%s14041_s20 + $0x4c0] sm:$0xff]  ;;  %v3565_v30 = vrot.slane %v11629_v45, 3 }
 0x8c4   :  { %5272 = vmatprep.mubr.f32.mxu1 %v11208_v7  ;;  %7608 = vmatpush3.msra.mxu0 %v4345_v5  ;;  %v2797_v7 = vsel %vm2778_vm9, %v2783_v44, %v2796_v8  ;;  %v4379_v22 = vld [vmem:[%s14041_s20 + $0x568] sm:$0xff]  ;;  %v4394_v25 = vld [vmem:[%s14041_s20 + $0x5e0] sm:$0xff]  ;;  %v3551_v40 = vsel %vm2778_vm9, %v3549_v51, %v3550_v17  ;;  %v2802_v59 = vrot.slane %v2762_v14, 3  ;;  %3682 = vst [vmem:[#allocation3 + $0x50] sm:$0xf0] %v3642_v41  ;;  %v11659_v62 = vld [vmem:[#allocation2 + $0xb8] sm:$0xff] }
 0x8c5   :  { %7647 = vmatpush3.msra.mxu1 %v4381_v57  ;;  %7609 = vmatprep.subr.mxu0 %v4360_v21  ;;  %2825 = vst [vmem:[#allocation3 + $0x5f0] sm:$0xff] %v2797_v7  ;;  %v3510_v13 = vld [vmem:[#allocation2 + $0x28] sm:$0x80]  ;;  %3597 = vst [vmem:[#allocation3 + $0x1e8] sm:$0xf0] %v3551_v40  ;;  %v2790_v11 = vsel %vm2778_vm9, %v2788_v9, %v2789_v31  ;;  %v4378_v10 = vld [vmem:[%s14041_s20 + $0x560] sm:$0xff]  ;;  %v3566_v50 = vsel %vm2778_vm9, %v3553_v4, %v3565_v30 }
 0x8c6   :  { %7648 = vmatprep.subr.mxu1 %v4396_v49  ;;  %7610 = vmatpush3.msra.mxu0 %v4344_v33  ;;  %v11647_v42 = vld [vmem:[#allocation2 + $0x98] sm:$0x80]  ;;  %2822 = vst [vmem:[#allocation3 + $0x30] sm:$0xff] %v2790_v11  ;;  %v2803_v3 = vsel %vm2778_vm9, %v2792_v29, %v2802_v59  ;;  %2833 = vst [vmem:[#allocation3 + $0x338] sm:$0xf] %v2802_v59  ;;  %v3558_v46 = vrot.slane %v3510_v13, 3 }
 0x8c7   :  { %7649 = vmatpush3.msra.mxu1 %v4380_v19  ;;  %5193 = vmatmul.mubr.f32.gmra.mxu0 %v11114_v53  ;;  %v4078_v53 = vld [vmem:[#allocation3 + $0x6a8] sm:$0xff]  ;;  %v2761_v6 = vld [vmem:[#allocation2 + $0xc8] sm:$0x7f]  ;;  %3603 = vst [vmem:[#allocation3 + $0x578] sm:$0xff] %v3566_v50  ;;  %2828 = vst [vmem:[#allocation3 + $0x650] sm:$0xff] %v2803_v3  ;;  %v3555_v18 = vrot.slane %v11647_v42, 3 }
 0x8c8   :  { %5273 = vmatmul.mubr.f32.gmra.mxu1 %v11220_v26  ;;  %7611 = vmatprep.subr.mxu0 %v4359_v2  ;;  %v4342_v26 = vld [vmem:[%s14041_s20 + $0x440] sm:$0xff]  ;;  %v2800_v39 = vrot.slane %v2761_v6, 3  ;;  %v3523_v37 = vld [vmem:[#allocation2 + $0xa8] sm:$0x7]  ;;  %v4357_v61 = vld [vmem:[%s14041_s20 + $0x4b8] sm:$0xff]  ;;  %v3648_v54 = vrot.slane %v11659_v62, 4 }
 0x8c9   :  { %7650 = vmatprep.subr.mxu1 %v4395_v55  ;;  %5197 = vmatprep.mubr.f32.mxu0 %v11223_v16  ;;  %v3563_v16 = vrot.slane %v11659_v62, 3  ;;  %v4393_v56 = vld [vmem:[%s14041_s20 + $0x5d8] sm:$0xff]  ;;  %v3575_v4 = vrot.slane %v3523_v37, 3  ;;  %v3515_v29 = vld [vmem:[#allocation2 + $0x40] sm:$0xff]  ;;  %v4077_v36 = vld [vmem:[#allocation3 + $0x38] sm:$0xff] }
 0x8ca   :  { %5277 = vmatprep.mubr.f32.mxu1 %v4078_v53  ;;  %7612 = vmatpush3.msra.mxu0 %v4343_v52  ;;  %v4341_v27 = vld [vmem:[%s14041_s20 + $0x438] sm:$0xff]  ;;  %v2801_v44 = vsel %vm2778_vm9, %v2789_v31, %v2800_v39  ;;  %2832 = vst [vmem:[#allocation3 + $0x6c0] sm:$0xf] %v2800_v39  ;;  %v3559_v20 = vrot.slane %v3515_v29, 3  ;;  %v3645_v0 = vrot.slane %v3515_v29, 4  ;;  %v8872_v43 = vld [vmem:[#allocation2] sm:$0xff]  ;;  %v3649_v21 = vsel %vm2415_vm6, %v3642_v41, %v3648_v54 }
 0x8cb   :  { %7651 = vmatpush3.msra.mxu1 %v4379_v22  ;;  %7613 = vmatprep.subr.mxu0 %v4358_v60  ;;  %v3564_v63 = vsel %vm2778_vm9, %v3550_v17, %v3563_v16  ;;  %v4377_v38 = vld [vmem:[%s14041_s20 + $0x558] sm:$0xff]  ;;  %2827 = vst [vmem:[#allocation3 + $0xd0] sm:$0xff] %v2801_v44  ;;  %v3576_v5 = vsel %vm2778_vm9, %v3565_v30, %v3575_v4  ;;  %v11679_v23 = vld [vmem:[#allocation2 + $0xa0] sm:$0xff]  ;;  %v4356_v49 = vld [vmem:[%s14041_s20 + $0x4b0] sm:$0xff]  ;;  %v2874_v39 = vrot.slane %v11622_v58, 4 }
 0x8cc   :  { %7652 = vmatprep.subr.mxu1 %v4394_v25  ;;  %7614 = vmatpush3.msra.mxu0 %v4342_v26  ;;  %3602 = vst [vmem:[#allocation3 + $0x450] sm:$0xff] %v3564_v63  ;;  %v3522_v57 = vld [vmem:[#allocation2 + $0xf8] sm:$0x7]  ;;  %v4392_v48 = vld [vmem:[%s14041_s20 + $0x5d0] sm:$0xff]  ;;  %3608 = vst [vmem:[#allocation3 + $0x468] sm:$0xff] %v3576_v5  ;;  %v3560_v8 = vsel %vm2778_vm9, %v3558_v46, %v3559_v20  ;;  %v3556_v19 = vrot.slane %v11679_v23, 3 }
 0x8cd   :  { %7653 = vmatpush3.msra.mxu1 %v4378_v10  ;;  %5198 = vmatmul.mubr.f32.gmra.mxu0 %v8872_v43  ;;  %v3573_v33 = vrot.slane %v3522_v57, 3  ;;  %v11695_v51 = vld [vmem:[#allocation2] sm:$0xff]  ;;  %3687 = vst [vmem:[#allocation3 + $0x4e8] sm:$0xff] %v3649_v21  ;;  %v3644_v2 = vrot.slane %v11679_v23, 4  ;;  %3685 = vst [vmem:[#allocation3 + $0x6e8] sm:$0xf0] %v3645_v0 }
 0x8ce   :  { %5278 = vmatmul.mubr.f32.gmra.mxu1 %v4077_v36  ;;  %7615 = vmatprep.subr.mxu0 %v4357_v61  ;;  %v4340_v55 = vld [vmem:[%s14041_s20 + $0x430] sm:$0xff]  ;;  %3600 = vst [vmem:[#allocation3 + $0x338] sm:$0xf0] %v3560_v8  ;;  %v3569_v34 = vrot.slane %v11695_v51, 3  ;;  %v3654_v17 = vrot.slane %v11695_v51, 4  ;;  %v4391_v35 = vld [vmem:[%s14041_s20 + $0x5c8] sm:$0xff]  ;;  %v3557_v9 = vsel %vm2778_vm9, %v3555_v18, %v3556_v19 }
 0x8cf   :  { %7654 = vmatprep.subr.mxu1 %v4393_v56  ;;  %5282 = vmatprep.mubr.f32.mxu1 %v11238_v24  ;;  %v4376_v7 = vld [vmem:[%s14041_s20 + $0x550] sm:$0xff]  ;;  %v4355_v24 = vld [vmem:[%s14041_s20 + $0x4a8] sm:$0xff]  ;;  %v3574_v22 = vsel %vm2778_vm9, %v3563_v16, %v3573_v33  ;;  %3684 = vst [vmem:[#allocation3 + $0x470] sm:$0xf0] %v3644_v2  ;;  %v4354_v14 = vld [vmem:[%s14041_s20 + $0x4a0] sm:$0xff] }
 0x8d0   :  { %7616 = vmatpush3.msra.mxu0 %v4341_v27  ;;  %v2835_v52 = vld [vmem:[#allocation2 + $0xd0] sm:$0xf0]  ;;  %5357 = vmatprep.mubr.f32.mxu0 %v11264_v28  ;;  %v4339_v41 = vld [vmem:[%s14041_s20 + $0x428] sm:$0xff]  ;;  %3607 = vst [vmem:[#allocation3 + $0x550] sm:$0xff] %v3574_v22  ;;  %3599 = vst [vmem:[#allocation3 + $0x6c0] sm:$0xf0] %v3557_v9  ;;  %v3570_v60 = vsel %vm2778_vm9, %v3559_v20, %v3569_v34  ;;  %v3655_v40 = vsel %vm2415_vm6, %v3645_v0, %v3654_v17 }
 0x8d1   :  { %7655 = vmatpush3.msra.mxu1 %v4377_v38  ;;  %v2867_v31 = vrot.slane %v2835_v52, 4  ;;  %7617 = vmatprep.subr.mxu0 %v4356_v49  ;;  %v4375_v28 = vld [vmem:[%s14041_s20 + $0x548] sm:$0xff]  ;;  %v4390_v30 = vld [vmem:[%s14041_s20 + $0x5c0] sm:$0xff]  ;;  %3605 = vst [vmem:[#allocation3 + $0xa0] sm:$0xff] %v3570_v60  ;;  %3690 = vst [vmem:[#allocation3 + $0x390] sm:$0xff] %v3655_v40 }
 0x8d2   :  { %7656 = vmatprep.subr.mxu1 %v4392_v48  ;;  %v11726_v25 = vld [vmem:[#allocation2 + $0xe8] sm:$0xff]  ;;  %7618 = vmatpush3.msra.mxu0 %v4340_v55  ;;  %v4338_v59 = vld [vmem:[%s14041_s20 + $0x420] sm:$0xff]  ;;  %v4353_v10 = vld [vmem:[%s14041_s20 + $0x498] sm:$0xff] }
 0x8d3   :  { %7657 = vmatpush3.msra.mxu1 %v4376_v7  ;;  %v2869_v13 = vsel %vm2415_vm6, %v2867_v31, %v2868_v12  ;;  %v3567_v53 = vrot.slane %v11726_v25, 3  ;;  %v3525_v26 = vld [vmem:[#allocation2 + $0xe0] sm:$0x7]  ;;  %v3652_v11 = vrot.slane %v11726_v25, 4  ;;  %7619 = vmatprep.subr.mxu0 %v4355_v24  ;;  %v3524_v16 = vld [vmem:[#allocation2 + $0x78] sm:$0x7] }
 0x8d4   :  { %5283 = vmatmul.mubr.f32.gmra.mxu1 %v11267_v1  ;;  %v4374_v42 = vld [vmem:[%s14041_s20 + $0x540] sm:$0xff]  ;;  %2905 = vst [vmem:[#allocation3 + $0x298] sm:$0xff] %v2869_v13  ;;  %v3579_v50 = vrot.slane %v3525_v26, 3  ;;  %7658 = vmatprep.subr.mxu1 %v4391_v35  ;;  %v4389_v1 = vld [vmem:[%s14041_s20 + $0x5b8] sm:$0xff]  ;;  %v3577_v56 = vrot.slane %v3524_v16, 3  ;;  %v4352_v36 = vld [vmem:[%s14041_s20 + $0x490] sm:$0xff] }
 0x8d5   :  { %v11749_v3 = vld [vmem:[#allocation2 + $0x100] sm:$0x1]  ;;  %5287 = vmatprep.mubr.f32.mxu1 %v11281_v32  ;;  %v3568_v6 = vsel %vm2778_vm9, %v3556_v19, %v3567_v53  ;;  %v3653_v37 = vsel %vm2415_vm6, %v3644_v2, %v3652_v11  ;;  %7620 = vmatpush3.msra.mxu0 %v4339_v41  ;;  %v4337_v32 = vld [vmem:[%s14041_s20 + $0x418] sm:$0xff]  ;;  %v2837_v4 = vld [vmem:[#allocation2 + $0x48] sm:$0xf0] }
 0x8d6   :  { %v11760_v46 = vld [vmem:[#allocation2 + $0xc0] sm:$0x1]  ;;  %7659 = vmatpush3.msra.mxu1 %v4375_v28  ;;  %3604 = vst [vmem:[#allocation3 + $0x248] sm:$0xff] %v3568_v6  ;;  %v3580_v61 = vsel %vm2778_vm9, %v3569_v34, %v3579_v50  ;;  %v2834_v29 = vld [vmem:[#allocation2 + $0xb0] sm:$0xf0]  ;;  %3689 = vst [vmem:[#allocation3 + $0x60] sm:$0xff] %v3653_v37  ;;  %7621 = vmatprep.subr.mxu0 %v4354_v14  ;;  %v3578_v43 = vsel %vm2778_vm9, %v3567_v53, %v3577_v56 }
 0x8d7   :  { %7660 = vmatprep.subr.mxu1 %v4390_v30  ;;  %v4373_v18 = vld [vmem:[%s14041_s20 + $0x538] sm:$0xff]  ;;  %v4388_v27 = vld [vmem:[%s14041_s20 + $0x5b0] sm:$0xff]  ;;  %3610 = vst [vmem:[#allocation3 + $0x1d0] sm:$0xff] %v3580_v61  ;;  %v2873_v63 = vrot.slane %v2837_v4, 4  ;;  %v2864_v44 = vrot.slane %v2834_v29, 4  ;;  %7622 = vmatpush3.msra.mxu0 %v4338_v59  ;;  %v11782_v38 = vld [vmem:[#allocation2 + $0x68] sm:$0xff] }
 0x8d8   :  { %7661 = vmatpush3.msra.mxu1 %v4374_v42  ;;  %v4336_v20 = vld [vmem:[%s14041_s20 + $0x410] sm:$0xff]  ;;  %v2987_v5 = vrot.slane %v11760_v46, 5  ;;  %7623 = vmatprep.subr.mxu0 %v4353_v10  ;;  %v4351_v23 = vld [vmem:[%s14041_s20 + $0x488] sm:$0xff]  ;;  %3609 = vst [vmem:[#allocation3 + $0x3f8] sm:$0xff] %v3578_v43  ;;  %v2865_v48 = vrot.slane %v11782_v38, 4  ;;  %v2961_v33 = vrot.slane %v11782_v38, 5 }
 0x8d9   :  { %v4372_v0 = vld [vmem:[%s14041_s20 + $0x530] sm:$0xff]  ;;  %v4387_v21 = vld [vmem:[%s14041_s20 + $0x5a8] sm:$0xff]  ;;  %v2875_v49 = vsel %vm2415_vm6, %v2873_v63, %v2874_v39  ;;  %v2985_v19 = vrot.slane %v11749_v3, 5  ;;  %7662 = vmatprep.subr.mxu1 %v4389_v1  ;;  %7624 = vmatpush3.msra.mxu0 %v4337_v32  ;;  %v3646_v34 = vrot.slane %v11486_v47, 4  ;;  %v14205_v24 = vld [vmem:[#allocation9_spill] sm:$0xff] }
 0x8da   :  { %v14204_v57 = vld [vmem:[#allocation8_spill] sm:$0xff]  ;;  %v4335_v2 = vld [vmem:[%s14041_s20 + $0x408] sm:$0xff]  ;;  %2907 = vst [vmem:[#allocation3 + $0x2e8] sm:$0xff] %v2875_v49  ;;  %7663 = vmatpush3.msra.mxu1 %v4373_v18  ;;  %v4350_v41 = vld [vmem:[%s14041_s20 + $0x480] sm:$0xff]  ;;  %v2866_v22 = vsel %vm2415_vm6, %v2864_v44, %v2865_v48  ;;  %7625 = vmatprep.subr.mxu0 %v4352_v36  ;;  %v3650_v44 = vrot.slane %v11629_v45, 4 }
 0x8db   :  { %5288 = vmatmul.mubr.f32.gmra.mxu1 %v14204_v57  ;;  %v11796_v8 = vld [vmem:[#allocation2 + $0xf0] sm:$0xff]  ;;  %v4371_v35 = vld [vmem:[%s14041_s20 + $0x528] sm:$0xff]  ;;  %7664 = vmatprep.subr.mxu1 %v4388_v27  ;;  %v4386_v14 = vld [vmem:[%s14041_s20 + $0x5a0] sm:$0xff]  ;;  %2904 = vst [vmem:[#allocation3 + $0x588] sm:$0xff] %v2866_v22 }
 0x8dc   :  { %v2881_v55 = vrot.slane %v11796_v8, 4  ;;  %v2844_v7 = vld [vmem:[#allocation2 + $0x90] sm:$0xff]  ;;  %v2977_v52 = vrot.slane %v11796_v8, 5  ;;  %5447 = vmatprep.mubr.f32.mxu1 %v14205_v24  ;;  %v11820_v59 = vld [vmem:[#allocation2 + $0x88] sm:$0x1]  ;;  %7626 = vmatpush3.msra.mxu0 %v4336_v20  ;;  %v4334_v53 = vld [vmem:[%s14041_s20 + $0x400] sm:$0xff] }
 0x8dd   :  { %v2879_v9 = vrot.slane %v2844_v7, 4  ;;  %v3611_v31 = vld [vmem:[#allocation2 + $0x50] sm:$0xff]  ;;  %v2975_v28 = vrot.slane %v2844_v7, 5  ;;  %7665 = vmatpush3.msra.mxu1 %v4372_v0  ;;  %v4370_v15 = vld [vmem:[%s14041_s20 + $0x520] sm:$0xff]  ;;  %v11832_v26 = vld [vmem:[#allocation2 + $0x18] sm:$0xff]  ;;  %7627 = vmatprep.subr.mxu0 %v4351_v23  ;;  %v2989_v4 = vrot.slane %v11820_v59, 5 }
 0x8de   :  { %v2882_v60 = vsel %vm2415_vm6, %v2868_v12, %v2881_v55  ;;  %2915 = vst [vmem:[#allocation3 + $0x50] sm:$0xf] %v2881_v55  ;;  %v3641_v40 = vrot.slane %v3611_v31, 4  ;;  %v2836_v30 = vld [vmem:[#allocation2 + $0x10] sm:$0xf0]  ;;  %v2988_v13 = vsel %vm2959_vm10, %v2977_v52, %v2987_v5  ;;  %7666 = vmatprep.subr.mxu1 %v4387_v21  ;;  %v4385_v3 = vld [vmem:[%s14041_s20 + $0x598] sm:$0xff]  ;;  %7628 = vmatpush3.msra.mxu0 %v4335_v2 }
 0x8df   :  { %2910 = vst [vmem:[#allocation3 + $0x610] sm:$0xff] %v2882_v60  ;;  %v2880_v12 = vsel %vm2415_vm6, %v2865_v48, %v2879_v9  ;;  %2914 = vst [vmem:[#allocation3 + $0x318] sm:$0xf] %v2879_v9  ;;  %v2870_v42 = vrot.slane %v2836_v30, 4  ;;  %v2976_v10 = vsel %vm2959_vm10, %v2961_v33, %v2975_v28  ;;  %v2986_v50 = vsel %vm2959_vm10, %v2975_v28, %v2985_v19  ;;  %v4429_v1 = vld [vmem:[%s14041_s20 + $0x6f8] sm:$0xff]  ;;  %v2847_v16 = vld [vmem:[#allocation2 + $0xc8] sm:$0xff] }
 0x8e0   :  { %3021 = vst [vmem:[#allocation3 + $0x5b8] sm:$0xf] %v2988_v13  ;;  %2909 = vst [vmem:[#allocation3 + $0x5a0] sm:$0xff] %v2880_v12  ;;  %v2871_v6 = vrot.slane %v11832_v26, 4  ;;  %v3647_v37 = vsel %vm2415_vm6, %v3641_v40, %v3646_v34  ;;  %7667 = vmatpush3.msra.mxu1 %v4371_v35  ;;  %v2885_v46 = vrot.slane %v2847_v16, 4  ;;  %v2846_v32 = vld [vmem:[#allocation2 + $0x20] sm:$0xff]  ;;  %7629 = vmatprep.subr.mxu0 %v4350_v41 }
 0x8e1   :  { %3681 = vst [vmem:[#allocation3 + $0x318] sm:$0xf0] %v3641_v40  ;;  %3015 = vst [vmem:[#allocation3 + $0x6c8] sm:$0xff] %v2976_v10  ;;  %v3622_v61 = vld [vmem:[#allocation2 + $0xf8] sm:$0xf]  ;;  %v2967_v56 = vrot.slane %v11832_v26, 5  ;;  %7668 = vmatprep.subr.mxu1 %v4386_v14  ;;  %7630 = vmatpush3.msra.mxu0 %v4334_v53 }
 0x8e2   :  { %3020 = vst [vmem:[#allocation3 + $0x478] sm:$0xf] %v2986_v50  ;;  %3686 = vst [vmem:[#allocation3 + $0x438] sm:$0xff] %v3647_v37  ;;  %v4369_v29 = vld [vmem:[%s14041_s20 + $0x518] sm:$0xff]  ;;  %v2872_v18 = vsel %vm2415_vm6, %v2870_v42, %v2871_v6  ;;  %v2883_v36 = vrot.slane %v2846_v32, 4  ;;  %v3658_v27 = vrot.slane %v3622_v61, 4  ;;  %7669 = vmatpush3.msra.mxu1 %v4370_v15  ;;  %v2886_v0 = vsel %vm2415_vm6, %v2874_v39, %v2885_v46 }
 0x8e3   :  { %v3621_v63 = vld [vmem:[#allocation2 + $0x60] sm:$0xf]  ;;  %v4413_v20 = vld [vmem:[%s14041_s20 + $0x678] sm:$0xff]  ;;  %2906 = vst [vmem:[#allocation3 + $0xb0] sm:$0xff] %v2872_v18  ;;  %2917 = vst [vmem:[#allocation3 + $0x470] sm:$0xf] %v2885_v46  ;;  %7670 = vmatprep.subr.mxu1 %v4385_v3  ;;  %7693 = vmatprep.subr.mxu0 %v4429_v1 }
 0x8e4   :  { %v3656_v43 = vrot.slane %v3621_v63, 4  ;;  %v3613_v5 = vld [vmem:[#allocation2 + $0x58] sm:$0xff]  ;;  %v2919_v57 = vld [vmem:[#allocation2 + $0xb0] sm:$0xe0]  ;;  %v2979_v23 = vrot.slane %v2846_v32, 5  ;;  %2912 = vst [vmem:[#allocation3 + $0x540] sm:$0xff] %v2886_v0  ;;  %v2884_v58 = vsel %vm2415_vm6, %v2871_v6, %v2883_v36  ;;  %v3659_v39 = vsel %vm2415_vm6, %v3648_v54, %v3658_v27  ;;  %7671 = vmatpush3.msra.mxu1 %v4369_v29 }
 0x8e5   :  { %v8873_v21 = vld [vmem:[#allocation3 + $0xd8] sm:$0xff]  ;;  %2916 = vst [vmem:[#allocation3 + $0x238] sm:$0xf] %v2883_v36  ;;  %v3643_v19 = vrot.slane %v3613_v5, 4  ;;  %v2960_v2 = vrot.slane %v2919_v57, 5  ;;  %v8874_v7 = vld [vmem:[#allocation3 + $0xc8] sm:$0xff] }
 0x8e6   :  { %5358 = vmatmul.mubr.f32.vlgmr.msra.gmra.mxu0 %v8873_v21  ;;  %v4384_v49 = vld [vmem:[%s14041_s20 + $0x590] sm:$0xff]  ;;  %v3624_v55 = vld [vmem:[#allocation2 + $0x78] sm:$0xf]  ;;  %2911 = vst [vmem:[#allocation3 + $0x280] sm:$0xff] %v2884_v58  ;;  %3692 = vst [vmem:[#allocation3 + $0x1a0] sm:$0xff] %v3659_v39  ;;  %v3657_v62 = vsel %vm2415_vm6, %v3646_v34, %v3656_v43  ;;  %v2980_v41 = vsel %vm2959_vm10, %v2967_v56, %v2979_v23  ;;  %v2990_v22 = vsel %vm2959_vm10, %v2979_v23, %v2989_v4 }
 0x8e7   :  { %v4428_v48 = vld [vmem:[%s14041_s20 + $0x6f0] sm:$0xff]  ;;  %5362 = vmatprep.mubr.f32.mxu0 %v8874_v7  ;;  %v3662_v54 = vrot.slane %v3624_v55, 4  ;;  %v11884_v9 = vld [vmem:[#allocation2 + $0x28] sm:$0x1]  ;;  %7694 = vmatpush3.msra.mxu0 %v4413_v20  ;;  %3691 = vst [vmem:[#allocation3 + $0x2d0] sm:$0xff] %v3657_v62  ;;  %v2962_v47 = vsel %vm2959_vm10, %v2960_v2, %v2961_v33  ;;  %v3651_v34 = vsel %vm2415_vm6, %v3643_v19, %v3650_v44  ;;  %3017 = vst [vmem:[#allocation3 + $0x480] sm:$0xff] %v2980_v41 }
 0x8e8   :  { %v4368_v24 = vld [vmem:[%s14041_s20 + $0x510] sm:$0xff]  ;;  %v4383_v31 = vld [vmem:[%s14041_s20 + $0x588] sm:$0xff]  ;;  %3683 = vst [vmem:[#allocation3 + $0x238] sm:$0xf0] %v3643_v19  ;;  %3022 = vst [vmem:[#allocation3 + $0x48] sm:$0xf] %v2990_v22  ;;  %7672 = vmatprep.subr.mxu1 %v4384_v49  ;;  %7695 = vmatprep.subr.mxu0 %v4428_v48 }
 0x8e9   :  { %v4412_v35 = vld [vmem:[%s14041_s20 + $0x670] sm:$0xff]  ;;  %v3623_v28 = vld [vmem:[#allocation2 + $0xa8] sm:$0xf]  ;;  %3010 = vst [vmem:[#allocation3 + $0x608] sm:$0xff] %v2962_v47  ;;  %3688 = vst [vmem:[#allocation3 + $0x618] sm:$0xff] %v3651_v34  ;;  %v3663_v40 = vsel %vm2415_vm6, %v3652_v11, %v3662_v54  ;;  %7673 = vmatpush3.msra.mxu1 %v4368_v24  ;;  %v2993_v12 = vrot.slane %v11884_v9, 5 }
 0x8ea   :  { %v2921_v14 = vld [vmem:[#allocation2 + $0x10] sm:$0xe0]  ;;  %v4427_v60 = vld [vmem:[%s14041_s20 + $0x6e8] sm:$0xff]  ;;  %v3660_v30 = vrot.slane %v3623_v28, 4  ;;  %7696 = vmatpush3.msra.mxu0 %v4412_v35  ;;  %v4382_v13 = vld [vmem:[%s14041_s20 + $0x580] sm:$0xff]  ;;  %3694 = vst [vmem:[#allocation3 + $0x410] sm:$0xff] %v3663_v40  ;;  %7674 = vmatprep.subr.mxu1 %v4383_v31 }
 0x8eb   :  { %v4367_v38 = vld [vmem:[%s14041_s20 + $0x508] sm:$0xff]  ;;  %v2966_v59 = vrot.slane %v2921_v14, 5  ;;  %v11910_v15 = vld [vmem:[#allocation2 + $0x110] sm:$0xff]  ;;  %v8875_v42 = vld [vmem:[#allocation3 + $0x160] sm:$0xff]  ;;  %7697 = vmatprep.subr.mxu0 %v4427_v60 }
 0x8ec   :  { %v4411_v33 = vld [vmem:[%s14041_s20 + $0x668] sm:$0xff]  ;;  %5363 = vmatmul.mubr.f32.gmra.mxu0 %v8875_v42  ;;  %v4426_v11 = vld [vmem:[%s14041_s20 + $0x6e0] sm:$0xff]  ;;  %v3661_v10 = vsel %vm2415_vm6, %v3650_v44, %v3660_v30  ;;  %v2877_v1 = vrot.slane %v11910_v15, 4  ;;  %v2848_v6 = vld [vmem:[#allocation2 + $0x70] sm:$0xff]  ;;  %v2973_v46 = vrot.slane %v11910_v15, 5  ;;  %7675 = vmatpush3.msra.mxu1 %v4367_v38 }
 0x8ed   :  { %v2838_v53 = vld [vmem:[#allocation2 + $0x108] sm:$0xf0]  ;;  %v2968_v50 = vsel %vm2959_vm10, %v2966_v59, %v2967_v56  ;;  %v4366_v16 = vld [vmem:[%s14041_s20 + $0x500] sm:$0xff]  ;;  %v4425_v26 = vld [vmem:[%s14041_s20 + $0x6d8] sm:$0xff]  ;;  %3693 = vst [vmem:[#allocation3 + $0x1f0] sm:$0xff] %v3661_v10  ;;  %v2887_v37 = vrot.slane %v2848_v6, 4  ;;  %7698 = vmatpush3.msra.mxu0 %v4411_v33  ;;  %7676 = vmatprep.subr.mxu1 %v4382_v13 }
 0x8ee   :  { %v4080_v25 = vld [vmem:[#allocation3 + $0x430] sm:$0xff]  ;;  %v2876_v3 = vrot.slane %v2838_v53, 4  ;;  %v4410_v45 = vld [vmem:[%s14041_s20 + $0x660] sm:$0xff]  ;;  %3012 = vst [vmem:[#allocation3 + $0x1b0] sm:$0xff] %v2968_v50  ;;  %v2983_v32 = vrot.slane %v2848_v6, 5  ;;  %v4461_v61 = vld [vmem:[%s14041_s20 + $0x7f8] sm:$0xff]  ;;  %7699 = vmatprep.subr.mxu0 %v4426_v11  ;;  %7677 = vmatpush3.msra.mxu1 %v4366_v16 }
 0x8ef   :  { %5367 = vmatprep.mubr.f32.mxu0 %v4080_v25  ;;  %v3696_v4 = vld [vmem:[#allocation2 + $0x50] sm:$0xfe]  ;;  %v4409_v18 = vld [vmem:[%s14041_s20 + $0x658] sm:$0xff]  ;;  %v2888_v27 = vsel %vm2415_vm6, %v2877_v1, %v2887_v37  ;;  %2918 = vst [vmem:[#allocation3 + $0x6e8] sm:$0xf] %v2887_v37  ;;  %v11946_v0 = vld [vmem:[#allocation2 + $0x8] sm:$0xff]  ;;  %7700 = vmatpush3.msra.mxu0 %v4410_v45 }
 0x8f0   :  { %v2878_v56 = vsel %vm2415_vm6, %v2876_v3, %v2877_v1  ;;  %v2920_v29 = vld [vmem:[#allocation2 + $0xd0] sm:$0xe0]  ;;  %v4445_v36 = vld [vmem:[%s14041_s20 + $0x778] sm:$0xff]  ;;  %v3726_v63 = vrot.slane %v3696_v4, 5  ;;  %v2984_v43 = vsel %vm2959_vm10, %v2973_v46, %v2983_v32  ;;  %v4079_v5 = vld [vmem:[#allocation3 + $0x4d0] sm:$0xff]  ;;  %2913 = vst [vmem:[#allocation3 + $0x598] sm:$0xff] %v2888_v27  ;;  %v2994_v48 = vsel %vm2959_vm10, %v2983_v32, %v2993_v12  ;;  %7701 = vmatprep.subr.mxu0 %v4425_v26 }
 0x8f1   :  { %2908 = vst [vmem:[#allocation3 + $0x418] sm:$0xff] %v2878_v56  ;;  %v11944_v44 = vld [vmem:[#allocation2 + $0x30] sm:$0xff]  ;;  %v2963_v20 = vrot.slane %v2920_v29, 5  ;;  %v3731_v21 = vrot.slane %v11946_v0, 5  ;;  %v3706_v49 = vld [vmem:[#allocation2 + $0x60] sm:$0x1f]  ;;  %5368 = vmatmul.mubr.f32.gmra.mxu0 %v4079_v5  ;;  %7740 = vmatprep.subr.mxu1 %v4461_v61 }
 0x8f2   :  { %v4424_v57 = vld [vmem:[%s14041_s20 + $0x6d0] sm:$0xff]  ;;  %v2964_v23 = vrot.slane %v11944_v44, 5  ;;  %3019 = vst [vmem:[#allocation3 + $0x190] sm:$0xff] %v2984_v43  ;;  %v8876_v58 = vld [vmem:[#allocation3 + $0x490] sm:$0xff]  ;;  %3766 = vst [vmem:[#allocation3 + $0x478] sm:$0xf0] %v3726_v63  ;;  %7702 = vmatpush3.msra.mxu0 %v4409_v18 }
 0x8f3   :  { %5448 = vmatmul.mubr.f32.vlgmr.msra.gmra.mxu1 %v8876_v58  ;;  %v4460_v39 = vld [vmem:[%s14041_s20 + $0x7f0] sm:$0xff]  ;;  %v3741_v19 = vrot.slane %v3706_v49, 5  ;;  %v3698_v2 = vld [vmem:[#allocation2 + $0x58] sm:$0xfe]  ;;  %v3625_v55 = vld [vmem:[#allocation2 + $0xe0] sm:$0xf]  ;;  %v3732_v62 = vsel %vm2959_vm10, %v3726_v63, %v3731_v21  ;;  %7703 = vmatprep.subr.mxu0 %v4424_v57 }
 0x8f4   :  { %3024 = vst [vmem:[#allocation3 + $0x378] sm:$0xf] %v2994_v48  ;;  %v4408_v7 = vld [vmem:[%s14041_s20 + $0x650] sm:$0xff]  ;;  %v2965_v35 = vsel %vm2959_vm10, %v2963_v20, %v2964_v23  ;;  %v2978_v54 = vsel %vm2959_vm10, %v2964_v23, %v2977_v52  ;;  %v3728_v41 = vrot.slane %v3698_v2, 5  ;;  %v3697_v22 = vld [vmem:[#allocation2 + $0xd8] sm:$0xfe]  ;;  %7741 = vmatpush3.msra.mxu1 %v4445_v36 }
 0x8f5   :  { %v4444_v24 = vld [vmem:[%s14041_s20 + $0x770] sm:$0xff]  ;;  %v8877_v9 = vld [vmem:[#allocation3 + $0x28] sm:$0xff]  ;;  %v8878_v31 = vld [vmem:[#allocation3 + $0x180] sm:$0xff]  ;;  %3011 = vst [vmem:[#allocation3 + $0x600] sm:$0xff] %v2965_v35  ;;  %v3742_v8 = vsel %vm2959_vm10, %v3731_v21, %v3741_v19  ;;  %v3664_v52 = vrot.slane %v3625_v55, 4  ;;  %v3727_v28 = vrot.slane %v3697_v22, 5  ;;  %7742 = vmatprep.subr.mxu1 %v4460_v39  ;;  %7704 = vmatpush3.msra.mxu0 %v4408_v7 }
 0x8f6   :  { %5372 = vmatprep.mubr.f32.mxu0 %v8877_v9  ;;  %5452 = vmatprep.mubr.f32.mxu1 %v8878_v31  ;;  %v4423_v47 = vld [vmem:[%s14041_s20 + $0x6c8] sm:$0xff]  ;;  %3771 = vst [vmem:[#allocation3 + $0x428] sm:$0xff] %v3732_v62  ;;  %3016 = vst [vmem:[#allocation3 + $0x20] sm:$0xff] %v2978_v54  ;;  %v3703_v14 = vld [vmem:[#allocation2 + $0x38] sm:$0xff]  ;;  %v3069_v3 = vrot.slane %v11944_v44, 6 }
 0x8f7   :  { %v4459_v34 = vld [vmem:[%s14041_s20 + $0x7e8] sm:$0xff]  ;;  %3776 = vst [vmem:[#allocation3 + $0x440] sm:$0xff] %v3742_v8  ;;  %3768 = vst [vmem:[#allocation3 + $0x48] sm:$0xf0] %v3728_v41  ;;  %v3735_v60 = vrot.slane %v3703_v14, 5  ;;  %v11978_v33 = vld [vmem:[#allocation2 + $0xb8] sm:$0xff]  ;;  %v3665_v13 = vsel %vm2415_vm6, %v3654_v17, %v3664_v52  ;;  %7743 = vmatpush3.msra.mxu1 %v4444_v24  ;;  %7705 = vmatprep.subr.mxu0 %v4423_v47 }
 0x8f8   :  { %v2923_v38 = vld [vmem:[#allocation2 + $0x108] sm:$0xe0]  ;;  %v11980_v40 = vld [vmem:[#allocation2 + $0x98] sm:$0x1]  ;;  %3767 = vst [vmem:[#allocation3 + $0x5b8] sm:$0xf0] %v3727_v28  ;;  %7744 = vmatprep.subr.mxu1 %v4459_v34 }
 0x8f9   :  { %v4407_v30 = vld [vmem:[%s14041_s20 + $0x648] sm:$0xff]  ;;  %v2972_v53 = vrot.slane %v2923_v38, 5  ;;  %v3733_v12 = vrot.slane %v11978_v33, 5  ;;  %v11992_v25 = vld [vmem:[#allocation2 + $0x80] sm:$0xff]  ;;  %3695 = vst [vmem:[#allocation3 + $0x228] sm:$0xff] %v3665_v13  ;;  %v3736_v51 = vsel %vm2959_vm10, %v3728_v41, %v3735_v60  ;;  %v8879_v6 = vld [vmem:[#allocation3 + $0x98] sm:$0xff] }
 0x8fa   :  { %v4443_v59 = vld [vmem:[%s14041_s20 + $0x768] sm:$0xff]  ;;  %v4422_v11 = vld [vmem:[%s14041_s20 + $0x6c0] sm:$0xff]  ;;  %v3707_v50 = vld [vmem:[#allocation2 + $0xf8] sm:$0x1f]  ;;  %v2970_v1 = vrot.slane %v11992_v25, 5  ;;  %5373 = vmatmul.mubr.f32.gmra.mxu0 %v8879_v6  ;;  %3773 = vst [vmem:[#allocation3 + $0x80] sm:$0xff] %v3736_v51 }
 0x8fb   :  { %v3708_v42 = vld [vmem:[#allocation2 + $0xa8] sm:$0x1f]  ;;  %v4458_v10 = vld [vmem:[%s14041_s20 + $0x7e0] sm:$0xff]  ;;  %v2974_v37 = vsel %vm2959_vm10, %v2972_v53, %v2973_v46  ;;  %v3734_v32 = vsel %vm2959_vm10, %v3727_v28, %v3733_v12  ;;  %v3743_v61 = vrot.slane %v3707_v50, 5  ;;  %v3026_v56 = vld [vmem:[#allocation2 + $0xd0] sm:$0xc0]  ;;  %7706 = vmatpush3.msra.mxu0 %v4407_v30  ;;  %7745 = vmatpush3.msra.mxu1 %v4443_v59 }
 0x8fc   :  { %v3745_v17 = vrot.slane %v3708_v42, 5  ;;  %v8880_v16 = vld [vmem:[#allocation3 + $0x530] sm:$0xff]  ;;  %v4406_v45 = vld [vmem:[%s14041_s20 + $0x640] sm:$0xff]  ;;  %3014 = vst [vmem:[#allocation3 + $0x700] sm:$0xff] %v2974_v37  ;;  %3772 = vst [vmem:[#allocation3 + $0x668] sm:$0xff] %v3734_v32  ;;  %v3068_v36 = vrot.slane %v3026_v56, 6  ;;  %7707 = vmatprep.subr.mxu0 %v4422_v11  ;;  %7746 = vmatprep.subr.mxu1 %v4458_v10 }
 0x8fd   :  { %5453 = vmatmul.mubr.f32.gmra.mxu1 %v8880_v16  ;;  %v4442_v26 = vld [vmem:[%s14041_s20 + $0x760] sm:$0xff]  ;;  %v2922_v4 = vld [vmem:[#allocation2 + $0x48] sm:$0xe0]  ;;  %v2991_v63 = vrot.slane %v11980_v40, 5  ;;  %v8881_v15 = vld [vmem:[#allocation3 + $0x360] sm:$0xff]  ;;  %v3744_v5 = vsel %vm2959_vm10, %v3733_v12, %v3743_v61  ;;  %v3075_v2 = vrot.slane %v11992_v25, 6  ;;  %7708 = vmatpush3.msra.mxu0 %v4406_v45 }
 0x8fe   :  { %v4082_v29 = vld [vmem:[#allocation3 + $0x648] sm:$0xff]  ;;  %v3746_v18 = vsel %vm2959_vm10, %v3735_v60, %v3745_v17  ;;  %v2969_v27 = vrot.slane %v2922_v4, 5  ;;  %5377 = vmatprep.mubr.f32.mxu0 %v8881_v15  ;;  %v4421_v46 = vld [vmem:[%s14041_s20 + $0x6b8] sm:$0xff]  ;;  %v12024_v57 = vld [vmem:[#allocation2 + $0xc8] sm:$0xff]  ;;  %3777 = vst [vmem:[#allocation3 + $0x4b0] sm:$0xff] %v3744_v5  ;;  %v3070_v49 = vsel %vm543_vm2, %v3068_v36, %v3069_v3  ;;  %7747 = vmatpush3.msra.mxu1 %v4442_v26  ;;  %v3818_v6 = vrot.slane %v11978_v33, 6 }
 0x8ff   :  { %v12015_v20 = vld [vmem:[#allocation2 + $0xc0] sm:$0x3]  ;;  %5457 = vmatprep.mubr.f32.mxu1 %v4082_v29  ;;  %v4457_v43 = vld [vmem:[%s14041_s20 + $0x7d8] sm:$0xff]  ;;  %3778 = vst [vmem:[#allocation3 + $0x458] sm:$0xff] %v3746_v18  ;;  %v2981_v58 = vrot.slane %v12024_v57, 5  ;;  %3116 = vst [vmem:[#allocation3 + $0x518] sm:$0xff] %v3070_v49  ;;  %7709 = vmatprep.subr.mxu0 %v4421_v46 }
 0x900   :  { %v12026_v23 = vld [vmem:[#allocation2 + $0x100] sm:$0x3]  ;;  %v4405_v21 = vld [vmem:[%s14041_s20 + $0x638] sm:$0xff]  ;;  %v2971_v48 = vsel %vm2959_vm10, %v2969_v27, %v2970_v1  ;;  %v3025_v35 = vld [vmem:[#allocation2 + $0xb0] sm:$0xc0]  ;;  %v3092_v62 = vrot.slane %v12015_v20, 6  ;;  %7748 = vmatprep.subr.mxu1 %v4457_v43 }
 0x901   :  { %v3700_v39 = vld [vmem:[#allocation2 + $0x40] sm:$0xfe]  ;;  %v4441_v55 = vld [vmem:[%s14041_s20 + $0x758] sm:$0xff]  ;;  %3013 = vst [vmem:[#allocation3 + $0x3d0] sm:$0xff] %v2971_v48  ;;  %v4081_v54 = vld [vmem:[#allocation3 + $0x6d0] sm:$0xff]  ;;  %v2982_v22 = vsel %vm2959_vm10, %v2970_v1, %v2981_v58  ;;  %v2992_v9 = vsel %vm2959_vm10, %v2981_v58, %v2991_v63  ;;  %v3065_v47 = vrot.slane %v3025_v35, 6  ;;  %7710 = vmatpush3.msra.mxu0 %v4405_v21 }
 0x902   :  { %v12036_v19 = vld [vmem:[#allocation2 + $0xa0] sm:$0xfe]  ;;  %v3730_v7 = vrot.slane %v3700_v39, 5  ;;  %v4420_v41 = vld [vmem:[%s14041_s20 + $0x6b0] sm:$0xff]  ;;  %v12049_v31 = vld [vmem:[#allocation2 + $0x68] sm:$0xff]  ;;  %v3086_v34 = vrot.slane %v12024_v57, 6  ;;  %5458 = vmatmul.mubr.f32.gmra.mxu1 %v4081_v54 }
 0x903   :  { %v3729_v24 = vrot.slane %v12036_v19, 5  ;;  %v12052_v8 = vld [vmem:[#allocation2 + $0x100] sm:$0x7]  ;;  %v8882_v52 = vld [vmem:[#allocation3 + $0x130] sm:$0xff]  ;;  %v4456_v28 = vld [vmem:[%s14041_s20 + $0x7d0] sm:$0xff]  ;;  %3018 = vst [vmem:[#allocation3 + $0x328] sm:$0xff] %v2982_v22  ;;  %7749 = vmatpush3.msra.mxu1 %v4441_v55  ;;  %7711 = vmatprep.subr.mxu0 %v4420_v41 }
 0x904   :  { %5378 = vmatmul.mubr.f32.gmra.mxu0 %v8882_v52  ;;  %3770 = vst [vmem:[#allocation3 + $0x378] sm:$0xf0] %v3730_v7  ;;  %3023 = vst [vmem:[#allocation3 + $0x698] sm:$0xf] %v2992_v9  ;;  %v3066_v14 = vrot.slane %v12049_v31, 6  ;;  %v12058_v60 = vld [vmem:[#allocation2] sm:$0xff]  ;;  %v3087_v42 = vsel %vm543_vm2, %v3075_v2, %v3086_v34  ;;  %7750 = vmatprep.subr.mxu1 %v4456_v28 }
 0x905   :  { %3769 = vst [vmem:[#allocation3 + $0x698] sm:$0xf0] %v3729_v24  ;;  %v3036_v38 = vld [vmem:[#allocation2 + $0xf0] sm:$0xff]  ;;  %v3090_v40 = vrot.slane %v12026_v23, 6  ;;  %v3739_v13 = vrot.slane %v12058_v60, 5  ;;  %v12068_v12 = vld [vmem:[#allocation2 + $0xe8] sm:$0xff] }
 0x906   :  { %v4404_v30 = vld [vmem:[%s14041_s20 + $0x630] sm:$0xff]  ;;  %v3082_v53 = vrot.slane %v3036_v38, 6  ;;  %v8883_v11 = vld [vmem:[#allocation3 + $0x88] sm:$0xff]  ;;  %v4419_v10 = vld [vmem:[%s14041_s20 + $0x6a8] sm:$0xff]  ;;  %v3067_v17 = vsel %vm543_vm2, %v3065_v47, %v3066_v14  ;;  %v3737_v50 = vrot.slane %v12068_v12, 5  ;;  %3123 = vst [vmem:[#allocation3 + $0x138] sm:$0xff] %v3087_v42 }
 0x907   :  { %v4440_v59 = vld [vmem:[%s14041_s20 + $0x750] sm:$0xff]  ;;  %5462 = vmatprep.mubr.f32.mxu1 %v8883_v11  ;;  %v4455_v51 = vld [vmem:[%s14041_s20 + $0x7c8] sm:$0xff]  ;;  %v3196_v16 = vrot.slane %v12052_v8, 7  ;;  %3115 = vst [vmem:[#allocation3 + $0x628] sm:$0xff] %v3067_v17  ;;  %v3740_v37 = vsel %vm2959_vm10, %v3730_v7, %v3739_v13  ;;  %v3710_v56 = vld [vmem:[#allocation2 + $0xe0] sm:$0x1f]  ;;  %7712 = vmatpush3.msra.mxu0 %v4404_v30 }
 0x908   :  { %v12083_v1 = vld [vmem:[#allocation2 + $0x90] sm:$0xff]  ;;  %v4403_v26 = vld [vmem:[%s14041_s20 + $0x628] sm:$0xff]  ;;  %v3083_v32 = vsel %vm543_vm2, %v3069_v3, %v3082_v53  ;;  %v3093_v4 = vsel %vm543_vm2, %v3082_v53, %v3092_v62  ;;  %v3782_v29 = vld [vmem:[#allocation2 + $0xd8] sm:$0xfc]  ;;  %3775 = vst [vmem:[#allocation3 + $0x78] sm:$0xff] %v3740_v37  ;;  %v3738_v36 = vsel %vm2959_vm10, %v3729_v24, %v3737_v50  ;;  %v3749_v27 = vrot.slane %v3710_v56, 5  ;;  %7751 = vmatpush3.msra.mxu1 %v4440_v59 }
 0x909   :  { %v8884_v45 = vld [vmem:[#allocation3 + $0x658] sm:$0xff]  ;;  %v3080_v61 = vrot.slane %v12083_v1, 6  ;;  %v4439_v18 = vld [vmem:[%s14041_s20 + $0x748] sm:$0xff]  ;;  %3121 = vst [vmem:[#allocation3 + $0x6b8] sm:$0xff] %v3083_v32  ;;  %3126 = vst [vmem:[#allocation3 + $0x258] sm:$0xf] %v3093_v4  ;;  %7713 = vmatprep.subr.mxu0 %v4419_v10  ;;  %7752 = vmatprep.subr.mxu1 %v4455_v51 }
 0x90a   :  { %5537 = vmatprep.mubr.f32.mxu0 %v8884_v45  ;;  %v3812_v44 = vrot.slane %v3782_v29, 6  ;;  %v3709_v3 = vld [vmem:[#allocation2 + $0x78] sm:$0x1f]  ;;  %v3816_v63 = vrot.slane %v11946_v0, 6  ;;  %3774 = vst [vmem:[#allocation3 + $0x370] sm:$0xff] %v3738_v36  ;;  %v3172_v23 = vrot.slane %v12049_v31, 7  ;;  %v3750_v58 = vsel %vm2959_vm10, %v3739_v13, %v3749_v27  ;;  %7714 = vmatpush3.msra.mxu0 %v4403_v26 }
 0x90b   :  { %v3081_v20 = vsel %vm543_vm2, %v3066_v14, %v3080_v61  ;;  %v3747_v15 = vrot.slane %v3709_v3, 5  ;;  %v3091_v46 = vsel %vm543_vm2, %v3080_v61, %v3090_v40  ;;  %v3781_v43 = vld [vmem:[#allocation2 + $0x50] sm:$0xfc]  ;;  %v3028_v5 = vld [vmem:[#allocation2 + $0x48] sm:$0xc0]  ;;  %v4418_v49 = vld [vmem:[%s14041_s20 + $0x6a0] sm:$0xff]  ;;  %7753 = vmatpush3.msra.mxu1 %v4439_v18 }
 0x90c   :  { %v8885_v21 = vld [vmem:[#allocation3 + $0x218] sm:$0xff]  ;;  %v4454_v48 = vld [vmem:[%s14041_s20 + $0x7c0] sm:$0xff]  ;;  %3120 = vst [vmem:[#allocation3 + $0x3c0] sm:$0xff] %v3081_v20  ;;  %3852 = vst [vmem:[#allocation3 + $0x258] sm:$0xf0] %v3812_v44  ;;  %v3811_v39 = vrot.slane %v3781_v43, 6  ;;  %v3819_v19 = vsel %vm543_vm2, %v3812_v44, %v3818_v6  ;;  %7715 = vmatprep.subr.mxu0 %v4418_v49 }
 0x90d   :  { %5463 = vmatmul.mubr.f32.gmra.mxu1 %v8885_v21  ;;  %3125 = vst [vmem:[#allocation3 + $0x3f0] sm:$0xf] %v3091_v46  ;;  %v3074_v55 = vrot.slane %v3028_v5, 6  ;;  %v3792_v7 = vld [vmem:[#allocation2 + $0xf8] sm:$0x3f]  ;;  %v4402_v35 = vld [vmem:[%s14041_s20 + $0x620] sm:$0xff]  ;;  %v3748_v54 = vsel %vm2959_vm10, %v3737_v50, %v3747_v15  ;;  %7754 = vmatprep.subr.mxu1 %v4454_v48 }
 0x90e   :  { %v8886_v24 = vld [vmem:[#allocation3 + $0x560] sm:$0xff]  ;;  %v4438_v62 = vld [vmem:[%s14041_s20 + $0x740] sm:$0xff]  ;;  %3780 = vst [vmem:[#allocation3 + $0x320] sm:$0xff] %v3750_v58  ;;  %3857 = vst [vmem:[#allocation3 + $0x1d8] sm:$0xff] %v3819_v19  ;;  %v3828_v41 = vrot.slane %v3792_v7, 6  ;;  %v3186_v22 = vrot.slane %v12083_v1, 7  ;;  %v3817_v52 = vsel %vm543_vm2, %v3811_v39, %v3816_v63  ;;  %7716 = vmatpush3.msra.mxu0 %v4402_v35 }
 0x90f   :  { %5467 = vmatprep.mubr.f32.mxu1 %v8886_v24  ;;  %v4417_v9 = vld [vmem:[%s14041_s20 + $0x698] sm:$0xff]  ;;  %3779 = vst [vmem:[#allocation3 + $0x220] sm:$0xff] %v3748_v54  ;;  %3851 = vst [vmem:[#allocation3 + $0x3f0] sm:$0xf0] %v3811_v39  ;;  %v3076_v47 = vsel %vm543_vm2, %v3074_v55, %v3075_v2  ;;  %v3791_v28 = vld [vmem:[#allocation2 + $0x60] sm:$0x3f]  ;;  %7755 = vmatpush3.msra.mxu1 %v4438_v62 }
 0x910   :  { %v4453_v14 = vld [vmem:[%s14041_s20 + $0x7b8] sm:$0xff]  ;;  %3118 = vst [vmem:[#allocation3 + $0x170] sm:$0xff] %v3076_v47  ;;  %3856 = vst [vmem:[#allocation3 + $0x508] sm:$0xff] %v3817_v52  ;;  %v3829_v25 = vsel %vm543_vm2, %v3818_v6, %v3828_v41  ;;  %v3826_v2 = vrot.slane %v3791_v28, 6  ;;  %v3130_v40 = vld [vmem:[#allocation2 + $0xb0] sm:$0x80]  ;;  %v3187_v30 = vsel %vm3170_vm11, %v3172_v23, %v3186_v22  ;;  %v3197_v59 = vsel %vm3170_vm11, %v3186_v22, %v3196_v16 }
 0x911   :  { %v4401_v38 = vld [vmem:[%s14041_s20 + $0x618] sm:$0xff]  ;;  %v4416_v33 = vld [vmem:[%s14041_s20 + $0x690] sm:$0xff]  ;;  %3862 = vst [vmem:[#allocation3 + $0x118] sm:$0xff] %v3829_v25  ;;  %v3171_v53 = vrot.slane %v3130_v40, 7  ;;  %3226 = vst [vmem:[#allocation3 + $0x2c8] sm:$0xff] %v3187_v30  ;;  %7717 = vmatprep.subr.mxu0 %v4417_v9  ;;  %7756 = vmatprep.subr.mxu1 %v4453_v14  ;;  %v3822_v56 = vrot.slane %v12068_v12, 6 }
 0x912   :  { %v4437_v13 = vld [vmem:[%s14041_s20 + $0x738] sm:$0xff]  ;;  %v3027_v42 = vld [vmem:[#allocation2 + $0x10] sm:$0xc0]  ;;  %3231 = vst [vmem:[#allocation3 + $0x680] sm:$0xf] %v3197_v59  ;;  %v3827_v10 = vsel %vm543_vm2, %v3816_v63, %v3826_v2  ;;  %v12160_v50 = vld [vmem:[#allocation2 + $0x20] sm:$0xff]  ;;  %7718 = vmatpush3.msra.mxu0 %v4401_v38 }
 0x913   :  { %v8887_v11 = vld [vmem:[#allocation3 + $0x158] sm:$0xff]  ;;  %v12158_v51 = vld [vmem:[#allocation2 + $0x18] sm:$0xff]  ;;  %v3071_v17 = vrot.slane %v3027_v42, 6  ;;  %3861 = vst [vmem:[#allocation3 + $0x1c8] sm:$0xff] %v3827_v10  ;;  %v3173_v0 = vsel %vm3170_vm11, %v3171_v53, %v3172_v23  ;;  %v3084_v45 = vrot.slane %v12160_v50, 6  ;;  %7757 = vmatpush3.msra.mxu1 %v4437_v13  ;;  %v4415_v32 = vld [vmem:[%s14041_s20 + $0x688] sm:$0xff]  ;;  %7719 = vmatprep.subr.mxu0 %v4416_v33 }
 0x914   :  { %5468 = vmatmul.mubr.f32.gmra.mxu1 %v8887_v11  ;;  %v4452_v8 = vld [vmem:[%s14041_s20 + $0x7b0] sm:$0xff]  ;;  %v3072_v16 = vrot.slane %v12158_v51, 6  ;;  %v3043_v26 = vld [vmem:[#allocation2 + $0x98] sm:$0x3]  ;;  %v4451_v61 = vld [vmem:[%s14041_s20 + $0x7a8] sm:$0xff]  ;;  %3221 = vst [vmem:[#allocation3 + $0x4c0] sm:$0xff] %v3173_v0 }
 0x915   :  { %v4400_v1 = vld [vmem:[%s14041_s20 + $0x610] sm:$0xff]  ;;  %v8888_v37 = vld [vmem:[#allocation3 + $0x300] sm:$0xff]  ;;  %v3096_v31 = vrot.slane %v3043_v26, 6  ;;  %v3178_v4 = vrot.slane %v12158_v51, 7  ;;  %v3190_v29 = vrot.slane %v12160_v50, 7  ;;  %7758 = vmatprep.subr.mxu1 %v4452_v8  ;;  %v4399_v18 = vld [vmem:[%s14041_s20 + $0x608] sm:$0xff] }
 0x916   :  { %v4436_v6 = vld [vmem:[%s14041_s20 + $0x730] sm:$0xff]  ;;  %5627 = vmatprep.mubr.f32.mxu1 %v8888_v37  ;;  %v4435_v36 = vld [vmem:[%s14041_s20 + $0x728] sm:$0xff]  ;;  %v3073_v27 = vsel %vm543_vm2, %v3071_v17, %v3072_v16  ;;  %v3085_v44 = vsel %vm543_vm2, %v3072_v16, %v3084_v45  ;;  %v3784_v3 = vld [vmem:[#allocation2 + $0xa0] sm:$0xfc]  ;;  %7720 = vmatpush3.msra.mxu0 %v4400_v1  ;;  %v3824_v26 = vrot.slane %v12058_v60, 6 }
 0x917   :  { %7759 = vmatpush3.msra.mxu1 %v4436_v6  ;;  %v4414_v63 = vld [vmem:[%s14041_s20 + $0x680] sm:$0xff]  ;;  %3117 = vst [vmem:[#allocation3 + $0xf0] sm:$0xff] %v3073_v27  ;;  %3122 = vst [vmem:[#allocation3 + $0x640] sm:$0xff] %v3085_v44  ;;  %v3097_v46 = vsel %vm543_vm2, %v3086_v34, %v3096_v31  ;;  %v3814_v43 = vrot.slane %v3784_v3, 6  ;;  %v3191_v5 = vsel %vm3170_vm11, %v3178_v4, %v3190_v29  ;;  %7721 = vmatprep.subr.mxu0 %v4415_v32  ;;  %v4449_v21 = vld [vmem:[%s14041_s20 + $0x798] sm:$0xff] }
 0x918   :  { %v4450_v20 = vld [vmem:[%s14041_s20 + $0x7a0] sm:$0xff]  ;;  %7760 = vmatprep.subr.mxu1 %v4451_v61  ;;  %3128 = vst [vmem:[#allocation3 + $0x630] sm:$0xf] %v3097_v46  ;;  %v3042_v57 = vld [vmem:[#allocation2 + $0x88] sm:$0x3]  ;;  %3228 = vst [vmem:[#allocation3 + $0x6e0] sm:$0xff] %v3191_v5  ;;  %7722 = vmatpush3.msra.mxu0 %v4399_v18 }
 0x919   :  { %v4398_v15 = vld [vmem:[%s14041_s20 + $0x600] sm:$0xff]  ;;  %7761 = vmatpush3.msra.mxu1 %v4435_v36  ;;  %v4493_v34 = vld [vmem:[%s14041_s20 + $0x8f8] sm:$0xff]  ;;  %3854 = vst [vmem:[#allocation3 + $0x630] sm:$0xf0] %v3814_v43  ;;  %v3094_v49 = vrot.slane %v3042_v57, 6  ;;  %v3823_v39 = vsel %vm543_vm2, %v3814_v43, %v3822_v56  ;;  %7723 = vmatprep.subr.mxu0 %v4414_v63  ;;  %v12225_v24 = vld [vmem:[#allocation2 + $0x110] sm:$0xff] }
 0x91a   :  { %v4434_v23 = vld [vmem:[%s14041_s20 + $0x720] sm:$0xff]  ;;  %v3783_v48 = vld [vmem:[#allocation2 + $0x58] sm:$0xfc]  ;;  %v3029_v58 = vld [vmem:[#allocation2 + $0x108] sm:$0xc0]  ;;  %7762 = vmatprep.subr.mxu1 %v4450_v20  ;;  %3859 = vst [vmem:[#allocation3 + $0x558] sm:$0xff] %v3823_v39  ;;  %7724 = vmatpush3.msra.mxu0 %v4398_v15 }
 0x91b   :  { %v4433_v19 = vld [vmem:[%s14041_s20 + $0x718] sm:$0xff]  ;;  %v3813_v7 = vrot.slane %v3783_v48, 6  ;;  %v3077_v35 = vrot.slane %v3029_v58, 6  ;;  %7763 = vmatpush3.msra.mxu1 %v4434_v23  ;;  %v4448_v62 = vld [vmem:[%s14041_s20 + $0x790] sm:$0xff]  ;;  %v3095_v54 = vsel %vm543_vm2, %v3084_v45, %v3094_v49  ;;  %v3078_v41 = vrot.slane %v12225_v24, 6  ;;  %v8889_v47 = vld [vmem:[#allocation3 + $0x388] sm:$0xff]  ;;  %7787 = vmatprep.subr.mxu0 %v4493_v34 }
 0x91c   :  { %v4477_v55 = vld [vmem:[%s14041_s20 + $0x878] sm:$0xff]  ;;  %v12234_v9 = vld [vmem:[#allocation2 + $0x70] sm:$0xff]  ;;  %5538 = vmatmul.mubr.f32.vlgmr.msra.gmra.mxu0 %v8889_v47  ;;  %7764 = vmatprep.subr.mxu1 %v4449_v21  ;;  %3127 = vst [vmem:[#allocation3 + $0x380] sm:$0xf] %v3095_v54  ;;  %v3184_v25 = vrot.slane %v12225_v24, 7  ;;  %v4447_v59 = vld [vmem:[%s14041_s20 + $0x788] sm:$0xff] }
 0x91d   :  { %v12232_v22 = vld [vmem:[#allocation2 + $0x38] sm:$0xff]  ;;  %v4492_v52 = vld [vmem:[%s14041_s20 + $0x8f0] sm:$0xff]  ;;  %3853 = vst [vmem:[#allocation3 + $0x380] sm:$0xf0] %v3813_v7  ;;  %v3088_v14 = vrot.slane %v12234_v9, 6  ;;  %v3079_v13 = vsel %vm543_vm2, %v3077_v35, %v3078_v41  ;;  %7765 = vmatpush3.msra.mxu1 %v4433_v19  ;;  %7788 = vmatpush3.msra.mxu0 %v4477_v55  ;;  %v4491_v53 = vld [vmem:[%s14041_s20 + $0x8e8] sm:$0xff] }
 0x91e   :  { %v3820_v28 = vrot.slane %v12232_v22, 6  ;;  %v3794_v38 = vld [vmem:[#allocation2 + $0x78] sm:$0x3f]  ;;  %v8890_v2 = vld [vmem:[#allocation3 + $0x6f8] sm:$0xff]  ;;  %3119 = vst [vmem:[#allocation3 + $0x3e8] sm:$0xff] %v3079_v13  ;;  %v3194_v17 = vrot.slane %v12234_v9, 7  ;;  %7766 = vmatprep.subr.mxu1 %v4448_v62  ;;  %7789 = vmatprep.subr.mxu0 %v4492_v52 }
 0x91f   :  { %5542 = vmatprep.mubr.f32.mxu0 %v8890_v2  ;;  %v4432_v40 = vld [vmem:[%s14041_s20 + $0x710] sm:$0xff]  ;;  %v3832_v33 = vrot.slane %v3794_v38, 6  ;;  %v3089_v11 = vsel %vm543_vm2, %v3078_v41, %v3088_v14  ;;  %v3793_v10 = vld [vmem:[#allocation2 + $0xa8] sm:$0x3f]  ;;  %v4446_v32 = vld [vmem:[%s14041_s20 + $0x780] sm:$0xff] }
 0x920   :  { %v4476_v30 = vld [vmem:[%s14041_s20 + $0x870] sm:$0xff]  ;;  %v3821_v42 = vsel %vm543_vm2, %v3813_v7, %v3820_v28  ;;  %v4431_v1 = vld [vmem:[%s14041_s20 + $0x708] sm:$0xff]  ;;  %3124 = vst [vmem:[#allocation3 + $0x4e0] sm:$0xff] %v3089_v11  ;;  %v3830_v16 = vrot.slane %v3793_v10, 6  ;;  %7767 = vmatpush3.msra.mxu1 %v4432_v40  ;;  %v3785_v12 = vld [vmem:[#allocation2 + $0x40] sm:$0xfc]  ;;  %v3195_v31 = vsel %vm3170_vm11, %v3184_v25, %v3194_v17 }
 0x921   :  { %v3866_v8 = vld [vmem:[#allocation2 + $0x50] sm:$0xf8]  ;;  %3858 = vst [vmem:[#allocation3 + $0x6d8] sm:$0xff] %v3821_v42  ;;  %v3833_v6 = vsel %vm543_vm2, %v3822_v56, %v3832_v33  ;;  %v3044_v45 = vld [vmem:[#allocation2 + $0x28] sm:$0x3]  ;;  %7790 = vmatpush3.msra.mxu0 %v4476_v30  ;;  %7768 = vmatprep.subr.mxu1 %v4447_v59  ;;  %v4490_v36 = vld [vmem:[%s14041_s20 + $0x8e0] sm:$0xff] }
 0x922   :  { %v3896_v0 = vrot.slane %v3866_v8, 7  ;;  %v4475_v37 = vld [vmem:[%s14041_s20 + $0x868] sm:$0xff]  ;;  %3864 = vst [vmem:[#allocation3 + $0x230] sm:$0xff] %v3833_v6  ;;  %v3098_v61 = vrot.slane %v3044_v45, 6  ;;  %v8891_v56 = vld [vmem:[#allocation3 + $0x678] sm:$0xff]  ;;  %v3831_v27 = vsel %vm543_vm2, %v3820_v28, %v3830_v16  ;;  %v3815_v44 = vrot.slane %v3785_v12, 6  ;;  %7791 = vmatprep.subr.mxu0 %v4491_v53  ;;  %7769 = vmatpush3.msra.mxu1 %v4431_v1 }
 0x923   :  { %5543 = vmatmul.mubr.f32.gmra.mxu0 %v8891_v56  ;;  %v4084_v18 = vld [vmem:[#allocation3 + $0x110] sm:$0xff]  ;;  %3230 = vst [vmem:[#allocation3 + $0x1a8] sm:$0xff] %v3195_v31  ;;  %v4430_v63 = vld [vmem:[%s14041_s20 + $0x700] sm:$0xff]  ;;  %3863 = vst [vmem:[#allocation3 + $0x250] sm:$0xff] %v3831_v27  ;;  %7770 = vmatprep.subr.mxu1 %v4446_v32  ;;  %v3905_v30 = vrot.slane %v12232_v22, 7 }
 0x924   :  { %3936 = vst [vmem:[#allocation3 + $0x680] sm:$0xf0] %v3896_v0  ;;  %v3871_v3 = vld [vmem:[#allocation2 + $0x8] sm:$0xff]  ;;  %5547 = vmatprep.mubr.f32.mxu0 %v4084_v18  ;;  %v4474_v20 = vld [vmem:[%s14041_s20 + $0x860] sm:$0xff]  ;;  %v3099_v15 = vsel %vm543_vm2, %v3088_v14, %v3098_v61  ;;  %v3132_v43 = vld [vmem:[#allocation2 + $0x10] sm:$0x80]  ;;  %7792 = vmatpush3.msra.mxu0 %v4475_v37  ;;  %v3825_v57 = vsel %vm543_vm2, %v3815_v44, %v3824_v26 }
 0x925   :  { %v3901_v46 = vrot.slane %v3871_v3, 7  ;;  %3971 = vst [vmem:[#allocation3 + $0x288] sm:$0xff] %v3871_v3  ;;  %v4489_v5 = vld [vmem:[%s14041_s20 + $0x8d8] sm:$0xff]  ;;  %3129 = vst [vmem:[#allocation3 + $0x688] sm:$0xf] %v3099_v15  ;;  %v3177_v21 = vrot.slane %v3132_v43, 7  ;;  %7793 = vmatprep.subr.mxu0 %v4490_v36  ;;  %7771 = vmatpush3.msra.mxu1 %v4430_v63 }
 0x926   :  { %v4525_v23 = vld [vmem:[%s14041_s20 + $0x9f8] sm:$0xff]  ;;  %3855 = vst [vmem:[#allocation3 + $0x688] sm:$0xf0] %v3815_v44  ;;  %v3876_v34 = vld [vmem:[#allocation2 + $0x60] sm:$0x7f]  ;;  %3860 = vst [vmem:[#allocation3 + $0x670] sm:$0xff] %v3825_v57  ;;  %7794 = vmatpush3.msra.mxu0 %v4474_v20 }
 0x927   :  { %v4473_v49 = vld [vmem:[%s14041_s20 + $0x858] sm:$0xff]  ;;  %v3902_v58 = vsel %vm3170_vm11, %v3896_v0, %v3901_v46  ;;  %v3911_v39 = vrot.slane %v3876_v34, 7  ;;  %v3795_v19 = vld [vmem:[#allocation2 + $0xe0] sm:$0x3f]  ;;  %v3134_v55 = vld [vmem:[#allocation2 + $0x108] sm:$0x80]  ;;  %v3179_v35 = vsel %vm3170_vm11, %v3177_v21, %v3178_v4  ;;  %7795 = vmatprep.subr.mxu0 %v4489_v5  ;;  %7834 = vmatprep.subr.mxu1 %v4525_v23 }
 0x928   :  { %v4509_v48 = vld [vmem:[%s14041_s20 + $0x978] sm:$0xff]  ;;  %3941 = vst [vmem:[#allocation3 + $0x528] sm:$0xff] %v3902_v58  ;;  %v3834_v62 = vrot.slane %v3795_v19, 6  ;;  %v3183_v54 = vrot.slane %v3134_v55, 7  ;;  %v3131_v41 = vld [vmem:[#allocation2 + $0xd0] sm:$0x80]  ;;  %7796 = vmatpush3.msra.mxu0 %v4473_v49 }
 0x929   :  { %v4083_v7 = vld [vmem:[#allocation3 + $0x40] sm:$0xff]  ;;  %v3136_v47 = vld [vmem:[#allocation2 + $0x30] sm:$0xff]  ;;  %v8892_v52 = vld [vmem:[#allocation3 + $0x350] sm:$0xff]  ;;  %3223 = vst [vmem:[#allocation3 + $0x70] sm:$0xff] %v3179_v35  ;;  %v3912_v28 = vsel %vm3170_vm11, %v3901_v46, %v3911_v39  ;;  %v3174_v14 = vrot.slane %v3131_v41, 7 }
 0x92a   :  { %5548 = vmatmul.mubr.f32.gmra.mxu0 %v4083_v7  ;;  %5628 = vmatmul.mubr.f32.vlgmr.msra.gmra.mxu1 %v8892_v52  ;;  %v3175_v38 = vrot.slane %v3136_v47, 7  ;;  %v3141_v2 = vld [vmem:[#allocation2 + $0xf0] sm:$0xff]  ;;  %v3147_v40 = vld [vmem:[#allocation2 + $0x88] sm:$0x7]  ;;  %3252 = vst [vmem:[#allocation3 + $0x3a0] sm:$0xff] %v3136_v47  ;;  %3946 = vst [vmem:[#allocation3 + $0x580] sm:$0xff] %v3912_v28  ;;  %v3835_v59 = vsel %vm543_vm2, %v3824_v26, %v3834_v62  ;;  %v3185_v13 = vsel %vm3170_vm11, %v3183_v54, %v3184_v25 }
 0x92b   :  { %v4488_v51 = vld [vmem:[%s14041_s20 + $0x8d0] sm:$0xff]  ;;  %v3188_v33 = vrot.slane %v3141_v2, 7  ;;  %v3200_v53 = vrot.slane %v3147_v40, 7  ;;  %v3868_v42 = vld [vmem:[#allocation2 + $0x58] sm:$0xf8]  ;;  %3257 = vst [vmem:[#allocation3 + $0x2f0] sm:$0xff] %v3141_v2  ;;  %7835 = vmatpush3.msra.mxu1 %v4509_v48 }
 0x92c   :  { %v4524_v4 = vld [vmem:[%s14041_s20 + $0x9f0] sm:$0xff]  ;;  %v8894_v8 = vld [vmem:[#allocation3 + $0xa8] sm:$0xff]  ;;  %3865 = vst [vmem:[#allocation3 + $0x5c0] sm:$0xff] %v3835_v59  ;;  %3225 = vst [vmem:[#allocation3 + $0x150] sm:$0xff] %v3185_v13  ;;  %v3176_v24 = vsel %vm3170_vm11, %v3174_v14, %v3175_v38  ;;  %v3898_v25 = vrot.slane %v3868_v42, 7  ;;  %7797 = vmatprep.subr.mxu0 %v4488_v51 }
 0x92d   :  { %v8893_v11 = vld [vmem:[#allocation3 + $0x2f8] sm:$0xff]  ;;  %5632 = vmatprep.mubr.f32.mxu1 %v8894_v8  ;;  %v4487_v1 = vld [vmem:[%s14041_s20 + $0x8c8] sm:$0xff]  ;;  %3222 = vst [vmem:[#allocation3 + $0x3d8] sm:$0xff] %v3176_v24  ;;  %v3189_v6 = vsel %vm3170_vm11, %v3175_v38, %v3188_v33  ;;  %v3201_v0 = vsel %vm3170_vm11, %v3190_v29, %v3200_v53  ;;  %v3146_v16 = vld [vmem:[#allocation2 + $0xc0] sm:$0x7]  ;;  %7836 = vmatprep.subr.mxu1 %v4524_v4 }
 0x92e   :  { %5552 = vmatprep.mubr.f32.mxu0 %v8893_v11  ;;  %v4472_v10 = vld [vmem:[%s14041_s20 + $0x850] sm:$0xff]  ;;  %v3867_v45 = vld [vmem:[#allocation2 + $0xd8] sm:$0xf8]  ;;  %v4523_v26 = vld [vmem:[%s14041_s20 + $0x9e8] sm:$0xff]  ;;  %3227 = vst [vmem:[#allocation3 + $0x488] sm:$0xff] %v3189_v6  ;;  %v3198_v32 = vrot.slane %v3146_v16, 7  ;;  %v3906_v29 = vsel %vm3170_vm11, %v3898_v25, %v3905_v30 }
 0x92f   :  { %v4508_v60 = vld [vmem:[%s14041_s20 + $0x970] sm:$0xff]  ;;  %v4471_v37 = vld [vmem:[%s14041_s20 + $0x848] sm:$0xff]  ;;  %3233 = vst [vmem:[#allocation3 + $0x140] sm:$0xf] %v3201_v0  ;;  %3938 = vst [vmem:[#allocation3 + $0x140] sm:$0xf0] %v3898_v25  ;;  %7798 = vmatpush3.msra.mxu0 %v4472_v10 }
 0x930   :  { %v3897_v61 = vrot.slane %v3867_v45, 7  ;;  %v3133_v50 = vld [vmem:[#allocation2 + $0x48] sm:$0x80]  ;;  %7837 = vmatpush3.msra.mxu1 %v4508_v60  ;;  %v3138_v31 = vld [vmem:[#allocation2 + $0x80] sm:$0xff]  ;;  %3943 = vst [vmem:[#allocation3 + $0x4b8] sm:$0xff] %v3906_v29  ;;  %v12346_v18 = vld [vmem:[#allocation2 + $0xb8] sm:$0xff]  ;;  %v3199_v3 = vsel %vm3170_vm11, %v3188_v33, %v3198_v32  ;;  %7799 = vmatprep.subr.mxu0 %v4487_v1 }
 0x931   :  { %v4507_v12 = vld [vmem:[%s14041_s20 + $0x968] sm:$0xff]  ;;  %v3180_v56 = vrot.slane %v3133_v50, 7  ;;  %v8895_v36 = vld [vmem:[#allocation3 + $0x100] sm:$0xff]  ;;  %v8896_v27 = vld [vmem:[#allocation3 + $0x5a8] sm:$0xff]  ;;  %v3181_v63 = vrot.slane %v3138_v31, 7  ;;  %v3903_v20 = vrot.slane %v12346_v18, 7  ;;  %7838 = vmatprep.subr.mxu1 %v4523_v26  ;;  %7800 = vmatpush3.msra.mxu0 %v4471_v37 }
 0x932   :  { %5553 = vmatmul.mubr.f32.gmra.mxu0 %v8895_v36  ;;  %5633 = vmatmul.mubr.f32.gmra.mxu1 %v8896_v27  ;;  %v4486_v44 = vld [vmem:[%s14041_s20 + $0x8c0] sm:$0xff]  ;;  %3937 = vst [vmem:[#allocation3 + $0x1c0] sm:$0xf0] %v3897_v61  ;;  %v3143_v15 = vld [vmem:[#allocation2 + $0xc8] sm:$0xff]  ;;  %3254 = vst [vmem:[#allocation3 + $0x90] sm:$0xff] %v3138_v31 }
 0x933   :  { %v3878_v46 = vld [vmem:[#allocation2 + $0xa8] sm:$0x7f]  ;;  %3972 = vst [vmem:[#allocation3 + $0x1e0] sm:$0xff] %v12346_v18  ;;  %v4086_v43 = vld [vmem:[#allocation3 + $0x120] sm:$0xff]  ;;  %v4522_v5 = vld [vmem:[%s14041_s20 + $0x9e0] sm:$0xff]  ;;  %v3192_v23 = vrot.slane %v3143_v15, 7  ;;  %v3182_v58 = vsel %vm3170_vm11, %v3180_v56, %v3181_v63  ;;  %v3904_v39 = vsel %vm3170_vm11, %v3897_v61, %v3903_v20  ;;  %7839 = vmatpush3.msra.mxu1 %v4507_v12  ;;  %7801 = vmatprep.subr.mxu0 %v4486_v44 }
 0x934   :  { %3232 = vst [vmem:[#allocation3 + $0x1c0] sm:$0xf] %v3199_v3  ;;  %v3915_v21 = vrot.slane %v3878_v46, 7  ;;  %v3149_v57 = vld [vmem:[#allocation2 + $0x28] sm:$0x7]  ;;  %3259 = vst [vmem:[#allocation3 + $0x4d8] sm:$0xff] %v3143_v15  ;;  %5637 = vmatprep.mubr.f32.mxu1 %v4086_v43  ;;  %7840 = vmatprep.subr.mxu1 %v4522_v5 }
 0x935   :  { %v8897_v34 = vld [vmem:[#allocation3 + $0xf8] sm:$0xff]  ;;  %v4470_v49 = vld [vmem:[%s14041_s20 + $0x840] sm:$0xff]  ;;  %v3204_v19 = vrot.slane %v3149_v57, 7  ;;  %v4485_v7 = vld [vmem:[%s14041_s20 + $0x8b8] sm:$0xff]  ;;  %3224 = vst [vmem:[#allocation3 + $0x3e0] sm:$0xff] %v3182_v58  ;;  %v3193_v35 = vsel %vm3170_vm11, %v3181_v63, %v3192_v23 }
 0x936   :  { %5557 = vmatprep.mubr.f32.mxu0 %v8897_v34  ;;  %v4506_v48 = vld [vmem:[%s14041_s20 + $0x960] sm:$0xff]  ;;  %3942 = vst [vmem:[#allocation3 + $0x660] sm:$0xff] %v3904_v39  ;;  %v3916_v62 = vsel %vm3170_vm11, %v3905_v30, %v3915_v21  ;;  %v3877_v41 = vld [vmem:[#allocation2 + $0xf8] sm:$0x7f]  ;;  %3229 = vst [vmem:[#allocation3 + $0x408] sm:$0xff] %v3193_v35  ;;  %7802 = vmatpush3.msra.mxu0 %v4470_v49 }
 0x937   :  { %v3870_v55 = vld [vmem:[#allocation2 + $0x40] sm:$0xf8]  ;;  %v3148_v47 = vld [vmem:[#allocation2 + $0x98] sm:$0x7]  ;;  %3948 = vst [vmem:[#allocation3 + $0x5e0] sm:$0xff] %v3916_v62  ;;  %v3205_v28 = vsel %vm3170_vm11, %v3194_v17, %v3204_v19  ;;  %v3913_v14 = vrot.slane %v3877_v41, 7  ;;  %7841 = vmatpush3.msra.mxu1 %v4506_v48  ;;  %7803 = vmatprep.subr.mxu0 %v4485_v7 }
 0x938   :  { %v3900_v54 = vrot.slane %v3870_v55, 7  ;;  %v4521_v52 = vld [vmem:[%s14041_s20 + $0x9d8] sm:$0xff]  ;;  %v3202_v38 = vrot.slane %v3148_v47, 7  ;;  %v3869_v22 = vld [vmem:[#allocation2 + $0xa0] sm:$0xf8]  ;;  %v4085_v40 = vld [vmem:[#allocation3 + $0x590] sm:$0xff] }
 0x939   :  { %v3875_v2 = vld [vmem:[#allocation2] sm:$0xff]  ;;  %v4469_v30 = vld [vmem:[%s14041_s20 + $0x838] sm:$0xff]  ;;  %3235 = vst [vmem:[#allocation3 + $0x260] sm:$0xf] %v3205_v28  ;;  %v3899_v51 = vrot.slane %v3869_v22, 7  ;;  %v3874_v59 = vld [vmem:[#allocation2 + $0xe8] sm:$0xff]  ;;  %5638 = vmatmul.mubr.f32.gmra.mxu1 %v4085_v40  ;;  %v3914_v13 = vsel %vm3170_vm11, %v3903_v20, %v3913_v14  ;;  %7842 = vmatprep.subr.mxu1 %v4521_v52 }
 0x93a   :  { %3940 = vst [vmem:[#allocation3 + $0x260] sm:$0xf0] %v3900_v54  ;;  %v3909_v4 = vrot.slane %v3875_v2, 7  ;;  %3975 = vst [vmem:[#allocation3 + $0x68] sm:$0xff] %v3875_v2  ;;  %v8898_v9 = vld [vmem:[#allocation3 + $0x308] sm:$0xff]  ;;  %v4505_v17 = vld [vmem:[%s14041_s20 + $0x958] sm:$0xff]  ;;  %v3203_v33 = vsel %vm3170_vm11, %v3192_v23, %v3202_v38  ;;  %7804 = vmatpush3.msra.mxu0 %v4469_v30 }
 0x93b   :  { %5558 = vmatmul.mubr.f32.gmra.mxu0 %v8898_v9  ;;  %v3907_v53 = vrot.slane %v3874_v59, 7  ;;  %v3880_v42 = vld [vmem:[#allocation2 + $0xe0] sm:$0x7f]  ;;  %v3879_v11 = vld [vmem:[#allocation2 + $0x78] sm:$0x7f]  ;;  %3974 = vst [vmem:[#allocation3 + $0x4a0] sm:$0xff] %v3874_v59  ;;  %7843 = vmatpush3.msra.mxu1 %v4505_v17 }
 0x93c   :  { %v4484_v8 = vld [vmem:[%s14041_s20 + $0x8b0] sm:$0xff]  ;;  %3947 = vst [vmem:[#allocation3 + $0x2d8] sm:$0xff] %v3914_v13  ;;  %3234 = vst [vmem:[#allocation3 + $0x6b0] sm:$0xf] %v3203_v33  ;;  %v3910_v60 = vsel %vm3170_vm11, %v3900_v54, %v3909_v4  ;;  %v3919_v24 = vrot.slane %v3880_v42, 7  ;;  %v3917_v25 = vrot.slane %v3879_v11, 7 }
 0x93d   :  { %v4520_v10 = vld [vmem:[%s14041_s20 + $0x9d0] sm:$0xff]  ;;  %3939 = vst [vmem:[#allocation3 + $0x6b0] sm:$0xf0] %v3899_v51  ;;  %v3236_v1 = vld [vmem:[#allocation2 + $0x68] sm:$0xff]  ;;  %3945 = vst [vmem:[#allocation3 + $0x5b0] sm:$0xff] %v3910_v60  ;;  %v3908_v45 = vsel %vm3170_vm11, %v3899_v51, %v3907_v53  ;;  %7805 = vmatprep.subr.mxu0 %v4484_v8 }
 0x93e   :  { %v8899_v6 = vld [vmem:[#allocation3 + $0x4f8] sm:$0xff]  ;;  %3251 = vst [vmem:[#allocation3 + $0xc0] sm:$0xff] %v3236_v1  ;;  %v4483_v37 = vld [vmem:[%s14041_s20 + $0x8a8] sm:$0xff]  ;;  %3944 = vst [vmem:[#allocation3 + $0x6f0] sm:$0xff] %v3908_v45  ;;  %v3920_v32 = vsel %vm3170_vm11, %v3909_v4, %v3919_v24  ;;  %v3918_v61 = vsel %vm3170_vm11, %v3907_v53, %v3917_v25  ;;  %7844 = vmatprep.subr.mxu1 %v4520_v10 }
 0x93f   :  { %5642 = vmatprep.mubr.f32.mxu1 %v8899_v6  ;;  %v4468_v0 = vld [vmem:[%s14041_s20 + $0x830] sm:$0xff]  ;;  %v3247_v29 = vld [vmem:[#allocation2 + $0xc0] sm:$0xf]  ;;  %v4519_v12 = vld [vmem:[%s14041_s20 + $0x9c8] sm:$0xff]  ;;  %3950 = vst [vmem:[#allocation3 + $0x340] sm:$0xff] %v3920_v32 }
 0x940   :  { %v4504_v16 = vld [vmem:[%s14041_s20 + $0x950] sm:$0xff]  ;;  %v4467_v31 = vld [vmem:[%s14041_s20 + $0x828] sm:$0xff]  ;;  %3949 = vst [vmem:[#allocation3 + $0x348] sm:$0xff] %v3918_v61  ;;  %3262 = vst [vmem:[#allocation3 + $0x148] sm:$0xf] %v3247_v29  ;;  %7806 = vmatpush3.msra.mxu0 %v4468_v0 }
 0x941   :  { %v8900_v26 = vld [vmem:[#allocation3 + $0x178] sm:$0xff]  ;;  %v3952_v56 = vld [vmem:[#allocation2 + $0xd8] sm:$0xf0]  ;;  %7845 = vmatpush3.msra.mxu1 %v4504_v16  ;;  %v4503_v18 = vld [vmem:[%s14041_s20 + $0x948] sm:$0xff]  ;;  %7807 = vmatprep.subr.mxu0 %v4483_v37 }
 0x942   :  { %5717 = vmatprep.mubr.f32.mxu0 %v8900_v26  ;;  %v3241_v50 = vld [vmem:[#allocation2 + $0x90] sm:$0xff]  ;;  %3967 = vst [vmem:[#allocation3 + $0x148] sm:$0xf0] %v3952_v56  ;;  %v3246_v36 = vld [vmem:[#allocation2 + $0x100] sm:$0xf]  ;;  %7846 = vmatprep.subr.mxu1 %v4519_v12  ;;  %v3238_v43 = vld [vmem:[#allocation2 + $0x18] sm:$0xff] }
 0x943   :  { %3256 = vst [vmem:[#allocation3 + $0x8] sm:$0xff] %v3241_v50  ;;  %v3951_v27 = vld [vmem:[#allocation2 + $0x50] sm:$0xf0]  ;;  %v8901_v44 = vld [vmem:[#allocation3 + $0x5e8] sm:$0xff]  ;;  %3261 = vst [vmem:[#allocation3 + $0x290] sm:$0xf] %v3246_v36  ;;  %7808 = vmatpush3.msra.mxu0 %v4467_v31  ;;  %7847 = vmatpush3.msra.mxu1 %v4503_v18 }
 0x944   :  { %5643 = vmatmul.mubr.f32.gmra.mxu1 %v8901_v44  ;;  %v4482_v3 = vld [vmem:[%s14041_s20 + $0x8a0] sm:$0xff]  ;;  %3966 = vst [vmem:[#allocation3 + $0x290] sm:$0xf0] %v3951_v27  ;;  %v8902_v20 = vld [vmem:[#allocation3 + $0x358] sm:$0xff]  ;;  %v4481_v5 = vld [vmem:[%s14041_s20 + $0x898] sm:$0xff] }
 0x945   :  { %v4518_v63 = vld [vmem:[%s14041_s20 + $0x9c0] sm:$0xff]  ;;  %5647 = vmatprep.mubr.f32.mxu1 %v8902_v20  ;;  %3253 = vst [vmem:[#allocation3 + $0x310] sm:$0xff] %v3238_v43  ;;  %7809 = vmatprep.subr.mxu0 %v4482_v3  ;;  %v4517_v21 = vld [vmem:[%s14041_s20 + $0x9b8] sm:$0xff]  ;;  %v4480_v48 = vld [vmem:[%s14041_s20 + $0x890] sm:$0xff] }
 0x946   :  { %v4466_v15 = vld [vmem:[%s14041_s20 + $0x820] sm:$0xff]  ;;  %7848 = vmatprep.subr.mxu1 %v4518_v63  ;;  %v4465_v57 = vld [vmem:[%s14041_s20 + $0x818] sm:$0xff]  ;;  %v8903_v39 = vld [vmem:[#allocation3 + $0x510] sm:$0xff] }
 0x947   :  { %v4502_v46 = vld [vmem:[%s14041_s20 + $0x940] sm:$0xff]  ;;  %v3962_v34 = vld [vmem:[#allocation2 + $0xf8] sm:$0xff]  ;;  %7810 = vmatpush3.msra.mxu0 %v4466_v15  ;;  %v4516_v19 = vld [vmem:[%s14041_s20 + $0x9b0] sm:$0xff] }
 0x948   :  { %v3243_v23 = vld [vmem:[#allocation2 + $0x20] sm:$0xff]  ;;  %7849 = vmatpush3.msra.mxu1 %v4502_v46  ;;  %v4501_v49 = vld [vmem:[%s14041_s20 + $0x938] sm:$0xff]  ;;  %3977 = vst [vmem:[#allocation3 + $0x538] sm:$0xff] %v3962_v34  ;;  %7811 = vmatprep.subr.mxu0 %v4481_v5  ;;  %v4464_v35 = vld [vmem:[%s14041_s20 + $0x810] sm:$0xff] }
 0x949   :  { %3258 = vst [vmem:[#allocation3 + $0x690] sm:$0xff] %v3243_v23  ;;  %v3249_v58 = vld [vmem:[#allocation2 + $0x98] sm:$0xf]  ;;  %5648 = vmatmul.mubr.f32.gmra.mxu1 %v8903_v39  ;;  %v3954_v55 = vld [vmem:[#allocation2 + $0xa0] sm:$0xf0]  ;;  %7850 = vmatprep.subr.mxu1 %v4517_v21  ;;  %v4500_v62 = vld [vmem:[%s14041_s20 + $0x930] sm:$0xff] }
 0x94a   :  { %3264 = vst [vmem:[#allocation3 + $0x4c8] sm:$0xf] %v3249_v58  ;;  %v3961_v7 = vld [vmem:[#allocation2 + $0x60] sm:$0xff]  ;;  %7812 = vmatpush3.msra.mxu0 %v4465_v57  ;;  %3969 = vst [vmem:[#allocation3 + $0x4c8] sm:$0xf0] %v3954_v55  ;;  %7851 = vmatpush3.msra.mxu1 %v4501_v49  ;;  %v8904_v54 = vld [vmem:[#allocation3 + $0x58] sm:$0xff] }
 0x94b   :  { %3976 = vst [vmem:[#allocation3 + $0x3c8] sm:$0xff] %v3961_v7  ;;  %5807 = vmatprep.mubr.f32.mxu1 %v8904_v54  ;;  %v4479_v41 = vld [vmem:[%s14041_s20 + $0x888] sm:$0xff]  ;;  %7813 = vmatprep.subr.mxu0 %v4480_v48  ;;  %v4478_v38 = vld [vmem:[%s14041_s20 + $0x880] sm:$0xff]  ;;  %v3953_v2 = vld [vmem:[#allocation2 + $0x58] sm:$0xf0] }
 0x94c   :  { %v4515_v47 = vld [vmem:[%s14041_s20 + $0x9a8] sm:$0xff]  ;;  %7852 = vmatprep.subr.mxu1 %v4516_v19  ;;  %7814 = vmatpush3.msra.mxu0 %v4464_v35  ;;  %v4514_v22 = vld [vmem:[%s14041_s20 + $0x9a0] sm:$0xff]  ;;  %3968 = vst [vmem:[#allocation3 + $0x420] sm:$0xf0] %v3953_v2  ;;  %v3958_v51 = vld [vmem:[#allocation2 + $0x38] sm:$0xff] }
 0x94d   :  { %v4463_v52 = vld [vmem:[%s14041_s20 + $0x808] sm:$0xff]  ;;  %7853 = vmatpush3.msra.mxu1 %v4500_v62  ;;  %7815 = vmatprep.subr.mxu0 %v4479_v41  ;;  %v4462_v40 = vld [vmem:[%s14041_s20 + $0x800] sm:$0xff]  ;;  %v4513_v4 = vld [vmem:[%s14041_s20 + $0x998] sm:$0xff]  ;;  %3973 = vst [vmem:[#allocation3 + $0xb8] sm:$0xff] %v3958_v51 }
 0x94e   :  { %v4499_v28 = vld [vmem:[%s14041_s20 + $0x928] sm:$0xff]  ;;  %7854 = vmatprep.subr.mxu1 %v4515_v47  ;;  %v4498_v30 = vld [vmem:[%s14041_s20 + $0x920] sm:$0xff]  ;;  %7816 = vmatpush3.msra.mxu0 %v4463_v52  ;;  %v3964_v59 = vld [vmem:[#allocation2 + $0x78] sm:$0xff] }
 0x94f   :  { %v3248_v14 = vld [vmem:[#allocation2 + $0x88] sm:$0xf]  ;;  %7855 = vmatpush3.msra.mxu1 %v4499_v28  ;;  %7817 = vmatprep.subr.mxu0 %v4478_v38  ;;  %v4557_v17 = vld [vmem:[%s14041_s20 + $0xaf8] sm:$0xff]  ;;  %3979 = vst [vmem:[#allocation3 + $0x208] sm:$0xff] %v3964_v59  ;;  %v3240_v13 = vld [vmem:[#allocation2 + $0x110] sm:$0xff] }
 0x950   :  { %3263 = vst [vmem:[#allocation3 + $0x420] sm:$0xf] %v3248_v14  ;;  %v3963_v9 = vld [vmem:[#allocation2 + $0xa8] sm:$0xff]  ;;  %7856 = vmatprep.subr.mxu1 %v4514_v22  ;;  %7818 = vmatpush3.msra.mxu0 %v4462_v40  ;;  %v4497_v33 = vld [vmem:[%s14041_s20 + $0x918] sm:$0xff]  ;;  %3255 = vst [vmem:[#allocation3 + $0x520] sm:$0xff] %v3240_v13 }
 0x951   :  { %3978 = vst [vmem:[#allocation3 + $0x2a0] sm:$0xff] %v3963_v9  ;;  %7857 = vmatpush3.msra.mxu1 %v4498_v30  ;;  %v4541_v53 = vld [vmem:[%s14041_s20 + $0xa78] sm:$0xff]  ;;  %v3245_v42 = vld [vmem:[#allocation2 + $0x70] sm:$0xff]  ;;  %v3250_v60 = vld [vmem:[#allocation2 + $0x28] sm:$0xf]  ;;  %7881 = vmatprep.subr.mxu0 %v4557_v17  ;;  %v12594_v30 = vpop.f32.mrf.mxu0 }
 0x952   :  { %v8905_v11 = vld [vmem:[#allocation3 + $0x240] sm:$0xff]  ;;  %7858 = vmatprep.subr.mxu1 %v4513_v4  ;;  %v4512_v8 = vld [vmem:[%s14041_s20 + $0x990] sm:$0xff]  ;;  %3260 = vst [vmem:[#allocation3 + $0x448] sm:$0xff] %v3245_v42  ;;  %v8906_v24 = vld [vmem:[#allocation3 + $0x330] sm:$0xff] }
 0x953   :  { %5718 = vmatmul.mubr.f32.vlgmr.msra.gmra.mxu0 %v8905_v11  ;;  %v4556_v10 = vld [vmem:[%s14041_s20 + $0xaf0] sm:$0xff]  ;;  %3265 = vst [vmem:[#allocation3 + $0x4a8] sm:$0xf] %v3250_v60  ;;  %v3955_v6 = vld [vmem:[#allocation2 + $0x40] sm:$0xf0]  ;;  %7859 = vmatpush3.msra.mxu1 %v4497_v33  ;;  %v4511_v0 = vld [vmem:[%s14041_s20 + $0x988] sm:$0xff]  ;;  %v7444_v9 = vpop.f32.mrf.mxu0 }
 0x954   :  { %5722 = vmatprep.mubr.f32.mxu0 %v8906_v24  ;;  %v4496_v25 = vld [vmem:[%s14041_s20 + $0x910] sm:$0xff]  ;;  %7882 = vmatpush3.msra.mxu0 %v4541_v53  ;;  %3970 = vst [vmem:[#allocation3 + $0x4a8] sm:$0xf0] %v3955_v6  ;;  %v3965_v16 = vld [vmem:[#allocation2 + $0xe0] sm:$0xff]  ;;  %v4555_v45 = vld [vmem:[%s14041_s20 + $0xae8] sm:$0xff] }
 0x955   :  { %v4540_v1 = vld [vmem:[%s14041_s20 + $0xa70] sm:$0xff]  ;;  %7860 = vmatprep.subr.mxu1 %v4512_v8  ;;  %7883 = vmatprep.subr.mxu0 %v4556_v10  ;;  %3980 = vst [vmem:[#allocation3 + $0x398] sm:$0xff] %v3965_v16  ;;  %v4495_v26 = vld [vmem:[%s14041_s20 + $0x908] sm:$0xff]  ;;  %v4088_v61 = vld [vmem:[#allocation3 + $0xe8] sm:$0xff]  ;;  %v12614_v11 = vpop.f32.mrf.mxu0 }
 0x956   :  { %7861 = vmatpush3.msra.mxu1 %v4496_v25  ;;  %7884 = vmatpush3.msra.mxu0 %v4540_v1  ;;  %v4539_v37 = vld [vmem:[%s14041_s20 + $0xa68] sm:$0xff]  ;;  %v4510_v50 = vld [vmem:[%s14041_s20 + $0x980] sm:$0xff]  ;;  %v4553_v56 = vld [vmem:[%s14041_s20 + $0xad8] sm:$0xff] }
 0x957   :  { %v8907_v32 = vld [vmem:[#allocation3 + $0x5f0] sm:$0xff]  ;;  %7862 = vmatprep.subr.mxu1 %v4511_v0  ;;  %v4554_v29 = vld [vmem:[%s14041_s20 + $0xae0] sm:$0xff]  ;;  %7885 = vmatprep.subr.mxu0 %v4555_v45  ;;  %v4589_v18 = vld [vmem:[%s14041_s20 + $0xbf8] sm:$0xff]  ;;  %v7447_v25 = vpop.f32.mrf.mxu0 }
 0x958   :  { %5723 = vmatmul.mubr.f32.gmra.mxu0 %v8907_v32  ;;  %v4494_v12 = vld [vmem:[%s14041_s20 + $0x900] sm:$0xff]  ;;  %7863 = vmatpush3.msra.mxu1 %v4495_v26  ;;  %v8908_v27 = vld [vmem:[#allocation3 + $0x30] sm:$0xff]  ;;  %v4537_v44 = vld [vmem:[%s14041_s20 + $0xa58] sm:$0xff] }
 0x959   :  { %5727 = vmatprep.mubr.f32.mxu0 %v4088_v61  ;;  %v4538_v31 = vld [vmem:[%s14041_s20 + $0xa60] sm:$0xff]  ;;  %7886 = vmatpush3.msra.mxu0 %v4539_v37  ;;  %v4573_v3 = vld [vmem:[%s14041_s20 + $0xb78] sm:$0xff]  ;;  %v4552_v63 = vld [vmem:[%s14041_s20 + $0xad0] sm:$0xff]  ;;  %v12646_v61 = vpop.f32.mrf.mxu0 }
 0x95a   :  { %7864 = vmatprep.subr.mxu1 %v4510_v50  ;;  %7887 = vmatprep.subr.mxu0 %v4554_v29  ;;  %v4087_v36 = vld [vmem:[#allocation3 + $0x1e8] sm:$0xff]  ;;  %v4588_v20 = vld [vmem:[%s14041_s20 + $0xbf0] sm:$0xff]  ;;  %v8910_v46 = vld [vmem:[#allocation3 + $0x650] sm:$0xff] }
 0x95b   :  { %7865 = vmatpush3.msra.mxu1 %v4494_v12  ;;  %7888 = vmatpush3.msra.mxu0 %v4538_v31  ;;  %v8909_v15 = vld [vmem:[#allocation3 + $0x578] sm:$0xff]  ;;  %v4551_v23 = vld [vmem:[%s14041_s20 + $0xac8] sm:$0xff]  ;;  %v4550_v39 = vld [vmem:[%s14041_s20 + $0xac0] sm:$0xff] }
 0x95c   :  { %5728 = vmatmul.mubr.f32.gmra.mxu0 %v4087_v36  ;;  %5808 = vmatmul.mubr.f32.vlgmr.msra.gmra.mxu1 %v8908_v27  ;;  %v4536_v43 = vld [vmem:[%s14041_s20 + $0xa50] sm:$0xff]  ;;  %v4587_v21 = vld [vmem:[%s14041_s20 + $0xbe8] sm:$0xff]  ;;  %v4586_v19 = vld [vmem:[%s14041_s20 + $0xbe0] sm:$0xff] }
 0x95d   :  { %7889 = vmatprep.subr.mxu0 %v4553_v56  ;;  %7928 = vmatprep.subr.mxu1 %v4589_v18  ;;  %v4572_v5 = vld [vmem:[%s14041_s20 + $0xb70] sm:$0xff]  ;;  %v8911_v57 = vld [vmem:[#allocation3 + $0x450] sm:$0xff]  ;;  %v8913_v55 = vld [vmem:[#allocation3 + $0x468] sm:$0xff]  ;;  %v12660_v18 = vpop.f32.mrf.mxu0 }
 0x95e   :  { %5732 = vmatprep.mubr.f32.mxu0 %v8909_v15  ;;  %5812 = vmatprep.mubr.f32.mxu1 %v8910_v46  ;;  %v8912_v34 = vld [vmem:[#allocation3 + $0xd0] sm:$0xff]  ;;  %v4090_v58 = vld [vmem:[#allocation3 + $0x338] sm:$0xff]  ;;  %v4534_v7 = vld [vmem:[%s14041_s20 + $0xa40] sm:$0xff] }
 0x95f   :  { %7890 = vmatpush3.msra.mxu0 %v4537_v44  ;;  %7929 = vmatpush3.msra.mxu1 %v4573_v3  ;;  %v4535_v49 = vld [vmem:[%s14041_s20 + $0xa48] sm:$0xff]  ;;  %v4570_v35 = vld [vmem:[%s14041_s20 + $0xb60] sm:$0xff]  ;;  %v4549_v62 = vld [vmem:[%s14041_s20 + $0xab8] sm:$0xff] }
 0x960   :  { %7891 = vmatprep.subr.mxu0 %v4552_v63  ;;  %7930 = vmatprep.subr.mxu1 %v4588_v20  ;;  %v4571_v48 = vld [vmem:[%s14041_s20 + $0xb68] sm:$0xff]  ;;  %v4585_v54 = vld [vmem:[%s14041_s20 + $0xbd8] sm:$0xff]  ;;  %v4548_v14 = vld [vmem:[%s14041_s20 + $0xab0] sm:$0xff]  ;;  %v7445_v63 = vadd.f32 %v7444_v9, %v12594_v30  ;;  %v12675_v20 = vpop.f32.mrf.mxu0 }
 0x961   :  { %7892 = vmatpush3.msra.mxu0 %v4536_v43  ;;  %7931 = vmatpush3.msra.mxu1 %v4572_v5  ;;  %v4089_v41 = vld [vmem:[#allocation3 + $0x6c0] sm:$0xff]  ;;  %v8914_v52 = vld [vmem:[#allocation3 + $0x550] sm:$0xff]  ;;  %v4584_v38 = vld [vmem:[%s14041_s20 + $0xbd0] sm:$0xff]  ;;  %v7490_v43 = vpop.f32.mrf.mxu1 }
 0x962   :  { %5733 = vmatmul.mubr.f32.gmra.mxu0 %v8911_v57  ;;  %5813 = vmatmul.mubr.f32.gmra.mxu1 %v8912_v34  ;;  %v4533_v47 = vld [vmem:[%s14041_s20 + $0xa38] sm:$0xff]  ;;  %v4532_v2 = vld [vmem:[%s14041_s20 + $0xa30] sm:$0xff]  ;;  %v4547_v4 = vld [vmem:[%s14041_s20 + $0xaa8] sm:$0xff]  ;;  %v7453_v34 = vpop.f32.mrf.mxu0 }
 0x963   :  { %7893 = vmatprep.subr.mxu0 %v4551_v23  ;;  %7932 = vmatprep.subr.mxu1 %v4587_v21  ;;  %v4569_v28 = vld [vmem:[%s14041_s20 + $0xb58] sm:$0xff]  ;;  %v4568_v40 = vld [vmem:[%s14041_s20 + $0xb50] sm:$0xff]  ;;  %v4583_v59 = vld [vmem:[%s14041_s20 + $0xbc8] sm:$0xff]  ;;  %v7491_v57 = vpop.f32.mrf.mxu1 }
 0x964   :  { %5737 = vmatprep.mubr.f32.mxu0 %v8913_v55  ;;  %5817 = vmatprep.mubr.f32.mxu1 %v4090_v58  ;;  %v8915_v22 = vld [vmem:[#allocation3 + $0xa0] sm:$0xff]  ;;  %v8916_v51 = vld [vmem:[#allocation3 + $0x298] sm:$0xff]  ;;  %v4531_v17 = vld [vmem:[%s14041_s20 + $0xa28] sm:$0xff]  ;;  %v7492_v55 = vadd.f32 %v7491_v57, %v7490_v43 }
 0x965   :  { %7894 = vmatpush3.msra.mxu0 %v4535_v49  ;;  %7933 = vmatpush3.msra.mxu1 %v4571_v48  ;;  %v4567_v13 = vld [vmem:[%s14041_s20 + $0xb48] sm:$0xff]  ;;  %v8917_v33 = vld [vmem:[#allocation3 + $0x248] sm:$0xff]  ;;  %v4545_v24 = vld [vmem:[%s14041_s20 + $0xa98] sm:$0xff] }
 0x966   :  { %7895 = vmatprep.subr.mxu0 %v4550_v39  ;;  %7934 = vmatprep.subr.mxu1 %v4586_v19  ;;  %v4546_v53 = vld [vmem:[%s14041_s20 + $0xaa0] sm:$0xff]  ;;  %v8918_v8 = vld [vmem:[#allocation3 + $0x1d0] sm:$0xff]  ;;  %v4581_v1 = vld [vmem:[%s14041_s20 + $0xbb8] sm:$0xff]  ;;  %v7448_v19 = vadd.f32 %v7447_v25, %v12614_v11 }
 0x967   :  { %7896 = vmatpush3.msra.mxu0 %v4534_v7  ;;  %7935 = vmatpush3.msra.mxu1 %v4570_v35  ;;  %v4582_v42 = vld [vmem:[%s14041_s20 + $0xbc0] sm:$0xff]  ;;  %v4529_v6 = vld [vmem:[%s14041_s20 + $0xa18] sm:$0xff]  ;;  %v8919_v16 = vld [vmem:[#allocation3 + $0x3f8] sm:$0xff] }
 0x968   :  { %5738 = vmatmul.mubr.f32.gmra.mxu0 %v8914_v52  ;;  %5818 = vmatmul.mubr.f32.gmra.mxu1 %v4089_v41  ;;  %v4530_v10 = vld [vmem:[%s14041_s20 + $0xa20] sm:$0xff]  ;;  %v4565_v0 = vld [vmem:[%s14041_s20 + $0xb38] sm:$0xff]  ;;  %v4544_v45 = vld [vmem:[%s14041_s20 + $0xa90] sm:$0xff] }
 0x969   :  { %7897 = vmatprep.subr.mxu0 %v4549_v62  ;;  %7936 = vmatprep.subr.mxu1 %v4585_v54  ;;  %v4566_v60 = vld [vmem:[%s14041_s20 + $0xb40] sm:$0xff]  ;;  %v4580_v26 = vld [vmem:[%s14041_s20 + $0xbb0] sm:$0xff]  ;;  %v4543_v29 = vld [vmem:[%s14041_s20 + $0xa88] sm:$0xff]  ;;  %v7493_v54 = vpop.f32.mrf.mxu1 }
 0x96a   :  { %5822 = vmatprep.mubr.f32.mxu1 %v8915_v22  ;;  %7898 = vmatpush3.msra.mxu0 %v4533_v47  ;;  %v4528_v37 = vld [vmem:[%s14041_s20 + $0xa10] sm:$0xff]  ;;  %v8920_v50 = vld [vmem:[#allocation3 + $0x2e8] sm:$0xff]  ;;  %v4579_v12 = vld [vmem:[%s14041_s20 + $0xba8] sm:$0xff] }
 0x96b   :  { %5897 = vmatprep.mubr.f32.mxu0 %v8916_v51  ;;  %7937 = vmatpush3.msra.mxu1 %v4569_v28  ;;  %v4564_v32 = vld [vmem:[%s14041_s20 + $0xb30] sm:$0xff]  ;;  %v4527_v31 = vld [vmem:[%s14041_s20 + $0xa08] sm:$0xff]  ;;  %v4542_v36 = vld [vmem:[%s14041_s20 + $0xa80] sm:$0xff]  ;;  %v7494_v28 = vpop.f32.mrf.mxu1 }
 0x96c   :  { %7899 = vmatprep.subr.mxu0 %v4548_v14  ;;  %7938 = vmatprep.subr.mxu1 %v4584_v38  ;;  %v4563_v56 = vld [vmem:[%s14041_s20 + $0xb28] sm:$0xff]  ;;  %v4578_v27 = vld [vmem:[%s14041_s20 + $0xba0] sm:$0xff]  ;;  %v4577_v15 = vld [vmem:[%s14041_s20 + $0xb98] sm:$0xff]  ;;  %v7455_v14 = vpop.f32.mrf.mxu0 }
 0x96d   :  { %7900 = vmatpush3.msra.mxu0 %v4532_v2  ;;  %7939 = vmatpush3.msra.mxu1 %v4568_v40  ;;  %v4526_v44 = vld [vmem:[%s14041_s20 + $0xa00] sm:$0xff]  ;;  %v4621_v5 = vld [vmem:[%s14041_s20 + $0xcf8] sm:$0xff]  ;;  %v4576_v48 = vld [vmem:[%s14041_s20 + $0xb90] sm:$0xff]  ;;  %v7495_v40 = vadd.f32 %v7494_v28, %v7493_v54  ;;  %v7496_v11 = vpop.f32.mrf.mxu1 }
 0x96e   :  { %5823 = vmatmul.mubr.f32.gmra.mxu1 %v8917_v33  ;;  %7901 = vmatprep.subr.mxu0 %v4547_v4  ;;  %v4562_v3 = vld [vmem:[%s14041_s20 + $0xb20] sm:$0xff]  ;;  %v4561_v23 = vld [vmem:[%s14041_s20 + $0xb18] sm:$0xff]  ;;  %v4620_v58 = vld [vmem:[%s14041_s20 + $0xcf0] sm:$0xff]  ;;  %v7456_v9 = vpop.f32.mrf.mxu0  ;;  %v7451_v33 = vadd.f32 %v12660_v18, %v12646_v61 }
 0x96f   :  { %7940 = vmatprep.subr.mxu1 %v4583_v59  ;;  %5827 = vmatprep.mubr.f32.mxu1 %v8918_v8  ;;  %v12683_v46 = vld [vmem:[%s14042_s21] ss:$0 sm:$0xff]  ;;  %v4605_v21 = vld [vmem:[%s14041_s20 + $0xc78] sm:$0xff]  ;;  %v8922_v7 = vld [vmem:[#allocation3 + $0x610] sm:$0xff] }
 0x970   :  { %7902 = vmatpush3.msra.mxu0 %v4531_v17  ;;  %7941 = vmatpush3.msra.mxu1 %v4567_v13  ;;  %v8921_v49 = vld [vmem:[#allocation3 + $0x588] sm:$0xff]  ;;  %v5000_v39 = vadd.f32 %v7445_v63, %v12683_v46  ;;  %v4560_v35 = vld [vmem:[%s14041_s20 + $0xb10] sm:$0xff]  ;;  %v4575_v41 = vld [vmem:[%s14041_s20 + $0xb88] sm:$0xff]  ;;  %v5005_v2 = vadd.f32 %v7448_v19, %v12683_v46 }
 0x971   :  { %7903 = vmatprep.subr.mxu0 %v4546_v53  ;;  %7942 = vmatprep.subr.mxu1 %v4582_v42  ;;  %v4604_v62 = vld [vmem:[%s14041_s20 + $0xc70] sm:$0xff]  ;;  %v4619_v52 = vld [vmem:[%s14041_s20 + $0xce8] sm:$0xff]  ;;  %v8923_v30 = vld [vmem:[#allocation3 + $0x5a0] sm:$0xff]  ;;  %v12739_v42 = vadd.f32 %v7456_v9, %v7455_v14 }
 0x972   :  { %7904 = vmatpush3.msra.mxu0 %v4530_v10  ;;  %7943 = vmatpush3.msra.mxu1 %v4566_v60  ;;  %v12711_v47 = vadd.f32 %v7492_v55, %v5000_v39  ;;  %v4559_v38 = vld [vmem:[%s14041_s20 + $0xb08] sm:$0xff]  ;;  %v4574_v4 = vld [vmem:[%s14041_s20 + $0xb80] sm:$0xff]  ;;  %v12737_v53 = vadd.f32 %v7495_v40, %v5005_v2  ;;  %v4617_v8 = vld [vmem:[%s14041_s20 + $0xcd8] sm:$0xff] }
 0x973   :  { %5828 = vmatmul.mubr.f32.gmra.mxu1 %v8919_v16  ;;  %7905 = vmatprep.subr.mxu0 %v4545_v24  ;;  %v4603_v22 = vld [vmem:[%s14041_s20 + $0xc68] sm:$0xff]  ;;  %v4618_v59 = vld [vmem:[%s14041_s20 + $0xce0] sm:$0xff]  ;;  %v4653_v10 = vld [vmem:[%s14041_s20 + $0xdf8] sm:$0xff]  ;;  %v7497_v24 = vpop.f32.mrf.mxu1  ;;  %v7454_v16 = vadd.f32 %v7453_v34, %v12675_v20  ;;  %v5020_v39 = vadd.f32 %v12739_v42, %v12683_v46 }
 0x974   :  { %7944 = vmatprep.subr.mxu1 %v4581_v1  ;;  %7906 = vmatpush3.msra.mxu0 %v4529_v6  ;;  %v4092_v51 = vld [vmem:[#allocation3 + $0x50] sm:$0xff]  ;;  %v4558_v17 = vld [vmem:[%s14041_s20 + $0xb00] sm:$0xff]  ;;  %v4091_v60 = vld [vmem:[#allocation3 + $0x318] sm:$0xff] }
 0x975   :  { %7945 = vmatpush3.msra.mxu1 %v4565_v0  ;;  %5987 = vmatprep.mubr.f32.mxu1 %v8920_v50  ;;  %v4602_v13 = vld [vmem:[%s14041_s20 + $0xc60] sm:$0xff]  ;;  %v8924_v25 = vld [vmem:[#allocation3 + $0xb0] sm:$0xff]  ;;  %v4601_v1 = vld [vmem:[%s14041_s20 + $0xc58] sm:$0xff]  ;;  %v5010_v0 = vadd.f32 %v7451_v33, %v12683_v46 }
 0x976   :  { %7907 = vmatprep.subr.mxu0 %v4544_v45  ;;  %7946 = vmatprep.subr.mxu1 %v4580_v26  ;;  %v4637_v6 = vld [vmem:[%s14041_s20 + $0xd78] sm:$0xff]  ;;  %v7498_v45 = vadd.f32 %v7497_v24, %v7496_v11  ;;  %v4616_v26 = vld [vmem:[%s14041_s20 + $0xcd0] sm:$0xff]  ;;  %v8925_v61 = vld [vmem:[#allocation3 + $0x4e8] sm:$0xff] }
 0x977   :  { %7908 = vmatpush3.msra.mxu0 %v4528_v37  ;;  %7947 = vmatpush3.msra.mxu1 %v4564_v32  ;;  %v4652_v37 = vld [vmem:[%s14041_s20 + $0xdf0] sm:$0xff]  ;;  %v7499_v32 = vpop.f32.mrf.mxu1  ;;  %v8926_v50 = vld [vmem:[#allocation3 + $0x540] sm:$0xff]  ;;  %v4615_v18 = vld [vmem:[%s14041_s20 + $0xcc8] sm:$0xff]  ;;  %v7537_v2 = vpop.f32.mrf.mxu0 }
 0x978   :  { %7909 = vmatprep.subr.mxu0 %v4543_v29  ;;  %7948 = vmatprep.subr.mxu1 %v4579_v12  ;;  %v4600_v29 = vld [vmem:[%s14041_s20 + $0xc50] sm:$0xff]  ;;  %v8928_v63 = vld [vmem:[#allocation3 + $0x280] sm:$0xff]  ;;  %v4599_v20 = vld [vmem:[%s14041_s20 + $0xc48] sm:$0xff] }
 0x979   :  { %7910 = vmatpush3.msra.mxu0 %v4527_v31  ;;  %7949 = vmatpush3.msra.mxu1 %v4563_v56  ;;  %v4636_v12 = vld [vmem:[%s14041_s20 + $0xd70] sm:$0xff]  ;;  %v12767_v31 = vadd.f32 %v7498_v45, %v5010_v0  ;;  %v7500_v56 = vpop.f32.mrf.mxu1  ;;  %v4650_v57 = vld [vmem:[%s14041_s20 + $0xde0] sm:$0xff]  ;;  %v8929_v34 = vld [vmem:[#allocation3 + $0x1a0] sm:$0xff] }
 0x97a   :  { %7911 = vmatprep.subr.mxu0 %v4542_v36  ;;  %7950 = vmatprep.subr.mxu1 %v4578_v27  ;;  %v4651_v36 = vld [vmem:[%s14041_s20 + $0xde8] sm:$0xff]  ;;  %v5015_v27 = vadd.f32 %v7454_v16, %v12683_v46  ;;  %v4613_v55 = vld [vmem:[%s14041_s20 + $0xcb8] sm:$0xff]  ;;  %v4648_v28 = vld [vmem:[%s14041_s20 + $0xdd0] sm:$0xff] }
 0x97b   :  { %7912 = vmatpush3.msra.mxu0 %v4526_v44  ;;  %7951 = vmatpush3.msra.mxu1 %v4562_v3  ;;  %v7501_v44 = vadd.f32 %v7500_v56, %v7499_v32  ;;  %v8927_v3 = vld [vmem:[#allocation3 + $0x438] sm:$0xff]  ;;  %v8930_v46 = vld [vmem:[#allocation3 + $0x2d0] sm:$0xff]  ;;  %v8931_v14 = vld [vmem:[#allocation3 + $0x60] sm:$0xff] }
 0x97c   :  { %5898 = vmatmul.mubr.f32.vlgmr.msra.gmra.mxu0 %v8921_v49  ;;  %7952 = vmatprep.subr.mxu1 %v4577_v15  ;;  %v4635_v15 = vld [vmem:[%s14041_s20 + $0xd68] sm:$0xff]  ;;  %v4598_v49 = vld [vmem:[%s14041_s20 + $0xc40] sm:$0xff]  ;;  %v4592_v32 = vld [vmem:[%s14041_s20 + $0xc10] sm:$0xff] }
 0x97d   :  { %7975 = vmatprep.subr.mxu0 %v4621_v5  ;;  %5902 = vmatprep.mubr.f32.mxu0 %v8922_v7  ;;  %v12782_v43 = vadd.f32 %v7501_v44, %v5015_v27  ;;  %v7502_v5 = vpop.f32.mrf.mxu1  ;;  %v4649_v7 = vld [vmem:[%s14041_s20 + $0xdd8] sm:$0xff]  ;;  %v8932_v40 = vld [vmem:[#allocation3 + $0x608] sm:$0xff]  ;;  %v4631_v9 = vld [vmem:[%s14041_s20 + $0xd48] sm:$0xff] }
 0x97e   :  { %7953 = vmatpush3.msra.mxu1 %v4561_v23  ;;  %7976 = vmatpush3.msra.mxu0 %v4605_v21  ;;  %v4094_v23 = vld [vmem:[#allocation3 + $0x470] sm:$0xff]  ;;  %v4614_v21 = vld [vmem:[%s14041_s20 + $0xcc0] sm:$0xff] }
 0x97f   :  { %7954 = vmatprep.subr.mxu1 %v4576_v48  ;;  %7977 = vmatprep.subr.mxu0 %v4620_v58  ;;  %v4634_v48 = vld [vmem:[%s14041_s20 + $0xd60] sm:$0xff]  ;;  %v7503_v58 = vpop.f32.mrf.mxu1  ;;  %v8934_v11 = vld [vmem:[#allocation3 + $0x410] sm:$0xff] }
 0x980   :  { %7955 = vmatpush3.msra.mxu1 %v4560_v35  ;;  %7978 = vmatpush3.msra.mxu0 %v4604_v62  ;;  %v7504_v19 = vadd.f32 %v7503_v58, %v7502_v5  ;;  %v4093_v35 = vld [vmem:[#allocation3 + $0x238] sm:$0xff]  ;;  %v4597_v62 = vld [vmem:[%s14041_s20 + $0xc38] sm:$0xff]  ;;  %v4610_v33 = vld [vmem:[%s14041_s20 + $0xca0] sm:$0xff] }
 0x981   :  { %5903 = vmatmul.mubr.f32.gmra.mxu0 %v8923_v30  ;;  %7956 = vmatprep.subr.mxu1 %v4575_v41  ;;  %v4633_v41 = vld [vmem:[%s14041_s20 + $0xd58] sm:$0xff]  ;;  %v4611_v30 = vld [vmem:[%s14041_s20 + $0xca8] sm:$0xff]  ;;  %v4646_v42 = vld [vmem:[%s14041_s20 + $0xdc0] sm:$0xff] }
 0x982   :  { %7979 = vmatprep.subr.mxu0 %v4619_v52  ;;  %5907 = vmatprep.mubr.f32.mxu0 %v4092_v51  ;;  %v12807_v54 = vadd.f32 %v7504_v19, %v5020_v39  ;;  %v4612_v52 = vld [vmem:[%s14041_s20 + $0xcb0] sm:$0xff]  ;;  %v4647_v51 = vld [vmem:[%s14041_s20 + $0xdc8] sm:$0xff]  ;;  %v4625_v19 = vld [vmem:[%s14041_s20 + $0xd18] sm:$0xff] }
 0x983   :  { %7957 = vmatpush3.msra.mxu1 %v4559_v38  ;;  %7980 = vmatpush3.msra.mxu0 %v4603_v22  ;;  %v4596_v38 = vld [vmem:[%s14041_s20 + $0xc30] sm:$0xff]  ;;  %v8935_v45 = vld [vmem:[#allocation3 + $0x1f0] sm:$0xff] }
 0x984   :  { %7958 = vmatprep.subr.mxu1 %v4574_v4  ;;  %7981 = vmatprep.subr.mxu0 %v4618_v59  ;;  %v4632_v22 = vld [vmem:[%s14041_s20 + $0xd50] sm:$0xff]  ;;  %v7538_v4 = vpop.f32.mrf.mxu0  ;;  %v4595_v59 = vld [vmem:[%s14041_s20 + $0xc28] sm:$0xff] }
 0x985   :  { %7959 = vmatpush3.msra.mxu1 %v4558_v17  ;;  %7982 = vmatpush3.msra.mxu0 %v4602_v13  ;;  %v7539_v17 = vadd.f32 %v7538_v4, %v7537_v2  ;;  %v8933_v13 = vld [vmem:[#allocation3 + $0x618] sm:$0xff]  ;;  %v8936_v56 = vld [vmem:[#allocation3 + $0x1b0] sm:$0xff] }
 0x986   :  { %5908 = vmatmul.mubr.f32.gmra.mxu0 %v4091_v60  ;;  %5988 = vmatmul.mubr.f32.vlgmr.msra.gmra.mxu1 %v8924_v25  ;;  %v7540_v24 = vpop.f32.mrf.mxu0  ;;  %v4609_v25 = vld [vmem:[%s14041_s20 + $0xc98] sm:$0xff]  ;;  %v4591_v27 = vld [vmem:[%s14041_s20 + $0xc08] sm:$0xff] }
 0x987   :  { %7983 = vmatprep.subr.mxu0 %v4617_v8  ;;  %8022 = vmatprep.subr.mxu1 %v4653_v10  ;;  %v4594_v8 = vld [vmem:[%s14041_s20 + $0xc20] sm:$0xff]  ;;  %v5180_v60 = vadd.f32 %v7539_v17, %v12711_v47  ;;  %v4629_v47 = vld [vmem:[%s14041_s20 + $0xd38] sm:$0xff]  ;;  %v4683_v2 = vld [vmem:[%s14041_s20 + $0xee8] sm:$0xff] }
 0x988   :  { %5912 = vmatprep.mubr.f32.mxu0 %v8925_v61  ;;  %5992 = vmatprep.mubr.f32.mxu1 %v8926_v50  ;;  %v4630_v10 = vld [vmem:[%s14041_s20 + $0xd40] sm:$0xff]  ;;  %v7541_v0 = vpop.f32.mrf.mxu0  ;;  %v4628_v61 = vld [vmem:[%s14041_s20 + $0xd30] sm:$0xff]  ;;  %v4667_v4 = vld [vmem:[%s14041_s20 + $0xe68] sm:$0xff] }
 0x989   :  { %7984 = vmatpush3.msra.mxu0 %v4601_v1  ;;  %8023 = vmatpush3.msra.mxu1 %v4637_v6  ;;  %v4645_v1 = vld [vmem:[%s14041_s20 + $0xdb8] sm:$0xff]  ;;  %v7542_v16 = vadd.f32 %v7541_v0, %v7540_v24  ;;  %v8939_v17 = vld [vmem:[#allocation3 + $0x598] sm:$0xff] }
 0x98a   :  { %7985 = vmatprep.subr.mxu0 %v4616_v26  ;;  %8024 = vmatprep.subr.mxu1 %v4652_v37  ;;  %v4593_v6 = vld [vmem:[%s14041_s20 + $0xc18] sm:$0xff]  ;;  %v4608_v26 = vld [vmem:[%s14041_s20 + $0xc90] sm:$0xff] }
 0x98b   :  { %7986 = vmatpush3.msra.mxu0 %v4600_v29  ;;  %8025 = vmatpush3.msra.mxu1 %v4636_v12  ;;  %v4644_v37 = vld [vmem:[%s14041_s20 + $0xdb0] sm:$0xff]  ;;  %v5185_v50 = vadd.f32 %v7542_v16, %v12737_v53  ;;  %v7543_v29 = vpop.f32.mrf.mxu0  ;;  %v7584_v12 = vpop.f32.mrf.mxu1  ;;  %v4627_v53 = vld [vmem:[%s14041_s20 + $0xd28] sm:$0xff]  ;;  %v8940_v16 = vld [vmem:[#allocation3 + $0x600] sm:$0xff] }
 0x98c   :  { %5913 = vmatmul.mubr.f32.gmra.mxu0 %v8927_v3  ;;  %5993 = vmatmul.mubr.f32.gmra.mxu1 %v8928_v63  ;;  %v4606_v63 = vld [vmem:[%s14041_s20 + $0xc80] sm:$0xff] }
 0x98d   :  { %7987 = vmatprep.subr.mxu0 %v4615_v18  ;;  %8026 = vmatprep.subr.mxu1 %v4651_v36  ;;  %v4607_v18 = vld [vmem:[%s14041_s20 + $0xc88] sm:$0xff]  ;;  %v7544_v44 = vpop.f32.mrf.mxu0  ;;  %v7585_v3 = vpop.f32.mrf.mxu1 }
 0x98e   :  { %5917 = vmatprep.mubr.f32.mxu0 %v8929_v34  ;;  %5997 = vmatprep.mubr.f32.mxu1 %v4094_v23  ;;  %v4643_v36 = vld [vmem:[%s14041_s20 + $0xda8] sm:$0xff]  ;;  %v7586_v5 = vadd.f32 %v7585_v3, %v7584_v12  ;;  %v4590_v23 = vld [vmem:[%s14041_s20 + $0xc00] sm:$0xff]  ;;  %v4700_v12 = vld [vmem:[%s14041_s20 + $0xf70] sm:$0xff] }
 0x98f   :  { %7988 = vmatpush3.msra.mxu0 %v4599_v20  ;;  %8027 = vmatpush3.msra.mxu1 %v4635_v15  ;;  %v4642_v20 = vld [vmem:[%s14041_s20 + $0xda0] sm:$0xff]  ;;  %v7545_v15 = vadd.f32 %v7544_v44, %v7543_v29  ;;  %v7546_v58 = vpop.f32.mrf.mxu0  ;;  %v7587_v39 = vpop.f32.mrf.mxu1  ;;  %v4664_v29 = vld [vmem:[%s14041_s20 + $0xe50] sm:$0xff]  ;;  %v8943_v3 = vld [vmem:[#allocation3 + $0x390] sm:$0xff] }
 0x990   :  { %7989 = vmatprep.subr.mxu0 %v4614_v21  ;;  %8028 = vmatprep.subr.mxu1 %v4650_v57  ;;  %v4626_v21 = vld [vmem:[%s14041_s20 + $0xd20] sm:$0xff]  ;;  %v4641_v57 = vld [vmem:[%s14041_s20 + $0xd98] sm:$0xff] }
 0x991   :  { %7990 = vmatpush3.msra.mxu0 %v4598_v49  ;;  %8029 = vmatpush3.msra.mxu1 %v4634_v48  ;;  %v12902_v34 = vadd.f32 %v7545_v15, %v12767_v31  ;;  %v12904_v49 = vadd.f32 %v7586_v5, %v5180_v60  ;;  %v4685_v48 = vld [vmem:[%s14041_s20 + $0xef8] sm:$0xff]  ;;  %v4699_v15 = vld [vmem:[%s14041_s20 + $0xf68] sm:$0xff]  ;;  %v4098_v5 = vld [vmem:[#allocation3 + $0x48] sm:$0xff] }
 0x992   :  { %5918 = vmatmul.mubr.f32.gmra.mxu0 %v8930_v46  ;;  %5998 = vmatmul.mubr.f32.gmra.mxu1 %v4093_v35  ;;  %v4669_v31 = vld [vmem:[%s14041_s20 + $0xe78] sm:$0xff]  ;;  %v4684_v35 = vld [vmem:[%s14041_s20 + $0xef0] sm:$0xff]  ;;  %v7588_v46 = vpop.f32.mrf.mxu1 }
 0x993   :  { %7991 = vmatprep.subr.mxu0 %v4613_v55  ;;  %8030 = vmatprep.subr.mxu1 %v4649_v7  ;;  %v8937_v55 = vld [vmem:[#allocation3 + $0x418] sm:$0xff] }
 0x994   :  { %6002 = vmatprep.mubr.f32.mxu1 %v8931_v14  ;;  %7992 = vmatpush3.msra.mxu0 %v4597_v62  ;;  %v4640_v7 = vld [vmem:[%s14041_s20 + $0xd90] sm:$0xff]  ;;  %v7547_v62 = vpop.f32.mrf.mxu0 }
 0x995   :  { %6077 = vmatprep.mubr.f32.mxu0 %v8932_v40  ;;  %8031 = vmatpush3.msra.mxu1 %v4633_v41  ;;  %v8938_v41 = vld [vmem:[#allocation3 + $0x6c8] sm:$0xff]  ;;  %v7548_v14 = vadd.f32 %v7547_v62, %v7546_v58 }
 0x996   :  { %7993 = vmatprep.subr.mxu0 %v4612_v52  ;;  %8032 = vmatprep.subr.mxu1 %v4648_v28  ;;  %v4624_v52 = vld [vmem:[%s14041_s20 + $0xd10] sm:$0xff]  ;;  %v4698_v58 = vld [vmem:[%s14041_s20 + $0xf60] sm:$0xff] }
 0x997   :  { %7994 = vmatpush3.msra.mxu0 %v4596_v38  ;;  %8033 = vmatpush3.msra.mxu1 %v4632_v22  ;;  %v4668_v28 = vld [vmem:[%s14041_s20 + $0xe70] sm:$0xff]  ;;  %v7589_v38 = vadd.f32 %v7588_v46, %v7587_v39  ;;  %v4639_v22 = vld [vmem:[%s14041_s20 + $0xd88] sm:$0xff]  ;;  %v5195_v40 = vadd.f32 %v7548_v14, %v12782_v43  ;;  %v4638_v43 = vld [vmem:[%s14041_s20 + $0xd80] sm:$0xff] }
 0x998   :  { %6003 = vmatmul.mubr.f32.gmra.mxu1 %v8933_v13  ;;  %7995 = vmatprep.subr.mxu0 %v4611_v30  ;;  %v4096_v13 = vld [vmem:[#allocation3 + $0x478] sm:$0xff]  ;;  %v8946_v62 = vld [vmem:[#allocation3 + $0x228] sm:$0xff]  ;;  %v4697_v46 = vld [vmem:[%s14041_s20 + $0xf58] sm:$0xff] }
 0x999   :  { %8034 = vmatprep.subr.mxu1 %v4647_v51  ;;  %6007 = vmatprep.mubr.f32.mxu1 %v8934_v11  ;;  %v12934_v30 = vadd.f32 %v7589_v38, %v5185_v50  ;;  %v4623_v51 = vld [vmem:[%s14041_s20 + $0xd08] sm:$0xff]  ;;  %v4666_v11 = vld [vmem:[%s14041_s20 + $0xe60] sm:$0xff]  ;;  %v8942_v50 = vld [vmem:[#allocation3 + $0x480] sm:$0xff] }
 0x99a   :  { %7996 = vmatpush3.msra.mxu0 %v4595_v59  ;;  %8035 = vmatpush3.msra.mxu1 %v4631_v9  ;;  %v7549_v59 = vpop.f32.mrf.mxu0  ;;  %v7590_v9 = vpop.f32.mrf.mxu1  ;;  %v4660_v14 = vld [vmem:[%s14041_s20 + $0xe30] sm:$0xff] }
 0x99b   :  { %7997 = vmatprep.subr.mxu0 %v4610_v33  ;;  %8036 = vmatprep.subr.mxu1 %v4646_v42  ;;  %v4682_v33 = vld [vmem:[%s14041_s20 + $0xee0] sm:$0xff]  ;;  %v4696_v38 = vld [vmem:[%s14041_s20 + $0xf50] sm:$0xff] }
 0x99c   :  { %7998 = vmatpush3.msra.mxu0 %v4594_v8  ;;  %8037 = vmatpush3.msra.mxu1 %v4630_v10  ;;  %v4622_v42 = vld [vmem:[%s14041_s20 + $0xd00] sm:$0xff]  ;;  %v7550_v8 = vpop.f32.mrf.mxu0  ;;  %v7591_v10 = vpop.f32.mrf.mxu1 }
 0x99d   :  { %6008 = vmatmul.mubr.f32.gmra.mxu1 %v8935_v45  ;;  %7999 = vmatprep.subr.mxu0 %v4609_v25  ;;  %v7551_v60 = vadd.f32 %v7550_v8, %v7549_v59  ;;  %v7592_v24 = vadd.f32 %v7591_v10, %v7590_v9  ;;  %v4681_v25 = vld [vmem:[%s14041_s20 + $0xed8] sm:$0xff]  ;;  %v4659_v59 = vld [vmem:[%s14041_s20 + $0xe28] sm:$0xff]  ;;  %v4694_v8 = vld [vmem:[%s14041_s20 + $0xf40] sm:$0xff] }
 0x99e   :  { %8038 = vmatprep.subr.mxu1 %v4645_v1  ;;  %8000 = vmatpush3.msra.mxu0 %v4593_v6  ;;  %v4717_v1 = vld [vmem:[%s14041_s20 + $0xff8] sm:$0xff]  ;;  %v4095_v6 = vld [vmem:[#allocation3 + $0x6e8] sm:$0xff]  ;;  %v4695_v9 = vld [vmem:[%s14041_s20 + $0xf48] sm:$0xff] }
 0x99f   :  { %8039 = vmatpush3.msra.mxu1 %v4629_v47  ;;  %6167 = vmatprep.mubr.f32.mxu1 %v8936_v56  ;;  %v5200_v0 = vadd.f32 %v7551_v60, %v12807_v54  ;;  %v12962_v47 = vadd.f32 %v7592_v24, %v12902_v34  ;;  %v4665_v45 = vld [vmem:[%s14041_s20 + $0xe58] sm:$0xff]  ;;  %v4680_v54 = vld [vmem:[%s14041_s20 + $0xed0] sm:$0xff] }
 0x9a0   :  { %8001 = vmatprep.subr.mxu0 %v4608_v26  ;;  %8040 = vmatprep.subr.mxu1 %v4644_v37  ;;  %v4701_v26 = vld [vmem:[%s14041_s20 + $0xf78] sm:$0xff]  ;;  %v7593_v37 = vpop.f32.mrf.mxu1 }
 0x9a1   :  { %8002 = vmatpush3.msra.mxu0 %v4592_v32  ;;  %8041 = vmatpush3.msra.mxu1 %v4628_v61  ;;  %v4716_v32 = vld [vmem:[%s14041_s20 + $0xff0] sm:$0xff]  ;;  %v8941_v61 = vld [vmem:[#allocation3 + $0x428] sm:$0xff]  ;;  %v8945_v34 = vld [vmem:[#allocation3 + $0x440] sm:$0xff] }
 0x9a2   :  { %8003 = vmatprep.subr.mxu0 %v4607_v18  ;;  %8042 = vmatprep.subr.mxu1 %v4643_v36  ;;  %v7594_v56 = vpop.f32.mrf.mxu1  ;;  %v4679_v36 = vld [vmem:[%s14041_s20 + $0xec8] sm:$0xff]  ;;  %v4673_v24 = vld [vmem:[%s14041_s20 + $0xe98] sm:$0xff] }
 0x9a3   :  { %8004 = vmatpush3.msra.mxu0 %v4591_v27  ;;  %8043 = vmatpush3.msra.mxu1 %v4627_v53  ;;  %v7595_v18 = vadd.f32 %v7594_v56, %v7593_v37  ;;  %v4715_v27 = vld [vmem:[%s14041_s20 + $0xfe8] sm:$0xff]  ;;  %v4656_v37 = vld [vmem:[%s14041_s20 + $0xe10] sm:$0xff] }
 0x9a4   :  { %8005 = vmatprep.subr.mxu0 %v4606_v63  ;;  %8044 = vmatprep.subr.mxu1 %v4642_v20  ;;  %v7596_v44 = vpop.f32.mrf.mxu1  ;;  %v8944_v63 = vld [vmem:[#allocation3 + $0x20] sm:$0xff]  ;;  %v4663_v20 = vld [vmem:[%s14041_s20 + $0xe48] sm:$0xff] }
 0x9a5   :  { %8006 = vmatpush3.msra.mxu0 %v4590_v23  ;;  %8045 = vmatpush3.msra.mxu1 %v4626_v21  ;;  %v12988_v53 = vadd.f32 %v7595_v18, %v5195_v40  ;;  %v4678_v23 = vld [vmem:[%s14041_s20 + $0xec0] sm:$0xff]  ;;  %v4675_v40 = vld [vmem:[%s14041_s20 + $0xea8] sm:$0xff] }
 0x9a6   :  { %6078 = vmatmul.mubr.f32.vlgmr.msra.gmra.mxu0 %v8937_v55  ;;  %8046 = vmatprep.subr.mxu1 %v4641_v57  ;;  %v4714_v21 = vld [vmem:[%s14041_s20 + $0xfe0] sm:$0xff]  ;;  %v7597_v57 = vpop.f32.mrf.mxu1  ;;  %v4707_v56 = vld [vmem:[%s14041_s20 + $0xfa8] sm:$0xff] }
 0x9a7   :  { %8069 = vmatprep.subr.mxu0 %v4685_v48  ;;  %6082 = vmatprep.mubr.f32.mxu0 %v8938_v41  ;;  %v4662_v48 = vld [vmem:[%s14041_s20 + $0xe40] sm:$0xff]  ;;  %v7598_v39 = vadd.f32 %v7597_v57, %v7596_v44  ;;  %v4676_v41 = vld [vmem:[%s14041_s20 + $0xeb0] sm:$0xff]  ;;  %v4655_v18 = vld [vmem:[%s14041_s20 + $0xe08] sm:$0xff] }
 0x9a8   :  { %8047 = vmatpush3.msra.mxu1 %v4625_v19  ;;  %8070 = vmatpush3.msra.mxu0 %v4669_v31  ;;  %v4677_v19 = vld [vmem:[%s14041_s20 + $0xeb8] sm:$0xff]  ;;  %v4670_v44 = vld [vmem:[%s14041_s20 + $0xe80] sm:$0xff] }
 0x9a9   :  { %8048 = vmatprep.subr.mxu1 %v4640_v7  ;;  %8071 = vmatprep.subr.mxu0 %v4684_v35  ;;  %v4713_v31 = vld [vmem:[%s14041_s20 + $0xfd8] sm:$0xff]  ;;  %v13014_v55 = vadd.f32 %v7598_v39, %v5200_v0  ;;  %v4097_v7 = vld [vmem:[#allocation3 + $0x5b8] sm:$0xff] }
 0x9aa   :  { %8049 = vmatpush3.msra.mxu1 %v4624_v52  ;;  %8072 = vmatpush3.msra.mxu0 %v4668_v28  ;;  %v4661_v35 = vld [vmem:[%s14041_s20 + $0xe38] sm:$0xff]  ;;  %v4712_v52 = vld [vmem:[%s14041_s20 + $0xfd0] sm:$0xff] }
 0x9ab   :  { %6083 = vmatmul.mubr.f32.gmra.mxu0 %v8939_v17  ;;  %8050 = vmatprep.subr.mxu1 %v4639_v22  ;;  %v8947_v28 = vld [vmem:[#allocation3 + $0x80] sm:$0xff]  ;;  %v7631_v22 = vpop.f32.mrf.mxu0 }
 0x9ac   :  { %8073 = vmatprep.subr.mxu0 %v4683_v2  ;;  %6087 = vmatprep.mubr.f32.mxu0 %v4096_v13  ;;  %v8948_v2 = vld [vmem:[#allocation3 + $0x700] sm:$0xff]  ;;  %v8949_v13 = vld [vmem:[#allocation3 + $0x668] sm:$0xff] }
 0x9ad   :  { %8051 = vmatpush3.msra.mxu1 %v4623_v51  ;;  %8074 = vmatpush3.msra.mxu0 %v4667_v4  ;;  %v4711_v51 = vld [vmem:[%s14041_s20 + $0xfc8] sm:$0xff]  ;;  %v7632_v4 = vpop.f32.mrf.mxu0  ;;  %v4689_v39 = vld [vmem:[%s14041_s20 + $0xf18] sm:$0xff] }
 0x9ae   :  { %8052 = vmatprep.subr.mxu1 %v4638_v43  ;;  %8075 = vmatprep.subr.mxu0 %v4682_v33  ;;  %v7633_v17 = vadd.f32 %v7632_v4, %v7631_v22  ;;  %v4674_v43 = vld [vmem:[%s14041_s20 + $0xea0] sm:$0xff]  ;;  %v4747_v22 = vld [vmem:[%s14041_s20 + $0x10e8] sm:$0xff] }
 0x9af   :  { %8053 = vmatpush3.msra.mxu1 %v4622_v42  ;;  %8076 = vmatpush3.msra.mxu0 %v4666_v11  ;;  %v4710_v33 = vld [vmem:[%s14041_s20 + $0xfc0] sm:$0xff]  ;;  %v8950_v42 = vld [vmem:[#allocation3 + $0x458] sm:$0xff]  ;;  %v7634_v60 = vpop.f32.mrf.mxu0  ;;  %v4731_v4 = vld [vmem:[%s14041_s20 + $0x1068] sm:$0xff] }
 0x9b0   :  { %6088 = vmatmul.mubr.f32.gmra.mxu0 %v4095_v6  ;;  %6168 = vmatmul.mubr.f32.vlgmr.msra.gmra.mxu1 %v8940_v16  ;;  %v4658_v11 = vld [vmem:[%s14041_s20 + $0xe20] sm:$0xff]  ;;  %v5360_v10 = vadd.f32 %v7633_v17, %v12904_v49  ;;  %v4693_v49 = vld [vmem:[%s14041_s20 + $0xf38] sm:$0xff]  ;;  %v8951_v16 = vld [vmem:[#allocation3 + $0x4b0] sm:$0xff] }
 0x9b1   :  { %8077 = vmatprep.subr.mxu0 %v4681_v25  ;;  %8116 = vmatprep.subr.mxu1 %v4717_v1  ;;  %v4709_v25 = vld [vmem:[%s14041_s20 + $0xfb8] sm:$0xff]  ;;  %v7635_v6 = vpop.f32.mrf.mxu0  ;;  %v8955_v17 = vld [vmem:[#allocation3 + $0x328] sm:$0xff] }
 0x9b2   :  { %6092 = vmatprep.mubr.f32.mxu0 %v8941_v61  ;;  %6172 = vmatprep.mubr.f32.mxu1 %v8942_v50  ;;  %v4657_v1 = vld [vmem:[%s14041_s20 + $0xe18] sm:$0xff]  ;;  %v7636_v0 = vadd.f32 %v7635_v6, %v7634_v60 }
 0x9b3   :  { %8078 = vmatpush3.msra.mxu0 %v4665_v45  ;;  %8117 = vmatpush3.msra.mxu1 %v4701_v26  ;;  %v4672_v45 = vld [vmem:[%s14041_s20 + $0xe90] sm:$0xff]  ;;  %v7637_v61 = vpop.f32.mrf.mxu0  ;;  %v7678_v50 = vpop.f32.mrf.mxu1 }
 0x9b4   :  { %8079 = vmatprep.subr.mxu0 %v4680_v54  ;;  %8118 = vmatprep.subr.mxu1 %v4716_v32  ;;  %v4708_v26 = vld [vmem:[%s14041_s20 + $0xfb0] sm:$0xff]  ;;  %v5365_v32 = vadd.f32 %v7636_v0, %v12934_v30  ;;  %v4691_v30 = vld [vmem:[%s14041_s20 + $0xf28] sm:$0xff]  ;;  %v8956_v0 = vld [vmem:[#allocation3 + $0x628] sm:$0xff] }
 0x9b5   :  { %8080 = vmatpush3.msra.mxu0 %v4664_v29  ;;  %8119 = vmatpush3.msra.mxu1 %v4700_v12  ;;  %v4692_v54 = vld [vmem:[%s14041_s20 + $0xf30] sm:$0xff]  ;;  %v4671_v12 = vld [vmem:[%s14041_s20 + $0xe88] sm:$0xff] }
 0x9b6   :  { %6093 = vmatmul.mubr.f32.gmra.mxu0 %v8943_v3  ;;  %6173 = vmatmul.mubr.f32.gmra.mxu1 %v8944_v63  ;;  %v8952_v29 = vld [vmem:[#allocation3 + $0x518] sm:$0xff]  ;;  %v4706_v3 = vld [vmem:[%s14041_s20 + $0xfa0] sm:$0xff] }
 0x9b7   :  { %8081 = vmatprep.subr.mxu0 %v4679_v36  ;;  %8120 = vmatprep.subr.mxu1 %v4715_v27  ;;  %v7638_v36 = vpop.f32.mrf.mxu0  ;;  %v7679_v27 = vpop.f32.mrf.mxu1 }
 0x9b8   :  { %6097 = vmatprep.mubr.f32.mxu0 %v8945_v34  ;;  %6177 = vmatprep.mubr.f32.mxu1 %v4098_v5  ;;  %v7639_v63 = vadd.f32 %v7638_v36, %v7637_v61  ;;  %v4690_v5 = vld [vmem:[%s14041_s20 + $0xf20] sm:$0xff]  ;;  %v4749_v34 = vld [vmem:[%s14041_s20 + $0x10f8] sm:$0xff]  ;;  %v4728_v61 = vld [vmem:[%s14041_s20 + $0x1050] sm:$0xff] }
 0x9b9   :  { %8082 = vmatpush3.msra.mxu0 %v4663_v20  ;;  %8121 = vmatpush3.msra.mxu1 %v4699_v15  ;;  %v7680_v20 = vadd.f32 %v7679_v27, %v7678_v50  ;;  %v4654_v15 = vld [vmem:[%s14041_s20 + $0xe00] sm:$0xff]  ;;  %v4764_v50 = vld [vmem:[%s14041_s20 + $0x1170] sm:$0xff]  ;;  %v8959_v27 = vld [vmem:[#allocation3 + $0x370] sm:$0xff] }
 0x9ba   :  { %8083 = vmatprep.subr.mxu0 %v4678_v23  ;;  %8122 = vmatprep.subr.mxu1 %v4714_v21  ;;  %v4705_v23 = vld [vmem:[%s14041_s20 + $0xf98] sm:$0xff]  ;;  %v13112_v21 = vadd.f32 %v7639_v63, %v12962_v47  ;;  %v4763_v63 = vld [vmem:[%s14041_s20 + $0x1168] sm:$0xff] }
 0x9bb   :  { %8084 = vmatpush3.msra.mxu0 %v4662_v48  ;;  %8123 = vmatpush3.msra.mxu1 %v4698_v58  ;;  %v13114_v57 = vadd.f32 %v7680_v20, %v5360_v10  ;;  %v7640_v48 = vpop.f32.mrf.mxu0  ;;  %v4733_v47 = vld [vmem:[%s14041_s20 + $0x1078] sm:$0xff]  ;;  %v4102_v20 = vld [vmem:[#allocation3 + $0x258] sm:$0xff] }
 0x9bc   :  { %6098 = vmatmul.mubr.f32.gmra.mxu0 %v8946_v62  ;;  %6178 = vmatmul.mubr.f32.gmra.mxu1 %v4097_v7  ;;  %v4748_v7 = vld [vmem:[%s14041_s20 + $0x10f0] sm:$0xff] }
 0x9bd   :  { %8085 = vmatprep.subr.mxu0 %v4677_v19  ;;  %8124 = vmatprep.subr.mxu1 %v4713_v31  ;;  %v7681_v58 = vpop.f32.mrf.mxu1  ;;  %v8953_v19 = vld [vmem:[#allocation3 + $0x3d0] sm:$0xff]  ;;  %v4704_v31 = vld [vmem:[%s14041_s20 + $0xf90] sm:$0xff] }
 0x9be   :  { %6182 = vmatprep.mubr.f32.mxu1 %v8947_v28  ;;  %8086 = vmatpush3.msra.mxu0 %v4661_v35  ;;  %v7641_v35 = vpop.f32.mrf.mxu0 }
 0x9bf   :  { %6257 = vmatprep.mubr.f32.mxu0 %v8948_v2  ;;  %8125 = vmatpush3.msra.mxu1 %v4697_v46  ;;  %v7682_v62 = vpop.f32.mrf.mxu1  ;;  %v8954_v46 = vld [vmem:[#allocation3 + $0x190] sm:$0xff]  ;;  %v7642_v28 = vadd.f32 %v7641_v35, %v7640_v48  ;;  %v4762_v48 = vld [vmem:[%s14041_s20 + $0x1160] sm:$0xff]  ;;  %v8962_v35 = vld [vmem:[#allocation3 + $0x220] sm:$0xff] }
 0x9c0   :  { %8087 = vmatprep.subr.mxu0 %v4676_v41  ;;  %8126 = vmatprep.subr.mxu1 %v4712_v52  ;;  %v4688_v41 = vld [vmem:[%s14041_s20 + $0xf10] sm:$0xff] }
 0x9c1   :  { %8088 = vmatpush3.msra.mxu0 %v4660_v14  ;;  %8127 = vmatpush3.msra.mxu1 %v4696_v38  ;;  %v4732_v52 = vld [vmem:[%s14041_s20 + $0x1070] sm:$0xff]  ;;  %v7683_v14 = vadd.f32 %v7682_v62, %v7681_v58  ;;  %v4703_v38 = vld [vmem:[%s14041_s20 + $0xf88] sm:$0xff]  ;;  %v5375_v2 = vadd.f32 %v7642_v28, %v12988_v53  ;;  %v4702_v53 = vld [vmem:[%s14041_s20 + $0xf80] sm:$0xff] }
 0x9c2   :  { %6183 = vmatmul.mubr.f32.gmra.mxu1 %v8949_v13  ;;  %8089 = vmatprep.subr.mxu0 %v4675_v40  ;;  %v4100_v13 = vld [vmem:[#allocation3 + $0x378] sm:$0xff]  ;;  %v4761_v62 = vld [vmem:[%s14041_s20 + $0x1158] sm:$0xff] }
 0x9c3   :  { %8128 = vmatprep.subr.mxu1 %v4711_v51  ;;  %6187 = vmatprep.mubr.f32.mxu1 %v8950_v42  ;;  %v13144_v40 = vadd.f32 %v7683_v14, %v5365_v32  ;;  %v4687_v51 = vld [vmem:[%s14041_s20 + $0xf08] sm:$0xff]  ;;  %v4730_v42 = vld [vmem:[%s14041_s20 + $0x1060] sm:$0xff]  ;;  %v8958_v32 = vld [vmem:[#allocation3 + $0x6b8] sm:$0xff] }
 0x9c4   :  { %8090 = vmatpush3.msra.mxu0 %v4659_v59  ;;  %8129 = vmatpush3.msra.mxu1 %v4695_v9  ;;  %v7643_v59 = vpop.f32.mrf.mxu0  ;;  %v7684_v9 = vpop.f32.mrf.mxu1  ;;  %v4724_v28 = vld [vmem:[%s14041_s20 + $0x1030] sm:$0xff] }
 0x9c5   :  { %8091 = vmatprep.subr.mxu0 %v4674_v43  ;;  %8130 = vmatprep.subr.mxu1 %v4710_v33  ;;  %v4746_v43 = vld [vmem:[%s14041_s20 + $0x10e0] sm:$0xff]  ;;  %v4760_v14 = vld [vmem:[%s14041_s20 + $0x1150] sm:$0xff] }
 0x9c6   :  { %8092 = vmatpush3.msra.mxu0 %v4658_v11  ;;  %8131 = vmatpush3.msra.mxu1 %v4694_v8  ;;  %v4686_v33 = vld [vmem:[%s14041_s20 + $0xf00] sm:$0xff]  ;;  %v7644_v11 = vpop.f32.mrf.mxu0  ;;  %v7685_v8 = vpop.f32.mrf.mxu1 }
 0x9c7   :  { %6188 = vmatmul.mubr.f32.gmra.mxu1 %v8951_v16  ;;  %8093 = vmatprep.subr.mxu0 %v4673_v24  ;;  %v7645_v10 = vadd.f32 %v7644_v11, %v7643_v59  ;;  %v7686_v60 = vadd.f32 %v7685_v8, %v7684_v9  ;;  %v4745_v24 = vld [vmem:[%s14041_s20 + $0x10d8] sm:$0xff]  ;;  %v4723_v59 = vld [vmem:[%s14041_s20 + $0x1028] sm:$0xff]  ;;  %v4758_v11 = vld [vmem:[%s14041_s20 + $0x1140] sm:$0xff] }
 0x9c8   :  { %8132 = vmatprep.subr.mxu1 %v4709_v25  ;;  %8094 = vmatpush3.msra.mxu0 %v4657_v1  ;;  %v4781_v25 = vld [vmem:[%s14041_s20 + $0x11f8] sm:$0xff]  ;;  %v4099_v1 = vld [vmem:[#allocation3 + $0x698] sm:$0xff]  ;;  %v4759_v9 = vld [vmem:[%s14041_s20 + $0x1148] sm:$0xff] }
 0x9c9   :  { %8133 = vmatpush3.msra.mxu1 %v4693_v49  ;;  %6347 = vmatprep.mubr.f32.mxu1 %v8952_v29  ;;  %v5380_v6 = vadd.f32 %v7645_v10, %v13014_v55  ;;  %v13172_v49 = vadd.f32 %v7686_v60, %v13112_v21  ;;  %v4729_v16 = vld [vmem:[%s14041_s20 + $0x1058] sm:$0xff]  ;;  %v4744_v55 = vld [vmem:[%s14041_s20 + $0x10d0] sm:$0xff] }
 0x9ca   :  { %8095 = vmatprep.subr.mxu0 %v4672_v45  ;;  %8134 = vmatprep.subr.mxu1 %v4708_v26  ;;  %v4765_v45 = vld [vmem:[%s14041_s20 + $0x1178] sm:$0xff] }
 0x9cb   :  { %8096 = vmatpush3.msra.mxu0 %v4656_v37  ;;  %8135 = vmatpush3.msra.mxu1 %v4692_v54  ;;  %v4780_v37 = vld [vmem:[%s14041_s20 + $0x11f0] sm:$0xff]  ;;  %v8961_v21 = vld [vmem:[#allocation3 + $0x320] sm:$0xff] }
 0x9cc   :  { %8097 = vmatprep.subr.mxu0 %v4671_v12  ;;  %8136 = vmatprep.subr.mxu1 %v4707_v56  ;;  %v8957_v54 = vld [vmem:[#allocation3 + $0x78] sm:$0xff]  ;;  %v4743_v56 = vld [vmem:[%s14041_s20 + $0x10c8] sm:$0xff]  ;;  %v4737_v60 = vld [vmem:[%s14041_s20 + $0x1098] sm:$0xff] }
 0x9cd   :  { %8098 = vmatpush3.msra.mxu0 %v4655_v18  ;;  %8137 = vmatpush3.msra.mxu1 %v4691_v30  ;;  %v7687_v26 = vpop.f32.mrf.mxu1  ;;  %v4779_v18 = vld [vmem:[%s14041_s20 + $0x11e8] sm:$0xff] }
 0x9ce   :  { %8099 = vmatprep.subr.mxu0 %v4670_v44  ;;  %8138 = vmatprep.subr.mxu1 %v4706_v3  ;;  %v8960_v44 = vld [vmem:[#allocation3 + $0x3c0] sm:$0xff]  ;;  %v4727_v3 = vld [vmem:[%s14041_s20 + $0x1048] sm:$0xff] }
 0x9cf   :  { %8100 = vmatpush3.msra.mxu0 %v4654_v15  ;;  %8139 = vmatpush3.msra.mxu1 %v4690_v5  ;;  %v7688_v29 = vpop.f32.mrf.mxu1  ;;  %v4742_v15 = vld [vmem:[%s14041_s20 + $0x10c0] sm:$0xff] }
 0x9d0   :  { %6258 = vmatmul.mubr.f32.vlgmr.msra.gmra.mxu0 %v8953_v19  ;;  %8140 = vmatprep.subr.mxu1 %v4705_v23  ;;  %v7689_v12 = vadd.f32 %v7688_v29, %v7687_v26  ;;  %v4778_v5 = vld [vmem:[%s14041_s20 + $0x11e0] sm:$0xff]  ;;  %v4720_v26 = vld [vmem:[%s14041_s20 + $0x1010] sm:$0xff]  ;;  %v4771_v29 = vld [vmem:[%s14041_s20 + $0x11a8] sm:$0xff] }
 0x9d1   :  { %8163 = vmatprep.subr.mxu0 %v4749_v34  ;;  %6262 = vmatprep.mubr.f32.mxu0 %v8954_v46  ;;  %v4726_v34 = vld [vmem:[%s14041_s20 + $0x1040] sm:$0xff]  ;;  %v4740_v46 = vld [vmem:[%s14041_s20 + $0x10b0] sm:$0xff] }
 0x9d2   :  { %8141 = vmatpush3.msra.mxu1 %v4689_v39  ;;  %8164 = vmatpush3.msra.mxu0 %v4733_v47  ;;  %v13198_v30 = vadd.f32 %v7689_v12, %v5375_v2  ;;  %v4741_v39 = vld [vmem:[%s14041_s20 + $0x10b8] sm:$0xff]  ;;  %v4739_v2 = vld [vmem:[%s14041_s20 + $0x10a8] sm:$0xff] }
 0x9d3   :  { %8142 = vmatprep.subr.mxu1 %v4704_v31  ;;  %8165 = vmatprep.subr.mxu0 %v4748_v7  ;;  %v4777_v47 = vld [vmem:[%s14041_s20 + $0x11d8] sm:$0xff]  ;;  %v4101_v31 = vld [vmem:[#allocation3 + $0x3f0] sm:$0xff] }
 0x9d4   :  { %8143 = vmatpush3.msra.mxu1 %v4688_v41  ;;  %8166 = vmatpush3.msra.mxu0 %v4732_v52  ;;  %v7690_v36 = vpop.f32.mrf.mxu1  ;;  %v4725_v7 = vld [vmem:[%s14041_s20 + $0x1038] sm:$0xff]  ;;  %v4776_v41 = vld [vmem:[%s14041_s20 + $0x11d0] sm:$0xff]  ;;  %v4719_v12 = vld [vmem:[%s14041_s20 + $0x1008] sm:$0xff] }
 0x9d5   :  { %6263 = vmatmul.mubr.f32.gmra.mxu0 %v8955_v17  ;;  %8144 = vmatprep.subr.mxu1 %v4703_v38  ;;  %v8963_v52 = vld [vmem:[#allocation3 + $0x1d8] sm:$0xff] }
 0x9d6   :  { %8167 = vmatprep.subr.mxu0 %v4747_v22  ;;  %6267 = vmatprep.mubr.f32.mxu0 %v4100_v13  ;;  %v7691_v23 = vpop.f32.mrf.mxu1  ;;  %v8964_v22 = vld [vmem:[#allocation3 + $0x170] sm:$0xff]  ;;  %v8965_v13 = vld [vmem:[#allocation3 + $0x508] sm:$0xff] }
 0x9d7   :  { %8145 = vmatpush3.msra.mxu1 %v4687_v51  ;;  %8168 = vmatpush3.msra.mxu0 %v4731_v4  ;;  %v7692_v58 = vadd.f32 %v7691_v23, %v7690_v36  ;;  %v4775_v51 = vld [vmem:[%s14041_s20 + $0x11c8] sm:$0xff]  ;;  %v4734_v36 = vld [vmem:[%s14041_s20 + $0x1080] sm:$0xff] }
 0x9d8   :  { %8146 = vmatprep.subr.mxu1 %v4702_v53  ;;  %8169 = vmatprep.subr.mxu0 %v4746_v43  ;;  %v4738_v53 = vld [vmem:[%s14041_s20 + $0x10a0] sm:$0xff] }
 0x9d9   :  { %8147 = vmatpush3.msra.mxu1 %v4686_v33  ;;  %8170 = vmatpush3.msra.mxu0 %v4730_v42  ;;  %v13224_v19 = vadd.f32 %v7692_v58, %v5380_v6  ;;  %v4774_v43 = vld [vmem:[%s14041_s20 + $0x11c0] sm:$0xff]  ;;  %v8966_v33 = vld [vmem:[#allocation3 + $0x118] sm:$0xff]  ;;  %v4753_v58 = vld [vmem:[%s14041_s20 + $0x1118] sm:$0xff] }
 0x9da   :  { %6268 = vmatmul.mubr.f32.gmra.mxu0 %v4099_v1  ;;  %6348 = vmatmul.mubr.f32.vlgmr.msra.gmra.mxu1 %v8956_v0  ;;  %v4722_v42 = vld [vmem:[%s14041_s20 + $0x1020] sm:$0xff] }
 0x9db   :  { %8171 = vmatprep.subr.mxu0 %v4745_v24  ;;  %8210 = vmatprep.subr.mxu1 %v4781_v25  ;;  %v4773_v24 = vld [vmem:[%s14041_s20 + $0x11b8] sm:$0xff]  ;;  %v8967_v0 = vld [vmem:[#allocation3 + $0x1c8] sm:$0xff] }
 0x9dc   :  { %6272 = vmatprep.mubr.f32.mxu0 %v8957_v54  ;;  %6352 = vmatprep.mubr.f32.mxu1 %v8958_v32  ;;  %v7725_v38 = vpop.f32.mrf.mxu0  ;;  %v4721_v25 = vld [vmem:[%s14041_s20 + $0x1018] sm:$0xff] }
 0x9dd   :  { %8172 = vmatpush3.msra.mxu0 %v4729_v16  ;;  %8211 = vmatpush3.msra.mxu1 %v4765_v45  ;;  %v4736_v16 = vld [vmem:[%s14041_s20 + $0x1090] sm:$0xff] }
 0x9de   :  { %8173 = vmatprep.subr.mxu0 %v4744_v55  ;;  %8212 = vmatprep.subr.mxu1 %v4780_v37  ;;  %v7726_v4 = vpop.f32.mrf.mxu0  ;;  %v4772_v45 = vld [vmem:[%s14041_s20 + $0x11b0] sm:$0xff] }
 0x9df   :  { %8174 = vmatpush3.msra.mxu0 %v4728_v61  ;;  %8213 = vmatpush3.msra.mxu1 %v4764_v50  ;;  %v7727_v17 = vadd.f32 %v7726_v4, %v7725_v38  ;;  %v4756_v55 = vld [vmem:[%s14041_s20 + $0x1130] sm:$0xff]  ;;  %v8968_v61 = vld [vmem:[#allocation3 + $0x4c0] sm:$0xff]  ;;  %v4735_v50 = vld [vmem:[%s14041_s20 + $0x1088] sm:$0xff] }
 0x9e0   :  { %6273 = vmatmul.mubr.f32.gmra.mxu0 %v8959_v27  ;;  %6353 = vmatmul.mubr.f32.gmra.mxu1 %v8960_v44  ;;  %v4770_v27 = vld [vmem:[%s14041_s20 + $0x11a0] sm:$0xff]  ;;  %v4811_v38 = vld [vmem:[%s14041_s20 + $0x12e8] sm:$0xff] }
 0x9e1   :  { %8175 = vmatprep.subr.mxu0 %v4743_v56  ;;  %8214 = vmatprep.subr.mxu1 %v4779_v18  ;;  %v5540_v8 = vadd.f32 %v7727_v17, %v13114_v57  ;;  %v4757_v57 = vld [vmem:[%s14041_s20 + $0x1138] sm:$0xff]  ;;  %v4795_v4 = vld [vmem:[%s14041_s20 + $0x1268] sm:$0xff] }
 0x9e2   :  { %6277 = vmatprep.mubr.f32.mxu0 %v8961_v21  ;;  %6357 = vmatprep.mubr.f32.mxu1 %v4102_v20  ;;  %v4754_v20 = vld [vmem:[%s14041_s20 + $0x1120] sm:$0xff]  ;;  %v4813_v21 = vld [vmem:[%s14041_s20 + $0x12f8] sm:$0xff] }
 0x9e3   :  { %8176 = vmatpush3.msra.mxu0 %v4727_v3  ;;  %8215 = vmatpush3.msra.mxu1 %v4763_v63  ;;  %v7728_v10 = vpop.f32.mrf.mxu0  ;;  %v4718_v63 = vld [vmem:[%s14041_s20 + $0x1000] sm:$0xff]  ;;  %v8971_v17 = vld [vmem:[#allocation3 + $0x640] sm:$0xff] }
 0x9e4   :  { %8177 = vmatprep.subr.mxu0 %v4742_v15  ;;  %8216 = vmatprep.subr.mxu1 %v4778_v5  ;;  %v4769_v15 = vld [vmem:[%s14041_s20 + $0x1198] sm:$0xff] }
 0x9e5   :  { %8178 = vmatpush3.msra.mxu0 %v4726_v34  ;;  %8217 = vmatpush3.msra.mxu1 %v4762_v48  ;;  %v7729_v1 = vpop.f32.mrf.mxu0 }
 0x9e6   :  { %6278 = vmatmul.mubr.f32.gmra.mxu0 %v8962_v35  ;;  %6358 = vmatmul.mubr.f32.gmra.mxu1 %v4101_v31  ;;  %v7730_v6 = vadd.f32 %v7729_v1, %v7728_v10  ;;  %v4812_v31 = vld [vmem:[%s14041_s20 + $0x12f0] sm:$0xff] }
 0x9e7   :  { %8179 = vmatprep.subr.mxu0 %v4741_v39  ;;  %8218 = vmatprep.subr.mxu1 %v4777_v47  ;;  %v8969_v39 = vld [vmem:[#allocation3 + $0xf0] sm:$0xff]  ;;  %v4768_v47 = vld [vmem:[%s14041_s20 + $0x1190] sm:$0xff] }
 0x9e8   :  { %6362 = vmatprep.mubr.f32.mxu1 %v8963_v52  ;;  %8180 = vmatpush3.msra.mxu0 %v4725_v7  ;;  %v5545_v37 = vadd.f32 %v7730_v6, %v13144_v40  ;;  %v4755_v40 = vld [vmem:[%s14041_s20 + $0x1128] sm:$0xff]  ;;  %v8972_v6 = vld [vmem:[#allocation3 + $0x3e8] sm:$0xff] }
 0x9e9   :  { %6437 = vmatprep.mubr.f32.mxu0 %v8964_v22  ;;  %8219 = vmatpush3.msra.mxu1 %v4761_v62  ;;  %v8970_v62 = vld [vmem:[#allocation3 + $0x138] sm:$0xff] }
 0x9ea   :  { %8181 = vmatprep.subr.mxu0 %v4740_v46  ;;  %8220 = vmatprep.subr.mxu1 %v4776_v41  ;;  %v7731_v54 = vpop.f32.mrf.mxu0  ;;  %v7772_v32 = vpop.f32.mrf.mxu1  ;;  %v4752_v46 = vld [vmem:[%s14041_s20 + $0x1110] sm:$0xff] }
 0x9eb   :  { %8182 = vmatpush3.msra.mxu0 %v4724_v28  ;;  %8221 = vmatpush3.msra.mxu1 %v4760_v14  ;;  %v4796_v41 = vld [vmem:[%s14041_s20 + $0x1270] sm:$0xff]  ;;  %v4767_v14 = vld [vmem:[%s14041_s20 + $0x1188] sm:$0xff] }
 0x9ec   :  { %6363 = vmatmul.mubr.f32.gmra.mxu1 %v8965_v13  ;;  %8183 = vmatprep.subr.mxu0 %v4739_v2  ;;  %v7732_v56 = vpop.f32.mrf.mxu0  ;;  %v7773_v18 = vpop.f32.mrf.mxu1  ;;  %v4104_v13 = vld [vmem:[#allocation3 + $0x630] sm:$0xff] }
 0x9ed   :  { %8222 = vmatprep.subr.mxu1 %v4775_v51  ;;  %6367 = vmatprep.mubr.f32.mxu1 %v8966_v33  ;;  %v7733_v44 = vadd.f32 %v7732_v56, %v7731_v54  ;;  %v7774_v3 = vadd.f32 %v7773_v18, %v7772_v32  ;;  %v4751_v51 = vld [vmem:[%s14041_s20 + $0x1108] sm:$0xff]  ;;  %v4794_v33 = vld [vmem:[%s14041_s20 + $0x1260] sm:$0xff]  ;;  %v4792_v54 = vld [vmem:[%s14041_s20 + $0x1250] sm:$0xff] }
 0x9ee   :  { %8184 = vmatpush3.msra.mxu0 %v4723_v59  ;;  %8223 = vmatpush3.msra.mxu1 %v4759_v9  ;;  %v4828_v32 = vld [vmem:[%s14041_s20 + $0x1370] sm:$0xff] }
 0x9ef   :  { %8185 = vmatprep.subr.mxu0 %v4738_v53  ;;  %8224 = vmatprep.subr.mxu1 %v4774_v43  ;;  %v13322_v5 = vadd.f32 %v7733_v44, %v13172_v49  ;;  %v13324_v23 = vadd.f32 %v7774_v3, %v5540_v8  ;;  %v4797_v49 = vld [vmem:[%s14041_s20 + $0x1278] sm:$0xff]  ;;  %v4810_v53 = vld [vmem:[%s14041_s20 + $0x12e0] sm:$0xff]  ;;  %v8975_v18 = vld [vmem:[#allocation3 + $0x6d8] sm:$0xff] }
 0x9f0   :  { %8186 = vmatpush3.msra.mxu0 %v4722_v42  ;;  %8225 = vmatpush3.msra.mxu1 %v4758_v11  ;;  %v4750_v43 = vld [vmem:[%s14041_s20 + $0x1100] sm:$0xff]  ;;  %v4827_v44 = vld [vmem:[%s14041_s20 + $0x1368] sm:$0xff]  ;;  %v4106_v3 = vld [vmem:[#allocation3 + $0x680] sm:$0xff] }
 0x9f1   :  { %6368 = vmatmul.mubr.f32.gmra.mxu1 %v8967_v0  ;;  %8187 = vmatprep.subr.mxu0 %v4737_v60  ;;  %v4809_v60 = vld [vmem:[%s14041_s20 + $0x12d8] sm:$0xff] }
 0x9f2   :  { %8226 = vmatprep.subr.mxu1 %v4773_v24  ;;  %8188 = vmatpush3.msra.mxu0 %v4721_v25  ;;  %v7734_v34 = vpop.f32.mrf.mxu0  ;;  %v7775_v48 = vpop.f32.mrf.mxu1  ;;  %v4845_v24 = vld [vmem:[%s14041_s20 + $0x13f8] sm:$0xff] }
 0x9f3   :  { %8227 = vmatpush3.msra.mxu1 %v4757_v57  ;;  %6527 = vmatprep.mubr.f32.mxu1 %v8968_v61  ;;  %v4103_v25 = vld [vmem:[#allocation3 + $0x380] sm:$0xff] }
 0x9f4   :  { %8189 = vmatprep.subr.mxu0 %v4736_v16  ;;  %8228 = vmatprep.subr.mxu1 %v4772_v45  ;;  %v7735_v7 = vpop.f32.mrf.mxu0  ;;  %v7776_v35 = vpop.f32.mrf.mxu1  ;;  %v4793_v0 = vld [vmem:[%s14041_s20 + $0x1258] sm:$0xff] }
 0x9f5   :  { %8190 = vmatpush3.msra.mxu0 %v4720_v26  ;;  %8229 = vmatpush3.msra.mxu1 %v4756_v55  ;;  %v7736_v52 = vadd.f32 %v7735_v7, %v7734_v34  ;;  %v7777_v28 = vadd.f32 %v7776_v35, %v7775_v48  ;;  %v4829_v16 = vld [vmem:[%s14041_s20 + $0x1378] sm:$0xff]  ;;  %v4844_v26 = vld [vmem:[%s14041_s20 + $0x13f0] sm:$0xff]  ;;  %v4826_v34 = vld [vmem:[%s14041_s20 + $0x1360] sm:$0xff] }
 0x9f6   :  { %8191 = vmatprep.subr.mxu0 %v4735_v50  ;;  %8230 = vmatprep.subr.mxu1 %v4771_v29  ;;  %v8973_v55 = vld [vmem:[#allocation3 + $0x558] sm:$0xff]  ;;  %v4807_v29 = vld [vmem:[%s14041_s20 + $0x12c8] sm:$0xff]  ;;  %v4825_v35 = vld [vmem:[%s14041_s20 + $0x1358] sm:$0xff] }
 0x9f7   :  { %8192 = vmatpush3.msra.mxu0 %v4719_v12  ;;  %8231 = vmatpush3.msra.mxu1 %v4755_v40  ;;  %v5555_v22 = vadd.f32 %v7736_v52, %v13198_v30  ;;  %v13354_v2 = vadd.f32 %v7777_v28, %v5545_v37  ;;  %v4766_v30 = vld [vmem:[%s14041_s20 + $0x1180] sm:$0xff]  ;;  %v4843_v12 = vld [vmem:[%s14041_s20 + $0x13e8] sm:$0xff]  ;;  %v4788_v52 = vld [vmem:[%s14041_s20 + $0x1230] sm:$0xff] }
 0x9f8   :  { %8193 = vmatprep.subr.mxu0 %v4734_v36  ;;  %8232 = vmatprep.subr.mxu1 %v4770_v27  ;;  %v8974_v37 = vld [vmem:[#allocation3 + $0x2c8] sm:$0xff]  ;;  %v8976_v36 = vld [vmem:[#allocation3 + $0x4e0] sm:$0xff]  ;;  %v4791_v27 = vld [vmem:[%s14041_s20 + $0x1248] sm:$0xff] }
 0x9f9   :  { %8194 = vmatpush3.msra.mxu0 %v4718_v63  ;;  %8233 = vmatpush3.msra.mxu1 %v4754_v20  ;;  %v7778_v9 = vpop.f32.mrf.mxu1  ;;  %v4806_v63 = vld [vmem:[%s14041_s20 + $0x12c0] sm:$0xff]  ;;  %v8978_v7 = vld [vmem:[#allocation3 + $0x250] sm:$0xff]  ;;  %v4824_v28 = vld [vmem:[%s14041_s20 + $0x1350] sm:$0xff] }
 0x9fa   :  { %6438 = vmatmul.mubr.f32.vlgmr.msra.gmra.mxu0 %v8969_v39  ;;  %8234 = vmatprep.subr.mxu1 %v4769_v15  ;;  %v4842_v20 = vld [vmem:[%s14041_s20 + $0x13e0] sm:$0xff] }
 0x9fb   :  { %8257 = vmatprep.subr.mxu0 %v4813_v21  ;;  %6442 = vmatprep.mubr.f32.mxu0 %v8970_v62  ;;  %v7737_v59 = vpop.f32.mrf.mxu0  ;;  %v7779_v11 = vpop.f32.mrf.mxu1  ;;  %v4790_v21 = vld [vmem:[%s14041_s20 + $0x1240] sm:$0xff]  ;;  %v4804_v62 = vld [vmem:[%s14041_s20 + $0x12b0] sm:$0xff] }
 0x9fc   :  { %8235 = vmatpush3.msra.mxu1 %v4753_v58  ;;  %8258 = vmatpush3.msra.mxu0 %v4797_v49  ;;  %v7780_v10 = vadd.f32 %v7779_v11, %v7778_v9  ;;  %v4805_v58 = vld [vmem:[%s14041_s20 + $0x12b8] sm:$0xff]  ;;  %v4823_v9 = vld [vmem:[%s14041_s20 + $0x1348] sm:$0xff] }
 0x9fd   :  { %8236 = vmatprep.subr.mxu1 %v4768_v47  ;;  %8259 = vmatprep.subr.mxu0 %v4812_v31  ;;  %v7738_v42 = vpop.f32.mrf.mxu0  ;;  %v4841_v49 = vld [vmem:[%s14041_s20 + $0x13d8] sm:$0xff]  ;;  %v4105_v47 = vld [vmem:[#allocation3 + $0x688] sm:$0xff] }
 0x9fe   :  { %8237 = vmatpush3.msra.mxu1 %v4752_v46  ;;  %8260 = vmatpush3.msra.mxu0 %v4796_v41  ;;  %v7739_v8 = vadd.f32 %v7738_v42, %v7737_v59  ;;  %v13382_v57 = vadd.f32 %v7780_v10, %v13322_v5  ;;  %v8977_v5 = vld [vmem:[#allocation3 + $0x230] sm:$0xff]  ;;  %v4789_v31 = vld [vmem:[%s14041_s20 + $0x1238] sm:$0xff]  ;;  %v4840_v46 = vld [vmem:[%s14041_s20 + $0x13d0] sm:$0xff] }
 0x9ff   :  { %6443 = vmatmul.mubr.f32.gmra.mxu0 %v8971_v17  ;;  %8238 = vmatprep.subr.mxu1 %v4767_v14  ;;  %v8979_v41 = vld [vmem:[#allocation3 + $0x528] sm:$0xff]  ;;  %v4787_v59 = vld [vmem:[%s14041_s20 + $0x1228] sm:$0xff]  ;;  %v4801_v10 = vld [vmem:[%s14041_s20 + $0x1298] sm:$0xff] }
 0xa00   :  { %8261 = vmatprep.subr.mxu0 %v4811_v38  ;;  %6447 = vmatprep.mubr.f32.mxu0 %v4104_v13  ;;  %v5560_v1 = vadd.f32 %v7739_v8, %v13224_v19  ;;  %v4808_v19 = vld [vmem:[%s14041_s20 + $0x12d0] sm:$0xff]  ;;  %v8980_v38 = vld [vmem:[#allocation3 + $0x70] sm:$0xff]  ;;  %v4822_v42 = vld [vmem:[%s14041_s20 + $0x1340] sm:$0xff] }
 0xa01   :  { %8239 = vmatpush3.msra.mxu1 %v4751_v51  ;;  %8262 = vmatpush3.msra.mxu0 %v4795_v4  ;;  %v4839_v51 = vld [vmem:[%s14041_s20 + $0x13c8] sm:$0xff] }
 0xa02   :  { %8240 = vmatprep.subr.mxu1 %v4766_v30  ;;  %8263 = vmatprep.subr.mxu0 %v4810_v53  ;;  %v8981_v13 = vld [vmem:[#allocation3 + $0x670] sm:$0xff]  ;;  %v4802_v30 = vld [vmem:[%s14041_s20 + $0x12a0] sm:$0xff] }
 0xa03   :  { %8241 = vmatpush3.msra.mxu1 %v4750_v43  ;;  %8264 = vmatpush3.msra.mxu0 %v4794_v33  ;;  %v4838_v53 = vld [vmem:[%s14041_s20 + $0x13c0] sm:$0xff]  ;;  %v8982_v43 = vld [vmem:[#allocation3 + $0x580] sm:$0xff] }
 0xa04   :  { %6448 = vmatmul.mubr.f32.gmra.mxu0 %v4103_v25  ;;  %6528 = vmatmul.mubr.f32.vlgmr.msra.gmra.mxu1 %v8972_v6  ;;  %v7781_v45 = vpop.f32.mrf.mxu1  ;;  %v4786_v33 = vld [vmem:[%s14041_s20 + $0x1220] sm:$0xff]  ;;  %v8983_v6 = vld [vmem:[#allocation3 + $0x5c0] sm:$0xff] }
 0xa05   :  { %8265 = vmatprep.subr.mxu0 %v4809_v60  ;;  %8304 = vmatprep.subr.mxu1 %v4845_v24  ;;  %v4837_v60 = vld [vmem:[%s14041_s20 + $0x13b8] sm:$0xff] }
 0xa06   :  { %6452 = vmatprep.mubr.f32.mxu0 %v8973_v55  ;;  %6532 = vmatprep.mubr.f32.mxu1 %v8974_v37  ;;  %v7782_v61 = vpop.f32.mrf.mxu1  ;;  %v4785_v24 = vld [vmem:[%s14041_s20 + $0x1218] sm:$0xff] }
 0xa07   :  { %8266 = vmatpush3.msra.mxu0 %v4793_v0  ;;  %8305 = vmatpush3.msra.mxu1 %v4829_v16  ;;  %v7783_v50 = vadd.f32 %v7782_v61, %v7781_v45  ;;  %v4800_v0 = vld [vmem:[%s14041_s20 + $0x1290] sm:$0xff]  ;;  %v4835_v61 = vld [vmem:[%s14041_s20 + $0x13a8] sm:$0xff] }
 0xa08   :  { %8267 = vmatprep.subr.mxu0 %v4808_v19  ;;  %8306 = vmatprep.subr.mxu1 %v4844_v26  ;;  %v4836_v16 = vld [vmem:[%s14041_s20 + $0x13b0] sm:$0xff] }
 0xa09   :  { %8268 = vmatpush3.msra.mxu0 %v4792_v54  ;;  %8307 = vmatpush3.msra.mxu1 %v4828_v32  ;;  %v13408_v40 = vadd.f32 %v7783_v50, %v5555_v22  ;;  %v7784_v56 = vpop.f32.mrf.mxu1  ;;  %v4803_v22 = vld [vmem:[%s14041_s20 + $0x12a8] sm:$0xff]  ;;  %v4784_v45 = vld [vmem:[%s14041_s20 + $0x1210] sm:$0xff] }
 0xa0a   :  { %6453 = vmatmul.mubr.f32.gmra.mxu0 %v8975_v18  ;;  %6533 = vmatmul.mubr.f32.gmra.mxu1 %v8976_v36  ;;  %v4820_v19 = vld [vmem:[%s14041_s20 + $0x1330] sm:$0xff]  ;;  %v8984_v54 = vld [vmem:[#allocation3 + $0x150] sm:$0xff]  ;;  %v4834_v18 = vld [vmem:[%s14041_s20 + $0x13a0] sm:$0xff] }
 0xa0b   :  { %8269 = vmatprep.subr.mxu0 %v4807_v29  ;;  %8308 = vmatprep.subr.mxu1 %v4843_v12  ;;  %v7785_v15 = vpop.f32.mrf.mxu1  ;;  %v4799_v32 = vld [vmem:[%s14041_s20 + $0x1288] sm:$0xff] }
 0xa0c   :  { %6457 = vmatprep.mubr.f32.mxu0 %v8977_v5  ;;  %6537 = vmatprep.mubr.f32.mxu1 %v4106_v3  ;;  %v7786_v48 = vadd.f32 %v7785_v15, %v7784_v56  ;;  %v4783_v50 = vld [vmem:[%s14041_s20 + $0x1208] sm:$0xff]  ;;  %v4798_v56 = vld [vmem:[%s14041_s20 + $0x1280] sm:$0xff]  ;;  %v4877_v5 = vld [vmem:[%s14041_s20 + $0x14f8] sm:$0xff] }
 0xa0d   :  { %8270 = vmatpush3.msra.mxu0 %v4791_v27  ;;  %8309 = vmatpush3.msra.mxu1 %v4827_v44  ;;  %v4782_v44 = vld [vmem:[%s14041_s20 + $0x1200] sm:$0xff] }
 0xa0e   :  { %8271 = vmatprep.subr.mxu0 %v4806_v63  ;;  %8310 = vmatprep.subr.mxu1 %v4842_v20  ;;  %v13434_v39 = vadd.f32 %v7786_v48, %v5560_v1  ;;  %v4818_v3 = vld [vmem:[%s14041_s20 + $0x1320] sm:$0xff]  ;;  %v4833_v63 = vld [vmem:[%s14041_s20 + $0x1398] sm:$0xff] }
 0xa0f   :  { %8272 = vmatpush3.msra.mxu0 %v4790_v21  ;;  %8311 = vmatpush3.msra.mxu1 %v4826_v34  ;;  %v4817_v48 = vld [vmem:[%s14041_s20 + $0x1318] sm:$0xff] }
 0xa10   :  { %6458 = vmatmul.mubr.f32.gmra.mxu0 %v8978_v7  ;;  %6538 = vmatmul.mubr.f32.gmra.mxu1 %v4105_v47  ;;  %v4876_v47 = vld [vmem:[%s14041_s20 + $0x14f0] sm:$0xff] }
 0xa11   :  { %8273 = vmatprep.subr.mxu0 %v4805_v58  ;;  %8312 = vmatprep.subr.mxu1 %v4841_v49  ;;  %v8985_v58 = vld [vmem:[#allocation3 + $0x3d8] sm:$0xff] }
 0xa12   :  { %6542 = vmatprep.mubr.f32.mxu1 %v8979_v41  ;;  %8274 = vmatpush3.msra.mxu0 %v4789_v31  ;;  %v4832_v49 = vld [vmem:[%s14041_s20 + $0x1390] sm:$0xff] }
 0xa13   :  { %v7819_v14 = vpop.f32.mrf.mxu0  ;;  %6617 = vmatprep.mubr.f32.mxu0 %v8980_v38  ;;  %8313 = vmatpush3.msra.mxu1 %v4825_v35  ;;  %v8986_v35 = vld [vmem:[#allocation3 + $0x6e0] sm:$0xff] }
 0xa14   :  { %8275 = vmatprep.subr.mxu0 %v4804_v62  ;;  %8314 = vmatprep.subr.mxu1 %v4840_v46  ;;  %v4816_v62 = vld [vmem:[%s14041_s20 + $0x1310] sm:$0xff] }
 0xa15   :  { %v7820_v4 = vpop.f32.mrf.mxu0  ;;  %8276 = vmatpush3.msra.mxu0 %v4788_v52  ;;  %8315 = vmatpush3.msra.mxu1 %v4824_v28  ;;  %v4860_v46 = vld [vmem:[%s14041_s20 + $0x1470] sm:$0xff]  ;;  %v4831_v28 = vld [vmem:[%s14041_s20 + $0x1388] sm:$0xff] }
 0xa16   :  { %v7821_v17 = vadd.f32 %v7820_v4, %v7819_v14  ;;  %6543 = vmatmul.mubr.f32.gmra.mxu1 %v8981_v13  ;;  %8277 = vmatprep.subr.mxu0 %v4803_v22  ;;  %v4875_v14 = vld [vmem:[%s14041_s20 + $0x14e8] sm:$0xff]  ;;  %v4108_v13 = vld [vmem:[#allocation3 + $0x140] sm:$0xff] }
 0xa17   :  { %8316 = vmatprep.subr.mxu1 %v4839_v51  ;;  %6547 = vmatprep.mubr.f32.mxu1 %v8982_v43  ;;  %v4815_v51 = vld [vmem:[%s14041_s20 + $0x1308] sm:$0xff]  ;;  %v4858_v43 = vld [vmem:[%s14041_s20 + $0x1460] sm:$0xff] }
 0xa18   :  { %v5720_v11 = vadd.f32 %v7821_v17, %v13324_v23  ;;  %v7822_v8 = vpop.f32.mrf.mxu0  ;;  %8278 = vmatpush3.msra.mxu0 %v4787_v59  ;;  %8317 = vmatpush3.msra.mxu1 %v4823_v9  ;;  %v4821_v23 = vld [vmem:[%s14041_s20 + $0x1338] sm:$0xff]  ;;  %v4859_v4 = vld [vmem:[%s14041_s20 + $0x1468] sm:$0xff]  ;;  %v8987_v17 = vld [vmem:[#allocation3 + $0x488] sm:$0xff] }
 0xa19   :  { %8279 = vmatprep.subr.mxu0 %v4802_v30  ;;  %8318 = vmatprep.subr.mxu1 %v4838_v53  ;;  %v4874_v30 = vld [vmem:[%s14041_s20 + $0x14e0] sm:$0xff] }
 0xa1a   :  { %v7823_v25 = vpop.f32.mrf.mxu0  ;;  %8280 = vmatpush3.msra.mxu0 %v4786_v33  ;;  %8319 = vmatpush3.msra.mxu1 %v4822_v42  ;;  %v4814_v53 = vld [vmem:[%s14041_s20 + $0x1300] sm:$0xff] }
 0xa1b   :  { %v7824_v1 = vadd.f32 %v7823_v25, %v7822_v8  ;;  %6548 = vmatmul.mubr.f32.gmra.mxu1 %v8983_v6  ;;  %8281 = vmatprep.subr.mxu0 %v4801_v10  ;;  %v4873_v10 = vld [vmem:[%s14041_s20 + $0x14d8] sm:$0xff] }
 0xa1c   :  { %8320 = vmatprep.subr.mxu1 %v4837_v60  ;;  %8282 = vmatpush3.msra.mxu0 %v4785_v24  ;;  %v7825_v55 = vpop.f32.mrf.mxu0  ;;  %v7866_v37 = vpop.f32.mrf.mxu1  ;;  %v4909_v60 = vld [vmem:[%s14041_s20 + $0x15f8] sm:$0xff] }
 0xa1d   :  { %v5725_v26 = vadd.f32 %v7824_v1, %v13354_v2  ;;  %8321 = vmatpush3.msra.mxu1 %v4821_v23  ;;  %6707 = vmatprep.mubr.f32.mxu1 %v8984_v54  ;;  %v4819_v2 = vld [vmem:[%s14041_s20 + $0x1328] sm:$0xff]  ;;  %v4107_v24 = vld [vmem:[#allocation3 + $0x1c0] sm:$0xff] }
 0xa1e   :  { %8283 = vmatprep.subr.mxu0 %v4800_v0  ;;  %8322 = vmatprep.subr.mxu1 %v4836_v16  ;;  %v7826_v29 = vpop.f32.mrf.mxu0  ;;  %v7867_v12 = vpop.f32.mrf.mxu1  ;;  %v8988_v1 = vld [vmem:[#allocation3 + $0x3e0] sm:$0xff] }
 0xa1f   :  { %8284 = vmatpush3.msra.mxu0 %v4784_v45  ;;  %8323 = vmatpush3.msra.mxu1 %v4820_v19  ;;  %v7827_v36 = vadd.f32 %v7826_v29, %v7825_v55  ;;  %v7868_v27 = vadd.f32 %v7867_v12, %v7866_v37  ;;  %v4857_v6 = vld [vmem:[%s14041_s20 + $0x1458] sm:$0xff]  ;;  %v4908_v45 = vld [vmem:[%s14041_s20 + $0x15f0] sm:$0xff] }
 0xa20   :  { %8285 = vmatprep.subr.mxu0 %v4799_v32  ;;  %8324 = vmatprep.subr.mxu1 %v4835_v61  ;;  %v4893_v0 = vld [vmem:[%s14041_s20 + $0x1578] sm:$0xff]  ;;  %v8989_v19 = vld [vmem:[#allocation3 + $0x4b8] sm:$0xff]  ;;  %v4871_v61 = vld [vmem:[%s14041_s20 + $0x14c8] sm:$0xff] }
 0xa21   :  { %8286 = vmatpush3.msra.mxu0 %v4783_v50  ;;  %8325 = vmatpush3.msra.mxu1 %v4819_v2  ;;  %v13532_v20 = vadd.f32 %v7827_v36, %v13382_v57  ;;  %v13534_v15 = vadd.f32 %v7868_v27, %v5720_v11  ;;  %v4861_v57 = vld [vmem:[%s14041_s20 + $0x1478] sm:$0xff]  ;;  %v4856_v55 = vld [vmem:[%s14041_s20 + $0x1450] sm:$0xff]  ;;  %v4907_v50 = vld [vmem:[%s14041_s20 + $0x15e8] sm:$0xff] }
 0xa22   :  { %8287 = vmatprep.subr.mxu0 %v4798_v56  ;;  %8326 = vmatprep.subr.mxu1 %v4834_v18  ;;  %v7828_v21 = vpop.f32.mrf.mxu0  ;;  %v7869_v34 = vpop.f32.mrf.mxu1  ;;  %v4892_v37 = vld [vmem:[%s14041_s20 + $0x1570] sm:$0xff]  ;;  %v8991_v12 = vld [vmem:[#allocation3 + $0x660] sm:$0xff]  ;;  %v8992_v56 = vld [vmem:[#allocation3 + $0x408] sm:$0xff] }
 0xa23   :  { %8288 = vmatpush3.msra.mxu0 %v4782_v44  ;;  %8327 = vmatpush3.msra.mxu1 %v4818_v3  ;;  %v4855_v18 = vld [vmem:[%s14041_s20 + $0x1448] sm:$0xff]  ;;  %v4110_v27 = vld [vmem:[#allocation3 + $0x260] sm:$0xff]  ;;  %v4870_v44 = vld [vmem:[%s14041_s20 + $0x14c0] sm:$0xff] }
 0xa24   :  { %6618 = vmatmul.mubr.f32.vlgmr.msra.gmra.mxu0 %v8985_v58  ;;  %8328 = vmatprep.subr.mxu1 %v4833_v63  ;;  %v7829_v31 = vpop.f32.mrf.mxu0  ;;  %v7870_v7 = vpop.f32.mrf.mxu1  ;;  %v4891_v36 = vld [vmem:[%s14041_s20 + $0x1568] sm:$0xff]  ;;  %v4906_v3 = vld [vmem:[%s14041_s20 + $0x15e0] sm:$0xff] }
 0xa25   :  { %8351 = vmatprep.subr.mxu0 %v4877_v5  ;;  %6622 = vmatprep.mubr.f32.mxu0 %v8986_v35  ;;  %v7830_v41 = vadd.f32 %v7829_v31, %v7828_v21  ;;  %v7871_v52 = vadd.f32 %v7870_v7, %v7869_v34  ;;  %v4854_v5 = vld [vmem:[%s14041_s20 + $0x1440] sm:$0xff]  ;;  %v8994_v31 = vld [vmem:[#allocation3 + $0x2d8] sm:$0xff]  ;;  %v4889_v7 = vld [vmem:[%s14041_s20 + $0x1558] sm:$0xff] }
 0xa26   :  { %8329 = vmatpush3.msra.mxu1 %v4817_v48  ;;  %8352 = vmatpush3.msra.mxu0 %v4861_v57  ;;  %v4890_v21 = vld [vmem:[%s14041_s20 + $0x1560] sm:$0xff]  ;;  %v4869_v48 = vld [vmem:[%s14041_s20 + $0x14b8] sm:$0xff]  ;;  %v4868_v35 = vld [vmem:[%s14041_s20 + $0x14b0] sm:$0xff] }
 0xa27   :  { %8330 = vmatprep.subr.mxu1 %v4832_v49  ;;  %8353 = vmatprep.subr.mxu0 %v4876_v47  ;;  %v5735_v38 = vadd.f32 %v7830_v41, %v13408_v40  ;;  %v13564_v22 = vadd.f32 %v7871_v52, %v5725_v26  ;;  %v4830_v40 = vld [vmem:[%s14041_s20 + $0x1380] sm:$0xff]  ;;  %v4905_v57 = vld [vmem:[%s14041_s20 + $0x15d8] sm:$0xff]  ;;  %v4109_v49 = vld [vmem:[#allocation3 + $0x6b0] sm:$0xff] }
 0xa28   :  { %8331 = vmatpush3.msra.mxu1 %v4816_v62  ;;  %8354 = vmatpush3.msra.mxu0 %v4860_v46  ;;  %v7831_v59 = vpop.f32.mrf.mxu0  ;;  %v7872_v9 = vpop.f32.mrf.mxu1  ;;  %v8990_v26 = vld [vmem:[#allocation3 + $0x1a8] sm:$0xff]  ;;  %v4853_v47 = vld [vmem:[%s14041_s20 + $0x1438] sm:$0xff]  ;;  %v4904_v62 = vld [vmem:[%s14041_s20 + $0x15d0] sm:$0xff] }
 0xa29   :  { %6623 = vmatmul.mubr.f32.gmra.mxu0 %v8987_v17  ;;  %8332 = vmatprep.subr.mxu1 %v4831_v28  ;;  %v8995_v46 = vld [vmem:[#allocation3 + $0x5b0] sm:$0xff]  ;;  %v4852_v41 = vld [vmem:[%s14041_s20 + $0x1430] sm:$0xff] }
 0xa2a   :  { %8355 = vmatprep.subr.mxu0 %v4875_v14  ;;  %6627 = vmatprep.mubr.f32.mxu0 %v4108_v13  ;;  %v7832_v33 = vpop.f32.mrf.mxu0  ;;  %v7873_v42 = vpop.f32.mrf.mxu1  ;;  %v4888_v52 = vld [vmem:[%s14041_s20 + $0x1550] sm:$0xff]  ;;  %v8996_v14 = vld [vmem:[#allocation3 + $0x3a0] sm:$0xff]  ;;  %v8997_v13 = vld [vmem:[#allocation3 + $0x6f0] sm:$0xff] }
 0xa2b   :  { %8333 = vmatpush3.msra.mxu1 %v4815_v51  ;;  %8356 = vmatpush3.msra.mxu0 %v4859_v4  ;;  %v7833_v11 = vadd.f32 %v7832_v33, %v7831_v59  ;;  %v7874_v8 = vadd.f32 %v7873_v42, %v7872_v9  ;;  %v4903_v51 = vld [vmem:[%s14041_s20 + $0x15c8] sm:$0xff]  ;;  %v4886_v33 = vld [vmem:[%s14041_s20 + $0x1540] sm:$0xff] }
 0xa2c   :  { %8334 = vmatprep.subr.mxu1 %v4830_v40  ;;  %8357 = vmatprep.subr.mxu0 %v4874_v30  ;;  %v4851_v59 = vld [vmem:[%s14041_s20 + $0x1428] sm:$0xff]  ;;  %v4866_v40 = vld [vmem:[%s14041_s20 + $0x14a0] sm:$0xff] }
 0xa2d   :  { %8335 = vmatpush3.msra.mxu1 %v4814_v53  ;;  %8358 = vmatpush3.msra.mxu0 %v4858_v43  ;;  %v5740_v25 = vadd.f32 %v7833_v11, %v13434_v39  ;;  %v13592_v23 = vadd.f32 %v7874_v8, %v13532_v20  ;;  %v4872_v39 = vld [vmem:[%s14041_s20 + $0x14d0] sm:$0xff]  ;;  %v8993_v20 = vld [vmem:[#allocation3 + $0x5e0] sm:$0xff]  ;;  %v4887_v9 = vld [vmem:[%s14041_s20 + $0x1548] sm:$0xff] }
 0xa2e   :  { %6628 = vmatmul.mubr.f32.gmra.mxu0 %v4107_v24  ;;  %6708 = vmatmul.mubr.f32.vlgmr.msra.gmra.mxu1 %v8988_v1  ;;  %v7875_v16 = vpop.f32.mrf.mxu1  ;;  %v4902_v30 = vld [vmem:[%s14041_s20 + $0x15c0] sm:$0xff]  ;;  %v8998_v53 = vld [vmem:[#allocation3 + $0x340] sm:$0xff] }
 0xa2f   :  { %8359 = vmatprep.subr.mxu0 %v4873_v10  ;;  %8398 = vmatprep.subr.mxu1 %v4909_v60  ;;  %v4850_v43 = vld [vmem:[%s14041_s20 + $0x1420] sm:$0xff]  ;;  %v4865_v8 = vld [vmem:[%s14041_s20 + $0x1498] sm:$0xff] }
 0xa30   :  { %6632 = vmatprep.mubr.f32.mxu0 %v8989_v19  ;;  %6712 = vmatprep.mubr.f32.mxu1 %v8990_v26  ;;  %v7876_v54 = vpop.f32.mrf.mxu1  ;;  %v4901_v10 = vld [vmem:[%s14041_s20 + $0x15b8] sm:$0xff]  ;;  %v8999_v1 = vld [vmem:[#allocation3 + $0x348] sm:$0xff] }
 0xa31   :  { %8360 = vmatpush3.msra.mxu0 %v4857_v6  ;;  %8399 = vmatpush3.msra.mxu1 %v4893_v0  ;;  %v7877_v32 = vadd.f32 %v7876_v54, %v7875_v16  ;;  %v4849_v60 = vld [vmem:[%s14041_s20 + $0x1418] sm:$0xff]  ;;  %v4864_v6 = vld [vmem:[%s14041_s20 + $0x1490] sm:$0xff]  ;;  %v4899_v54 = vld [vmem:[%s14041_s20 + $0x15a8] sm:$0xff] }
 0xa32   :  { %8361 = vmatprep.subr.mxu0 %v4872_v39  ;;  %8400 = vmatprep.subr.mxu1 %v4908_v45  ;;  %v4900_v0 = vld [vmem:[%s14041_s20 + $0x15b0] sm:$0xff] }
 0xa33   :  { %8362 = vmatpush3.msra.mxu0 %v4856_v55  ;;  %8401 = vmatpush3.msra.mxu1 %v4892_v37  ;;  %v13618_v2 = vadd.f32 %v7877_v32, %v5735_v38  ;;  %v7878_v29 = vpop.f32.mrf.mxu1  ;;  %v4867_v38 = vld [vmem:[%s14041_s20 + $0x14a8] sm:$0xff]  ;;  %v4848_v16 = vld [vmem:[%s14041_s20 + $0x1410] sm:$0xff] }
 0xa34   :  { %6633 = vmatmul.mubr.f32.gmra.mxu0 %v8991_v12  ;;  %6713 = vmatmul.mubr.f32.gmra.mxu1 %v8992_v56  ;;  %v4884_v39 = vld [vmem:[%s14041_s20 + $0x1530] sm:$0xff]  ;;  %v9000_v55 = vld [vmem:[#allocation3 + $0x90] sm:$0xff]  ;;  %v4898_v12 = vld [vmem:[%s14041_s20 + $0x15a0] sm:$0xff] }
 0xa35   :  { %8363 = vmatprep.subr.mxu0 %v4871_v61  ;;  %8402 = vmatprep.subr.mxu1 %v4907_v50  ;;  %v7879_v63 = vpop.f32.mrf.mxu1  ;;  %v4863_v37 = vld [vmem:[%s14041_s20 + $0x1488] sm:$0xff] }
 0xa36   :  { %6637 = vmatprep.mubr.f32.mxu0 %v8993_v20  ;;  %6717 = vmatprep.mubr.f32.mxu1 %v4110_v27  ;;  %v7880_v34 = vadd.f32 %v7879_v63, %v7878_v29  ;;  %v4847_v32 = vld [vmem:[%s14041_s20 + $0x1408] sm:$0xff]  ;;  %v4862_v29 = vld [vmem:[%s14041_s20 + $0x1480] sm:$0xff] }
 0xa37   :  { %8364 = vmatpush3.msra.mxu0 %v4855_v18  ;;  %8403 = vmatpush3.msra.mxu1 %v4891_v36  ;;  %v4846_v36 = vld [vmem:[%s14041_s20 + $0x1400] sm:$0xff] }
 0xa38   :  { %8365 = vmatprep.subr.mxu0 %v4870_v44  ;;  %8404 = vmatprep.subr.mxu1 %v4906_v3  ;;  %v13644_v58 = vadd.f32 %v7880_v34, %v5740_v25  ;;  %v4882_v27 = vld [vmem:[%s14041_s20 + $0x1520] sm:$0xff]  ;;  %v4897_v44 = vld [vmem:[%s14041_s20 + $0x1598] sm:$0xff] }
 0xa39   :  { %8366 = vmatpush3.msra.mxu0 %v4854_v5  ;;  %8405 = vmatpush3.msra.mxu1 %v4890_v21  ;;  %v4881_v21 = vld [vmem:[%s14041_s20 + $0x1518] sm:$0xff] }
 0xa3a   :  { %6638 = vmatmul.mubr.f32.gmra.mxu0 %v8994_v31  ;;  %6718 = vmatmul.mubr.f32.gmra.mxu1 %v4109_v49  ;;  %v4925_v34 = vld [vmem:[%s14041_s20 + $0x1678] sm:$0xff]  ;;  %v9002_v31 = vld [vmem:[#allocation3 + $0x2f0] sm:$0xff] }
 0xa3b   :  { %8367 = vmatprep.subr.mxu0 %v4869_v48  ;;  %8406 = vmatprep.subr.mxu1 %v4905_v57  ;;  %v9001_v48 = vld [vmem:[#allocation3 + $0xc0] sm:$0xff] }
 0xa3c   :  { %6722 = vmatprep.mubr.f32.mxu1 %v8995_v46  ;;  %8368 = vmatpush3.msra.mxu0 %v4853_v47  ;;  %v7913_v28 = vpop.f32.mrf.mxu0  ;;  %v14206_v47 = vmov 0.0  }
 0xa3d   :  { %6797 = vmatprep.mubr.f32.mxu0 %v8996_v14  ;;  %8407 = vmatpush3.msra.mxu1 %v4889_v7  ;;  %v4880_v7 = vld [vmem:[%s14041_s20 + $0x1510] sm:$0xff]  ;;  %v4879_v14 = vld [vmem:[%s14041_s20 + $0x1508] sm:$0xff] }
 0xa3e   :  { %8369 = vmatprep.subr.mxu0 %v4868_v35  ;;  %8408 = vmatprep.subr.mxu1 %v4904_v62  ;;  %v7914_v4 = vpop.f32.mrf.mxu0  ;;  %v4924_v35 = vld [vmem:[%s14041_s20 + $0x1670] sm:$0xff] }
 0xa3f   :  { %8370 = vmatpush3.msra.mxu0 %v4852_v41  ;;  %8409 = vmatpush3.msra.mxu1 %v4888_v52  ;;  %v7915_v17 = vadd.f32 %v7914_v4, %v7913_v28  ;;  %v4895_v41 = vld [vmem:[%s14041_s20 + $0x1588] sm:$0xff] }
 0xa40   :  { %6723 = vmatmul.mubr.f32.gmra.mxu1 %v8997_v13  ;;  %8371 = vmatprep.subr.mxu0 %v4867_v38  ;;  %v4923_v38 = vld [vmem:[%s14041_s20 + $0x1668] sm:$0xff]  ;;  %v4922_v13 = vld [vmem:[%s14041_s20 + $0x1660] sm:$0xff] }
 0xa41   :  { %8410 = vmatprep.subr.mxu1 %v4903_v51  ;;  %6727 = vmatprep.mubr.f32.mxu1 %v8998_v53  ;;  %v5900_v42 = vadd.f32 %v7915_v17, %v13534_v15  ;;  %v7916_v11 = vpop.f32.mrf.mxu0  ;;  %v4885_v15 = vld [vmem:[%s14041_s20 + $0x1538] sm:$0xff]  ;;  %v4878_v17 = vld [vmem:[%s14041_s20 + $0x1500] sm:$0xff] }
 0xa42   :  { %8372 = vmatpush3.msra.mxu0 %v4851_v59  ;;  %8411 = vmatpush3.msra.mxu1 %v4887_v9  ;;  %v9003_v59 = vld [vmem:[#allocation3 + $0x8] sm:$0xff] }
 0xa43   :  { %8373 = vmatprep.subr.mxu0 %v4866_v40  ;;  %8412 = vmatprep.subr.mxu1 %v4902_v30  ;;  %v7917_v24 = vpop.f32.mrf.mxu0  ;;  %v4112_v9 = vld [vmem:[#allocation3 + $0x148] sm:$0xff] }
 0xa44   :  { %8374 = vmatpush3.msra.mxu0 %v4850_v43  ;;  %8413 = vmatpush3.msra.mxu1 %v4886_v33  ;;  %v7918_v25 = vadd.f32 %v7917_v24, %v7916_v11  ;;  %v4111_v33 = vld [vmem:[#allocation3 + $0x290] sm:$0xff]  ;;  %v9005_v24 = vld [vmem:[#allocation3 + $0x1e0] sm:$0xff] }
 0xa45   :  { %6728 = vmatmul.mubr.f32.gmra.mxu1 %v8999_v1  ;;  %8375 = vmatprep.subr.mxu0 %v4865_v8 }
 0xa46   :  { %8414 = vmatprep.subr.mxu1 %v4901_v10  ;;  %8376 = vmatpush3.msra.mxu0 %v4849_v60  ;;  %v5905_v45 = vadd.f32 %v7918_v25, %v13564_v22  ;;  %v7919_v19 = vpop.f32.mrf.mxu0  ;;  %v7960_v26 = vpop.f32.mrf.mxu1  ;;  %v4883_v22 = vld [vmem:[%s14041_s20 + $0x1528] sm:$0xff]  ;;  %v9006_v25 = vld [vmem:[#allocation3 + $0x4d8] sm:$0xff] }
 0xa47   :  { %8415 = vmatpush3.msra.mxu1 %v4885_v15  ;;  %6887 = vmatprep.mubr.f32.mxu1 %v9000_v55  ;;  %v9004_v10 = vld [vmem:[#allocation3 + $0x310] sm:$0xff]  ;;  %v4920_v15 = vld [vmem:[%s14041_s20 + $0x1650] sm:$0xff]  ;;  %v4918_v55 = vld [vmem:[%s14041_s20 + $0x1640] sm:$0xff] }
 0xa48   :  { %8377 = vmatprep.subr.mxu0 %v4864_v6  ;;  %8416 = vmatprep.subr.mxu1 %v4900_v0  ;;  %v7920_v61 = vpop.f32.mrf.mxu0  ;;  %v7961_v50 = vpop.f32.mrf.mxu1  ;;  %v9007_v6 = vld [vmem:[#allocation3 + $0x690] sm:$0xff] }
 0xa49   :  { %8378 = vmatpush3.msra.mxu0 %v4848_v16  ;;  %8417 = vmatpush3.msra.mxu1 %v4884_v39  ;;  %v7921_v56 = vadd.f32 %v7920_v61, %v7919_v19  ;;  %v7962_v18 = vadd.f32 %v7961_v50, %v7960_v26  ;;  %v4919_v0 = vld [vmem:[%s14041_s20 + $0x1648] sm:$0xff]  ;;  %v9008_v16 = vld [vmem:[#allocation3 + $0x288] sm:$0xff]  ;;  %v9009_v26 = vld [vmem:[#allocation3 + $0x538] sm:$0xff] }
 0xa4a   :  { %8379 = vmatprep.subr.mxu0 %v4863_v37  ;;  %8418 = vmatprep.subr.mxu1 %v4899_v54  ;;  %v4114_v39 = vld [vmem:[#allocation3 + $0x4c8] sm:$0xff]  ;;  %v4113_v37 = vld [vmem:[#allocation3 + $0x420] sm:$0xff] }
 0xa4b   :  { %8380 = vmatpush3.msra.mxu0 %v4847_v32  ;;  %8419 = vmatpush3.msra.mxu1 %v4883_v22  ;;  %v5910_v3 = vadd.f32 %v7921_v56, %v13592_v23  ;;  %v13742_v63 = vadd.f32 %v7962_v18, %v5900_v42  ;;  %v4896_v23 = vld [vmem:[%s14041_s20 + $0x1590] sm:$0xff]  ;;  %v4921_v42 = vld [vmem:[%s14041_s20 + $0x1658] sm:$0xff]  ;;  %v9011_v50 = vld [vmem:[#allocation3 + $0x3c8] sm:$0xff] }
 0xa4c   :  { %8381 = vmatprep.subr.mxu0 %v4862_v29  ;;  %8420 = vmatprep.subr.mxu1 %v4898_v12  ;;  %v7922_v20 = vpop.f32.mrf.mxu0  ;;  %v7963_v5 = vpop.f32.mrf.mxu1  ;;  %v4917_v32 = vld [vmem:[%s14041_s20 + $0x1638] sm:$0xff]  ;;  %v4916_v29 = vld [vmem:[%s14041_s20 + $0x1630] sm:$0xff]  ;;  %v4915_v18 = vld [vmem:[%s14041_s20 + $0x1628] sm:$0xff] }
 0xa4d   :  { %8382 = vmatpush3.msra.mxu0 %v4846_v36  ;;  %8421 = vmatpush3.msra.mxu1 %v4882_v27  ;;  %v9010_v61 = vld [vmem:[#allocation3 + $0x4a0] sm:$0xff]  ;;  %v9012_v56 = vld [vmem:[#allocation3 + $0xb8] sm:$0xff]  ;;  %v9013_v36 = vld [vmem:[#allocation3 + $0x208] sm:$0xff] }
 0xa4e   :  { %6798 = vmatmul.mubr.f32.vlgmr.msra.gmra.mxu0 %v9001_v48  ;;  %8422 = vmatprep.subr.mxu1 %v4897_v44  ;;  %v7923_v57 = vpop.f32.mrf.mxu0  ;;  %v7964_v49 = vpop.f32.mrf.mxu1  ;;  %v4914_v27 = vld [vmem:[%s14041_s20 + $0x1620] sm:$0xff] }
 0xa4f   :  { %8816 = vmatprep.subr.mxu0 %v14206_v47  ;;  %6802 = vmatprep.mubr.f32.mxu0 %v9002_v31  ;;  %v7924_v62 = vadd.f32 %v7923_v57, %v7922_v20  ;;  %v7965_v46 = vadd.f32 %v7964_v49, %v7963_v5  ;;  %v4913_v20 = vld [vmem:[%s14041_s20 + $0x1618] sm:$0xff]  ;;  %v4911_v57 = vld [vmem:[%s14041_s20 + $0x1608] sm:$0xff]  ;;  %v4910_v31 = vld [vmem:[%s14041_s20 + $0x1600] sm:$0xff] }
 0xa50   :  { %8423 = vmatpush3.msra.mxu1 %v4881_v21  ;;  %8817 = vmatpush3.msra.mxu0 %v4925_v34  ;;  %v4912_v34 = vld [vmem:[%s14041_s20 + $0x1610] sm:$0xff] }
 0xa51   :  { %8424 = vmatprep.subr.mxu1 %v4896_v23  ;;  %8818 = vmatprep.subr.mxu0 %v14206_v47  ;;  %v5915_v52 = vadd.f32 %v7924_v62, %v13618_v2  ;;  %v13765_v28 = vadd.f32 %v7965_v46, %v5905_v45  ;;  %v4894_v2 = vld [vmem:[%s14041_s20 + $0x1580] sm:$0xff]  ;;  %v9015_v46 = vld [vmem:[#allocation3 + $0x520] sm:$0xff]  ;;  %s9043_s20 = smov [#allocation4]  }
 0xa52   :  { %8425 = vmatpush3.msra.mxu1 %v4880_v7  ;;  %8819 = vmatpush3.msra.mxu0 %v4924_v35  ;;  %v7925_v51 = vpop.f32.mrf.mxu0  ;;  %v7966_v4 = vpop.f32.mrf.mxu1  ;;  %s7014_s2 = sshll.u32 %s9043_s20, 4  ;;  %s7015_s2 = int_to_ptr.vmem [resolvable:$true] %s7014_s2 }
 0xa53   :  { %6803 = vmatmul.mubr.f32.gmra.mxu0 %v9003_v59  ;;  %8426 = vmatprep.subr.mxu1 %v4895_v41  ;;  %v9016_v59 = vld [vmem:[#allocation3 + $0x448] sm:$0xff]  ;;  %s9019_s27 = scalar_lea.vmem %s7015_s2, 640  ;;  %p9024_p1 = scmp.lt.s32.totalorder %s7015_s2, %s7015_s2 }
 0xa54   :  { %8820 = vmatprep.subr.mxu0 %v14206_v47  ;;  %6807 = vmatprep.mubr.f32.mxu0 %v4112_v9  ;;  %v7926_v40 = vpop.f32.mrf.mxu0  ;;  %v7967_v30 = vpop.f32.mrf.mxu1  ;;  %p9020_p0 = scmp.ne.s32.totalorder %s7015_s2, %s9019_s27  ;;  %p9025_p2 = scmp.lt.s32.totalorder %s9019_s27, %s9019_s27 }
 0xa55   :  { %8427 = vmatpush3.msra.mxu1 %v4879_v14  ;;  %8821 = vmatpush3.msra.mxu0 %v4923_v38  ;;  %v7927_v53 = vadd.f32 %v7926_v40, %v7925_v51  ;;  %v7968_v43 = vadd.f32 %v7967_v30, %v7966_v4 }
 0xa56   :  { %8428 = vmatprep.subr.mxu1 %v4894_v2  ;;  %8822 = vmatprep.subr.mxu0 %v14206_v47  ;;  %p9026_p3 = por %p9025_p2, %p9024_p1 }
 0xa57   :  { %8429 = vmatpush3.msra.mxu1 %v4878_v17  ;;  %8823 = vmatpush3.msra.mxu0 %v4922_v13  ;;  %v5920_v11 = vadd.f32 %v7927_v53, %v13644_v58  ;;  %v13788_v8 = vadd.f32 %v7968_v43, %v5910_v3  ;;  %v9014_v3 = vld [vmem:[#allocation3 + $0x2a0] sm:$0xff]  ;;  %v4115_v13 = vld [vmem:[#allocation3 + $0x4a8] sm:$0xff] }
 0xa58   :  { %6808 = vmatmul.mubr.f32.gmra.mxu0 %v4111_v33  ;;  %6888 = vmatmul.mubr.f32.vlgmr.msra.gmra.mxu1 %v9004_v10  ;;  %v7969_v60 = vpop.f32.mrf.mxu1  ;;  %p9027_p4 = pnand %p9026_p3, %p9020_p0 }
 0xa59   :  { %8824 = vmatprep.subr.mxu0 %v14206_v47  ;;  %6812 = vmatprep.mubr.f32.mxu0 %v9005_v24 }
 0xa5a   :  { %6892 = vmatprep.mubr.f32.mxu1 %v9006_v25  ;;  %8825 = vmatpush3.msra.mxu0 %v4921_v42  ;;  %v7970_v1 = vpop.f32.mrf.mxu1 }
 0xa5b   :  { %8826 = vmatprep.subr.mxu0 %v14206_v47  ;;  %v7971_v58 = vadd.f32 %v7970_v1, %v7969_v60  ;;  %v9018_v1 = vld [vmem:[#allocation3 + $0x398] sm:$0xff] }
 0xa5c   :  { %8827 = vmatpush3.msra.mxu0 %v4920_v15  ;;  %6893 = vmatmul.mubr.f32.gmra.mxu1 %v9007_v6 }
 0xa5d   :  { %6813 = vmatmul.mubr.f32.gmra.mxu0 %v9008_v16  ;;  %8828 = vmatprep.subr.mxu0 %v14206_v47  ;;  %v13799_v45 = vadd.f32 %v7971_v58, %v5915_v52  ;;  %v7972_v19 = vpop.f32.mrf.mxu1 }
 0xa5e   :  { %6817 = vmatprep.mubr.f32.mxu0 %v9009_v26  ;;  %6897 = vmatprep.mubr.f32.mxu1 %v4114_v39 }
 0xa5f   :  { %8829 = vmatpush3.msra.mxu0 %v4919_v0  ;;  %v7973_v54 = vpop.f32.mrf.mxu1 }
 0xa60   :  { %8830 = vmatprep.subr.mxu0 %v14206_v47  ;;  %6898 = vmatmul.mubr.f32.gmra.mxu1 %v4113_v37  ;;  %v7974_v22 = vadd.f32 %v7973_v54, %v7972_v19 }
 0xa61   :  { %8831 = vmatpush3.msra.mxu0 %v4918_v55  ;;  %6902 = vmatprep.mubr.f32.mxu1 %v9010_v61 }
 0xa62   :  { %6818 = vmatmul.mubr.f32.gmra.mxu0 %v9011_v50  ;;  %8832 = vmatprep.subr.mxu0 %v14206_v47  ;;  %v13812_v12 = vadd.f32 %v7974_v22, %v5920_v11  ;;  %v9017_v11 = vld [vmem:[#allocation3 + $0x68] sm:$0xff] }
 0xa63   :  { %8833 = vmatpush3.msra.mxu0 %v4917_v32  ;;  %8848 = vmatprep.mubr.msk.f32.mxu0 %vm9042_vm0, %v14206_v47 }
 0xa64   :  { %8834 = vmatprep.subr.mxu0 %v14206_v47  ;;  %6903 = vmatmul.mubr.f32.gmra.mxu1 %v9012_v56 }
 0xa65   :  { %8835 = vmatpush3.msra.mxu0 %v4916_v29  ;;  %6907 = vmatprep.mubr.f32.mxu1 %v9013_v36 }
 0xa66   :  { %8836 = vmatprep.subr.mxu0 %v14206_v47  ;;  %v8007_v44 = vpop.f32.mrf.mxu0 }
 0xa67   :  { %8837 = vmatpush3.msra.mxu0 %v4915_v18 }
 0xa68   :  { %8838 = vmatprep.subr.mxu0 %v14206_v47  ;;  %6908 = vmatmul.mubr.f32.gmra.mxu1 %v9014_v3  ;;  %v8008_v5 = vpop.f32.mrf.mxu0 }
 0xa69   :  { %8839 = vmatpush3.msra.mxu0 %v4914_v27  ;;  %v8009_v21 = vadd.f32 %v8008_v5, %v8007_v44 }
 0xa6a   :  { %8840 = vmatprep.subr.mxu0 %v14206_v47 }
 0xa6b   :  { %8841 = vmatpush3.msra.mxu0 %v4913_v20  ;;  %v6080_v48 = vadd.f32 %v8009_v21, %v13742_v63  ;;  %v8010_v23 = vpop.f32.mrf.mxu0 }
 0xa6c   :  { %8842 = vmatprep.subr.mxu0 %v14206_v47 }
 0xa6d   :  { %8843 = vmatpush3.msra.mxu0 %v4912_v34  ;;  %v8011_v49 = vpop.f32.mrf.mxu0 }
 0xa6e   :  { %8844 = vmatprep.subr.mxu0 %v14206_v47  ;;  %v8012_v7 = vadd.f32 %v8011_v49, %v8010_v23 }
 0xa6f   :  { %8845 = vmatpush3.msra.mxu0 %v4911_v57 }
 0xa70   :  { %8846 = vmatprep.subr.mxu0 %v14206_v47  ;;  %v6085_v63 = vadd.f32 %v8012_v7, %v13765_v28  ;;  %v8013_v35 = vpop.f32.mrf.mxu0  ;;  %v8054_v62 = vpop.f32.mrf.mxu1 }
 0xa71   :  { %8847 = vmatpush3.msra.mxu0 %v4910_v31 }
 0xa72   :  { %8849 = vmatmul.mubr.f32.vlgmr.msra.gmra.mxu0 %v9015_v46  ;;  %v8014_v41 = vpop.f32.mrf.mxu0  ;;  %v8055_v52 = vpop.f32.mrf.mxu1 }
 0xa73   :  { %8851 = vmatprep.mubr.msk.f32.mxu0 %vm9042_vm0, %v14206_v47  ;;  %v8015_v14 = vadd.f32 %v8014_v41, %v8013_v35  ;;  %v8056_v38 = vadd.f32 %v8055_v52, %v8054_v62 }
 0xa75   :  { %v6090_v51 = vadd.f32 %v8015_v14, %v13788_v8  ;;  %v13846_v4 = vadd.f32 %v8056_v38, %v6080_v48 }
 0xa76   :  { %8852 = vmatmul.mubr.f32.gmra.mxu0 %v9016_v59  ;;  %v8016_v9 = vpop.f32.mrf.mxu0  ;;  %v8057_v28 = vpop.f32.mrf.mxu1 }
 0xa77   :  { %8854 = vmatprep.mubr.msk.f32.mxu0 %vm9042_vm0, %v14206_v47 }
 0xa78   :  { %v8017_v2 = vpop.f32.mrf.mxu0  ;;  %v8058_v17 = vpop.f32.mrf.mxu1 }
 0xa79   :  { %v8018_v40 = vadd.f32 %v8017_v2, %v8016_v9  ;;  %v8059_v30 = vadd.f32 %v8058_v17, %v8057_v28 }
 0xa7a   :  { %8855 = vmatmul.mubr.f32.gmra.mxu0 %v4115_v13 }
 0xa7b   :  { %8857 = vmatprep.mubr.msk.f32.mxu0 %vm9042_vm0, %v14206_v47  ;;  %v6095_v53 = vadd.f32 %v8018_v40, %v13799_v45  ;;  %v13853_v43 = vadd.f32 %v8059_v30, %v6085_v63 }
 0xa7c   :  { %v8019_v33 = vpop.f32.mrf.mxu0  ;;  %v8060_v42 = vpop.f32.mrf.mxu1 }
 0xa7e   :  { %8858 = vmatmul.mubr.f32.gmra.mxu0 %v9017_v11  ;;  %v8020_v8 = vpop.f32.mrf.mxu0  ;;  %v8061_v10 = vpop.f32.mrf.mxu1 }
 0xa7f   :  { %8860 = vmatprep.mubr.msk.f32.mxu0 %vm9042_vm0, %v14206_v47  ;;  %v8021_v60 = vadd.f32 %v8020_v8, %v8019_v33  ;;  %v8062_v24 = vadd.f32 %v8061_v10, %v8060_v42 }
 0xa81   :  { %v6100_v15 = vadd.f32 %v8021_v60, %v13812_v12  ;;  %v13858_v25 = vadd.f32 %v8062_v24, %v6090_v51 }
 0xa82   :  { %8861 = vmatmul.mubr.f32.gmra.mxu0 %v9018_v1  ;;  %v8063_v58 = vpop.f32.mrf.mxu1 }
 0xa84   :  { %v8064_v6 = vpop.f32.mrf.mxu1 }
 0xa85   :  { %v8065_v0 = vadd.f32 %v8064_v6, %v8063_v58 }
 0xa87   :  { %v13860_v16 = vadd.f32 %v8065_v0, %v6095_v53  ;;  %v8066_v39 = vpop.f32.mrf.mxu1 }
 0xa89   :  { %v8067_v45 = vpop.f32.mrf.mxu1 }
 0xa8a   :  { %v8068_v19 = vadd.f32 %v8067_v45, %v8066_v39 }
 0xa8c   :  { %v13862_v26 = vadd.f32 %v8068_v19, %v6100_v15 }
 0xa90   :  { %v13864_v55 = vpop.f32.mrf.mxu0 }
 0xa92   :  { %v13866_v47 = vpop.f32.mrf.mxu0 }
 0xa95   :  { %v13868_v37 = vpop.f32.mrf.mxu0 }
 0xa97   :  { %v13872_v32 = vpop.f32.mrf.mxu0 }
 0xa9a   :  { %v13870_v54 = vpop.f32.mrf.mxu1  ;;  %v13876_v61 = vpop.f32.mrf.mxu0 }
 0xa9c   :  { %v13874_v22 = vpop.f32.mrf.mxu1  ;;  %v13880_v29 = vpop.f32.mrf.mxu0 }
 0xaa0   :  { %v13878_v50 = vpop.f32.mrf.mxu1  ;;  %v13884_v56 = vpop.f32.mrf.mxu0 }
 0xaa2   :  { %v13882_v12 = vpop.f32.mrf.mxu1  ;;  %v13888_v36 = vpop.f32.mrf.mxu0 }
 0xaa6   :  { %v13886_v18 = vpop.f32.mrf.mxu1  ;;  %v13892_v44 = vpop.f32.mrf.mxu0 }
 0xaa8   :  { %v13890_v27 = vpop.f32.mrf.mxu1  ;;  %v13896_v20 = vpop.f32.mrf.mxu0 }
 0xaac   :  { %v13894_v3 = vpop.f32.mrf.mxu1 }
 0xaae   :  { %v13898_v5 = vpop.f32.mrf.mxu1 }
 0xab1   :  { %v13900_v34 = vpop.f32.mrf.mxu1 }
 0xab2   :  { %14207 = vst [vmem:[#allocation10_spill] sm:$0xff] %v13900_v34 }
 0xab3   :  { %v13902_v23 = vpop.f32.mrf.mxu1 }
 0xab4   :  { %14208 = vst [vmem:[#allocation11_spill] sm:$0xff] %v13902_v23 }
 0xaba   :  { %v8195_v21 = vpop.f32.mrf.mxu0 }
 0xabc   :  { %v8196_v48 = vpop.f32.mrf.mxu0 }
 0xabf   :  { %v8198_v57 = vpop.f32.mrf.mxu0 }
 0xac1   :  { %v8199_v31 = vpop.f32.mrf.mxu0 }
 0xac4   :  { %v8242_v49 = vpop.f32.mrf.mxu1  ;;  %v13904_v63 = vpop.f32.mrf.mxu0 }
 0xac6   :  { %v8243_v7 = vpop.f32.mrf.mxu1  ;;  %v13906_v62 = vpop.f32.mrf.mxu0 }
 0xaca   :  { %v8245_v35 = vpop.f32.mrf.mxu1  ;;  %v13908_v41 = vpop.f32.mrf.mxu0 }
 0xacc   :  { %v8246_v46 = vpop.f32.mrf.mxu1  ;;  %v13912_v14 = vpop.f32.mrf.mxu0 }
 0xad0   :  { %v13910_v52 = vpop.f32.mrf.mxu1  ;;  %v13916_v51 = vpop.f32.mrf.mxu0 }
 0xad1   :  { %14209 = vst [vmem:[#allocation12_spill] sm:$0xff] %v13916_v51 }
 0xad2   :  { %v13914_v38 = vpop.f32.mrf.mxu1  ;;  %v13920_v9 = vpop.f32.mrf.mxu0 }
 0xad3   :  { %14211 = vst [vmem:[#allocation14_spill] sm:$0xff] %v13920_v9 }
 0xad6   :  { %v13918_v59 = vpop.f32.mrf.mxu1 }
 0xad7   :  { %14210 = vst [vmem:[#allocation13_spill] sm:$0xff] %v13918_v59  ;;  %v8197_v59 = vadd.f32 %v8196_v48, %v8195_v21 }
 0xad8   :  { %v13922_v28 = vpop.f32.mrf.mxu1 }
 0xad9   :  { %14212 = vst [vmem:[#allocation15_spill] sm:$0xff] %v13922_v28 }
 0xadb   :  { %v13924_v17 = vpop.f32.mrf.mxu1 }
 0xadc   :  { %14213 = vst [vmem:[#allocation16_spill] sm:$0xff] %v13924_v17 }
 0xadd   :  { %v13926_v40 = vpop.f32.mrf.mxu1 }
 0xade   :  { %14214 = vst [vmem:[#allocation17_spill] sm:$0xff] %v13926_v40 }
 0xae4   :  { %v8289_v2 = vpop.f32.mrf.mxu0 }
 0xae6   :  { %v8290_v13 = vpop.f32.mrf.mxu0 }
 0xae9   :  { %v8292_v30 = vpop.f32.mrf.mxu0 }
 0xaeb   :  { %v8293_v33 = vpop.f32.mrf.mxu0 }
 0xaee   :  { %v8336_v53 = vpop.f32.mrf.mxu1  ;;  %v13928_v11 = vpop.f32.mrf.mxu0 }
 0xaf0   :  { %v8337_v42 = vpop.f32.mrf.mxu1  ;;  %v13930_v10 = vpop.f32.mrf.mxu0 }
 0xaf1   :  { %14215 = vst [vmem:[#allocation18_spill] sm:$0xff] %v13930_v10  ;;  %v8244_v10 = vadd.f32 %v8243_v7, %v8242_v49 }
 0xaf4   :  { %v8339_v8 = vpop.f32.mrf.mxu1  ;;  %v13932_v24 = vpop.f32.mrf.mxu0 }
 0xaf5   :  { %14216 = vst [vmem:[#allocation19_spill] sm:$0xff] %v13932_v24 }
 0xaf6   :  { %v8340_v60 = vpop.f32.mrf.mxu1  ;;  %v13936_v1 = vpop.f32.mrf.mxu0 }
 0xaf7   :  { %14218 = vst [vmem:[#allocation21_spill] sm:$0xff] %v13936_v1 }
 0xafa   :  { %v13934_v15 = vpop.f32.mrf.mxu1  ;;  %v13940_v6 = vpop.f32.mrf.mxu0 }
 0xafb   :  { %14217 = vst [vmem:[#allocation20_spill] sm:$0xff] %v13934_v15  ;;  %14220 = vst [vmem:[#allocation23_spill] sm:$0xff] %v13940_v6  ;;  %v8103_v6 = vadd.f32 %v13866_v47, %v13864_v55  ;;  %v8109_v55 = vadd.f32 %v13880_v29, %v13876_v61  ;;  %v8112_v61 = vadd.f32 %v13888_v36, %v13884_v56 }
 0xafc   :  { %v13938_v58 = vpop.f32.mrf.mxu1  ;;  %v13944_v39 = vpop.f32.mrf.mxu0  ;;  %v8203_v29 = vadd.f32 %v13906_v62, %v13904_v63 }
 0xafd   :  { %14219 = vst [vmem:[#allocation22_spill] sm:$0xff] %v13938_v58  ;;  %14222 = vst [vmem:[#allocation25_spill] sm:$0xff] %v13944_v39  ;;  %v8150_v39 = vadd.f32 %v13874_v22, %v13870_v54 }
 0xb00   :  { %v13942_v0 = vpop.f32.mrf.mxu1 }
 0xb01   :  { %14221 = vst [vmem:[#allocation24_spill] sm:$0xff] %v13942_v0 }
 0xb02   :  { %v13946_v45 = vpop.f32.mrf.mxu1 }
 0xb03   :  { %14223 = vst [vmem:[#allocation30_spill] sm:$0xff] %v13946_v45 }
 0xb05   :  { %v13948_v17 = vpop.f32.mrf.mxu1 }
 0xb06   :  { %14224 = vst [vmem:[#allocation26_spill] sm:$0xff] %v13948_v17  ;;  %v6260_v17 = vadd.f32 %v8103_v6, %v13846_v4  ;;  %v8291_v4 = vadd.f32 %v8290_v13, %v8289_v2  ;;  %v8338_v6 = vadd.f32 %v8337_v42, %v8336_v53  ;;  %v14229_v13 = vld [vmem:[#allocation10_spill] sm:$0xff] }
 0xb07   :  { %v13950_v24 = vpop.f32.mrf.mxu1 }
 0xb08   :  { %14225 = vst [vmem:[#allocation31_spill] sm:$0xff] %v13950_v24  ;;  %v8106_v24 = vadd.f32 %v13872_v32, %v13868_v37  ;;  %v6350_v34 = vadd.f32 %v8150_v39, %v6260_v17  ;;  %v8156_v37 = vadd.f32 %v13890_v27, %v13886_v18  ;;  %v8247_v17 = vadd.f32 %v8246_v46, %v8245_v35 }
 0xb09   :  { %v8294_v27 = vadd.f32 %v8293_v33, %v8292_v30  ;;  %v8341_v35 = vadd.f32 %v8340_v60, %v8339_v8  ;;  %v8206_v46 = vadd.f32 %v13912_v14, %v13908_v41  ;;  %v14231_v33 = vld [vmem:[#allocation13_spill] sm:$0xff]  ;;  %v14234_v60 = vld [vmem:[#allocation22_spill] sm:$0xff] }
 0xb0a   :  { %v6265_v54 = vadd.f32 %v8106_v24, %v13853_v43  ;;  %v6440_v22 = vadd.f32 %v8197_v59, %v6350_v34  ;;  %v8115_v43 = vadd.f32 %v13896_v20, %v13892_v44  ;;  %v6275_v20 = vadd.f32 %v8112_v61, %v13860_v16  ;;  %v14232_v16 = vld [vmem:[#allocation15_spill] sm:$0xff] }
 0xb0b   :  { %v8253_v42 = vadd.f32 %v14232_v16, %v14231_v33 }
 0xb0c   :  { %v6530_v48 = vadd.f32 %v8244_v10, %v6440_v22  ;;  %v6280_v63 = vadd.f32 %v8115_v43, %v13862_v26  ;;  %v14233_v10 = vld [vmem:[#allocation20_spill] sm:$0xff] }
 0xb0d   :  { %v8344_v41 = vadd.f32 %v14234_v60, %v14233_v10 }
 0xb0e   :  { %v8383_v19 = vpop.f32.mrf.mxu0  ;;  %v6620_v18 = vadd.f32 %v8291_v4, %v6530_v48 }
 0xb10   :  { %v8384_v40 = vpop.f32.mrf.mxu0  ;;  %v6710_v36 = vadd.f32 %v8338_v6, %v6620_v18 }
 0xb13   :  { %v8386_v9 = vpop.f32.mrf.mxu0 }
 0xb15   :  { %v8387_v51 = vpop.f32.mrf.mxu0 }
 0xb18   :  { %v8430_v15 = vpop.f32.mrf.mxu1  ;;  %v13952_v28 = vpop.f32.mrf.mxu0 }
 0xb19   :  { %14226 = vst [vmem:[#allocation34_spill] sm:$0xff] %v13952_v28  ;;  %v8153_v28 = vadd.f32 %v13882_v12, %v13878_v50  ;;  %v6270_v50 = vadd.f32 %v8109_v55, %v13858_v25  ;;  %v8250_v25 = vadd.f32 %v13914_v38, %v13910_v52  ;;  %v8388_v52 = vadd.f32 %v8387_v51, %v8386_v9  ;;  %v14237_v51 = vld [vmem:[#allocation19_spill] sm:$0xff]  ;;  %v14238_v9 = vld [vmem:[#allocation21_spill] sm:$0xff] }
 0xb1a   :  { %v8431_v1 = vpop.f32.mrf.mxu1  ;;  %v13956_v0 = vpop.f32.mrf.mxu0  ;;  %v8300_v39 = vadd.f32 %v14238_v9, %v14237_v51 }
 0xb1b   :  { %14227 = vst [vmem:[#allocation27_spill] sm:$0xff] %v13956_v0  ;;  %v8200_v0 = vadd.f32 %v8199_v31, %v8198_v57  ;;  %v6355_v21 = vadd.f32 %v8153_v28, %v6265_v54  ;;  %v8385_v57 = vadd.f32 %v8384_v40, %v8383_v19  ;;  %v6360_v49 = vadd.f32 %v8156_v37, %v6270_v50  ;;  %v14230_v40 = vld [vmem:[#allocation11_spill] sm:$0xff] }
 0xb1c   :  { %v8433_v58 = vpop.f32.mrf.mxu1  ;;  %v8159_v31 = vadd.f32 %v13898_v5, %v13894_v3  ;;  %v8432_v44 = vadd.f32 %v8431_v1, %v8430_v15  ;;  %v14228_v3 = vld [vmem:[#allocation18_spill] sm:$0xff]  ;;  %v8162_v30 = vadd.f32 %v14230_v40, %v14229_v13  ;;  %v14235_v1 = vld [vmem:[#allocation12_spill] sm:$0xff] }
 0xb1d   :  { %v13963_v23 = vpop.f32.mrf.mxu0  ;;  %v6445_v34 = vadd.f32 %v8200_v0, %v6355_v21  ;;  %v6450_v62 = vadd.f32 %v8203_v29, %v6360_v49  ;;  %v8297_v5 = vadd.f32 %v14228_v3, %v13928_v11  ;;  %v6800_v2 = vadd.f32 %v8385_v57, %v6710_v36  ;;  %v14236_v11 = vld [vmem:[#allocation14_spill] sm:$0xff]  ;;  %v14243_v29 = vld [vmem:[#allocation24_spill] sm:$0xff]  ;;  %v14245_v36 = vld [vmem:[#allocation23_spill] sm:$0xff] }
 0xb1e   :  { %v8434_v45 = vpop.f32.mrf.mxu1  ;;  %v6365_v38 = vadd.f32 %v8159_v31, %v6275_v20  ;;  %v8209_v0 = vadd.f32 %v14236_v11, %v14235_v1 }
 0xb1f   :  { %v13972_v32 = vpop.f32.mrf.mxu0  ;;  %v6535_v56 = vadd.f32 %v8247_v17, %v6445_v34  ;;  %v6540_v53 = vadd.f32 %v8250_v25, %v6450_v62  ;;  %v8435_v14 = vadd.f32 %v8434_v45, %v8433_v58  ;;  %v6890_v24 = vadd.f32 %v8432_v44, %v6800_v2  ;;  %v14241_v58 = vld [vmem:[#allocation16_spill] sm:$0xff]  ;;  %v14242_v45 = vld [vmem:[#allocation17_spill] sm:$0xff]  ;;  %v14244_v34 = vld [vmem:[#allocation30_spill] sm:$0xff] }
 0xb20   :  { %v8436_v47 = vpop.f32.mrf.mxu1  ;;  %v6455_v15 = vadd.f32 %v8206_v46, %v6365_v38  ;;  %v14239_v4 = vld [vmem:[#allocation34_spill] sm:$0xff]  ;;  %v6370_v17 = vadd.f32 %v8162_v30, %v6280_v63  ;;  %v8256_v50 = vadd.f32 %v14242_v45, %v14241_v58  ;;  %v8347_v18 = vadd.f32 %v14244_v34, %v14243_v29 }
 0xb21   :  { %v6625_v28 = vadd.f32 %v8294_v27, %v6535_v56  ;;  %v6630_v54 = vadd.f32 %v8297_v5, %v6540_v53  ;;  %v8394_v63 = vadd.f32 %v13972_v32, %v13963_v23  ;;  %v14247_v5 = vld [vmem:[#allocation26_spill] sm:$0xff] }
 0xb22   :  { %v8437_v12 = vpop.f32.mrf.mxu1  ;;  %v8395_v7 = vpop.f32.mrf.mxu0  ;;  %v14240_v37 = vld [vmem:[#allocation27_spill] sm:$0xff]  ;;  %v6545_v6 = vadd.f32 %v8253_v42, %v6455_v15  ;;  %v6460_v49 = vadd.f32 %v8209_v0, %v6370_v17 }
 0xb23   :  { %v6715_v8 = vadd.f32 %v8341_v35, %v6625_v28  ;;  %v8391_v21 = vadd.f32 %v14240_v37, %v14239_v4  ;;  %v6720_v43 = vadd.f32 %v8344_v41, %v6630_v54  ;;  %v8438_v27 = vadd.f32 %v8437_v12, %v8436_v47  ;;  %v14246_v35 = vld [vmem:[#allocation25_spill] sm:$0xff]  ;;  %v14248_v47 = vld [vmem:[#allocation31_spill] sm:$0xff] }
 0xb24   :  { %v8439_v59 = vpop.f32.mrf.mxu1  ;;  %v8396_v26 = vpop.f32.mrf.mxu0  ;;  %v6635_v31 = vadd.f32 %v8300_v39, %v6545_v6  ;;  %v8303_v44 = vadd.f32 %v14246_v35, %v14245_v36  ;;  %v6550_v46 = vadd.f32 %v8256_v50, %v6460_v49  ;;  %v8350_v12 = vadd.f32 %v14248_v47, %v14247_v5 }
 0xb25   :  { %v6805_v22 = vadd.f32 %v8388_v52, %v6715_v8  ;;  %v6810_v20 = vadd.f32 %v8391_v21, %v6720_v43  ;;  %v8397_v53 = vadd.f32 %v8396_v26, %v8395_v7 }
 0xb26   :  { %v8440_v19 = vpop.f32.mrf.mxu1  ;;  %v6725_v3 = vadd.f32 %v8347_v18, %v6635_v31  ;;  %v6640_v40 = vadd.f32 %v8303_v44, %v6550_v46 }
 0xb27   :  { %v6895_v57 = vadd.f32 %v8435_v14, %v6805_v22  ;;  %v8441_v2 = vadd.f32 %v8440_v19, %v8439_v59  ;;  %v6900_v52 = vadd.f32 %v8438_v27, %v6810_v20 }
 0xb28   :  { %v8442_v25 = vpop.f32.mrf.mxu1  ;;  %v6815_v30 = vadd.f32 %v8394_v63, %v6725_v3  ;;  %v6730_v42 = vadd.f32 %v8350_v12, %v6640_v40 }
 0xb2a   :  { %v8443_v38 = vpop.f32.mrf.mxu1  ;;  %v6905_v32 = vadd.f32 %v8441_v2, %v6815_v30  ;;  %v6820_v10 = vadd.f32 %v8397_v53, %v6730_v42 }
 0xb2b   :  { %v8444_v23 = vadd.f32 %v8443_v38, %v8442_v25 }
 0xb2d   :  { %v6910_v59 = vadd.f32 %v8444_v23, %v6820_v10 }
 0xb32   :  { %v6979_v55 = vpop.f32.mrf.mxu0 }
 0xb33   :  { %v6980_v48 = vadd.f32 %v6979_v55, %v6890_v24 }
 0xb34   :  { %v8850_v61 = vpop.f32.mrf.mxu0 }
 0xb35   :  { %7004 = vst.msk [vmem:[#allocation4] sm:$0xff] %vm7003_vm12, %v6980_v48 }
 0xb36   :  { %v6984_v56 = vpop.f32.mrf.mxu0 }
 0xb37   :  { %v6985_v62 = vadd.f32 %v6984_v56, %v6895_v57 }
 0xb38   :  { %v8853_v28 = vpop.f32.mrf.mxu0 }
 0xb39   :  { %7005 = vst.msk [vmem:[#allocation4 + $0x8] sm:$0xff] %vm7003_vm12, %v6985_v62 }
 0xb3a   :  { %v6989_v13 = vpop.f32.mrf.mxu0 }
 0xb3b   :  { %v6990_v33 = vadd.f32 %v6989_v13, %v6900_v52 }
 0xb3c   :  { %v8856_v16 = vpop.f32.mrf.mxu0 }
 0xb3d   :  { %7006 = vst.msk [vmem:[#allocation4 + $0x10] sm:$0xff] %vm7003_vm12, %v6990_v33 }
 0xb3e   :  { %v6994_v8 = vpop.f32.mrf.mxu0 }
 0xb3f   :  { %v6995_v60 = vadd.f32 %v6994_v8, %v6905_v32 }
 0xb40   :  { %v8859_v41 = vpop.f32.mrf.mxu0 }
 0xb41   :  { %7007 = vst.msk [vmem:[#allocation4 + $0x18] sm:$0xff] %vm7003_vm12, %v6995_v60 }
 0xb42   :  { %v6999_v14 = vpop.f32.mrf.mxu0 }
 0xb43   :  { %v7000_v24 = vadd.f32 %v6999_v14, %v6910_v59 }
 0xb44   :  { %v8862_v7 = vpop.f32.mrf.mxu0 }
 0xb45   :  { %7008 = vst.msk [vmem:[#allocation4 + $0x20] sm:$0xff] %vm7003_vm12, %v7000_v24 }
 0xb46   :  { %9030 = shalt.err (!%p9027_p4)
}
 0xb47   :  { %s9044_s3 = smov 128   ;;  %s9045_s28 = smov 8  }
 0xb48   :  { %7020 = dma.vmem_to_hbm [thread:$0]  %s7015_s2, 640, %s14043_s22, [#allocation5], %s9044_s3, %s9044_s3, %s9045_s28  }
 0xb49   :  { %9039 = dma.done.wait [#allocation5], 640  }
 0xb4a   :  { %9040 = vsyncadd [#allocation5], 4294966656 }
 0xb4b   :  { %7024 = vsyncpa [#allocation5], 1 }

</bundles_post_ra>
